<compile_context>
chip_gen: v7x
topology: tpu7x:2x2x1
jax: 0.10.0
libtpu: 0.0.40
codegen_flags: <defaults>
</compile_context>

<pallas_src>
import functools

import jax
import jax.numpy as jnp
from jax import lax
from jax.experimental import pallas as pl
from jax.experimental.pallas import tpu as pltpu

NEG_SLOPE = 0.2                  # LeakyReLU(0.2)
EPS = 1e-5                       # BatchNorm eps
VMEM_LIMIT = 48 * 1024 * 1024    # <= v7x 64 MiB physical - headroom; > v5e/v6e defaults


def _round_up(x, m):
    return ((x + m - 1) // m) * m


# ------------------------------- Pallas kernel --------------------------------

def _conv4x4_kernel(*refs, num_splits, taps, r_out, has_bias, apply_act, want_stats):
    """4x4 conv as 16 shifted (R, Cin) @ (Cin, Cp) MXU matmuls (in-kernel im2col).

    refs = [x_flat_0 .. x_flat_{S-1}, w_taps, (bias), (row_mask), y, (sum, sumsq)]
      x_flat_s : (R_flat, Cin) bf16   flattened padded image (+ zero tail)
      w_taps   : (16, Cin, Cp) bf16   per-tap weight matrices
      bias     : (1, Cp)       f32    (only layers with bias)
      row_mask : (R_out, 1)    f32    1.0 for valid output rows (BN-stat layers)
      y        : (R_out, Cp)   bf16/f32
      sum/sq   : (1, Cp)       f32    per-image BN partial statistics
    Each tap is a static contiguous row-slice of the VMEM-resident flat image, so
    the 16x-expanded patch matrix never exists in HBM (or VMEM).
    """
    idx = 0
    x_refs = refs[idx:idx + num_splits]; idx += num_splits
    w_ref = refs[idx]; idx += 1
    b_ref = None
    if has_bias:
        b_ref = refs[idx]; idx += 1
    mask_ref = None
    if want_stats:
        mask_ref = refs[idx]; idx += 1
    y_ref = refs[idx]; idx += 1
    if want_stats:
        sum_ref, sq_ref = refs[idx], refs[idx + 1]

    acc = None
    for tap_idx, (s, start) in enumerate(taps):
        slab = x_refs[s][start:start + r_out, :]              # static slice of VMEM block
        part = jnp.dot(slab, w_ref[tap_idx],
                       preferred_element_type=jnp.float32)    # bf16 MXU, f32 accumulate
        acc = part if acc is None else acc + part             # first tap: direct store

    y = acc + b_ref[...] if has_bias else acc
    if apply_act:
        y = jnp.where(y >= 0, y, NEG_SLOPE * y)
    y_ref[...] = y.astype(y_ref.dtype)

    if want_stats:
        m = mask_ref[...]                                      # exact: garbage rows masked
        sum_ref[...] = jnp.sum(acc * m, axis=0, keepdims=True)
        sq_ref[...] = jnp.sum(acc * acc * m, axis=0, keepdims=True)


# ------------------------------ kernel wrapper ---------------------------------

def _conv4x4(flats, taps, r_out, w_taps, bias, row_mask, *,
             apply_act, want_stats, out_dtype):
    n, r_flat, cin = flats[0].shape
    cp = w_taps.shape[-1]

    args = list(flats)
    in_specs = [pl.BlockSpec((None, r_flat, cin), lambda b: (b, 0, 0)) for _ in flats]
    args.append(w_taps)                                        # full-extent: W stays VMEM-resident
    in_specs.append(pl.BlockSpec((16, cin, cp), lambda b: (0, 0, 0)))
    has_bias = bias is not None
    if has_bias:
        args.append(bias)
        in_specs.append(pl.BlockSpec((1, cp), lambda b: (0, 0)))
    if want_stats:
        args.append(row_mask)
        in_specs.append(pl.BlockSpec((r_out, 1), lambda b: (0, 0)))

    y_shape = jax.ShapeDtypeStruct((n, r_out, cp), out_dtype)
    y_spec = pl.BlockSpec((None, r_out, cp), lambda b: (b, 0, 0))
    if want_stats:
        out_shape = (y_shape,
                     jax.ShapeDtypeStruct((n, 1, cp), jnp.float32),
                     jax.ShapeDtypeStruct((n, 1, cp), jnp.float32))
        out_specs = (y_spec,
                     pl.BlockSpec((None, 1, cp), lambda b: (b, 0, 0)),
                     pl.BlockSpec((None, 1, cp), lambda b: (b, 0, 0)))
    else:
        out_shape, out_specs = y_shape, y_spec

    kernel = functools.partial(
        _conv4x4_kernel, num_splits=len(flats), taps=tuple(taps), r_out=r_out,
        has_bias=has_bias, apply_act=apply_act, want_stats=want_stats)

    res = pl.pallas_call(
        kernel,
        out_shape=out_shape,
        grid=(n,),
        in_specs=in_specs,
        out_specs=out_specs,
        compiler_params=pltpu.CompilerParams(
            dimension_semantics=("parallel",),          # batch across v7x TensorCores
            vmem_limit_bytes=VMEM_LIMIT),
    )(*args)
    if want_stats:
        return res[0], (res[1], res[2])
    return res, None


# ------------------------- XLA glue (layout / padding) -------------------------

def _prep_stride1(a):
    """NHWC post-activation image -> flattened padded image for in-kernel im2col.

    Output row stride == input row stride == w_row, so tap (i, j) of the
    4x4 / stride-1 conv is the contiguous flat range [i*w_row + j, ... + r_out).
    Garbage columns (ow >= valid OW) are masked from BN stats / sliced later."""
    n, h, w, c = a.shape
    oh, ow = h - 1, w - 1
    w_row = w + 2
    ap = jnp.pad(a, ((0, 0), (1, 1), (1, 1), (0, 0)))
    flat = ap.reshape(n, (h + 2) * w_row, c)
    taps = [(0, i * w_row + j) for i in range(4) for j in range(4)]
    r_out = oh * w_row
    r_flat = _round_up(max(s for _, s in taps) + r_out, 8)
    flat = jnp.pad(flat, ((0, 0), (0, r_flat - flat.shape[1]), (0, 0)))
    return [flat], taps, r_out, w_row, oh, ow


def _prep_stride2(a):
    """Stride-2 variant: 4-way spatial parity split (one activation-sized XLA pass)
    so every tap is still a contiguous row-slice of one flattened split."""
    n, h, w, c = a.shape
    assert h % 2 == 0 and w % 2 == 0, "stride-2 layers expect even spatial dims"
    oh, ow = h // 2, w // 2
    w_row = ow + 1
    ap = jnp.pad(a, ((0, 0), (1, 1), (1, 1), (0, 0)))
    r_out = oh * w_row
    flats = []
    for p in range(2):
        for q in range(2):
            sp = ap[:, p::2, q::2, :]                           # (N, oh+1, ow+1, C)
            flats.append(sp.reshape(n, (oh + 1) * w_row, c))
    taps = [((i % 2) * 2 + (j % 2), (i // 2) * w_row + (j // 2))
            for i in range(4) for j in range(4)]
    r_flat = _round_up(max(s for _, s in taps) + r_out, 8)
    flats = [jnp.pad(f, ((0, 0), (0, r_flat - f.shape[1]), (0, 0))) for f in flats]
    return flats, taps, r_out, w_row, oh, ow


def _weight_taps(w, cp):
    """PyTorch (Cout, Cin, 4, 4) -> (16, Cin, Cp) bf16, tap index = 4*i + j."""
    cout, cin = w.shape[0], w.shape[1]
    wt = jnp.transpose(w, (2, 3, 1, 0)).reshape(16, cin, cout)
    if cp != cout:
        wt = jnp.pad(wt, ((0, 0), (0, 0), (0, cp - cout)))
    return wt.astype(jnp.bfloat16)


# --------------------------------- forward -------------------------------------

def nlayer_discriminator_forward(x_nchw, params, configs):
    n = x_nchw.shape[0]
    a = jnp.transpose(x_nchw, (0, 2, 3, 1)).astype(jnp.bfloat16)     # NCHW->NHWC once
    for cfg, p in zip(configs, params):
        w = p["w"]
        cout = w.shape[0]
        prep = _prep_stride2 if cfg["stride"] == 2 else _prep_stride1
        flats, taps, r_out, w_row, oh, ow = prep(a)

        is_head = (cfg["kind"] == "conv" and not cfg["act"])
        cp = 128 if is_head else cout        # head: pad to 128 lanes -> dense stores
        w_taps = _weight_taps(w, cp)

        if cfg["kind"] == "conv":
            bias = p["b"].astype(jnp.float32).reshape(1, cout)
            if cp != cout:
                bias = jnp.pad(bias, ((0, 0), (0, cp - cout)))
            y, _ = _conv4x4(flats, taps, r_out, w_taps, bias, None,
                            apply_act=cfg["act"], want_stats=False,
                            out_dtype=jnp.float32 if is_head else jnp.bfloat16)
            a = y.reshape(n, oh, w_row, cp)[:, :, :ow, :cout]
        else:
            # conv (no bias) + fused per-image BN partial statistics
            row_mask = (jnp.arange(r_out) % w_row < ow).astype(jnp.float32)
            row_mask = row_mask.reshape(r_out, 1)
            y, (s_p, q_p) = _conv4x4(flats, taps, r_out, w_taps, None, row_mask,
                                     apply_act=False, want_stats=True,
                                     out_dtype=jnp.bfloat16)
            cnt = n * oh * ow
            mean = jnp.sum(s_p, axis=(0, 1)) / cnt
            # E[x^2] - mean^2 (biased, clamped).  TODO(synk): shifted sum-of-squares
            # if |mean| >> std regimes ever matter for this discriminator.
            var = jnp.maximum(jnp.sum(q_p, axis=(0, 1)) / cnt - mean * mean, 0.0)
            scale = p["gamma"].astype(jnp.float32) * lax.rsqrt(var + EPS)
            shift = p["beta"].astype(jnp.float32) - mean * scale
            y = y.reshape(n, oh, w_row, cout)[:, :, :ow, :].astype(jnp.float32)
            # BN affine + LeakyReLU folded into the (XLA-fused) slice/pad/split that
            # feeds the next layer's in-kernel patch gather -> no standalone pass.
            y = y * scale + shift
            a = jnp.where(y >= 0, y, NEG_SLOPE * y).astype(jnp.bfloat16)
    return jnp.transpose(a, (0, 3, 1, 2))          # NHWC -> NCHW once (f32 head output)


# ----------------------------- model parameters --------------------------------

def init_params(key, input_nc, ndf, n_layers=3):
    """Deterministic synthetic parameters matching NLayerDiscriminator's shapes
    (norm_layer=BatchNorm2d => middle convs have no bias)."""
    keys = iter(jax.random.split(key, 4 * (n_layers + 3)))

    def conv_w(k, cout, cin):
        return jax.random.normal(k, (cout, cin, 4, 4), jnp.float32) * 0.05

    configs, params = [], []
    configs.append(dict(kind="conv", stride=2, act=True))
    params.append(dict(w=conv_w(next(keys), ndf, input_nc),
                       b=jax.random.normal(next(keys), (ndf,), jnp.float32) * 0.05))
    nf_mult = 1
    for nn_ in range(1, n_layers):
        nf_prev, nf_mult = nf_mult, min(2 ** nn_, 8)
        cin, cout = ndf * nf_prev, ndf * nf_mult
        configs.append(dict(kind="conv_bn", stride=2, act=True))
        params.append(dict(
            w=conv_w(next(keys), cout, cin),
            gamma=1.0 + 0.1 * jax.random.normal(next(keys), (cout,), jnp.float32),
            beta=0.1 * jax.random.normal(next(keys), (cout,), jnp.float32)))
    nf_prev, nf_mult = nf_mult, min(2 ** n_layers, 8)
    cin, cout = ndf * nf_prev, ndf * nf_mult
    configs.append(dict(kind="conv_bn", stride=1, act=True))
    params.append(dict(
        w=conv_w(next(keys), cout, cin),
        gamma=1.0 + 0.1 * jax.random.normal(next(keys), (cout,), jnp.float32),
        beta=0.1 * jax.random.normal(next(keys), (cout,), jnp.float32)))
    configs.append(dict(kind="conv", stride=1, act=False))
    params.append(dict(w=conv_w(next(keys), 1, cout),
                       b=jax.random.normal(next(keys), (1,), jnp.float32) * 0.05))
    return tuple(configs), params


# ----------------------------- pure-JAX reference -------------------------------

def reference_forward(x, params, configs):
    y = x
    for cfg, p in zip(configs, params):
        y = lax.conv_general_dilated(
            y, p["w"], window_strides=(cfg["stride"],) * 2, padding=((1, 1), (1, 1)),
            dimension_numbers=("NCHW", "OIHW", "NCHW"),
            precision=lax.Precision.HIGHEST)
        if cfg["kind"] == "conv":
            y = y + p["b"].reshape(1, -1, 1, 1)
            if cfg["act"]:
                y = jnp.where(y >= 0, y, NEG_SLOPE * y)
        else:
            mean = jnp.mean(y, axis=(0, 2, 3), keepdims=True)
            var = jnp.mean(jnp.square(y - mean), axis=(0, 2, 3), keepdims=True)
            y = (y - mean) * lax.rsqrt(var + EPS)
            y = y * p["gamma"].reshape(1, -1, 1, 1) + p["beta"].reshape(1, -1, 1, 1)
            y = jnp.where(y >= 0, y, NEG_SLOPE * y)
    return y


# ----------------------------------- main ---------------------------------------

if __name__ == "__main__":
    key = jax.random.PRNGKey(0)
    k_x, k_p = jax.random.split(key)

    # small but architecture-consistent shapes (spatial >= 32 so the final
    # stride-1 convs still have positive output size)
    N, input_nc, H, W = 2, 4, 32, 32
    ndf, n_layers = 16, 3

    x = jax.random.normal(k_x, (N, input_nc, H, W), jnp.float32)
    configs, params = init_params(k_p, input_nc, ndf, n_layers)

    fwd = jax.jit(functools.partial(nlayer_discriminator_forward, configs=configs))
    out = jax.block_until_ready(fwd(x, params))

    # PatchGAN head: 1-channel patch logits
    assert out.shape == (N, 1, 2, 2), out.shape
    assert bool(jnp.all(jnp.isfinite(out))), "non-finite output"

    # correctness vs. an f32 XLA reference (bf16 activations/weights => loose tolerance)
    ref = reference_forward(x, params, configs)
    err = float(jnp.max(jnp.abs(out - ref)) / (jnp.max(jnp.abs(ref)) + 1e-6))
    assert err < 0.2, f"mismatch vs reference: normalized max err {err:.4f}"

    print("KERNEL_OK")
</pallas_src>

<mosaic_0001>
module attributes {stable_mosaic.version = 11 : i64} {
  func.func @_conv4x4_kernel(%arg0: i32, %arg1: memref<1x296x4xbf16, #tpu.memory_space<vmem>>, %arg2: memref<1x296x4xbf16, #tpu.memory_space<vmem>>, %arg3: memref<1x296x4xbf16, #tpu.memory_space<vmem>>, %arg4: memref<1x296x4xbf16, #tpu.memory_space<vmem>>, %arg5: memref<16x4x16xbf16, #tpu.memory_space<vmem>>, %arg6: memref<1x16xf32, #tpu.memory_space<vmem>>, %arg7: memref<1x272x16xbf16, #tpu.memory_space<vmem>>) attributes {dimension_semantics = [#tpu.dimension_semantics<parallel>], iteration_bounds = array<i64: 2>, scalar_prefetch = 0 : i64, scratch_operands = 0 : i64, tpu.core_type = #tpu.core_type<tc>, window_params = [{transform_indices = @transform_0, window_bounds = array<i64: 1, 296, 4>}, {transform_indices = @transform_1, window_bounds = array<i64: 1, 296, 4>}, {transform_indices = @transform_2, window_bounds = array<i64: 1, 296, 4>}, {transform_indices = @transform_3, window_bounds = array<i64: 1, 296, 4>}, {pipeline_mode = #tpu.pipeline_mode<synchronous>, transform_indices = @transform_4, window_bounds = array<i64: 16, 4, 16>}, {pipeline_mode = #tpu.pipeline_mode<synchronous>, transform_indices = @transform_5, window_bounds = array<i64: 1, 16>}, {transform_indices = @transform_6, window_bounds = array<i64: 1, 272, 16>}]} {
    %c0 = arith.constant 0 : index
    %c0_0 = arith.constant 0 : index
    %c0_1 = arith.constant 0 : index
    %0 = vector.load %arg1[%c0, %c0_0, %c0_1] : memref<1x296x4xbf16, #tpu.memory_space<vmem>>, vector<1x272x4xbf16>
    %1 = vector.shape_cast %0 : vector<1x272x4xbf16> to vector<272x4xbf16>
    %c0_2 = arith.constant 0 : index
    %c0_3 = arith.constant 0 : index
    %c0_4 = arith.constant 0 : index
    %2 = vector.load %arg5[%c0_2, %c0_3, %c0_4] : memref<16x4x16xbf16, #tpu.memory_space<vmem>>, vector<1x4x16xbf16>
    %3 = vector.shape_cast %2 : vector<1x4x16xbf16> to vector<4x16xbf16>
    %cst = arith.constant dense<0.000000e+00> : vector<272x16xf32>
    %4 = tpu.matmul %1, %3, %cst {dimension_numbers = #tpu.dot_dimension_numbers<[1], [0], [0], [1], [0, 0, 1, 1], [], []>} : vector<272x4xbf16>, vector<4x16xbf16>, vector<272x16xf32> -> vector<272x16xf32>
    %c0_5 = arith.constant 0 : index
    %c0_6 = arith.constant 0 : index
    %c0_7 = arith.constant 0 : index
    %5 = vector.load %arg2[%c0_5, %c0_6, %c0_7] : memref<1x296x4xbf16, #tpu.memory_space<vmem>>, vector<1x272x4xbf16>
    %6 = vector.shape_cast %5 : vector<1x272x4xbf16> to vector<272x4xbf16>
    %c1 = arith.constant 1 : index
    %c0_8 = arith.constant 0 : index
    %c0_9 = arith.constant 0 : index
    %7 = vector.load %arg5[%c1, %c0_8, %c0_9] : memref<16x4x16xbf16, #tpu.memory_space<vmem>>, vector<1x4x16xbf16>
    %8 = vector.shape_cast %7 : vector<1x4x16xbf16> to vector<4x16xbf16>
    %cst_10 = arith.constant dense<0.000000e+00> : vector<272x16xf32>
    %9 = tpu.matmul %6, %8, %cst_10 {dimension_numbers = #tpu.dot_dimension_numbers<[1], [0], [0], [1], [0, 0, 1, 1], [], []>} : vector<272x4xbf16>, vector<4x16xbf16>, vector<272x16xf32> -> vector<272x16xf32>
    %10 = arith.addf %4, %9 : vector<272x16xf32>
    %c0_11 = arith.constant 0 : index
    %c1_12 = arith.constant 1 : index
    %c0_13 = arith.constant 0 : index
    %11 = vector.load %arg1[%c0_11, %c1_12, %c0_13] : memref<1x296x4xbf16, #tpu.memory_space<vmem>>, vector<1x272x4xbf16>
    %12 = vector.shape_cast %11 : vector<1x272x4xbf16> to vector<272x4xbf16>
    %c2 = arith.constant 2 : index
    %c0_14 = arith.constant 0 : index
    %c0_15 = arith.constant 0 : index
    %13 = vector.load %arg5[%c2, %c0_14, %c0_15] : memref<16x4x16xbf16, #tpu.memory_space<vmem>>, vector<1x4x16xbf16>
    %14 = vector.shape_cast %13 : vector<1x4x16xbf16> to vector<4x16xbf16>
    %cst_16 = arith.constant dense<0.000000e+00> : vector<272x16xf32>
    %15 = tpu.matmul %12, %14, %cst_16 {dimension_numbers = #tpu.dot_dimension_numbers<[1], [0], [0], [1], [0, 0, 1, 1], [], []>} : vector<272x4xbf16>, vector<4x16xbf16>, vector<272x16xf32> -> vector<272x16xf32>
    %16 = arith.addf %10, %15 : vector<272x16xf32>
    %c0_17 = arith.constant 0 : index
    %c1_18 = arith.constant 1 : index
    %c0_19 = arith.constant 0 : index
    %17 = vector.load %arg2[%c0_17, %c1_18, %c0_19] : memref<1x296x4xbf16, #tpu.memory_space<vmem>>, vector<1x272x4xbf16>
    %18 = vector.shape_cast %17 : vector<1x272x4xbf16> to vector<272x4xbf16>
    %c3 = arith.constant 3 : index
    %c0_20 = arith.constant 0 : index
    %c0_21 = arith.constant 0 : index
    %19 = vector.load %arg5[%c3, %c0_20, %c0_21] : memref<16x4x16xbf16, #tpu.memory_space<vmem>>, vector<1x4x16xbf16>
    %20 = vector.shape_cast %19 : vector<1x4x16xbf16> to vector<4x16xbf16>
    %cst_22 = arith.constant dense<0.000000e+00> : vector<272x16xf32>
    %21 = tpu.matmul %18, %20, %cst_22 {dimension_numbers = #tpu.dot_dimension_numbers<[1], [0], [0], [1], [0, 0, 1, 1], [], []>} : vector<272x4xbf16>, vector<4x16xbf16>, vector<272x16xf32> -> vector<272x16xf32>
    %22 = arith.addf %16, %21 : vector<272x16xf32>
    %c0_23 = arith.constant 0 : index
    %c0_24 = arith.constant 0 : index
    %c0_25 = arith.constant 0 : index
    %23 = vector.load %arg3[%c0_23, %c0_24, %c0_25] : memref<1x296x4xbf16, #tpu.memory_space<vmem>>, vector<1x272x4xbf16>
    %24 = vector.shape_cast %23 : vector<1x272x4xbf16> to vector<272x4xbf16>
    %c4 = arith.constant 4 : index
    %c0_26 = arith.constant 0 : index
    %c0_27 = arith.constant 0 : index
    %25 = vector.load %arg5[%c4, %c0_26, %c0_27] : memref<16x4x16xbf16, #tpu.memory_space<vmem>>, vector<1x4x16xbf16>
    %26 = vector.shape_cast %25 : vector<1x4x16xbf16> to vector<4x16xbf16>
    %cst_28 = arith.constant dense<0.000000e+00> : vector<272x16xf32>
    %27 = tpu.matmul %24, %26, %cst_28 {dimension_numbers = #tpu.dot_dimension_numbers<[1], [0], [0], [1], [0, 0, 1, 1], [], []>} : vector<272x4xbf16>, vector<4x16xbf16>, vector<272x16xf32> -> vector<272x16xf32>
    %28 = arith.addf %22, %27 : vector<272x16xf32>
    %c0_29 = arith.constant 0 : index
    %c0_30 = arith.constant 0 : index
    %c0_31 = arith.constant 0 : index
    %29 = vector.load %arg4[%c0_29, %c0_30, %c0_31] : memref<1x296x4xbf16, #tpu.memory_space<vmem>>, vector<1x272x4xbf16>
    %30 = vector.shape_cast %29 : vector<1x272x4xbf16> to vector<272x4xbf16>
    %c5 = arith.constant 5 : index
    %c0_32 = arith.constant 0 : index
    %c0_33 = arith.constant 0 : index
    %31 = vector.load %arg5[%c5, %c0_32, %c0_33] : memref<16x4x16xbf16, #tpu.memory_space<vmem>>, vector<1x4x16xbf16>
    %32 = vector.shape_cast %31 : vector<1x4x16xbf16> to vector<4x16xbf16>
    %cst_34 = arith.constant dense<0.000000e+00> : vector<272x16xf32>
    %33 = tpu.matmul %30, %32, %cst_34 {dimension_numbers = #tpu.dot_dimension_numbers<[1], [0], [0], [1], [0, 0, 1, 1], [], []>} : vector<272x4xbf16>, vector<4x16xbf16>, vector<272x16xf32> -> vector<272x16xf32>
    %34 = arith.addf %28, %33 : vector<272x16xf32>
    %c0_35 = arith.constant 0 : index
    %c1_36 = arith.constant 1 : index
    %c0_37 = arith.constant 0 : index
    %35 = vector.load %arg3[%c0_35, %c1_36, %c0_37] : memref<1x296x4xbf16, #tpu.memory_space<vmem>>, vector<1x272x4xbf16>
    %36 = vector.shape_cast %35 : vector<1x272x4xbf16> to vector<272x4xbf16>
    %c6 = arith.constant 6 : index
    %c0_38 = arith.constant 0 : index
    %c0_39 = arith.constant 0 : index
    %37 = vector.load %arg5[%c6, %c0_38, %c0_39] : memref<16x4x16xbf16, #tpu.memory_space<vmem>>, vector<1x4x16xbf16>
    %38 = vector.shape_cast %37 : vector<1x4x16xbf16> to vector<4x16xbf16>
    %cst_40 = arith.constant dense<0.000000e+00> : vector<272x16xf32>
    %39 = tpu.matmul %36, %38, %cst_40 {dimension_numbers = #tpu.dot_dimension_numbers<[1], [0], [0], [1], [0, 0, 1, 1], [], []>} : vector<272x4xbf16>, vector<4x16xbf16>, vector<272x16xf32> -> vector<272x16xf32>
    %40 = arith.addf %34, %39 : vector<272x16xf32>
    %c0_41 = arith.constant 0 : index
    %c1_42 = arith.constant 1 : index
    %c0_43 = arith.constant 0 : index
    %41 = vector.load %arg4[%c0_41, %c1_42, %c0_43] : memref<1x296x4xbf16, #tpu.memory_space<vmem>>, vector<1x272x4xbf16>
    %42 = vector.shape_cast %41 : vector<1x272x4xbf16> to vector<272x4xbf16>
    %c7 = arith.constant 7 : index
    %c0_44 = arith.constant 0 : index
    %c0_45 = arith.constant 0 : index
    %43 = vector.load %arg5[%c7, %c0_44, %c0_45] : memref<16x4x16xbf16, #tpu.memory_space<vmem>>, vector<1x4x16xbf16>
    %44 = vector.shape_cast %43 : vector<1x4x16xbf16> to vector<4x16xbf16>
    %cst_46 = arith.constant dense<0.000000e+00> : vector<272x16xf32>
    %45 = tpu.matmul %42, %44, %cst_46 {dimension_numbers = #tpu.dot_dimension_numbers<[1], [0], [0], [1], [0, 0, 1, 1], [], []>} : vector<272x4xbf16>, vector<4x16xbf16>, vector<272x16xf32> -> vector<272x16xf32>
    %46 = arith.addf %40, %45 : vector<272x16xf32>
    %c0_47 = arith.constant 0 : index
    %c17 = arith.constant 17 : index
    %c0_48 = arith.constant 0 : index
    %47 = vector.load %arg1[%c0_47, %c17, %c0_48] : memref<1x296x4xbf16, #tpu.memory_space<vmem>>, vector<1x272x4xbf16>
    %48 = vector.shape_cast %47 : vector<1x272x4xbf16> to vector<272x4xbf16>
    %c8 = arith.constant 8 : index
    %c0_49 = arith.constant 0 : index
    %c0_50 = arith.constant 0 : index
    %49 = vector.load %arg5[%c8, %c0_49, %c0_50] : memref<16x4x16xbf16, #tpu.memory_space<vmem>>, vector<1x4x16xbf16>
    %50 = vector.shape_cast %49 : vector<1x4x16xbf16> to vector<4x16xbf16>
    %cst_51 = arith.constant dense<0.000000e+00> : vector<272x16xf32>
    %51 = tpu.matmul %48, %50, %cst_51 {dimension_numbers = #tpu.dot_dimension_numbers<[1], [0], [0], [1], [0, 0, 1, 1], [], []>} : vector<272x4xbf16>, vector<4x16xbf16>, vector<272x16xf32> -> vector<272x16xf32>
    %52 = arith.addf %46, %51 : vector<272x16xf32>
    %c0_52 = arith.constant 0 : index
    %c17_53 = arith.constant 17 : index
    %c0_54 = arith.constant 0 : index
    %53 = vector.load %arg2[%c0_52, %c17_53, %c0_54] : memref<1x296x4xbf16, #tpu.memory_space<vmem>>, vector<1x272x4xbf16>
    %54 = vector.shape_cast %53 : vector<1x272x4xbf16> to vector<272x4xbf16>
    %c9 = arith.constant 9 : index
    %c0_55 = arith.constant 0 : index
    %c0_56 = arith.constant 0 : index
    %55 = vector.load %arg5[%c9, %c0_55, %c0_56] : memref<16x4x16xbf16, #tpu.memory_space<vmem>>, vector<1x4x16xbf16>
    %56 = vector.shape_cast %55 : vector<1x4x16xbf16> to vector<4x16xbf16>
    %cst_57 = arith.constant dense<0.000000e+00> : vector<272x16xf32>
    %57 = tpu.matmul %54, %56, %cst_57 {dimension_numbers = #tpu.dot_dimension_numbers<[1], [0], [0], [1], [0, 0, 1, 1], [], []>} : vector<272x4xbf16>, vector<4x16xbf16>, vector<272x16xf32> -> vector<272x16xf32>
    %58 = arith.addf %52, %57 : vector<272x16xf32>
    %c0_58 = arith.constant 0 : index
    %c18 = arith.constant 18 : index
    %c0_59 = arith.constant 0 : index
    %59 = vector.load %arg1[%c0_58, %c18, %c0_59] : memref<1x296x4xbf16, #tpu.memory_space<vmem>>, vector<1x272x4xbf16>
    %60 = vector.shape_cast %59 : vector<1x272x4xbf16> to vector<272x4xbf16>
    %c10 = arith.constant 10 : index
    %c0_60 = arith.constant 0 : index
    %c0_61 = arith.constant 0 : index
    %61 = vector.load %arg5[%c10, %c0_60, %c0_61] : memref<16x4x16xbf16, #tpu.memory_space<vmem>>, vector<1x4x16xbf16>
    %62 = vector.shape_cast %61 : vector<1x4x16xbf16> to vector<4x16xbf16>
    %cst_62 = arith.constant dense<0.000000e+00> : vector<272x16xf32>
    %63 = tpu.matmul %60, %62, %cst_62 {dimension_numbers = #tpu.dot_dimension_numbers<[1], [0], [0], [1], [0, 0, 1, 1], [], []>} : vector<272x4xbf16>, vector<4x16xbf16>, vector<272x16xf32> -> vector<272x16xf32>
    %64 = arith.addf %58, %63 : vector<272x16xf32>
    %c0_63 = arith.constant 0 : index
    %c18_64 = arith.constant 18 : index
    %c0_65 = arith.constant 0 : index
    %65 = vector.load %arg2[%c0_63, %c18_64, %c0_65] : memref<1x296x4xbf16, #tpu.memory_space<vmem>>, vector<1x272x4xbf16>
    %66 = vector.shape_cast %65 : vector<1x272x4xbf16> to vector<272x4xbf16>
    %c11 = arith.constant 11 : index
    %c0_66 = arith.constant 0 : index
    %c0_67 = arith.constant 0 : index
    %67 = vector.load %arg5[%c11, %c0_66, %c0_67] : memref<16x4x16xbf16, #tpu.memory_space<vmem>>, vector<1x4x16xbf16>
    %68 = vector.shape_cast %67 : vector<1x4x16xbf16> to vector<4x16xbf16>
    %cst_68 = arith.constant dense<0.000000e+00> : vector<272x16xf32>
    %69 = tpu.matmul %66, %68, %cst_68 {dimension_numbers = #tpu.dot_dimension_numbers<[1], [0], [0], [1], [0, 0, 1, 1], [], []>} : vector<272x4xbf16>, vector<4x16xbf16>, vector<272x16xf32> -> vector<272x16xf32>
    %70 = arith.addf %64, %69 : vector<272x16xf32>
    %c0_69 = arith.constant 0 : index
    %c17_70 = arith.constant 17 : index
    %c0_71 = arith.constant 0 : index
    %71 = vector.load %arg3[%c0_69, %c17_70, %c0_71] : memref<1x296x4xbf16, #tpu.memory_space<vmem>>, vector<1x272x4xbf16>
    %72 = vector.shape_cast %71 : vector<1x272x4xbf16> to vector<272x4xbf16>
    %c12 = arith.constant 12 : index
    %c0_72 = arith.constant 0 : index
    %c0_73 = arith.constant 0 : index
    %73 = vector.load %arg5[%c12, %c0_72, %c0_73] : memref<16x4x16xbf16, #tpu.memory_space<vmem>>, vector<1x4x16xbf16>
    %74 = vector.shape_cast %73 : vector<1x4x16xbf16> to vector<4x16xbf16>
    %cst_74 = arith.constant dense<0.000000e+00> : vector<272x16xf32>
    %75 = tpu.matmul %72, %74, %cst_74 {dimension_numbers = #tpu.dot_dimension_numbers<[1], [0], [0], [1], [0, 0, 1, 1], [], []>} : vector<272x4xbf16>, vector<4x16xbf16>, vector<272x16xf32> -> vector<272x16xf32>
    %76 = arith.addf %70, %75 : vector<272x16xf32>
    %c0_75 = arith.constant 0 : index
    %c17_76 = arith.constant 17 : index
    %c0_77 = arith.constant 0 : index
    %77 = vector.load %arg4[%c0_75, %c17_76, %c0_77] : memref<1x296x4xbf16, #tpu.memory_space<vmem>>, vector<1x272x4xbf16>
    %78 = vector.shape_cast %77 : vector<1x272x4xbf16> to vector<272x4xbf16>
    %c13 = arith.constant 13 : index
    %c0_78 = arith.constant 0 : index
    %c0_79 = arith.constant 0 : index
    %79 = vector.load %arg5[%c13, %c0_78, %c0_79] : memref<16x4x16xbf16, #tpu.memory_space<vmem>>, vector<1x4x16xbf16>
    %80 = vector.shape_cast %79 : vector<1x4x16xbf16> to vector<4x16xbf16>
    %cst_80 = arith.constant dense<0.000000e+00> : vector<272x16xf32>
    %81 = tpu.matmul %78, %80, %cst_80 {dimension_numbers = #tpu.dot_dimension_numbers<[1], [0], [0], [1], [0, 0, 1, 1], [], []>} : vector<272x4xbf16>, vector<4x16xbf16>, vector<272x16xf32> -> vector<272x16xf32>
    %82 = arith.addf %76, %81 : vector<272x16xf32>
    %c0_81 = arith.constant 0 : index
    %c18_82 = arith.constant 18 : index
    %c0_83 = arith.constant 0 : index
    %83 = vector.load %arg3[%c0_81, %c18_82, %c0_83] : memref<1x296x4xbf16, #tpu.memory_space<vmem>>, vector<1x272x4xbf16>
    %84 = vector.shape_cast %83 : vector<1x272x4xbf16> to vector<272x4xbf16>
    %c14 = arith.constant 14 : index
    %c0_84 = arith.constant 0 : index
    %c0_85 = arith.constant 0 : index
    %85 = vector.load %arg5[%c14, %c0_84, %c0_85] : memref<16x4x16xbf16, #tpu.memory_space<vmem>>, vector<1x4x16xbf16>
    %86 = vector.shape_cast %85 : vector<1x4x16xbf16> to vector<4x16xbf16>
    %cst_86 = arith.constant dense<0.000000e+00> : vector<272x16xf32>
    %87 = tpu.matmul %84, %86, %cst_86 {dimension_numbers = #tpu.dot_dimension_numbers<[1], [0], [0], [1], [0, 0, 1, 1], [], []>} : vector<272x4xbf16>, vector<4x16xbf16>, vector<272x16xf32> -> vector<272x16xf32>
    %88 = arith.addf %82, %87 : vector<272x16xf32>
    %c0_87 = arith.constant 0 : index
    %c18_88 = arith.constant 18 : index
    %c0_89 = arith.constant 0 : index
    %89 = vector.load %arg4[%c0_87, %c18_88, %c0_89] : memref<1x296x4xbf16, #tpu.memory_space<vmem>>, vector<1x272x4xbf16>
    %90 = vector.shape_cast %89 : vector<1x272x4xbf16> to vector<272x4xbf16>
    %c15 = arith.constant 15 : index
    %c0_90 = arith.constant 0 : index
    %c0_91 = arith.constant 0 : index
    %91 = vector.load %arg5[%c15, %c0_90, %c0_91] : memref<16x4x16xbf16, #tpu.memory_space<vmem>>, vector<1x4x16xbf16>
    %92 = vector.shape_cast %91 : vector<1x4x16xbf16> to vector<4x16xbf16>
    %cst_92 = arith.constant dense<0.000000e+00> : vector<272x16xf32>
    %93 = tpu.matmul %90, %92, %cst_92 {dimension_numbers = #tpu.dot_dimension_numbers<[1], [0], [0], [1], [0, 0, 1, 1], [], []>} : vector<272x4xbf16>, vector<4x16xbf16>, vector<272x16xf32> -> vector<272x16xf32>
    %94 = arith.addf %88, %93 : vector<272x16xf32>
    %c0_93 = arith.constant 0 : index
    %c0_94 = arith.constant 0 : index
    %95 = vector.load %arg6[%c0_93, %c0_94] : memref<1x16xf32, #tpu.memory_space<vmem>>, vector<1x16xf32>
    %96 = vector.broadcast %95 : vector<1x16xf32> to vector<272x16xf32>
    %97 = arith.addf %94, %96 : vector<272x16xf32>
    %cst_95 = arith.constant 0.000000e+00 : f32
    %98 = vector.broadcast %cst_95 : f32 to vector<272x16xf32>
    %99 = arith.cmpf oge, %97, %98 : vector<272x16xf32>
    %cst_96 = arith.constant 2.000000e-01 : f32
    %100 = vector.broadcast %cst_96 : f32 to vector<272x16xf32>
    %101 = arith.mulf %100, %97 : vector<272x16xf32>
    %102 = arith.select %99, %97, %101 : vector<272x16xi1>, vector<272x16xf32>
    %103 = arith.truncf %102 : vector<272x16xf32> to vector<272x16xbf16>
    %c0_97 = arith.constant 0 : index
    %c0_98 = arith.constant 0 : index
    %c0_99 = arith.constant 0 : index
    %104 = vector.load %arg7[%c0_97, %c0_98, %c0_99] : memref<1x272x16xbf16, #tpu.memory_space<vmem>>, vector<1x272x16xbf16>
    %105 = vector.shape_cast %104 : vector<1x272x16xbf16> to vector<272x16xbf16>
    %106 = vector.shape_cast %103 : vector<272x16xbf16> to vector<1x272x16xbf16>
    tpu.vector_store %arg7[%c0_97, %c0_98, %c0_99], %106 {strides = array<i32>} : memref<1x272x16xbf16, #tpu.memory_space<vmem>>, vector<1x272x16xbf16>,
    return
  }
  func.func @transform_0(%arg0: i32) -> (i32, i32, i32) {
    %c0_i32 = arith.constant 0 : i32
    %c0_i32_0 = arith.constant 0 : i32
    %c0_i32_1 = arith.constant 0 : i32
    return %arg0, %c0_i32, %c0_i32_0 : i32, i32, i32
  }
  func.func @transform_1(%arg0: i32) -> (i32, i32, i32) {
    %c0_i32 = arith.constant 0 : i32
    %c0_i32_0 = arith.constant 0 : i32
    %c0_i32_1 = arith.constant 0 : i32
    return %arg0, %c0_i32, %c0_i32_0 : i32, i32, i32
  }
  func.func @transform_2(%arg0: i32) -> (i32, i32, i32) {
    %c0_i32 = arith.constant 0 : i32
    %c0_i32_0 = arith.constant 0 : i32
    %c0_i32_1 = arith.constant 0 : i32
    return %arg0, %c0_i32, %c0_i32_0 : i32, i32, i32
  }
  func.func @transform_3(%arg0: i32) -> (i32, i32, i32) {
    %c0_i32 = arith.constant 0 : i32
    %c0_i32_0 = arith.constant 0 : i32
    %c0_i32_1 = arith.constant 0 : i32
    return %arg0, %c0_i32, %c0_i32_0 : i32, i32, i32
  }
  func.func @transform_4(%arg0: i32) -> (i32, i32, i32) {
    %c0_i32 = arith.constant 0 : i32
    %c0_i32_0 = arith.constant 0 : i32
    %c0_i32_1 = arith.constant 0 : i32
    %c0_i32_2 = arith.constant 0 : i32
    return %c0_i32, %c0_i32_0, %c0_i32_1 : i32, i32, i32
  }
  func.func @transform_5(%arg0: i32) -> (i32, i32) {
    %c0_i32 = arith.constant 0 : i32
    %c0_i32_0 = arith.constant 0 : i32
    %c0_i32_1 = arith.constant 0 : i32
    return %c0_i32, %c0_i32_0 : i32, i32
  }
  func.func @transform_6(%arg0: i32) -> (i32, i32, i32) {
    %c0_i32 = arith.constant 0 : i32
    %c0_i32_0 = arith.constant 0 : i32
    %c0_i32_1 = arith.constant 0 : i32
    return %arg0, %c0_i32, %c0_i32_0 : i32, i32, i32
  }
}

module attributes {stable_mosaic.version = 11 : i64} {
  func.func @_conv4x4_kernel(%arg0: i32, %arg1: memref<1x88x16xbf16, #tpu.memory_space<vmem>>, %arg2: memref<1x88x16xbf16, #tpu.memory_space<vmem>>, %arg3: memref<1x88x16xbf16, #tpu.memory_space<vmem>>, %arg4: memref<1x88x16xbf16, #tpu.memory_space<vmem>>, %arg5: memref<16x16x32xbf16, #tpu.memory_space<vmem>>, %arg6: memref<72x1xf32, #tpu.memory_space<vmem>>, %arg7: memref<1x72x32xbf16, #tpu.memory_space<vmem>>, %arg8: memref<1x1x32xf32, #tpu.memory_space<vmem>>, %arg9: memref<1x1x32xf32, #tpu.memory_space<vmem>>) attributes {dimension_semantics = [#tpu.dimension_semantics<parallel>], iteration_bounds = array<i64: 2>, scalar_prefetch = 0 : i64, scratch_operands = 0 : i64, tpu.core_type = #tpu.core_type<tc>, window_params = [{transform_indices = @transform_0, window_bounds = array<i64: 1, 88, 16>}, {transform_indices = @transform_1, window_bounds = array<i64: 1, 88, 16>}, {transform_indices = @transform_2, window_bounds = array<i64: 1, 88, 16>}, {transform_indices = @transform_3, window_bounds = array<i64: 1, 88, 16>}, {pipeline_mode = #tpu.pipeline_mode<synchronous>, transform_indices = @transform_4, window_bounds = array<i64: 16, 16, 32>}, {pipeline_mode = #tpu.pipeline_mode<synchronous>, transform_indices = @transform_5, window_bounds = array<i64: 72, 1>}, {transform_indices = @transform_6, window_bounds = array<i64: 1, 72, 32>}, {transform_indices = @transform_7, window_bounds = array<i64: 1, 1, 32>}, {transform_indices = @transform_8, window_bounds = array<i64: 1, 1, 32>}]} {
    %c0 = arith.constant 0 : index
    %c0_0 = arith.constant 0 : index
    %c0_1 = arith.constant 0 : index
    %0 = vector.load %arg1[%c0, %c0_0, %c0_1] : memref<1x88x16xbf16, #tpu.memory_space<vmem>>, vector<1x72x16xbf16>
    %1 = vector.shape_cast %0 : vector<1x72x16xbf16> to vector<72x16xbf16>
    %c0_2 = arith.constant 0 : index
    %c0_3 = arith.constant 0 : index
    %c0_4 = arith.constant 0 : index
    %2 = vector.load %arg5[%c0_2, %c0_3, %c0_4] : memref<16x16x32xbf16, #tpu.memory_space<vmem>>, vector<1x16x32xbf16>
    %3 = vector.shape_cast %2 : vector<1x16x32xbf16> to vector<16x32xbf16>
    %cst = arith.constant dense<0.000000e+00> : vector<72x32xf32>
    %4 = tpu.matmul %1, %3, %cst {dimension_numbers = #tpu.dot_dimension_numbers<[1], [0], [0], [1], [0, 0, 1, 1], [], []>} : vector<72x16xbf16>, vector<16x32xbf16>, vector<72x32xf32> -> vector<72x32xf32>
    %c0_5 = arith.constant 0 : index
    %c0_6 = arith.constant 0 : index
    %c0_7 = arith.constant 0 : index
    %5 = vector.load %arg2[%c0_5, %c0_6, %c0_7] : memref<1x88x16xbf16, #tpu.memory_space<vmem>>, vector<1x72x16xbf16>
    %6 = vector.shape_cast %5 : vector<1x72x16xbf16> to vector<72x16xbf16>
    %c1 = arith.constant 1 : index
    %c0_8 = arith.constant 0 : index
    %c0_9 = arith.constant 0 : index
    %7 = vector.load %arg5[%c1, %c0_8, %c0_9] : memref<16x16x32xbf16, #tpu.memory_space<vmem>>, vector<1x16x32xbf16>
    %8 = vector.shape_cast %7 : vector<1x16x32xbf16> to vector<16x32xbf16>
    %cst_10 = arith.constant dense<0.000000e+00> : vector<72x32xf32>
    %9 = tpu.matmul %6, %8, %cst_10 {dimension_numbers = #tpu.dot_dimension_numbers<[1], [0], [0], [1], [0, 0, 1, 1], [], []>} : vector<72x16xbf16>, vector<16x32xbf16>, vector<72x32xf32> -> vector<72x32xf32>
    %10 = arith.addf %4, %9 : vector<72x32xf32>
    %c0_11 = arith.constant 0 : index
    %c1_12 = arith.constant 1 : index
    %c0_13 = arith.constant 0 : index
    %11 = vector.load %arg1[%c0_11, %c1_12, %c0_13] : memref<1x88x16xbf16, #tpu.memory_space<vmem>>, vector<1x72x16xbf16>
    %12 = vector.shape_cast %11 : vector<1x72x16xbf16> to vector<72x16xbf16>
    %c2 = arith.constant 2 : index
    %c0_14 = arith.constant 0 : index
    %c0_15 = arith.constant 0 : index
    %13 = vector.load %arg5[%c2, %c0_14, %c0_15] : memref<16x16x32xbf16, #tpu.memory_space<vmem>>, vector<1x16x32xbf16>
    %14 = vector.shape_cast %13 : vector<1x16x32xbf16> to vector<16x32xbf16>
    %cst_16 = arith.constant dense<0.000000e+00> : vector<72x32xf32>
    %15 = tpu.matmul %12, %14, %cst_16 {dimension_numbers = #tpu.dot_dimension_numbers<[1], [0], [0], [1], [0, 0, 1, 1], [], []>} : vector<72x16xbf16>, vector<16x32xbf16>, vector<72x32xf32> -> vector<72x32xf32>
    %16 = arith.addf %10, %15 : vector<72x32xf32>
    %c0_17 = arith.constant 0 : index
    %c1_18 = arith.constant 1 : index
    %c0_19 = arith.constant 0 : index
    %17 = vector.load %arg2[%c0_17, %c1_18, %c0_19] : memref<1x88x16xbf16, #tpu.memory_space<vmem>>, vector<1x72x16xbf16>
    %18 = vector.shape_cast %17 : vector<1x72x16xbf16> to vector<72x16xbf16>
    %c3 = arith.constant 3 : index
    %c0_20 = arith.constant 0 : index
    %c0_21 = arith.constant 0 : index
    %19 = vector.load %arg5[%c3, %c0_20, %c0_21] : memref<16x16x32xbf16, #tpu.memory_space<vmem>>, vector<1x16x32xbf16>
    %20 = vector.shape_cast %19 : vector<1x16x32xbf16> to vector<16x32xbf16>
    %cst_22 = arith.constant dense<0.000000e+00> : vector<72x32xf32>
    %21 = tpu.matmul %18, %20, %cst_22 {dimension_numbers = #tpu.dot_dimension_numbers<[1], [0], [0], [1], [0, 0, 1, 1], [], []>} : vector<72x16xbf16>, vector<16x32xbf16>, vector<72x32xf32> -> vector<72x32xf32>
    %22 = arith.addf %16, %21 : vector<72x32xf32>
    %c0_23 = arith.constant 0 : index
    %c0_24 = arith.constant 0 : index
    %c0_25 = arith.constant 0 : index
    %23 = vector.load %arg3[%c0_23, %c0_24, %c0_25] : memref<1x88x16xbf16, #tpu.memory_space<vmem>>, vector<1x72x16xbf16>
    %24 = vector.shape_cast %23 : vector<1x72x16xbf16> to vector<72x16xbf16>
    %c4 = arith.constant 4 : index
    %c0_26 = arith.constant 0 : index
    %c0_27 = arith.constant 0 : index
    %25 = vector.load %arg5[%c4, %c0_26, %c0_27] : memref<16x16x32xbf16, #tpu.memory_space<vmem>>, vector<1x16x32xbf16>
    %26 = vector.shape_cast %25 : vector<1x16x32xbf16> to vector<16x32xbf16>
    %cst_28 = arith.constant dense<0.000000e+00> : vector<72x32xf32>
    %27 = tpu.matmul %24, %26, %cst_28 {dimension_numbers = #tpu.dot_dimension_numbers<[1], [0], [0], [1], [0, 0, 1, 1], [], []>} : vector<72x16xbf16>, vector<16x32xbf16>, vector<72x32xf32> -> vector<72x32xf32>
    %28 = arith.addf %22, %27 : vector<72x32xf32>
    %c0_29 = arith.constant 0 : index
    %c0_30 = arith.constant 0 : index
    %c0_31 = arith.constant 0 : index
    %29 = vector.load %arg4[%c0_29, %c0_30, %c0_31] : memref<1x88x16xbf16, #tpu.memory_space<vmem>>, vector<1x72x16xbf16>
    %30 = vector.shape_cast %29 : vector<1x72x16xbf16> to vector<72x16xbf16>
    %c5 = arith.constant 5 : index
    %c0_32 = arith.constant 0 : index
    %c0_33 = arith.constant 0 : index
    %31 = vector.load %arg5[%c5, %c0_32, %c0_33] : memref<16x16x32xbf16, #tpu.memory_space<vmem>>, vector<1x16x32xbf16>
    %32 = vector.shape_cast %31 : vector<1x16x32xbf16> to vector<16x32xbf16>
    %cst_34 = arith.constant dense<0.000000e+00> : vector<72x32xf32>
    %33 = tpu.matmul %30, %32, %cst_34 {dimension_numbers = #tpu.dot_dimension_numbers<[1], [0], [0], [1], [0, 0, 1, 1], [], []>} : vector<72x16xbf16>, vector<16x32xbf16>, vector<72x32xf32> -> vector<72x32xf32>
    %34 = arith.addf %28, %33 : vector<72x32xf32>
    %c0_35 = arith.constant 0 : index
    %c1_36 = arith.constant 1 : index
    %c0_37 = arith.constant 0 : index
    %35 = vector.load %arg3[%c0_35, %c1_36, %c0_37] : memref<1x88x16xbf16, #tpu.memory_space<vmem>>, vector<1x72x16xbf16>
    %36 = vector.shape_cast %35 : vector<1x72x16xbf16> to vector<72x16xbf16>
    %c6 = arith.constant 6 : index
    %c0_38 = arith.constant 0 : index
    %c0_39 = arith.constant 0 : index
    %37 = vector.load %arg5[%c6, %c0_38, %c0_39] : memref<16x16x32xbf16, #tpu.memory_space<vmem>>, vector<1x16x32xbf16>
    %38 = vector.shape_cast %37 : vector<1x16x32xbf16> to vector<16x32xbf16>
    %cst_40 = arith.constant dense<0.000000e+00> : vector<72x32xf32>
    %39 = tpu.matmul %36, %38, %cst_40 {dimension_numbers = #tpu.dot_dimension_numbers<[1], [0], [0], [1], [0, 0, 1, 1], [], []>} : vector<72x16xbf16>, vector<16x32xbf16>, vector<72x32xf32> -> vector<72x32xf32>
    %40 = arith.addf %34, %39 : vector<72x32xf32>
    %c0_41 = arith.constant 0 : index
    %c1_42 = arith.constant 1 : index
    %c0_43 = arith.constant 0 : index
    %41 = vector.load %arg4[%c0_41, %c1_42, %c0_43] : memref<1x88x16xbf16, #tpu.memory_space<vmem>>, vector<1x72x16xbf16>
    %42 = vector.shape_cast %41 : vector<1x72x16xbf16> to vector<72x16xbf16>
    %c7 = arith.constant 7 : index
    %c0_44 = arith.constant 0 : index
    %c0_45 = arith.constant 0 : index
    %43 = vector.load %arg5[%c7, %c0_44, %c0_45] : memref<16x16x32xbf16, #tpu.memory_space<vmem>>, vector<1x16x32xbf16>
    %44 = vector.shape_cast %43 : vector<1x16x32xbf16> to vector<16x32xbf16>
    %cst_46 = arith.constant dense<0.000000e+00> : vector<72x32xf32>
    %45 = tpu.matmul %42, %44, %cst_46 {dimension_numbers = #tpu.dot_dimension_numbers<[1], [0], [0], [1], [0, 0, 1, 1], [], []>} : vector<72x16xbf16>, vector<16x32xbf16>, vector<72x32xf32> -> vector<72x32xf32>
    %46 = arith.addf %40, %45 : vector<72x32xf32>
    %c0_47 = arith.constant 0 : index
    %c9 = arith.constant 9 : index
    %c0_48 = arith.constant 0 : index
    %47 = vector.load %arg1[%c0_47, %c9, %c0_48] : memref<1x88x16xbf16, #tpu.memory_space<vmem>>, vector<1x72x16xbf16>
    %48 = vector.shape_cast %47 : vector<1x72x16xbf16> to vector<72x16xbf16>
    %c8 = arith.constant 8 : index
    %c0_49 = arith.constant 0 : index
    %c0_50 = arith.constant 0 : index
    %49 = vector.load %arg5[%c8, %c0_49, %c0_50] : memref<16x16x32xbf16, #tpu.memory_space<vmem>>, vector<1x16x32xbf16>
    %50 = vector.shape_cast %49 : vector<1x16x32xbf16> to vector<16x32xbf16>
    %cst_51 = arith.constant dense<0.000000e+00> : vector<72x32xf32>
    %51 = tpu.matmul %48, %50, %cst_51 {dimension_numbers = #tpu.dot_dimension_numbers<[1], [0], [0], [1], [0, 0, 1, 1], [], []>} : vector<72x16xbf16>, vector<16x32xbf16>, vector<72x32xf32> -> vector<72x32xf32>
    %52 = arith.addf %46, %51 : vector<72x32xf32>
    %c0_52 = arith.constant 0 : index
    %c9_53 = arith.constant 9 : index
    %c0_54 = arith.constant 0 : index
    %53 = vector.load %arg2[%c0_52, %c9_53, %c0_54] : memref<1x88x16xbf16, #tpu.memory_space<vmem>>, vector<1x72x16xbf16>
    %54 = vector.shape_cast %53 : vector<1x72x16xbf16> to vector<72x16xbf16>
    %c9_55 = arith.constant 9 : index
    %c0_56 = arith.constant 0 : index
    %c0_57 = arith.constant 0 : index
    %55 = vector.load %arg5[%c9_55, %c0_56, %c0_57] : memref<16x16x32xbf16, #tpu.memory_space<vmem>>, vector<1x16x32xbf16>
    %56 = vector.shape_cast %55 : vector<1x16x32xbf16> to vector<16x32xbf16>
    %cst_58 = arith.constant dense<0.000000e+00> : vector<72x32xf32>
    %57 = tpu.matmul %54, %56, %cst_58 {dimension_numbers = #tpu.dot_dimension_numbers<[1], [0], [0], [1], [0, 0, 1, 1], [], []>} : vector<72x16xbf16>, vector<16x32xbf16>, vector<72x32xf32> -> vector<72x32xf32>
    %58 = arith.addf %52, %57 : vector<72x32xf32>
    %c0_59 = arith.constant 0 : index
    %c10 = arith.constant 10 : index
    %c0_60 = arith.constant 0 : index
    %59 = vector.load %arg1[%c0_59, %c10, %c0_60] : memref<1x88x16xbf16, #tpu.memory_space<vmem>>, vector<1x72x16xbf16>
    %60 = vector.shape_cast %59 : vector<1x72x16xbf16> to vector<72x16xbf16>
    %c10_61 = arith.constant 10 : index
    %c0_62 = arith.constant 0 : index
    %c0_63 = arith.constant 0 : index
    %61 = vector.load %arg5[%c10_61, %c0_62, %c0_63] : memref<16x16x32xbf16, #tpu.memory_space<vmem>>, vector<1x16x32xbf16>
    %62 = vector.shape_cast %61 : vector<1x16x32xbf16> to vector<16x32xbf16>
    %cst_64 = arith.constant dense<0.000000e+00> : vector<72x32xf32>
    %63 = tpu.matmul %60, %62, %cst_64 {dimension_numbers = #tpu.dot_dimension_numbers<[1], [0], [0], [1], [0, 0, 1, 1], [], []>} : vector<72x16xbf16>, vector<16x32xbf16>, vector<72x32xf32> -> vector<72x32xf32>
    %64 = arith.addf %58, %63 : vector<72x32xf32>
    %c0_65 = arith.constant 0 : index
    %c10_66 = arith.constant 10 : index
    %c0_67 = arith.constant 0 : index
    %65 = vector.load %arg2[%c0_65, %c10_66, %c0_67] : memref<1x88x16xbf16, #tpu.memory_space<vmem>>, vector<1x72x16xbf16>
    %66 = vector.shape_cast %65 : vector<1x72x16xbf16> to vector<72x16xbf16>
    %c11 = arith.constant 11 : index
    %c0_68 = arith.constant 0 : index
    %c0_69 = arith.constant 0 : index
    %67 = vector.load %arg5[%c11, %c0_68, %c0_69] : memref<16x16x32xbf16, #tpu.memory_space<vmem>>, vector<1x16x32xbf16>
    %68 = vector.shape_cast %67 : vector<1x16x32xbf16> to vector<16x32xbf16>
    %cst_70 = arith.constant dense<0.000000e+00> : vector<72x32xf32>
    %69 = tpu.matmul %66, %68, %cst_70 {dimension_numbers = #tpu.dot_dimension_numbers<[1], [0], [0], [1], [0, 0, 1, 1], [], []>} : vector<72x16xbf16>, vector<16x32xbf16>, vector<72x32xf32> -> vector<72x32xf32>
    %70 = arith.addf %64, %69 : vector<72x32xf32>
    %c0_71 = arith.constant 0 : index
    %c9_72 = arith.constant 9 : index
    %c0_73 = arith.constant 0 : index
    %71 = vector.load %arg3[%c0_71, %c9_72, %c0_73] : memref<1x88x16xbf16, #tpu.memory_space<vmem>>, vector<1x72x16xbf16>
    %72 = vector.shape_cast %71 : vector<1x72x16xbf16> to vector<72x16xbf16>
    %c12 = arith.constant 12 : index
    %c0_74 = arith.constant 0 : index
    %c0_75 = arith.constant 0 : index
    %73 = vector.load %arg5[%c12, %c0_74, %c0_75] : memref<16x16x32xbf16, #tpu.memory_space<vmem>>, vector<1x16x32xbf16>
    %74 = vector.shape_cast %73 : vector<1x16x32xbf16> to vector<16x32xbf16>
    %cst_76 = arith.constant dense<0.000000e+00> : vector<72x32xf32>
    %75 = tpu.matmul %72, %74, %cst_76 {dimension_numbers = #tpu.dot_dimension_numbers<[1], [0], [0], [1], [0, 0, 1, 1], [], []>} : vector<72x16xbf16>, vector<16x32xbf16>, vector<72x32xf32> -> vector<72x32xf32>
    %76 = arith.addf %70, %75 : vector<72x32xf32>
    %c0_77 = arith.constant 0 : index
    %c9_78 = arith.constant 9 : index
    %c0_79 = arith.constant 0 : index
    %77 = vector.load %arg4[%c0_77, %c9_78, %c0_79] : memref<1x88x16xbf16, #tpu.memory_space<vmem>>, vector<1x72x16xbf16>
    %78 = vector.shape_cast %77 : vector<1x72x16xbf16> to vector<72x16xbf16>
    %c13 = arith.constant 13 : index
    %c0_80 = arith.constant 0 : index
    %c0_81 = arith.constant 0 : index
    %79 = vector.load %arg5[%c13, %c0_80, %c0_81] : memref<16x16x32xbf16, #tpu.memory_space<vmem>>, vector<1x16x32xbf16>
    %80 = vector.shape_cast %79 : vector<1x16x32xbf16> to vector<16x32xbf16>
    %cst_82 = arith.constant dense<0.000000e+00> : vector<72x32xf32>
    %81 = tpu.matmul %78, %80, %cst_82 {dimension_numbers = #tpu.dot_dimension_numbers<[1], [0], [0], [1], [0, 0, 1, 1], [], []>} : vector<72x16xbf16>, vector<16x32xbf16>, vector<72x32xf32> -> vector<72x32xf32>
    %82 = arith.addf %76, %81 : vector<72x32xf32>
    %c0_83 = arith.constant 0 : index
    %c10_84 = arith.constant 10 : index
    %c0_85 = arith.constant 0 : index
    %83 = vector.load %arg3[%c0_83, %c10_84, %c0_85] : memref<1x88x16xbf16, #tpu.memory_space<vmem>>, vector<1x72x16xbf16>
    %84 = vector.shape_cast %83 : vector<1x72x16xbf16> to vector<72x16xbf16>
    %c14 = arith.constant 14 : index
    %c0_86 = arith.constant 0 : index
    %c0_87 = arith.constant 0 : index
    %85 = vector.load %arg5[%c14, %c0_86, %c0_87] : memref<16x16x32xbf16, #tpu.memory_space<vmem>>, vector<1x16x32xbf16>
    %86 = vector.shape_cast %85 : vector<1x16x32xbf16> to vector<16x32xbf16>
    %cst_88 = arith.constant dense<0.000000e+00> : vector<72x32xf32>
    %87 = tpu.matmul %84, %86, %cst_88 {dimension_numbers = #tpu.dot_dimension_numbers<[1], [0], [0], [1], [0, 0, 1, 1], [], []>} : vector<72x16xbf16>, vector<16x32xbf16>, vector<72x32xf32> -> vector<72x32xf32>
    %88 = arith.addf %82, %87 : vector<72x32xf32>
    %c0_89 = arith.constant 0 : index
    %c10_90 = arith.constant 10 : index
    %c0_91 = arith.constant 0 : index
    %89 = vector.load %arg4[%c0_89, %c10_90, %c0_91] : memref<1x88x16xbf16, #tpu.memory_space<vmem>>, vector<1x72x16xbf16>
    %90 = vector.shape_cast %89 : vector<1x72x16xbf16> to vector<72x16xbf16>
    %c15 = arith.constant 15 : index
    %c0_92 = arith.constant 0 : index
    %c0_93 = arith.constant 0 : index
    %91 = vector.load %arg5[%c15, %c0_92, %c0_93] : memref<16x16x32xbf16, #tpu.memory_space<vmem>>, vector<1x16x32xbf16>
    %92 = vector.shape_cast %91 : vector<1x16x32xbf16> to vector<16x32xbf16>
    %cst_94 = arith.constant dense<0.000000e+00> : vector<72x32xf32>
    %93 = tpu.matmul %90, %92, %cst_94 {dimension_numbers = #tpu.dot_dimension_numbers<[1], [0], [0], [1], [0, 0, 1, 1], [], []>} : vector<72x16xbf16>, vector<16x32xbf16>, vector<72x32xf32> -> vector<72x32xf32>
    %94 = arith.addf %88, %93 : vector<72x32xf32>
    %95 = arith.truncf %94 : vector<72x32xf32> to vector<72x32xbf16>
    %c0_95 = arith.constant 0 : index
    %c0_96 = arith.constant 0 : index
    %c0_97 = arith.constant 0 : index
    %96 = vector.load %arg7[%c0_95, %c0_96, %c0_97] : memref<1x72x32xbf16, #tpu.memory_space<vmem>>, vector<1x72x32xbf16>
    %97 = vector.shape_cast %96 : vector<1x72x32xbf16> to vector<72x32xbf16>
    %98 = vector.shape_cast %95 : vector<72x32xbf16> to vector<1x72x32xbf16>
    tpu.vector_store %arg7[%c0_95, %c0_96, %c0_97], %98 {strides = array<i32>} : memref<1x72x32xbf16, #tpu.memory_space<vmem>>, vector<1x72x32xbf16>,
    %c0_98 = arith.constant 0 : index
    %c0_99 = arith.constant 0 : index
    %99 = vector.load %arg6[%c0_98, %c0_99] : memref<72x1xf32, #tpu.memory_space<vmem>>, vector<72x1xf32>
    %100 = vector.broadcast %99 : vector<72x1xf32> to vector<72x32xf32>
    %101 = arith.mulf %94, %100 : vector<72x32xf32>
    %cst_100 = arith.constant dense<0.000000e+00> : vector<32xf32>
    %102 = vector.multi_reduction <add>, %101, %cst_100 [0] : vector<72x32xf32> to vector<32xf32>
    %103 = vector.shape_cast %102 : vector<32xf32> to vector<1x32xf32>
    %c0_101 = arith.constant 0 : index
    %c0_102 = arith.constant 0 : index
    %c0_103 = arith.constant 0 : index
    %104 = vector.load %arg8[%c0_101, %c0_102, %c0_103] : memref<1x1x32xf32, #tpu.memory_space<vmem>>, vector<1x1x32xf32>
    %105 = vector.shape_cast %104 : vector<1x1x32xf32> to vector<1x32xf32>
    %106 = vector.shape_cast %103 : vector<1x32xf32> to vector<1x1x32xf32>
    tpu.vector_store %arg8[%c0_101, %c0_102, %c0_103], %106 {strides = array<i32>} : memref<1x1x32xf32, #tpu.memory_space<vmem>>, vector<1x1x32xf32>,
    %107 = arith.mulf %94, %94 : vector<72x32xf32>
    %108 = vector.broadcast %99 : vector<72x1xf32> to vector<72x32xf32>
    %109 = arith.mulf %107, %108 : vector<72x32xf32>
    %cst_104 = arith.constant dense<0.000000e+00> : vector<32xf32>
    %110 = vector.multi_reduction <add>, %109, %cst_104 [0] : vector<72x32xf32> to vector<32xf32>
    %111 = vector.shape_cast %110 : vector<32xf32> to vector<1x32xf32>
    %c0_105 = arith.constant 0 : index
    %c0_106 = arith.constant 0 : index
    %c0_107 = arith.constant 0 : index
    %112 = vector.load %arg9[%c0_105, %c0_106, %c0_107] : memref<1x1x32xf32, #tpu.memory_space<vmem>>, vector<1x1x32xf32>
    %113 = vector.shape_cast %112 : vector<1x1x32xf32> to vector<1x32xf32>
    %114 = vector.shape_cast %111 : vector<1x32xf32> to vector<1x1x32xf32>
    tpu.vector_store %arg9[%c0_105, %c0_106, %c0_107], %114 {strides = array<i32>} : memref<1x1x32xf32, #tpu.memory_space<vmem>>, vector<1x1x32xf32>,
    return
  }
  func.func @transform_0(%arg0: i32) -> (i32, i32, i32) {
    %c0_i32 = arith.constant 0 : i32
    %c0_i32_0 = arith.constant 0 : i32
    %c0_i32_1 = arith.constant 0 : i32
    return %arg0, %c0_i32, %c0_i32_0 : i32, i32, i32
  }
  func.func @transform_1(%arg0: i32) -> (i32, i32, i32) {
    %c0_i32 = arith.constant 0 : i32
    %c0_i32_0 = arith.constant 0 : i32
    %c0_i32_1 = arith.constant 0 : i32
    return %arg0, %c0_i32, %c0_i32_0 : i32, i32, i32
  }
  func.func @transform_2(%arg0: i32) -> (i32, i32, i32) {
    %c0_i32 = arith.constant 0 : i32
    %c0_i32_0 = arith.constant 0 : i32
    %c0_i32_1 = arith.constant 0 : i32
    return %arg0, %c0_i32, %c0_i32_0 : i32, i32, i32
  }
  func.func @transform_3(%arg0: i32) -> (i32, i32, i32) {
    %c0_i32 = arith.constant 0 : i32
    %c0_i32_0 = arith.constant 0 : i32
    %c0_i32_1 = arith.constant 0 : i32
    return %arg0, %c0_i32, %c0_i32_0 : i32, i32, i32
  }
  func.func @transform_4(%arg0: i32) -> (i32, i32, i32) {
    %c0_i32 = arith.constant 0 : i32
    %c0_i32_0 = arith.constant 0 : i32
    %c0_i32_1 = arith.constant 0 : i32
    %c0_i32_2 = arith.constant 0 : i32
    return %c0_i32, %c0_i32_0, %c0_i32_1 : i32, i32, i32
  }
  func.func @transform_5(%arg0: i32) -> (i32, i32) {
    %c0_i32 = arith.constant 0 : i32
    %c0_i32_0 = arith.constant 0 : i32
    %c0_i32_1 = arith.constant 0 : i32
    return %c0_i32, %c0_i32_0 : i32, i32
  }
  func.func @transform_6(%arg0: i32) -> (i32, i32, i32) {
    %c0_i32 = arith.constant 0 : i32
    %c0_i32_0 = arith.constant 0 : i32
    %c0_i32_1 = arith.constant 0 : i32
    return %arg0, %c0_i32, %c0_i32_0 : i32, i32, i32
  }
  func.func @transform_7(%arg0: i32) -> (i32, i32, i32) {
    %c0_i32 = arith.constant 0 : i32
    %c0_i32_0 = arith.constant 0 : i32
    %c0_i32_1 = arith.constant 0 : i32
    return %arg0, %c0_i32, %c0_i32_0 : i32, i32, i32
  }
  func.func @transform_8(%arg0: i32) -> (i32, i32, i32) {
    %c0_i32 = arith.constant 0 : i32
    %c0_i32_0 = arith.constant 0 : i32
    %c0_i32_1 = arith.constant 0 : i32
    return %arg0, %c0_i32, %c0_i32_0 : i32, i32, i32
  }
}

module attributes {stable_mosaic.version = 11 : i64} {
  func.func @_conv4x4_kernel(%arg0: i32, %arg1: memref<1x32x32xbf16, #tpu.memory_space<vmem>>, %arg2: memref<1x32x32xbf16, #tpu.memory_space<vmem>>, %arg3: memref<1x32x32xbf16, #tpu.memory_space<vmem>>, %arg4: memref<1x32x32xbf16, #tpu.memory_space<vmem>>, %arg5: memref<16x32x64xbf16, #tpu.memory_space<vmem>>, %arg6: memref<20x1xf32, #tpu.memory_space<vmem>>, %arg7: memref<1x20x64xbf16, #tpu.memory_space<vmem>>, %arg8: memref<1x1x64xf32, #tpu.memory_space<vmem>>, %arg9: memref<1x1x64xf32, #tpu.memory_space<vmem>>) attributes {dimension_semantics = [#tpu.dimension_semantics<parallel>], iteration_bounds = array<i64: 2>, scalar_prefetch = 0 : i64, scratch_operands = 0 : i64, tpu.core_type = #tpu.core_type<tc>, window_params = [{transform_indices = @transform_0, window_bounds = array<i64: 1, 32, 32>}, {transform_indices = @transform_1, window_bounds = array<i64: 1, 32, 32>}, {transform_indices = @transform_2, window_bounds = array<i64: 1, 32, 32>}, {transform_indices = @transform_3, window_bounds = array<i64: 1, 32, 32>}, {pipeline_mode = #tpu.pipeline_mode<synchronous>, transform_indices = @transform_4, window_bounds = array<i64: 16, 32, 64>}, {pipeline_mode = #tpu.pipeline_mode<synchronous>, transform_indices = @transform_5, window_bounds = array<i64: 20, 1>}, {transform_indices = @transform_6, window_bounds = array<i64: 1, 20, 64>}, {transform_indices = @transform_7, window_bounds = array<i64: 1, 1, 64>}, {transform_indices = @transform_8, window_bounds = array<i64: 1, 1, 64>}]} {
    %c0 = arith.constant 0 : index
    %c0_0 = arith.constant 0 : index
    %c0_1 = arith.constant 0 : index
    %0 = vector.load %arg1[%c0, %c0_0, %c0_1] : memref<1x32x32xbf16, #tpu.memory_space<vmem>>, vector<1x20x32xbf16>
    %1 = vector.shape_cast %0 : vector<1x20x32xbf16> to vector<20x32xbf16>
    %c0_2 = arith.constant 0 : index
    %c0_3 = arith.constant 0 : index
    %c0_4 = arith.constant 0 : index
    %2 = vector.load %arg5[%c0_2, %c0_3, %c0_4] : memref<16x32x64xbf16, #tpu.memory_space<vmem>>, vector<1x32x64xbf16>
    %3 = vector.shape_cast %2 : vector<1x32x64xbf16> to vector<32x64xbf16>
    %cst = arith.constant dense<0.000000e+00> : vector<20x64xf32>
    %4 = tpu.matmul %1, %3, %cst {dimension_numbers = #tpu.dot_dimension_numbers<[1], [0], [0], [1], [0, 0, 1, 1], [], []>} : vector<20x32xbf16>, vector<32x64xbf16>, vector<20x64xf32> -> vector<20x64xf32>
    %c0_5 = arith.constant 0 : index
    %c0_6 = arith.constant 0 : index
    %c0_7 = arith.constant 0 : index
    %5 = vector.load %arg2[%c0_5, %c0_6, %c0_7] : memref<1x32x32xbf16, #tpu.memory_space<vmem>>, vector<1x20x32xbf16>
    %6 = vector.shape_cast %5 : vector<1x20x32xbf16> to vector<20x32xbf16>
    %c1 = arith.constant 1 : index
    %c0_8 = arith.constant 0 : index
    %c0_9 = arith.constant 0 : index
    %7 = vector.load %arg5[%c1, %c0_8, %c0_9] : memref<16x32x64xbf16, #tpu.memory_space<vmem>>, vector<1x32x64xbf16>
    %8 = vector.shape_cast %7 : vector<1x32x64xbf16> to vector<32x64xbf16>
    %cst_10 = arith.constant dense<0.000000e+00> : vector<20x64xf32>
    %9 = tpu.matmul %6, %8, %cst_10 {dimension_numbers = #tpu.dot_dimension_numbers<[1], [0], [0], [1], [0, 0, 1, 1], [], []>} : vector<20x32xbf16>, vector<32x64xbf16>, vector<20x64xf32> -> vector<20x64xf32>
    %10 = arith.addf %4, %9 : vector<20x64xf32>
    %c0_11 = arith.constant 0 : index
    %c1_12 = arith.constant 1 : index
    %c0_13 = arith.constant 0 : index
    %11 = vector.load %arg1[%c0_11, %c1_12, %c0_13] : memref<1x32x32xbf16, #tpu.memory_space<vmem>>, vector<1x20x32xbf16>
    %12 = vector.shape_cast %11 : vector<1x20x32xbf16> to vector<20x32xbf16>
    %c2 = arith.constant 2 : index
    %c0_14 = arith.constant 0 : index
    %c0_15 = arith.constant 0 : index
    %13 = vector.load %arg5[%c2, %c0_14, %c0_15] : memref<16x32x64xbf16, #tpu.memory_space<vmem>>, vector<1x32x64xbf16>
    %14 = vector.shape_cast %13 : vector<1x32x64xbf16> to vector<32x64xbf16>
    %cst_16 = arith.constant dense<0.000000e+00> : vector<20x64xf32>
    %15 = tpu.matmul %12, %14, %cst_16 {dimension_numbers = #tpu.dot_dimension_numbers<[1], [0], [0], [1], [0, 0, 1, 1], [], []>} : vector<20x32xbf16>, vector<32x64xbf16>, vector<20x64xf32> -> vector<20x64xf32>
    %16 = arith.addf %10, %15 : vector<20x64xf32>
    %c0_17 = arith.constant 0 : index
    %c1_18 = arith.constant 1 : index
    %c0_19 = arith.constant 0 : index
    %17 = vector.load %arg2[%c0_17, %c1_18, %c0_19] : memref<1x32x32xbf16, #tpu.memory_space<vmem>>, vector<1x20x32xbf16>
    %18 = vector.shape_cast %17 : vector<1x20x32xbf16> to vector<20x32xbf16>
    %c3 = arith.constant 3 : index
    %c0_20 = arith.constant 0 : index
    %c0_21 = arith.constant 0 : index
    %19 = vector.load %arg5[%c3, %c0_20, %c0_21] : memref<16x32x64xbf16, #tpu.memory_space<vmem>>, vector<1x32x64xbf16>
    %20 = vector.shape_cast %19 : vector<1x32x64xbf16> to vector<32x64xbf16>
    %cst_22 = arith.constant dense<0.000000e+00> : vector<20x64xf32>
    %21 = tpu.matmul %18, %20, %cst_22 {dimension_numbers = #tpu.dot_dimension_numbers<[1], [0], [0], [1], [0, 0, 1, 1], [], []>} : vector<20x32xbf16>, vector<32x64xbf16>, vector<20x64xf32> -> vector<20x64xf32>
    %22 = arith.addf %16, %21 : vector<20x64xf32>
    %c0_23 = arith.constant 0 : index
    %c0_24 = arith.constant 0 : index
    %c0_25 = arith.constant 0 : index
    %23 = vector.load %arg3[%c0_23, %c0_24, %c0_25] : memref<1x32x32xbf16, #tpu.memory_space<vmem>>, vector<1x20x32xbf16>
    %24 = vector.shape_cast %23 : vector<1x20x32xbf16> to vector<20x32xbf16>
    %c4 = arith.constant 4 : index
    %c0_26 = arith.constant 0 : index
    %c0_27 = arith.constant 0 : index
    %25 = vector.load %arg5[%c4, %c0_26, %c0_27] : memref<16x32x64xbf16, #tpu.memory_space<vmem>>, vector<1x32x64xbf16>
    %26 = vector.shape_cast %25 : vector<1x32x64xbf16> to vector<32x64xbf16>
    %cst_28 = arith.constant dense<0.000000e+00> : vector<20x64xf32>
    %27 = tpu.matmul %24, %26, %cst_28 {dimension_numbers = #tpu.dot_dimension_numbers<[1], [0], [0], [1], [0, 0, 1, 1], [], []>} : vector<20x32xbf16>, vector<32x64xbf16>, vector<20x64xf32> -> vector<20x64xf32>
    %28 = arith.addf %22, %27 : vector<20x64xf32>
    %c0_29 = arith.constant 0 : index
    %c0_30 = arith.constant 0 : index
    %c0_31 = arith.constant 0 : index
    %29 = vector.load %arg4[%c0_29, %c0_30, %c0_31] : memref<1x32x32xbf16, #tpu.memory_space<vmem>>, vector<1x20x32xbf16>
    %30 = vector.shape_cast %29 : vector<1x20x32xbf16> to vector<20x32xbf16>
    %c5 = arith.constant 5 : index
    %c0_32 = arith.constant 0 : index
    %c0_33 = arith.constant 0 : index
    %31 = vector.load %arg5[%c5, %c0_32, %c0_33] : memref<16x32x64xbf16, #tpu.memory_space<vmem>>, vector<1x32x64xbf16>
    %32 = vector.shape_cast %31 : vector<1x32x64xbf16> to vector<32x64xbf16>
    %cst_34 = arith.constant dense<0.000000e+00> : vector<20x64xf32>
    %33 = tpu.matmul %30, %32, %cst_34 {dimension_numbers = #tpu.dot_dimension_numbers<[1], [0], [0], [1], [0, 0, 1, 1], [], []>} : vector<20x32xbf16>, vector<32x64xbf16>, vector<20x64xf32> -> vector<20x64xf32>
    %34 = arith.addf %28, %33 : vector<20x64xf32>
    %c0_35 = arith.constant 0 : index
    %c1_36 = arith.constant 1 : index
    %c0_37 = arith.constant 0 : index
    %35 = vector.load %arg3[%c0_35, %c1_36, %c0_37] : memref<1x32x32xbf16, #tpu.memory_space<vmem>>, vector<1x20x32xbf16>
    %36 = vector.shape_cast %35 : vector<1x20x32xbf16> to vector<20x32xbf16>
    %c6 = arith.constant 6 : index
    %c0_38 = arith.constant 0 : index
    %c0_39 = arith.constant 0 : index
    %37 = vector.load %arg5[%c6, %c0_38, %c0_39] : memref<16x32x64xbf16, #tpu.memory_space<vmem>>, vector<1x32x64xbf16>
    %38 = vector.shape_cast %37 : vector<1x32x64xbf16> to vector<32x64xbf16>
    %cst_40 = arith.constant dense<0.000000e+00> : vector<20x64xf32>
    %39 = tpu.matmul %36, %38, %cst_40 {dimension_numbers = #tpu.dot_dimension_numbers<[1], [0], [0], [1], [0, 0, 1, 1], [], []>} : vector<20x32xbf16>, vector<32x64xbf16>, vector<20x64xf32> -> vector<20x64xf32>
    %40 = arith.addf %34, %39 : vector<20x64xf32>
    %c0_41 = arith.constant 0 : index
    %c1_42 = arith.constant 1 : index
    %c0_43 = arith.constant 0 : index
    %41 = vector.load %arg4[%c0_41, %c1_42, %c0_43] : memref<1x32x32xbf16, #tpu.memory_space<vmem>>, vector<1x20x32xbf16>
    %42 = vector.shape_cast %41 : vector<1x20x32xbf16> to vector<20x32xbf16>
    %c7 = arith.constant 7 : index
    %c0_44 = arith.constant 0 : index
    %c0_45 = arith.constant 0 : index
    %43 = vector.load %arg5[%c7, %c0_44, %c0_45] : memref<16x32x64xbf16, #tpu.memory_space<vmem>>, vector<1x32x64xbf16>
    %44 = vector.shape_cast %43 : vector<1x32x64xbf16> to vector<32x64xbf16>
    %cst_46 = arith.constant dense<0.000000e+00> : vector<20x64xf32>
    %45 = tpu.matmul %42, %44, %cst_46 {dimension_numbers = #tpu.dot_dimension_numbers<[1], [0], [0], [1], [0, 0, 1, 1], [], []>} : vector<20x32xbf16>, vector<32x64xbf16>, vector<20x64xf32> -> vector<20x64xf32>
    %46 = arith.addf %40, %45 : vector<20x64xf32>
    %c0_47 = arith.constant 0 : index
    %c5_48 = arith.constant 5 : index
    %c0_49 = arith.constant 0 : index
    %47 = vector.load %arg1[%c0_47, %c5_48, %c0_49] : memref<1x32x32xbf16, #tpu.memory_space<vmem>>, vector<1x20x32xbf16>
    %48 = vector.shape_cast %47 : vector<1x20x32xbf16> to vector<20x32xbf16>
    %c8 = arith.constant 8 : index
    %c0_50 = arith.constant 0 : index
    %c0_51 = arith.constant 0 : index
    %49 = vector.load %arg5[%c8, %c0_50, %c0_51] : memref<16x32x64xbf16, #tpu.memory_space<vmem>>, vector<1x32x64xbf16>
    %50 = vector.shape_cast %49 : vector<1x32x64xbf16> to vector<32x64xbf16>
    %cst_52 = arith.constant dense<0.000000e+00> : vector<20x64xf32>
    %51 = tpu.matmul %48, %50, %cst_52 {dimension_numbers = #tpu.dot_dimension_numbers<[1], [0], [0], [1], [0, 0, 1, 1], [], []>} : vector<20x32xbf16>, vector<32x64xbf16>, vector<20x64xf32> -> vector<20x64xf32>
    %52 = arith.addf %46, %51 : vector<20x64xf32>
    %c0_53 = arith.constant 0 : index
    %c5_54 = arith.constant 5 : index
    %c0_55 = arith.constant 0 : index
    %53 = vector.load %arg2[%c0_53, %c5_54, %c0_55] : memref<1x32x32xbf16, #tpu.memory_space<vmem>>, vector<1x20x32xbf16>
    %54 = vector.shape_cast %53 : vector<1x20x32xbf16> to vector<20x32xbf16>
    %c9 = arith.constant 9 : index
    %c0_56 = arith.constant 0 : index
    %c0_57 = arith.constant 0 : index
    %55 = vector.load %arg5[%c9, %c0_56, %c0_57] : memref<16x32x64xbf16, #tpu.memory_space<vmem>>, vector<1x32x64xbf16>
    %56 = vector.shape_cast %55 : vector<1x32x64xbf16> to vector<32x64xbf16>
    %cst_58 = arith.constant dense<0.000000e+00> : vector<20x64xf32>
    %57 = tpu.matmul %54, %56, %cst_58 {dimension_numbers = #tpu.dot_dimension_numbers<[1], [0], [0], [1], [0, 0, 1, 1], [], []>} : vector<20x32xbf16>, vector<32x64xbf16>, vector<20x64xf32> -> vector<20x64xf32>
    %58 = arith.addf %52, %57 : vector<20x64xf32>
    %c0_59 = arith.constant 0 : index
    %c6_60 = arith.constant 6 : index
    %c0_61 = arith.constant 0 : index
    %59 = vector.load %arg1[%c0_59, %c6_60, %c0_61] : memref<1x32x32xbf16, #tpu.memory_space<vmem>>, vector<1x20x32xbf16>
    %60 = vector.shape_cast %59 : vector<1x20x32xbf16> to vector<20x32xbf16>
    %c10 = arith.constant 10 : index
    %c0_62 = arith.constant 0 : index
    %c0_63 = arith.constant 0 : index
    %61 = vector.load %arg5[%c10, %c0_62, %c0_63] : memref<16x32x64xbf16, #tpu.memory_space<vmem>>, vector<1x32x64xbf16>
    %62 = vector.shape_cast %61 : vector<1x32x64xbf16> to vector<32x64xbf16>
    %cst_64 = arith.constant dense<0.000000e+00> : vector<20x64xf32>
    %63 = tpu.matmul %60, %62, %cst_64 {dimension_numbers = #tpu.dot_dimension_numbers<[1], [0], [0], [1], [0, 0, 1, 1], [], []>} : vector<20x32xbf16>, vector<32x64xbf16>, vector<20x64xf32> -> vector<20x64xf32>
    %64 = arith.addf %58, %63 : vector<20x64xf32>
    %c0_65 = arith.constant 0 : index
    %c6_66 = arith.constant 6 : index
    %c0_67 = arith.constant 0 : index
    %65 = vector.load %arg2[%c0_65, %c6_66, %c0_67] : memref<1x32x32xbf16, #tpu.memory_space<vmem>>, vector<1x20x32xbf16>
    %66 = vector.shape_cast %65 : vector<1x20x32xbf16> to vector<20x32xbf16>
    %c11 = arith.constant 11 : index
    %c0_68 = arith.constant 0 : index
    %c0_69 = arith.constant 0 : index
    %67 = vector.load %arg5[%c11, %c0_68, %c0_69] : memref<16x32x64xbf16, #tpu.memory_space<vmem>>, vector<1x32x64xbf16>
    %68 = vector.shape_cast %67 : vector<1x32x64xbf16> to vector<32x64xbf16>
    %cst_70 = arith.constant dense<0.000000e+00> : vector<20x64xf32>
    %69 = tpu.matmul %66, %68, %cst_70 {dimension_numbers = #tpu.dot_dimension_numbers<[1], [0], [0], [1], [0, 0, 1, 1], [], []>} : vector<20x32xbf16>, vector<32x64xbf16>, vector<20x64xf32> -> vector<20x64xf32>
    %70 = arith.addf %64, %69 : vector<20x64xf32>
    %c0_71 = arith.constant 0 : index
    %c5_72 = arith.constant 5 : index
    %c0_73 = arith.constant 0 : index
    %71 = vector.load %arg3[%c0_71, %c5_72, %c0_73] : memref<1x32x32xbf16, #tpu.memory_space<vmem>>, vector<1x20x32xbf16>
    %72 = vector.shape_cast %71 : vector<1x20x32xbf16> to vector<20x32xbf16>
    %c12 = arith.constant 12 : index
    %c0_74 = arith.constant 0 : index
    %c0_75 = arith.constant 0 : index
    %73 = vector.load %arg5[%c12, %c0_74, %c0_75] : memref<16x32x64xbf16, #tpu.memory_space<vmem>>, vector<1x32x64xbf16>
    %74 = vector.shape_cast %73 : vector<1x32x64xbf16> to vector<32x64xbf16>
    %cst_76 = arith.constant dense<0.000000e+00> : vector<20x64xf32>
    %75 = tpu.matmul %72, %74, %cst_76 {dimension_numbers = #tpu.dot_dimension_numbers<[1], [0], [0], [1], [0, 0, 1, 1], [], []>} : vector<20x32xbf16>, vector<32x64xbf16>, vector<20x64xf32> -> vector<20x64xf32>
    %76 = arith.addf %70, %75 : vector<20x64xf32>
    %c0_77 = arith.constant 0 : index
    %c5_78 = arith.constant 5 : index
    %c0_79 = arith.constant 0 : index
    %77 = vector.load %arg4[%c0_77, %c5_78, %c0_79] : memref<1x32x32xbf16, #tpu.memory_space<vmem>>, vector<1x20x32xbf16>
    %78 = vector.shape_cast %77 : vector<1x20x32xbf16> to vector<20x32xbf16>
    %c13 = arith.constant 13 : index
    %c0_80 = arith.constant 0 : index
    %c0_81 = arith.constant 0 : index
    %79 = vector.load %arg5[%c13, %c0_80, %c0_81] : memref<16x32x64xbf16, #tpu.memory_space<vmem>>, vector<1x32x64xbf16>
    %80 = vector.shape_cast %79 : vector<1x32x64xbf16> to vector<32x64xbf16>
    %cst_82 = arith.constant dense<0.000000e+00> : vector<20x64xf32>
    %81 = tpu.matmul %78, %80, %cst_82 {dimension_numbers = #tpu.dot_dimension_numbers<[1], [0], [0], [1], [0, 0, 1, 1], [], []>} : vector<20x32xbf16>, vector<32x64xbf16>, vector<20x64xf32> -> vector<20x64xf32>
    %82 = arith.addf %76, %81 : vector<20x64xf32>
    %c0_83 = arith.constant 0 : index
    %c6_84 = arith.constant 6 : index
    %c0_85 = arith.constant 0 : index
    %83 = vector.load %arg3[%c0_83, %c6_84, %c0_85] : memref<1x32x32xbf16, #tpu.memory_space<vmem>>, vector<1x20x32xbf16>
    %84 = vector.shape_cast %83 : vector<1x20x32xbf16> to vector<20x32xbf16>
    %c14 = arith.constant 14 : index
    %c0_86 = arith.constant 0 : index
    %c0_87 = arith.constant 0 : index
    %85 = vector.load %arg5[%c14, %c0_86, %c0_87] : memref<16x32x64xbf16, #tpu.memory_space<vmem>>, vector<1x32x64xbf16>
    %86 = vector.shape_cast %85 : vector<1x32x64xbf16> to vector<32x64xbf16>
    %cst_88 = arith.constant dense<0.000000e+00> : vector<20x64xf32>
    %87 = tpu.matmul %84, %86, %cst_88 {dimension_numbers = #tpu.dot_dimension_numbers<[1], [0], [0], [1], [0, 0, 1, 1], [], []>} : vector<20x32xbf16>, vector<32x64xbf16>, vector<20x64xf32> -> vector<20x64xf32>
    %88 = arith.addf %82, %87 : vector<20x64xf32>
    %c0_89 = arith.constant 0 : index
    %c6_90 = arith.constant 6 : index
    %c0_91 = arith.constant 0 : index
    %89 = vector.load %arg4[%c0_89, %c6_90, %c0_91] : memref<1x32x32xbf16, #tpu.memory_space<vmem>>, vector<1x20x32xbf16>
    %90 = vector.shape_cast %89 : vector<1x20x32xbf16> to vector<20x32xbf16>
    %c15 = arith.constant 15 : index
    %c0_92 = arith.constant 0 : index
    %c0_93 = arith.constant 0 : index
    %91 = vector.load %arg5[%c15, %c0_92, %c0_93] : memref<16x32x64xbf16, #tpu.memory_space<vmem>>, vector<1x32x64xbf16>
    %92 = vector.shape_cast %91 : vector<1x32x64xbf16> to vector<32x64xbf16>
    %cst_94 = arith.constant dense<0.000000e+00> : vector<20x64xf32>
    %93 = tpu.matmul %90, %92, %cst_94 {dimension_numbers = #tpu.dot_dimension_numbers<[1], [0], [0], [1], [0, 0, 1, 1], [], []>} : vector<20x32xbf16>, vector<32x64xbf16>, vector<20x64xf32> -> vector<20x64xf32>
    %94 = arith.addf %88, %93 : vector<20x64xf32>
    %95 = arith.truncf %94 : vector<20x64xf32> to vector<20x64xbf16>
    %c0_95 = arith.constant 0 : index
    %c0_96 = arith.constant 0 : index
    %c0_97 = arith.constant 0 : index
    %96 = vector.load %arg7[%c0_95, %c0_96, %c0_97] : memref<1x20x64xbf16, #tpu.memory_space<vmem>>, vector<1x20x64xbf16>
    %97 = vector.shape_cast %96 : vector<1x20x64xbf16> to vector<20x64xbf16>
    %98 = vector.shape_cast %95 : vector<20x64xbf16> to vector<1x20x64xbf16>
    tpu.vector_store %arg7[%c0_95, %c0_96, %c0_97], %98 {strides = array<i32>} : memref<1x20x64xbf16, #tpu.memory_space<vmem>>, vector<1x20x64xbf16>,
    %c0_98 = arith.constant 0 : index
    %c0_99 = arith.constant 0 : index
    %99 = vector.load %arg6[%c0_98, %c0_99] : memref<20x1xf32, #tpu.memory_space<vmem>>, vector<20x1xf32>
    %100 = vector.broadcast %99 : vector<20x1xf32> to vector<20x64xf32>
    %101 = arith.mulf %94, %100 : vector<20x64xf32>
    %cst_100 = arith.constant dense<0.000000e+00> : vector<64xf32>
    %102 = vector.multi_reduction <add>, %101, %cst_100 [0] : vector<20x64xf32> to vector<64xf32>
    %103 = vector.shape_cast %102 : vector<64xf32> to vector<1x64xf32>
    %c0_101 = arith.constant 0 : index
    %c0_102 = arith.constant 0 : index
    %c0_103 = arith.constant 0 : index
    %104 = vector.load %arg8[%c0_101, %c0_102, %c0_103] : memref<1x1x64xf32, #tpu.memory_space<vmem>>, vector<1x1x64xf32>
    %105 = vector.shape_cast %104 : vector<1x1x64xf32> to vector<1x64xf32>
    %106 = vector.shape_cast %103 : vector<1x64xf32> to vector<1x1x64xf32>
    tpu.vector_store %arg8[%c0_101, %c0_102, %c0_103], %106 {strides = array<i32>} : memref<1x1x64xf32, #tpu.memory_space<vmem>>, vector<1x1x64xf32>,
    %107 = arith.mulf %94, %94 : vector<20x64xf32>
    %108 = vector.broadcast %99 : vector<20x1xf32> to vector<20x64xf32>
    %109 = arith.mulf %107, %108 : vector<20x64xf32>
    %cst_104 = arith.constant dense<0.000000e+00> : vector<64xf32>
    %110 = vector.multi_reduction <add>, %109, %cst_104 [0] : vector<20x64xf32> to vector<64xf32>
    %111 = vector.shape_cast %110 : vector<64xf32> to vector<1x64xf32>
    %c0_105 = arith.constant 0 : index
    %c0_106 = arith.constant 0 : index
    %c0_107 = arith.constant 0 : index
    %112 = vector.load %arg9[%c0_105, %c0_106, %c0_107] : memref<1x1x64xf32, #tpu.memory_space<vmem>>, vector<1x1x64xf32>
    %113 = vector.shape_cast %112 : vector<1x1x64xf32> to vector<1x64xf32>
    %114 = vector.shape_cast %111 : vector<1x64xf32> to vector<1x1x64xf32>
    tpu.vector_store %arg9[%c0_105, %c0_106, %c0_107], %114 {strides = array<i32>} : memref<1x1x64xf32, #tpu.memory_space<vmem>>, vector<1x1x64xf32>,
    return
  }
  func.func @transform_0(%arg0: i32) -> (i32, i32, i32) {
    %c0_i32 = arith.constant 0 : i32
    %c0_i32_0 = arith.constant 0 : i32
    %c0_i32_1 = arith.constant 0 : i32
    return %arg0, %c0_i32, %c0_i32_0 : i32, i32, i32
  }
  func.func @transform_1(%arg0: i32) -> (i32, i32, i32) {
    %c0_i32 = arith.constant 0 : i32
    %c0_i32_0 = arith.constant 0 : i32
    %c0_i32_1 = arith.constant 0 : i32
    return %arg0, %c0_i32, %c0_i32_0 : i32, i32, i32
  }
  func.func @transform_2(%arg0: i32) -> (i32, i32, i32) {
    %c0_i32 = arith.constant 0 : i32
    %c0_i32_0 = arith.constant 0 : i32
    %c0_i32_1 = arith.constant 0 : i32
    return %arg0, %c0_i32, %c0_i32_0 : i32, i32, i32
  }
  func.func @transform_3(%arg0: i32) -> (i32, i32, i32) {
    %c0_i32 = arith.constant 0 : i32
    %c0_i32_0 = arith.constant 0 : i32
    %c0_i32_1 = arith.constant 0 : i32
    return %arg0, %c0_i32, %c0_i32_0 : i32, i32, i32
  }
  func.func @transform_4(%arg0: i32) -> (i32, i32, i32) {
    %c0_i32 = arith.constant 0 : i32
    %c0_i32_0 = arith.constant 0 : i32
    %c0_i32_1 = arith.constant 0 : i32
    %c0_i32_2 = arith.constant 0 : i32
    return %c0_i32, %c0_i32_0, %c0_i32_1 : i32, i32, i32
  }
  func.func @transform_5(%arg0: i32) -> (i32, i32) {
    %c0_i32 = arith.constant 0 : i32
    %c0_i32_0 = arith.constant 0 : i32
    %c0_i32_1 = arith.constant 0 : i32
    return %c0_i32, %c0_i32_0 : i32, i32
  }
  func.func @transform_6(%arg0: i32) -> (i32, i32, i32) {
    %c0_i32 = arith.constant 0 : i32
    %c0_i32_0 = arith.constant 0 : i32
    %c0_i32_1 = arith.constant 0 : i32
    return %arg0, %c0_i32, %c0_i32_0 : i32, i32, i32
  }
  func.func @transform_7(%arg0: i32) -> (i32, i32, i32) {
    %c0_i32 = arith.constant 0 : i32
    %c0_i32_0 = arith.constant 0 : i32
    %c0_i32_1 = arith.constant 0 : i32
    return %arg0, %c0_i32, %c0_i32_0 : i32, i32, i32
  }
  func.func @transform_8(%arg0: i32) -> (i32, i32, i32) {
    %c0_i32 = arith.constant 0 : i32
    %c0_i32_0 = arith.constant 0 : i32
    %c0_i32_1 = arith.constant 0 : i32
    return %arg0, %c0_i32, %c0_i32_0 : i32, i32, i32
  }
}

module attributes {stable_mosaic.version = 11 : i64} {
  func.func @_conv4x4_kernel(%arg0: i32, %arg1: memref<1x40x64xbf16, #tpu.memory_space<vmem>>, %arg2: memref<16x64x128xbf16, #tpu.memory_space<vmem>>, %arg3: memref<18x1xf32, #tpu.memory_space<vmem>>, %arg4: memref<1x18x128xbf16, #tpu.memory_space<vmem>>, %arg5: memref<1x1x128xf32, #tpu.memory_space<vmem>>, %arg6: memref<1x1x128xf32, #tpu.memory_space<vmem>>) attributes {dimension_semantics = [#tpu.dimension_semantics<parallel>], iteration_bounds = array<i64: 2>, scalar_prefetch = 0 : i64, scratch_operands = 0 : i64, tpu.core_type = #tpu.core_type<tc>, window_params = [{transform_indices = @transform_0, window_bounds = array<i64: 1, 40, 64>}, {pipeline_mode = #tpu.pipeline_mode<synchronous>, transform_indices = @transform_1, window_bounds = array<i64: 16, 64, 128>}, {pipeline_mode = #tpu.pipeline_mode<synchronous>, transform_indices = @transform_2, window_bounds = array<i64: 18, 1>}, {transform_indices = @transform_3, window_bounds = array<i64: 1, 18, 128>}, {transform_indices = @transform_4, window_bounds = array<i64: 1, 1, 128>}, {transform_indices = @transform_5, window_bounds = array<i64: 1, 1, 128>}]} {
    %c0 = arith.constant 0 : index
    %c0_0 = arith.constant 0 : index
    %c0_1 = arith.constant 0 : index
    %0 = vector.load %arg1[%c0, %c0_0, %c0_1] : memref<1x40x64xbf16, #tpu.memory_space<vmem>>, vector<1x18x64xbf16>
    %1 = vector.shape_cast %0 : vector<1x18x64xbf16> to vector<18x64xbf16>
    %c0_2 = arith.constant 0 : index
    %c0_3 = arith.constant 0 : index
    %c0_4 = arith.constant 0 : index
    %2 = vector.load %arg2[%c0_2, %c0_3, %c0_4] : memref<16x64x128xbf16, #tpu.memory_space<vmem>>, vector<1x64x128xbf16>
    %3 = vector.shape_cast %2 : vector<1x64x128xbf16> to vector<64x128xbf16>
    %cst = arith.constant dense<0.000000e+00> : vector<18x128xf32>
    %4 = tpu.matmul %1, %3, %cst {dimension_numbers = #tpu.dot_dimension_numbers<[1], [0], [0], [1], [0, 0, 1, 1], [], []>} : vector<18x64xbf16>, vector<64x128xbf16>, vector<18x128xf32> -> vector<18x128xf32>
    %c0_5 = arith.constant 0 : index
    %c1 = arith.constant 1 : index
    %c0_6 = arith.constant 0 : index
    %5 = vector.load %arg1[%c0_5, %c1, %c0_6] : memref<1x40x64xbf16, #tpu.memory_space<vmem>>, vector<1x18x64xbf16>
    %6 = vector.shape_cast %5 : vector<1x18x64xbf16> to vector<18x64xbf16>
    %c1_7 = arith.constant 1 : index
    %c0_8 = arith.constant 0 : index
    %c0_9 = arith.constant 0 : index
    %7 = vector.load %arg2[%c1_7, %c0_8, %c0_9] : memref<16x64x128xbf16, #tpu.memory_space<vmem>>, vector<1x64x128xbf16>
    %8 = vector.shape_cast %7 : vector<1x64x128xbf16> to vector<64x128xbf16>
    %cst_10 = arith.constant dense<0.000000e+00> : vector<18x128xf32>
    %9 = tpu.matmul %6, %8, %cst_10 {dimension_numbers = #tpu.dot_dimension_numbers<[1], [0], [0], [1], [0, 0, 1, 1], [], []>} : vector<18x64xbf16>, vector<64x128xbf16>, vector<18x128xf32> -> vector<18x128xf32>
    %10 = arith.addf %4, %9 : vector<18x128xf32>
    %c0_11 = arith.constant 0 : index
    %c2 = arith.constant 2 : index
    %c0_12 = arith.constant 0 : index
    %11 = vector.load %arg1[%c0_11, %c2, %c0_12] : memref<1x40x64xbf16, #tpu.memory_space<vmem>>, vector<1x18x64xbf16>
    %12 = vector.shape_cast %11 : vector<1x18x64xbf16> to vector<18x64xbf16>
    %c2_13 = arith.constant 2 : index
    %c0_14 = arith.constant 0 : index
    %c0_15 = arith.constant 0 : index
    %13 = vector.load %arg2[%c2_13, %c0_14, %c0_15] : memref<16x64x128xbf16, #tpu.memory_space<vmem>>, vector<1x64x128xbf16>
    %14 = vector.shape_cast %13 : vector<1x64x128xbf16> to vector<64x128xbf16>
    %cst_16 = arith.constant dense<0.000000e+00> : vector<18x128xf32>
    %15 = tpu.matmul %12, %14, %cst_16 {dimension_numbers = #tpu.dot_dimension_numbers<[1], [0], [0], [1], [0, 0, 1, 1], [], []>} : vector<18x64xbf16>, vector<64x128xbf16>, vector<18x128xf32> -> vector<18x128xf32>
    %16 = arith.addf %10, %15 : vector<18x128xf32>
    %c0_17 = arith.constant 0 : index
    %c3 = arith.constant 3 : index
    %c0_18 = arith.constant 0 : index
    %17 = vector.load %arg1[%c0_17, %c3, %c0_18] : memref<1x40x64xbf16, #tpu.memory_space<vmem>>, vector<1x18x64xbf16>
    %18 = vector.shape_cast %17 : vector<1x18x64xbf16> to vector<18x64xbf16>
    %c3_19 = arith.constant 3 : index
    %c0_20 = arith.constant 0 : index
    %c0_21 = arith.constant 0 : index
    %19 = vector.load %arg2[%c3_19, %c0_20, %c0_21] : memref<16x64x128xbf16, #tpu.memory_space<vmem>>, vector<1x64x128xbf16>
    %20 = vector.shape_cast %19 : vector<1x64x128xbf16> to vector<64x128xbf16>
    %cst_22 = arith.constant dense<0.000000e+00> : vector<18x128xf32>
    %21 = tpu.matmul %18, %20, %cst_22 {dimension_numbers = #tpu.dot_dimension_numbers<[1], [0], [0], [1], [0, 0, 1, 1], [], []>} : vector<18x64xbf16>, vector<64x128xbf16>, vector<18x128xf32> -> vector<18x128xf32>
    %22 = arith.addf %16, %21 : vector<18x128xf32>
    %c0_23 = arith.constant 0 : index
    %c6 = arith.constant 6 : index
    %c0_24 = arith.constant 0 : index
    %23 = vector.load %arg1[%c0_23, %c6, %c0_24] : memref<1x40x64xbf16, #tpu.memory_space<vmem>>, vector<1x18x64xbf16>
    %24 = vector.shape_cast %23 : vector<1x18x64xbf16> to vector<18x64xbf16>
    %c4 = arith.constant 4 : index
    %c0_25 = arith.constant 0 : index
    %c0_26 = arith.constant 0 : index
    %25 = vector.load %arg2[%c4, %c0_25, %c0_26] : memref<16x64x128xbf16, #tpu.memory_space<vmem>>, vector<1x64x128xbf16>
    %26 = vector.shape_cast %25 : vector<1x64x128xbf16> to vector<64x128xbf16>
    %cst_27 = arith.constant dense<0.000000e+00> : vector<18x128xf32>
    %27 = tpu.matmul %24, %26, %cst_27 {dimension_numbers = #tpu.dot_dimension_numbers<[1], [0], [0], [1], [0, 0, 1, 1], [], []>} : vector<18x64xbf16>, vector<64x128xbf16>, vector<18x128xf32> -> vector<18x128xf32>
    %28 = arith.addf %22, %27 : vector<18x128xf32>
    %c0_28 = arith.constant 0 : index
    %c7 = arith.constant 7 : index
    %c0_29 = arith.constant 0 : index
    %29 = vector.load %arg1[%c0_28, %c7, %c0_29] : memref<1x40x64xbf16, #tpu.memory_space<vmem>>, vector<1x18x64xbf16>
    %30 = vector.shape_cast %29 : vector<1x18x64xbf16> to vector<18x64xbf16>
    %c5 = arith.constant 5 : index
    %c0_30 = arith.constant 0 : index
    %c0_31 = arith.constant 0 : index
    %31 = vector.load %arg2[%c5, %c0_30, %c0_31] : memref<16x64x128xbf16, #tpu.memory_space<vmem>>, vector<1x64x128xbf16>
    %32 = vector.shape_cast %31 : vector<1x64x128xbf16> to vector<64x128xbf16>
    %cst_32 = arith.constant dense<0.000000e+00> : vector<18x128xf32>
    %33 = tpu.matmul %30, %32, %cst_32 {dimension_numbers = #tpu.dot_dimension_numbers<[1], [0], [0], [1], [0, 0, 1, 1], [], []>} : vector<18x64xbf16>, vector<64x128xbf16>, vector<18x128xf32> -> vector<18x128xf32>
    %34 = arith.addf %28, %33 : vector<18x128xf32>
    %c0_33 = arith.constant 0 : index
    %c8 = arith.constant 8 : index
    %c0_34 = arith.constant 0 : index
    %35 = vector.load %arg1[%c0_33, %c8, %c0_34] : memref<1x40x64xbf16, #tpu.memory_space<vmem>>, vector<1x18x64xbf16>
    %36 = vector.shape_cast %35 : vector<1x18x64xbf16> to vector<18x64xbf16>
    %c6_35 = arith.constant 6 : index
    %c0_36 = arith.constant 0 : index
    %c0_37 = arith.constant 0 : index
    %37 = vector.load %arg2[%c6_35, %c0_36, %c0_37] : memref<16x64x128xbf16, #tpu.memory_space<vmem>>, vector<1x64x128xbf16>
    %38 = vector.shape_cast %37 : vector<1x64x128xbf16> to vector<64x128xbf16>
    %cst_38 = arith.constant dense<0.000000e+00> : vector<18x128xf32>
    %39 = tpu.matmul %36, %38, %cst_38 {dimension_numbers = #tpu.dot_dimension_numbers<[1], [0], [0], [1], [0, 0, 1, 1], [], []>} : vector<18x64xbf16>, vector<64x128xbf16>, vector<18x128xf32> -> vector<18x128xf32>
    %40 = arith.addf %34, %39 : vector<18x128xf32>
    %c0_39 = arith.constant 0 : index
    %c9 = arith.constant 9 : index
    %c0_40 = arith.constant 0 : index
    %41 = vector.load %arg1[%c0_39, %c9, %c0_40] : memref<1x40x64xbf16, #tpu.memory_space<vmem>>, vector<1x18x64xbf16>
    %42 = vector.shape_cast %41 : vector<1x18x64xbf16> to vector<18x64xbf16>
    %c7_41 = arith.constant 7 : index
    %c0_42 = arith.constant 0 : index
    %c0_43 = arith.constant 0 : index
    %43 = vector.load %arg2[%c7_41, %c0_42, %c0_43] : memref<16x64x128xbf16, #tpu.memory_space<vmem>>, vector<1x64x128xbf16>
    %44 = vector.shape_cast %43 : vector<1x64x128xbf16> to vector<64x128xbf16>
    %cst_44 = arith.constant dense<0.000000e+00> : vector<18x128xf32>
    %45 = tpu.matmul %42, %44, %cst_44 {dimension_numbers = #tpu.dot_dimension_numbers<[1], [0], [0], [1], [0, 0, 1, 1], [], []>} : vector<18x64xbf16>, vector<64x128xbf16>, vector<18x128xf32> -> vector<18x128xf32>
    %46 = arith.addf %40, %45 : vector<18x128xf32>
    %c0_45 = arith.constant 0 : index
    %c12 = arith.constant 12 : index
    %c0_46 = arith.constant 0 : index
    %47 = vector.load %arg1[%c0_45, %c12, %c0_46] : memref<1x40x64xbf16, #tpu.memory_space<vmem>>, vector<1x18x64xbf16>
    %48 = vector.shape_cast %47 : vector<1x18x64xbf16> to vector<18x64xbf16>
    %c8_47 = arith.constant 8 : index
    %c0_48 = arith.constant 0 : index
    %c0_49 = arith.constant 0 : index
    %49 = vector.load %arg2[%c8_47, %c0_48, %c0_49] : memref<16x64x128xbf16, #tpu.memory_space<vmem>>, vector<1x64x128xbf16>
    %50 = vector.shape_cast %49 : vector<1x64x128xbf16> to vector<64x128xbf16>
    %cst_50 = arith.constant dense<0.000000e+00> : vector<18x128xf32>
    %51 = tpu.matmul %48, %50, %cst_50 {dimension_numbers = #tpu.dot_dimension_numbers<[1], [0], [0], [1], [0, 0, 1, 1], [], []>} : vector<18x64xbf16>, vector<64x128xbf16>, vector<18x128xf32> -> vector<18x128xf32>
    %52 = arith.addf %46, %51 : vector<18x128xf32>
    %c0_51 = arith.constant 0 : index
    %c13 = arith.constant 13 : index
    %c0_52 = arith.constant 0 : index
    %53 = vector.load %arg1[%c0_51, %c13, %c0_52] : memref<1x40x64xbf16, #tpu.memory_space<vmem>>, vector<1x18x64xbf16>
    %54 = vector.shape_cast %53 : vector<1x18x64xbf16> to vector<18x64xbf16>
    %c9_53 = arith.constant 9 : index
    %c0_54 = arith.constant 0 : index
    %c0_55 = arith.constant 0 : index
    %55 = vector.load %arg2[%c9_53, %c0_54, %c0_55] : memref<16x64x128xbf16, #tpu.memory_space<vmem>>, vector<1x64x128xbf16>
    %56 = vector.shape_cast %55 : vector<1x64x128xbf16> to vector<64x128xbf16>
    %cst_56 = arith.constant dense<0.000000e+00> : vector<18x128xf32>
    %57 = tpu.matmul %54, %56, %cst_56 {dimension_numbers = #tpu.dot_dimension_numbers<[1], [0], [0], [1], [0, 0, 1, 1], [], []>} : vector<18x64xbf16>, vector<64x128xbf16>, vector<18x128xf32> -> vector<18x128xf32>
    %58 = arith.addf %52, %57 : vector<18x128xf32>
    %c0_57 = arith.constant 0 : index
    %c14 = arith.constant 14 : index
    %c0_58 = arith.constant 0 : index
    %59 = vector.load %arg1[%c0_57, %c14, %c0_58] : memref<1x40x64xbf16, #tpu.memory_space<vmem>>, vector<1x18x64xbf16>
    %60 = vector.shape_cast %59 : vector<1x18x64xbf16> to vector<18x64xbf16>
    %c10 = arith.constant 10 : index
    %c0_59 = arith.constant 0 : index
    %c0_60 = arith.constant 0 : index
    %61 = vector.load %arg2[%c10, %c0_59, %c0_60] : memref<16x64x128xbf16, #tpu.memory_space<vmem>>, vector<1x64x128xbf16>
    %62 = vector.shape_cast %61 : vector<1x64x128xbf16> to vector<64x128xbf16>
    %cst_61 = arith.constant dense<0.000000e+00> : vector<18x128xf32>
    %63 = tpu.matmul %60, %62, %cst_61 {dimension_numbers = #tpu.dot_dimension_numbers<[1], [0], [0], [1], [0, 0, 1, 1], [], []>} : vector<18x64xbf16>, vector<64x128xbf16>, vector<18x128xf32> -> vector<18x128xf32>
    %64 = arith.addf %58, %63 : vector<18x128xf32>
    %c0_62 = arith.constant 0 : index
    %c15 = arith.constant 15 : index
    %c0_63 = arith.constant 0 : index
    %65 = vector.load %arg1[%c0_62, %c15, %c0_63] : memref<1x40x64xbf16, #tpu.memory_space<vmem>>, vector<1x18x64xbf16>
    %66 = vector.shape_cast %65 : vector<1x18x64xbf16> to vector<18x64xbf16>
    %c11 = arith.constant 11 : index
    %c0_64 = arith.constant 0 : index
    %c0_65 = arith.constant 0 : index
    %67 = vector.load %arg2[%c11, %c0_64, %c0_65] : memref<16x64x128xbf16, #tpu.memory_space<vmem>>, vector<1x64x128xbf16>
    %68 = vector.shape_cast %67 : vector<1x64x128xbf16> to vector<64x128xbf16>
    %cst_66 = arith.constant dense<0.000000e+00> : vector<18x128xf32>
    %69 = tpu.matmul %66, %68, %cst_66 {dimension_numbers = #tpu.dot_dimension_numbers<[1], [0], [0], [1], [0, 0, 1, 1], [], []>} : vector<18x64xbf16>, vector<64x128xbf16>, vector<18x128xf32> -> vector<18x128xf32>
    %70 = arith.addf %64, %69 : vector<18x128xf32>
    %c0_67 = arith.constant 0 : index
    %c18 = arith.constant 18 : index
    %c0_68 = arith.constant 0 : index
    %71 = vector.load %arg1[%c0_67, %c18, %c0_68] : memref<1x40x64xbf16, #tpu.memory_space<vmem>>, vector<1x18x64xbf16>
    %72 = vector.shape_cast %71 : vector<1x18x64xbf16> to vector<18x64xbf16>
    %c12_69 = arith.constant 12 : index
    %c0_70 = arith.constant 0 : index
    %c0_71 = arith.constant 0 : index
    %73 = vector.load %arg2[%c12_69, %c0_70, %c0_71] : memref<16x64x128xbf16, #tpu.memory_space<vmem>>, vector<1x64x128xbf16>
    %74 = vector.shape_cast %73 : vector<1x64x128xbf16> to vector<64x128xbf16>
    %cst_72 = arith.constant dense<0.000000e+00> : vector<18x128xf32>
    %75 = tpu.matmul %72, %74, %cst_72 {dimension_numbers = #tpu.dot_dimension_numbers<[1], [0], [0], [1], [0, 0, 1, 1], [], []>} : vector<18x64xbf16>, vector<64x128xbf16>, vector<18x128xf32> -> vector<18x128xf32>
    %76 = arith.addf %70, %75 : vector<18x128xf32>
    %c0_73 = arith.constant 0 : index
    %c19 = arith.constant 19 : index
    %c0_74 = arith.constant 0 : index
    %77 = vector.load %arg1[%c0_73, %c19, %c0_74] : memref<1x40x64xbf16, #tpu.memory_space<vmem>>, vector<1x18x64xbf16>
    %78 = vector.shape_cast %77 : vector<1x18x64xbf16> to vector<18x64xbf16>
    %c13_75 = arith.constant 13 : index
    %c0_76 = arith.constant 0 : index
    %c0_77 = arith.constant 0 : index
    %79 = vector.load %arg2[%c13_75, %c0_76, %c0_77] : memref<16x64x128xbf16, #tpu.memory_space<vmem>>, vector<1x64x128xbf16>
    %80 = vector.shape_cast %79 : vector<1x64x128xbf16> to vector<64x128xbf16>
    %cst_78 = arith.constant dense<0.000000e+00> : vector<18x128xf32>
    %81 = tpu.matmul %78, %80, %cst_78 {dimension_numbers = #tpu.dot_dimension_numbers<[1], [0], [0], [1], [0, 0, 1, 1], [], []>} : vector<18x64xbf16>, vector<64x128xbf16>, vector<18x128xf32> -> vector<18x128xf32>
    %82 = arith.addf %76, %81 : vector<18x128xf32>
    %c0_79 = arith.constant 0 : index
    %c20 = arith.constant 20 : index
    %c0_80 = arith.constant 0 : index
    %83 = vector.load %arg1[%c0_79, %c20, %c0_80] : memref<1x40x64xbf16, #tpu.memory_space<vmem>>, vector<1x18x64xbf16>
    %84 = vector.shape_cast %83 : vector<1x18x64xbf16> to vector<18x64xbf16>
    %c14_81 = arith.constant 14 : index
    %c0_82 = arith.constant 0 : index
    %c0_83 = arith.constant 0 : index
    %85 = vector.load %arg2[%c14_81, %c0_82, %c0_83] : memref<16x64x128xbf16, #tpu.memory_space<vmem>>, vector<1x64x128xbf16>
    %86 = vector.shape_cast %85 : vector<1x64x128xbf16> to vector<64x128xbf16>
    %cst_84 = arith.constant dense<0.000000e+00> : vector<18x128xf32>
    %87 = tpu.matmul %84, %86, %cst_84 {dimension_numbers = #tpu.dot_dimension_numbers<[1], [0], [0], [1], [0, 0, 1, 1], [], []>} : vector<18x64xbf16>, vector<64x128xbf16>, vector<18x128xf32> -> vector<18x128xf32>
    %88 = arith.addf %82, %87 : vector<18x128xf32>
    %c0_85 = arith.constant 0 : index
    %c21 = arith.constant 21 : index
    %c0_86 = arith.constant 0 : index
    %89 = vector.load %arg1[%c0_85, %c21, %c0_86] : memref<1x40x64xbf16, #tpu.memory_space<vmem>>, vector<1x18x64xbf16>
    %90 = vector.shape_cast %89 : vector<1x18x64xbf16> to vector<18x64xbf16>
    %c15_87 = arith.constant 15 : index
    %c0_88 = arith.constant 0 : index
    %c0_89 = arith.constant 0 : index
    %91 = vector.load %arg2[%c15_87, %c0_88, %c0_89] : memref<16x64x128xbf16, #tpu.memory_space<vmem>>, vector<1x64x128xbf16>
    %92 = vector.shape_cast %91 : vector<1x64x128xbf16> to vector<64x128xbf16>
    %cst_90 = arith.constant dense<0.000000e+00> : vector<18x128xf32>
    %93 = tpu.matmul %90, %92, %cst_90 {dimension_numbers = #tpu.dot_dimension_numbers<[1], [0], [0], [1], [0, 0, 1, 1], [], []>} : vector<18x64xbf16>, vector<64x128xbf16>, vector<18x128xf32> -> vector<18x128xf32>
    %94 = arith.addf %88, %93 : vector<18x128xf32>
    %95 = arith.truncf %94 : vector<18x128xf32> to vector<18x128xbf16>
    %c0_91 = arith.constant 0 : index
    %c0_92 = arith.constant 0 : index
    %c0_93 = arith.constant 0 : index
    %96 = vector.load %arg4[%c0_91, %c0_92, %c0_93] : memref<1x18x128xbf16, #tpu.memory_space<vmem>>, vector<1x18x128xbf16>
    %97 = vector.shape_cast %96 : vector<1x18x128xbf16> to vector<18x128xbf16>
    %98 = vector.shape_cast %95 : vector<18x128xbf16> to vector<1x18x128xbf16>
    tpu.vector_store %arg4[%c0_91, %c0_92, %c0_93], %98 {strides = array<i32>} : memref<1x18x128xbf16, #tpu.memory_space<vmem>>, vector<1x18x128xbf16>,
    %c0_94 = arith.constant 0 : index
    %c0_95 = arith.constant 0 : index
    %99 = vector.load %arg3[%c0_94, %c0_95] : memref<18x1xf32, #tpu.memory_space<vmem>>, vector<18x1xf32>
    %100 = vector.broadcast %99 : vector<18x1xf32> to vector<18x128xf32>
    %101 = arith.mulf %94, %100 : vector<18x128xf32>
    %cst_96 = arith.constant dense<0.000000e+00> : vector<128xf32>
    %102 = vector.multi_reduction <add>, %101, %cst_96 [0] : vector<18x128xf32> to vector<128xf32>
    %103 = vector.shape_cast %102 : vector<128xf32> to vector<1x128xf32>
    %c0_97 = arith.constant 0 : index
    %c0_98 = arith.constant 0 : index
    %c0_99 = arith.constant 0 : index
    %104 = vector.load %arg5[%c0_97, %c0_98, %c0_99] : memref<1x1x128xf32, #tpu.memory_space<vmem>>, vector<1x1x128xf32>
    %105 = vector.shape_cast %104 : vector<1x1x128xf32> to vector<1x128xf32>
    %106 = vector.shape_cast %103 : vector<1x128xf32> to vector<1x1x128xf32>
    tpu.vector_store %arg5[%c0_97, %c0_98, %c0_99], %106 {strides = array<i32>} : memref<1x1x128xf32, #tpu.memory_space<vmem>>, vector<1x1x128xf32>,
    %107 = arith.mulf %94, %94 : vector<18x128xf32>
    %108 = vector.broadcast %99 : vector<18x1xf32> to vector<18x128xf32>
    %109 = arith.mulf %107, %108 : vector<18x128xf32>
    %cst_100 = arith.constant dense<0.000000e+00> : vector<128xf32>
    %110 = vector.multi_reduction <add>, %109, %cst_100 [0] : vector<18x128xf32> to vector<128xf32>
    %111 = vector.shape_cast %110 : vector<128xf32> to vector<1x128xf32>
    %c0_101 = arith.constant 0 : index
    %c0_102 = arith.constant 0 : index
    %c0_103 = arith.constant 0 : index
    %112 = vector.load %arg6[%c0_101, %c0_102, %c0_103] : memref<1x1x128xf32, #tpu.memory_space<vmem>>, vector<1x1x128xf32>
    %113 = vector.shape_cast %112 : vector<1x1x128xf32> to vector<1x128xf32>
    %114 = vector.shape_cast %111 : vector<1x128xf32> to vector<1x1x128xf32>
    tpu.vector_store %arg6[%c0_101, %c0_102, %c0_103], %114 {strides = array<i32>} : memref<1x1x128xf32, #tpu.memory_space<vmem>>, vector<1x1x128xf32>,
    return
  }
  func.func @transform_0(%arg0: i32) -> (i32, i32, i32) {
    %c0_i32 = arith.constant 0 : i32
    %c0_i32_0 = arith.constant 0 : i32
    %c0_i32_1 = arith.constant 0 : i32
    return %arg0, %c0_i32, %c0_i32_0 : i32, i32, i32
  }
  func.func @transform_1(%arg0: i32) -> (i32, i32, i32) {
    %c0_i32 = arith.constant 0 : i32
    %c0_i32_0 = arith.constant 0 : i32
    %c0_i32_1 = arith.constant 0 : i32
    %c0_i32_2 = arith.constant 0 : i32
    return %c0_i32, %c0_i32_0, %c0_i32_1 : i32, i32, i32
  }
  func.func @transform_2(%arg0: i32) -> (i32, i32) {
    %c0_i32 = arith.constant 0 : i32
    %c0_i32_0 = arith.constant 0 : i32
    %c0_i32_1 = arith.constant 0 : i32
    return %c0_i32, %c0_i32_0 : i32, i32
  }
  func.func @transform_3(%arg0: i32) -> (i32, i32, i32) {
    %c0_i32 = arith.constant 0 : i32
    %c0_i32_0 = arith.constant 0 : i32
    %c0_i32_1 = arith.constant 0 : i32
    return %arg0, %c0_i32, %c0_i32_0 : i32, i32, i32
  }
  func.func @transform_4(%arg0: i32) -> (i32, i32, i32) {
    %c0_i32 = arith.constant 0 : i32
    %c0_i32_0 = arith.constant 0 : i32
    %c0_i32_1 = arith.constant 0 : i32
    return %arg0, %c0_i32, %c0_i32_0 : i32, i32, i32
  }
  func.func @transform_5(%arg0: i32) -> (i32, i32, i32) {
    %c0_i32 = arith.constant 0 : i32
    %c0_i32_0 = arith.constant 0 : i32
    %c0_i32_1 = arith.constant 0 : i32
    return %arg0, %c0_i32, %c0_i32_0 : i32, i32, i32
  }
}

module attributes {stable_mosaic.version = 11 : i64} {
  func.func @_conv4x4_kernel(%arg0: i32, %arg1: memref<1x32x128xbf16, #tpu.memory_space<vmem>>, %arg2: memref<16x128x128xbf16, #tpu.memory_space<vmem>>, %arg3: memref<1x128xf32, #tpu.memory_space<vmem>>, %arg4: memref<1x10x128xf32, #tpu.memory_space<vmem>>) attributes {dimension_semantics = [#tpu.dimension_semantics<parallel>], iteration_bounds = array<i64: 2>, scalar_prefetch = 0 : i64, scratch_operands = 0 : i64, tpu.core_type = #tpu.core_type<tc>, window_params = [{transform_indices = @transform_0, window_bounds = array<i64: 1, 32, 128>}, {pipeline_mode = #tpu.pipeline_mode<synchronous>, transform_indices = @transform_1, window_bounds = array<i64: 16, 128, 128>}, {pipeline_mode = #tpu.pipeline_mode<synchronous>, transform_indices = @transform_2, window_bounds = array<i64: 1, 128>}, {transform_indices = @transform_3, window_bounds = array<i64: 1, 10, 128>}]} {
    %c0 = arith.constant 0 : index
    %c0_0 = arith.constant 0 : index
    %c0_1 = arith.constant 0 : index
    %0 = vector.load %arg1[%c0, %c0_0, %c0_1] : memref<1x32x128xbf16, #tpu.memory_space<vmem>>, vector<1x10x128xbf16>
    %1 = vector.shape_cast %0 : vector<1x10x128xbf16> to vector<10x128xbf16>
    %c0_2 = arith.constant 0 : index
    %c0_3 = arith.constant 0 : index
    %c0_4 = arith.constant 0 : index
    %2 = vector.load %arg2[%c0_2, %c0_3, %c0_4] : memref<16x128x128xbf16, #tpu.memory_space<vmem>>, vector<1x128x128xbf16>
    %3 = vector.shape_cast %2 : vector<1x128x128xbf16> to vector<128x128xbf16>
    %cst = arith.constant dense<0.000000e+00> : vector<10x128xf32>
    %4 = tpu.matmul %1, %3, %cst {dimension_numbers = #tpu.dot_dimension_numbers<[1], [0], [0], [1], [0, 0, 1, 1], [], []>} : vector<10x128xbf16>, vector<128x128xbf16>, vector<10x128xf32> -> vector<10x128xf32>
    %c0_5 = arith.constant 0 : index
    %c1 = arith.constant 1 : index
    %c0_6 = arith.constant 0 : index
    %5 = vector.load %arg1[%c0_5, %c1, %c0_6] : memref<1x32x128xbf16, #tpu.memory_space<vmem>>, vector<1x10x128xbf16>
    %6 = vector.shape_cast %5 : vector<1x10x128xbf16> to vector<10x128xbf16>
    %c1_7 = arith.constant 1 : index
    %c0_8 = arith.constant 0 : index
    %c0_9 = arith.constant 0 : index
    %7 = vector.load %arg2[%c1_7, %c0_8, %c0_9] : memref<16x128x128xbf16, #tpu.memory_space<vmem>>, vector<1x128x128xbf16>
    %8 = vector.shape_cast %7 : vector<1x128x128xbf16> to vector<128x128xbf16>
    %cst_10 = arith.constant dense<0.000000e+00> : vector<10x128xf32>
    %9 = tpu.matmul %6, %8, %cst_10 {dimension_numbers = #tpu.dot_dimension_numbers<[1], [0], [0], [1], [0, 0, 1, 1], [], []>} : vector<10x128xbf16>, vector<128x128xbf16>, vector<10x128xf32> -> vector<10x128xf32>
    %10 = arith.addf %4, %9 : vector<10x128xf32>
    %c0_11 = arith.constant 0 : index
    %c2 = arith.constant 2 : index
    %c0_12 = arith.constant 0 : index
    %11 = vector.load %arg1[%c0_11, %c2, %c0_12] : memref<1x32x128xbf16, #tpu.memory_space<vmem>>, vector<1x10x128xbf16>
    %12 = vector.shape_cast %11 : vector<1x10x128xbf16> to vector<10x128xbf16>
    %c2_13 = arith.constant 2 : index
    %c0_14 = arith.constant 0 : index
    %c0_15 = arith.constant 0 : index
    %13 = vector.load %arg2[%c2_13, %c0_14, %c0_15] : memref<16x128x128xbf16, #tpu.memory_space<vmem>>, vector<1x128x128xbf16>
    %14 = vector.shape_cast %13 : vector<1x128x128xbf16> to vector<128x128xbf16>
    %cst_16 = arith.constant dense<0.000000e+00> : vector<10x128xf32>
    %15 = tpu.matmul %12, %14, %cst_16 {dimension_numbers = #tpu.dot_dimension_numbers<[1], [0], [0], [1], [0, 0, 1, 1], [], []>} : vector<10x128xbf16>, vector<128x128xbf16>, vector<10x128xf32> -> vector<10x128xf32>
    %16 = arith.addf %10, %15 : vector<10x128xf32>
    %c0_17 = arith.constant 0 : index
    %c3 = arith.constant 3 : index
    %c0_18 = arith.constant 0 : index
    %17 = vector.load %arg1[%c0_17, %c3, %c0_18] : memref<1x32x128xbf16, #tpu.memory_space<vmem>>, vector<1x10x128xbf16>
    %18 = vector.shape_cast %17 : vector<1x10x128xbf16> to vector<10x128xbf16>
    %c3_19 = arith.constant 3 : index
    %c0_20 = arith.constant 0 : index
    %c0_21 = arith.constant 0 : index
    %19 = vector.load %arg2[%c3_19, %c0_20, %c0_21] : memref<16x128x128xbf16, #tpu.memory_space<vmem>>, vector<1x128x128xbf16>
    %20 = vector.shape_cast %19 : vector<1x128x128xbf16> to vector<128x128xbf16>
    %cst_22 = arith.constant dense<0.000000e+00> : vector<10x128xf32>
    %21 = tpu.matmul %18, %20, %cst_22 {dimension_numbers = #tpu.dot_dimension_numbers<[1], [0], [0], [1], [0, 0, 1, 1], [], []>} : vector<10x128xbf16>, vector<128x128xbf16>, vector<10x128xf32> -> vector<10x128xf32>
    %22 = arith.addf %16, %21 : vector<10x128xf32>
    %c0_23 = arith.constant 0 : index
    %c5 = arith.constant 5 : index
    %c0_24 = arith.constant 0 : index
    %23 = vector.load %arg1[%c0_23, %c5, %c0_24] : memref<1x32x128xbf16, #tpu.memory_space<vmem>>, vector<1x10x128xbf16>
    %24 = vector.shape_cast %23 : vector<1x10x128xbf16> to vector<10x128xbf16>
    %c4 = arith.constant 4 : index
    %c0_25 = arith.constant 0 : index
    %c0_26 = arith.constant 0 : index
    %25 = vector.load %arg2[%c4, %c0_25, %c0_26] : memref<16x128x128xbf16, #tpu.memory_space<vmem>>, vector<1x128x128xbf16>
    %26 = vector.shape_cast %25 : vector<1x128x128xbf16> to vector<128x128xbf16>
    %cst_27 = arith.constant dense<0.000000e+00> : vector<10x128xf32>
    %27 = tpu.matmul %24, %26, %cst_27 {dimension_numbers = #tpu.dot_dimension_numbers<[1], [0], [0], [1], [0, 0, 1, 1], [], []>} : vector<10x128xbf16>, vector<128x128xbf16>, vector<10x128xf32> -> vector<10x128xf32>
    %28 = arith.addf %22, %27 : vector<10x128xf32>
    %c0_28 = arith.constant 0 : index
    %c6 = arith.constant 6 : index
    %c0_29 = arith.constant 0 : index
    %29 = vector.load %arg1[%c0_28, %c6, %c0_29] : memref<1x32x128xbf16, #tpu.memory_space<vmem>>, vector<1x10x128xbf16>
    %30 = vector.shape_cast %29 : vector<1x10x128xbf16> to vector<10x128xbf16>
    %c5_30 = arith.constant 5 : index
    %c0_31 = arith.constant 0 : index
    %c0_32 = arith.constant 0 : index
    %31 = vector.load %arg2[%c5_30, %c0_31, %c0_32] : memref<16x128x128xbf16, #tpu.memory_space<vmem>>, vector<1x128x128xbf16>
    %32 = vector.shape_cast %31 : vector<1x128x128xbf16> to vector<128x128xbf16>
    %cst_33 = arith.constant dense<0.000000e+00> : vector<10x128xf32>
    %33 = tpu.matmul %30, %32, %cst_33 {dimension_numbers = #tpu.dot_dimension_numbers<[1], [0], [0], [1], [0, 0, 1, 1], [], []>} : vector<10x128xbf16>, vector<128x128xbf16>, vector<10x128xf32> -> vector<10x128xf32>
    %34 = arith.addf %28, %33 : vector<10x128xf32>
    %c0_34 = arith.constant 0 : index
    %c7 = arith.constant 7 : index
    %c0_35 = arith.constant 0 : index
    %35 = vector.load %arg1[%c0_34, %c7, %c0_35] : memref<1x32x128xbf16, #tpu.memory_space<vmem>>, vector<1x10x128xbf16>
    %36 = vector.shape_cast %35 : vector<1x10x128xbf16> to vector<10x128xbf16>
    %c6_36 = arith.constant 6 : index
    %c0_37 = arith.constant 0 : index
    %c0_38 = arith.constant 0 : index
    %37 = vector.load %arg2[%c6_36, %c0_37, %c0_38] : memref<16x128x128xbf16, #tpu.memory_space<vmem>>, vector<1x128x128xbf16>
    %38 = vector.shape_cast %37 : vector<1x128x128xbf16> to vector<128x128xbf16>
    %cst_39 = arith.constant dense<0.000000e+00> : vector<10x128xf32>
    %39 = tpu.matmul %36, %38, %cst_39 {dimension_numbers = #tpu.dot_dimension_numbers<[1], [0], [0], [1], [0, 0, 1, 1], [], []>} : vector<10x128xbf16>, vector<128x128xbf16>, vector<10x128xf32> -> vector<10x128xf32>
    %40 = arith.addf %34, %39 : vector<10x128xf32>
    %c0_40 = arith.constant 0 : index
    %c8 = arith.constant 8 : index
    %c0_41 = arith.constant 0 : index
    %41 = vector.load %arg1[%c0_40, %c8, %c0_41] : memref<1x32x128xbf16, #tpu.memory_space<vmem>>, vector<1x10x128xbf16>
    %42 = vector.shape_cast %41 : vector<1x10x128xbf16> to vector<10x128xbf16>
    %c7_42 = arith.constant 7 : index
    %c0_43 = arith.constant 0 : index
    %c0_44 = arith.constant 0 : index
    %43 = vector.load %arg2[%c7_42, %c0_43, %c0_44] : memref<16x128x128xbf16, #tpu.memory_space<vmem>>, vector<1x128x128xbf16>
    %44 = vector.shape_cast %43 : vector<1x128x128xbf16> to vector<128x128xbf16>
    %cst_45 = arith.constant dense<0.000000e+00> : vector<10x128xf32>
    %45 = tpu.matmul %42, %44, %cst_45 {dimension_numbers = #tpu.dot_dimension_numbers<[1], [0], [0], [1], [0, 0, 1, 1], [], []>} : vector<10x128xbf16>, vector<128x128xbf16>, vector<10x128xf32> -> vector<10x128xf32>
    %46 = arith.addf %40, %45 : vector<10x128xf32>
    %c0_46 = arith.constant 0 : index
    %c10 = arith.constant 10 : index
    %c0_47 = arith.constant 0 : index
    %47 = vector.load %arg1[%c0_46, %c10, %c0_47] : memref<1x32x128xbf16, #tpu.memory_space<vmem>>, vector<1x10x128xbf16>
    %48 = vector.shape_cast %47 : vector<1x10x128xbf16> to vector<10x128xbf16>
    %c8_48 = arith.constant 8 : index
    %c0_49 = arith.constant 0 : index
    %c0_50 = arith.constant 0 : index
    %49 = vector.load %arg2[%c8_48, %c0_49, %c0_50] : memref<16x128x128xbf16, #tpu.memory_space<vmem>>, vector<1x128x128xbf16>
    %50 = vector.shape_cast %49 : vector<1x128x128xbf16> to vector<128x128xbf16>
    %cst_51 = arith.constant dense<0.000000e+00> : vector<10x128xf32>
    %51 = tpu.matmul %48, %50, %cst_51 {dimension_numbers = #tpu.dot_dimension_numbers<[1], [0], [0], [1], [0, 0, 1, 1], [], []>} : vector<10x128xbf16>, vector<128x128xbf16>, vector<10x128xf32> -> vector<10x128xf32>
    %52 = arith.addf %46, %51 : vector<10x128xf32>
    %c0_52 = arith.constant 0 : index
    %c11 = arith.constant 11 : index
    %c0_53 = arith.constant 0 : index
    %53 = vector.load %arg1[%c0_52, %c11, %c0_53] : memref<1x32x128xbf16, #tpu.memory_space<vmem>>, vector<1x10x128xbf16>
    %54 = vector.shape_cast %53 : vector<1x10x128xbf16> to vector<10x128xbf16>
    %c9 = arith.constant 9 : index
    %c0_54 = arith.constant 0 : index
    %c0_55 = arith.constant 0 : index
    %55 = vector.load %arg2[%c9, %c0_54, %c0_55] : memref<16x128x128xbf16, #tpu.memory_space<vmem>>, vector<1x128x128xbf16>
    %56 = vector.shape_cast %55 : vector<1x128x128xbf16> to vector<128x128xbf16>
    %cst_56 = arith.constant dense<0.000000e+00> : vector<10x128xf32>
    %57 = tpu.matmul %54, %56, %cst_56 {dimension_numbers = #tpu.dot_dimension_numbers<[1], [0], [0], [1], [0, 0, 1, 1], [], []>} : vector<10x128xbf16>, vector<128x128xbf16>, vector<10x128xf32> -> vector<10x128xf32>
    %58 = arith.addf %52, %57 : vector<10x128xf32>
    %c0_57 = arith.constant 0 : index
    %c12 = arith.constant 12 : index
    %c0_58 = arith.constant 0 : index
    %59 = vector.load %arg1[%c0_57, %c12, %c0_58] : memref<1x32x128xbf16, #tpu.memory_space<vmem>>, vector<1x10x128xbf16>
    %60 = vector.shape_cast %59 : vector<1x10x128xbf16> to vector<10x128xbf16>
    %c10_59 = arith.constant 10 : index
    %c0_60 = arith.constant 0 : index
    %c0_61 = arith.constant 0 : index
    %61 = vector.load %arg2[%c10_59, %c0_60, %c0_61] : memref<16x128x128xbf16, #tpu.memory_space<vmem>>, vector<1x128x128xbf16>
    %62 = vector.shape_cast %61 : vector<1x128x128xbf16> to vector<128x128xbf16>
    %cst_62 = arith.constant dense<0.000000e+00> : vector<10x128xf32>
    %63 = tpu.matmul %60, %62, %cst_62 {dimension_numbers = #tpu.dot_dimension_numbers<[1], [0], [0], [1], [0, 0, 1, 1], [], []>} : vector<10x128xbf16>, vector<128x128xbf16>, vector<10x128xf32> -> vector<10x128xf32>
    %64 = arith.addf %58, %63 : vector<10x128xf32>
    %c0_63 = arith.constant 0 : index
    %c13 = arith.constant 13 : index
    %c0_64 = arith.constant 0 : index
    %65 = vector.load %arg1[%c0_63, %c13, %c0_64] : memref<1x32x128xbf16, #tpu.memory_space<vmem>>, vector<1x10x128xbf16>
    %66 = vector.shape_cast %65 : vector<1x10x128xbf16> to vector<10x128xbf16>
    %c11_65 = arith.constant 11 : index
    %c0_66 = arith.constant 0 : index
    %c0_67 = arith.constant 0 : index
    %67 = vector.load %arg2[%c11_65, %c0_66, %c0_67] : memref<16x128x128xbf16, #tpu.memory_space<vmem>>, vector<1x128x128xbf16>
    %68 = vector.shape_cast %67 : vector<1x128x128xbf16> to vector<128x128xbf16>
    %cst_68 = arith.constant dense<0.000000e+00> : vector<10x128xf32>
    %69 = tpu.matmul %66, %68, %cst_68 {dimension_numbers = #tpu.dot_dimension_numbers<[1], [0], [0], [1], [0, 0, 1, 1], [], []>} : vector<10x128xbf16>, vector<128x128xbf16>, vector<10x128xf32> -> vector<10x128xf32>
    %70 = arith.addf %64, %69 : vector<10x128xf32>
    %c0_69 = arith.constant 0 : index
    %c15 = arith.constant 15 : index
    %c0_70 = arith.constant 0 : index
    %71 = vector.load %arg1[%c0_69, %c15, %c0_70] : memref<1x32x128xbf16, #tpu.memory_space<vmem>>, vector<1x10x128xbf16>
    %72 = vector.shape_cast %71 : vector<1x10x128xbf16> to vector<10x128xbf16>
    %c12_71 = arith.constant 12 : index
    %c0_72 = arith.constant 0 : index
    %c0_73 = arith.constant 0 : index
    %73 = vector.load %arg2[%c12_71, %c0_72, %c0_73] : memref<16x128x128xbf16, #tpu.memory_space<vmem>>, vector<1x128x128xbf16>
    %74 = vector.shape_cast %73 : vector<1x128x128xbf16> to vector<128x128xbf16>
    %cst_74 = arith.constant dense<0.000000e+00> : vector<10x128xf32>
    %75 = tpu.matmul %72, %74, %cst_74 {dimension_numbers = #tpu.dot_dimension_numbers<[1], [0], [0], [1], [0, 0, 1, 1], [], []>} : vector<10x128xbf16>, vector<128x128xbf16>, vector<10x128xf32> -> vector<10x128xf32>
    %76 = arith.addf %70, %75 : vector<10x128xf32>
    %c0_75 = arith.constant 0 : index
    %c16 = arith.constant 16 : index
    %c0_76 = arith.constant 0 : index
    %77 = vector.load %arg1[%c0_75, %c16, %c0_76] : memref<1x32x128xbf16, #tpu.memory_space<vmem>>, vector<1x10x128xbf16>
    %78 = vector.shape_cast %77 : vector<1x10x128xbf16> to vector<10x128xbf16>
    %c13_77 = arith.constant 13 : index
    %c0_78 = arith.constant 0 : index
    %c0_79 = arith.constant 0 : index
    %79 = vector.load %arg2[%c13_77, %c0_78, %c0_79] : memref<16x128x128xbf16, #tpu.memory_space<vmem>>, vector<1x128x128xbf16>
    %80 = vector.shape_cast %79 : vector<1x128x128xbf16> to vector<128x128xbf16>
    %cst_80 = arith.constant dense<0.000000e+00> : vector<10x128xf32>
    %81 = tpu.matmul %78, %80, %cst_80 {dimension_numbers = #tpu.dot_dimension_numbers<[1], [0], [0], [1], [0, 0, 1, 1], [], []>} : vector<10x128xbf16>, vector<128x128xbf16>, vector<10x128xf32> -> vector<10x128xf32>
    %82 = arith.addf %76, %81 : vector<10x128xf32>
    %c0_81 = arith.constant 0 : index
    %c17 = arith.constant 17 : index
    %c0_82 = arith.constant 0 : index
    %83 = vector.load %arg1[%c0_81, %c17, %c0_82] : memref<1x32x128xbf16, #tpu.memory_space<vmem>>, vector<1x10x128xbf16>
    %84 = vector.shape_cast %83 : vector<1x10x128xbf16> to vector<10x128xbf16>
    %c14 = arith.constant 14 : index
    %c0_83 = arith.constant 0 : index
    %c0_84 = arith.constant 0 : index
    %85 = vector.load %arg2[%c14, %c0_83, %c0_84] : memref<16x128x128xbf16, #tpu.memory_space<vmem>>, vector<1x128x128xbf16>
    %86 = vector.shape_cast %85 : vector<1x128x128xbf16> to vector<128x128xbf16>
    %cst_85 = arith.constant dense<0.000000e+00> : vector<10x128xf32>
    %87 = tpu.matmul %84, %86, %cst_85 {dimension_numbers = #tpu.dot_dimension_numbers<[1], [0], [0], [1], [0, 0, 1, 1], [], []>} : vector<10x128xbf16>, vector<128x128xbf16>, vector<10x128xf32> -> vector<10x128xf32>
    %88 = arith.addf %82, %87 : vector<10x128xf32>
    %c0_86 = arith.constant 0 : index
    %c18 = arith.constant 18 : index
    %c0_87 = arith.constant 0 : index
    %89 = vector.load %arg1[%c0_86, %c18, %c0_87] : memref<1x32x128xbf16, #tpu.memory_space<vmem>>, vector<1x10x128xbf16>
    %90 = vector.shape_cast %89 : vector<1x10x128xbf16> to vector<10x128xbf16>
    %c15_88 = arith.constant 15 : index
    %c0_89 = arith.constant 0 : index
    %c0_90 = arith.constant 0 : index
    %91 = vector.load %arg2[%c15_88, %c0_89, %c0_90] : memref<16x128x128xbf16, #tpu.memory_space<vmem>>, vector<1x128x128xbf16>
    %92 = vector.shape_cast %91 : vector<1x128x128xbf16> to vector<128x128xbf16>
    %cst_91 = arith.constant dense<0.000000e+00> : vector<10x128xf32>
    %93 = tpu.matmul %90, %92, %cst_91 {dimension_numbers = #tpu.dot_dimension_numbers<[1], [0], [0], [1], [0, 0, 1, 1], [], []>} : vector<10x128xbf16>, vector<128x128xbf16>, vector<10x128xf32> -> vector<10x128xf32>
    %94 = arith.addf %88, %93 : vector<10x128xf32>
    %c0_92 = arith.constant 0 : index
    %c0_93 = arith.constant 0 : index
    %95 = vector.load %arg3[%c0_92, %c0_93] : memref<1x128xf32, #tpu.memory_space<vmem>>, vector<1x128xf32>
    %96 = vector.broadcast %95 : vector<1x128xf32> to vector<10x128xf32>
    %97 = arith.addf %94, %96 : vector<10x128xf32>
    %c0_94 = arith.constant 0 : index
    %c0_95 = arith.constant 0 : index
    %c0_96 = arith.constant 0 : index
    %98 = vector.load %arg4[%c0_94, %c0_95, %c0_96] : memref<1x10x128xf32, #tpu.memory_space<vmem>>, vector<1x10x128xf32>
    %99 = vector.shape_cast %98 : vector<1x10x128xf32> to vector<10x128xf32>
    %100 = vector.shape_cast %97 : vector<10x128xf32> to vector<1x10x128xf32>
    tpu.vector_store %arg4[%c0_94, %c0_95, %c0_96], %100 {strides = array<i32>} : memref<1x10x128xf32, #tpu.memory_space<vmem>>, vector<1x10x128xf32>,
    return
  }
  func.func @transform_0(%arg0: i32) -> (i32, i32, i32) {
    %c0_i32 = arith.constant 0 : i32
    %c0_i32_0 = arith.constant 0 : i32
    %c0_i32_1 = arith.constant 0 : i32
    return %arg0, %c0_i32, %c0_i32_0 : i32, i32, i32
  }
  func.func @transform_1(%arg0: i32) -> (i32, i32, i32) {
    %c0_i32 = arith.constant 0 : i32
    %c0_i32_0 = arith.constant 0 : i32
    %c0_i32_1 = arith.constant 0 : i32
    %c0_i32_2 = arith.constant 0 : i32
    return %c0_i32, %c0_i32_0, %c0_i32_1 : i32, i32, i32
  }
  func.func @transform_2(%arg0: i32) -> (i32, i32) {
    %c0_i32 = arith.constant 0 : i32
    %c0_i32_0 = arith.constant 0 : i32
    %c0_i32_1 = arith.constant 0 : i32
    return %c0_i32, %c0_i32_0 : i32, i32
  }
  func.func @transform_3(%arg0: i32) -> (i32, i32, i32) {
    %c0_i32 = arith.constant 0 : i32
    %c0_i32_0 = arith.constant 0 : i32
    %c0_i32_1 = arith.constant 0 : i32
    return %arg0, %c0_i32, %c0_i32_0 : i32, i32, i32
  }
}

</mosaic_0001>

<bundles_post_ra>
// kernel: nlayer_discriminator_forward.6
= control target key start
LH: loop header
LB: loop body
LE: loop exit
PB: predicated region body
PF: predicated region fallthrough
CT: control target
= control target key end

     0   :  { %s4247_s27 = smov 0   ;;  %s4874_s0 = inlined_call_operand.vmem [shape: bf16[2,88,16], index: 0, kind: input, shape index: {}]   ;;  %s4875_s1 = inlined_call_operand.vmem [shape: bf16[2,88,16], index: 1, kind: input, shape index: {}]   ;;  %s4876_s2 = inlined_call_operand.vmem [shape: bf16[2,88,16], index: 2, kind: input, shape index: {}]   ;;  %s4877_s3 = inlined_call_operand.vmem [shape: bf16[2,88,16], index: 3, kind: input, shape index: {}]   ;;  %s4878_s4 = inlined_call_operand.vmem [shape: bf16[16,16,32], index: 4, kind: input, shape index: {}]   ;;  %s4879_s5 = inlined_call_operand.vmem [shape: f32[72,1], index: 5, kind: input, shape index: {}]   ;;  %s4880_s6 = inlined_call_operand.vmem [shape: bf16[2,72,32], index: 6, kind: output, shape index: {0}]   ;;  %s4881_s7 = inlined_call_operand.vmem [shape: f32[2,1,32], index: 7, kind: output, shape index: {1}]   ;;  %s4882_s8 = inlined_call_operand.vmem [shape: f32[2,1,32], index: 8, kind: output, shape index: {2}]  }
   0x1 LB: > { %s3139_s28 = sadd.s32 4294967295, %s4197_s27   ;;  %p3143_p0 = scmp.ge.s32.totalorder %s4197_s27, 1  ;;  %s4197_s27 = sphi %s4247_s27, %s19_s27  }
   0x2   : > { %p297_p1 = scmp.lt.s32.totalorder %s4197_s27, 3 }
   0x4   : > { %p298_p2 = pnand %p3143_p0, %p297_p1 }
   0x5   : > { %v4111_v0 = vld [vmem:[%s4878_s4 + $0x8] sm:$0xff] (!%p298_p2)   ;;  %v4199_v1 = vmov (!%p298_p2), 0.0   ;;  %p352_p3 = scmp.lt.s32.totalorder (!%p298_p2), %s3139_s28, 1  ;;  %v4113_v2 = vld [vmem:[%s4878_s4 + $0x40] sm:$0xff] (!%p298_p2)   ;;  %vm4200_vm0 = vmmov (!%p298_p2), 0   ;;  %vm436_vm1 = vcmask (!%p298_p2), 130048  }
   0x6   : > { %301 = sbr.rel (%p298_p2) target bundleno = 574 (0x23e), region = 44  ;;  %3455 = vmatprep.subr.bf16.mxu1 (!%p298_p2), %v4199_v1  ;;  %3631 = vmatprep.subr.bf16.mxu0 (!%p298_p2), %v4199_v1  ;;  %v4114_v3 = vld [vmem:[%s4878_s4] sm:$0xff] (!%p298_p2)   ;;  %vm678_vm2 = vsmask.f32 (!%p298_p2), 7424  ;;  %v4117_v16 = vld [vmem:[%s4878_s4 + $0x48] sm:$0xff] (!%p298_p2)   ;;  %vm1996_vm3 = vcmask (!%p298_p2), 1046528  }
   0x7   : > { %3456 = vmatpush3.bf16.msra.mxu1 (!%p298_p2), %v4111_v0  ;;  %3457 = vmatprep.mubr.msk.bf16.mxu1 (!%p298_p2), %vm4200_vm0, %v4199_v1  ;;  %vm2857_vm4 = vcmask (!%p298_p2), 257024   ;;  %vm2930_vm5 = vcmask (!%p298_p2), 261120   ;;  %vm2954_vm6 = vcmask (!%p298_p2), 253952  }
   0x8   : > { %3632 = vmatpush3.bf16.msra.mxu0 (!%p298_p2), %v4113_v2  ;;  %3477 = vmatprep.subr.bf16.mxu1 (!%p298_p2), %v4199_v1 }
   0x9   : > { %3633 = vmatprep.mubr.msk.bf16.mxu0 (!%p298_p2), %vm4200_vm0, %v4199_v1  ;;  %3653 = vmatprep.subr.bf16.mxu0 (!%p298_p2), %v4199_v1 }
   0xd   : > { %s4884_s28 = smov (!%p352_p3, %s3139_s28), 1 }
   0xe   : > { %s4272_s11 = smul.u32 44, %s4884_s28  ;;  %s382_s21 = scalar_lea.vmem %s4882_s8, %s4884_s28 }
  0x10   : > { %s4278_s14 = scalar_lea.vmem %s4875_s1, %s4272_s11  ;;  %s4287_s19 = scalar_lea.vmem %s4874_s0, %s4272_s11 }
  0x11   : > { %v4112_v4 = vld [vmem:[%s4278_s14] sm:$0xff]   ;;  %v1632_v6 = vld [vmem:[%s4287_s19 + $0x8] sm:$0xf]  ;;  %v4116_v8 = vld [vmem:[%s4287_s19 + $0xc] sm:$0xff]   ;;  %s4373_s24 = scalar_lea.vmem %s4876_s2, %s4272_s11  ;;  %s4434_s12 = scalar_lea.vmem %s4877_s3, %s4272_s11 }
  0x12   : > { %v1631_v5 = vld [vmem:[%s4287_s19 + $0x4] sm:$0xf]  ;;  %3458 = vmatmul.mubr.msk.bf16.vlgmr.msra.gmra.mrb[0].mxu1 %vm436_vm1, %v4112_v4  ;;  %v1677_v11 = vshll.u32 %v4116_v8, 16  ;;  %v4119_v12 = vld [vmem:[%s4287_s19 + $0x14] sm:$0xff]   ;;  %v4118_v15 = vld [vmem:[%s4278_s14 + $0x8] sm:$0xff]   ;;  %v1681_v18 = vshrl.u32 %v4116_v8, 16 }
  0x13   : > { %v3253_v7 = vcombine.low %v1631_v5, %v1632_v6  ;;  %3461 = vmatprep.mubr.msk.bf16.mxu1 %vm4200_vm0, %v4199_v1  ;;  %3478 = vmatpush3.bf16.msra.mxu1 %v4114_v3  ;;  %v1685_v19 = vshll.u32 %v4119_v12, 16  ;;  %v4121_v23 = vld [vmem:[%s4287_s19 + $0x1c] sm:$0xff]   ;;  %v4120_v24 = vld [vmem:[%s4278_s14 + $0x10] sm:$0xff]   ;;  %v1689_v26 = vshrl.u32 %v4119_v12, 16  ;;  %v4318_v28 = vld [vmem:[%s4287_s19 + $0x24] sm:$0x1f]  }
  0x14   : > { %3499 = vmatprep.subr.bf16.mxu1 %v4199_v1  ;;  %v1679_v14 = vrot.slane %v1677_v11, 1  ;;  %v1693_v27 = vshll.u32 %v4121_v23, 16  ;;  %v4122_v31 = vld [vmem:[%s4278_s14 + $0x18] sm:$0xff]   ;;  %v1701_v32 = vshll.u32 %v4318_v28, 16  ;;  %v1989_v33 = vld [vmem:[%s4287_s19 + $0x4] sm:$0xe] }
  0x15   : > { %v1670_v9 = vshrl.u32 %v3253_v7, 16  ;;  %v1672_v10 = vshll.u32 %v3253_v7, 16  ;;  %v1687_v22 = vrot.slane %v1685_v19, 1  ;;  %v1998_v34 = vrot.slane %v4116_v8, 1  ;;  %v1810_v42 = vld [vmem:[%s4278_s14 + $0x4] sm:$0xf] }
  0x16   : > { %v1683_v21 = vor.u32 %v1681_v18, %v1679_v14  ;;  %v1695_v30 = vrot.slane %v1693_v27, 1  ;;  %v2000_v35 = vrot.slane %v4119_v12, 1  ;;  %v1697_v37 = vshrl.u32 %v4121_v23, 16  ;;  %v1811_v43 = vld [vmem:[%s4278_s14 + $0x8] sm:$0xf]  ;;  %v4128_v53 = vld [vmem:[%s4278_s14 + $0xc] sm:$0xff]  }
  0x17   : > { %v1674_v13 = vrot.slane %v1672_v10, 1  ;;  %v1691_v29 = vor.u32 %v1689_v26, %v1687_v22  ;;  %v3279_v38 = vcombine.low %v1989_v33, %v1632_v6  ;;  %v1703_v41 = vrot.slane %v1701_v32, 1  ;;  %v4124_v48 = vld [vmem:[%s4278_s14 + $0x20] ss:$0 sps:$4 sm:$0xff]   ;;  %v2108_v54 = vld [vmem:[%s4278_s14 + $0x4] sm:$0xe] }
  0x18   : > { %v1688_v25 = vsel %vm678_vm2, %v1683_v21, %v1687_v22  ;;  %v4327_v39 = vsel %vm1996_vm3, %v1998_v34, %v2000_v35  ;;  %v1699_v44 = vor.u32 %v1697_v37, %v1695_v30  ;;  %v2002_v46 = vrot.slane %v4121_v23, 1  ;;  %v4131_v59 = vld [vmem:[%s4278_s14 + $0x14] sm:$0xff]   ;;  %v4133_v60 = vld [vmem:[%s4278_s14 + $0x1c] sm:$0xff]   ;;  %v4363_v62 = vld [vmem:[%s4278_s14 + $0x24] sm:$0x1f]  }
  0x19   : > { %v1675_v17 = vor.u32 %v1674_v13, %v1670_v9  ;;  %v1696_v36 = vsel %vm678_vm2, %v1691_v29, %v1695_v30  ;;  %v1997_v40 = vrot.slane %v3279_v38, 1  ;;  %v2004_v47 = vrot.slane %v4318_v28, 1  ;;  %v4125_v0 = vld [vmem:[%s4287_s19] sm:$0xff]   ;;  %v4126_v7 = vld [vmem:[%s4878_s4 + $0x10] sm:$0xff]   ;;  %v4134_v29 = vld [vmem:[%s4287_s19 + $0x18] sm:$0xff]  }
  0x1a   : > { %3462 = vmatmul.mubr.msk.bf16.gmra.mrb[4].mxu1 %vm436_vm1, %v4118_v15  ;;  %v4343_v49 = vsel %vm1996_vm3, %v2000_v35, %v2002_v46  ;;  %v3266_v51 = vcombine.low %v1810_v42, %v1811_v43  ;;  %v1704_v52 = vsel %vm678_vm2, %v1699_v44, %v1703_v41  ;;  %v1705_v55 = vshrl.u32 %v4318_v28, 16  ;;  %v4129_v15 = vld [vmem:[%s4878_s4 + $0x50] sm:$0xff]   ;;  %v4137_v30 = vld [vmem:[%s4287_s19] sm:$0xff]  }
  0x1b   : > { %v1680_v20 = vsel %vm678_vm2, %v1675_v17, %v1679_v14  ;;  %3465 = vmatprep.mubr.msk.bf16.mxu1 %vm4200_vm0, %v4199_v1  ;;  %v4338_v45 = vsel %vm1996_vm3, %v1997_v40, %v1998_v34  ;;  %v4348_v50 = vsel %vm1996_vm3, %v2002_v46, %v2004_v47  ;;  %v3288_v56 = vcombine.low %v2108_v54, %v1811_v43  ;;  %v4132_v22 = vld [vmem:[%s4287_s19 + $0x10] sm:$0xff]   ;;  %v4138_v34 = vld [vmem:[%s4287_s19 + $0x8] sm:$0xff]   ;;  %v4136_v38 = vld [vmem:[%s4287_s19 + $0x20] ss:$0 sps:$4 sm:$0xff]  }
  0x1c   : > { %3634 = vmatmul.mubr.msk.bf16.vlgmr.msra.gmra.mrb[0].mxu0 %vm436_vm1, %v1680_v20  ;;  %v2116_v57 = vrot.slane %v4128_v53, 1  ;;  %v1851_v58 = vshll.u32 %v3266_v51, 16  ;;  %v2118_v63 = vrot.slane %v4131_v59, 1  ;;  %v2120_v3 = vrot.slane %v4133_v60, 1  ;;  %v4149_v28 = vld [vmem:[%s4878_s4 + $0x60] sm:$0xff]  }
  0x1d   : > { %3654 = vmatpush3.bf16.msra.mxu0 %v4117_v16  ;;  %3637 = vmatprep.mubr.msk.bf16.mxu0 %vm4200_vm0, %v4199_v1  ;;  %v2115_v61 = vrot.slane %v3288_v56, 1  ;;  %v1707_v4 = vor.u32 %v1705_v55, %v1703_v41  ;;  %v2122_v6 = vrot.slane %v4363_v62, 1  ;;  %v1849_v8 = vshrl.u32 %v3266_v51, 16  ;;  %v4130_v16 = vld [vmem:[%s4287_s19 + $0x8] sm:$0xff]   ;;  %v4139_v56 = vld [vmem:[%s4878_s4 + $0x18] sm:$0xff]  }
  0x1e   : > { %3675 = vmatprep.subr.bf16.mxu0 %v4199_v1  ;;  %v4376_v5 = vsel %vm1996_vm3, %v2116_v57, %v2118_v63  ;;  %v1853_v9 = vrot.slane %v1851_v58, 1  ;;  %v1856_v10 = vshll.u32 %v4128_v53, 16  ;;  %v4383_v11 = vsel %vm1996_vm3, %v2118_v63, %v2120_v3 }
  0x1f   : > { %v4367_v2 = vsel %vm1996_vm3, %v2115_v61, %v2116_v57  ;;  %v4388_v12 = vsel %vm1996_vm3, %v2120_v3, %v2122_v6  ;;  %v1860_v17 = vshrl.u32 %v4128_v53, 16  ;;  %v1864_v18 = vshll.u32 %v4131_v59, 16 }
  0x20   : > { %v1854_v13 = vor.u32 %v1853_v9, %v1849_v8  ;;  %v1858_v14 = vrot.slane %v1856_v10, 1  ;;  %v1876_v32 = vshrl.u32 %v4133_v60, 16  ;;  %v1880_v33 = vshll.u32 %v4363_v62, 16 }
  0x21   : > { %v1866_v21 = vrot.slane %v1864_v18, 1  ;;  %v682_v35 = vshll.u32 %v4137_v30, 16  ;;  %v687_v40 = vshll.u32 %v4138_v34, 16  ;;  %v680_v41 = vshrl.u32 %v4137_v30, 16  ;;  %v4151_v30 = vld [vmem:[%s4278_s14 + $0x18] sm:$0xff]  }
  0x22   : > { %3466 = vmatmul.mubr.msk.bf16.gmra.mrb[8].mxu1 %vm436_vm1, %v4120_v24  ;;  %v1859_v19 = vsel %vm678_vm2, %v1854_v13, %v1858_v14  ;;  %v1862_v20 = vor.u32 %v1860_v17, %v1858_v14  ;;  %v1868_v24 = vshrl.u32 %v4131_v59, 16  ;;  %v1882_v37 = vrot.slane %v1880_v33, 1  ;;  %v4143_v59 = vld [vmem:[%s4287_s19 + $0x18] sm:$0xff]  }
  0x23   : > { %3469 = vmatprep.mubr.msk.bf16.mxu1 %vm4200_vm0, %v4199_v1  ;;  %v684_v42 = vrot.slane %v682_v35, 1  ;;  %v1884_v44 = vshrl.u32 %v4363_v62, 16  ;;  %v689_v46 = vrot.slane %v687_v40, 1  ;;  %v691_v54 = vshrl.u32 %v4138_v34, 16  ;;  %v4152_v35 = vld [vmem:[%s4278_s14 + $0x20] sm:$0x1f]  }
  0x24   : > { %3638 = vmatmul.mubr.msk.bf16.gmra.mrb[4].mxu0 %vm436_vm1, %v1688_v25  ;;  %v1867_v23 = vsel %vm678_vm2, %v1862_v20, %v1866_v21  ;;  %v1872_v25 = vshll.u32 %v4133_v60, 16  ;;  %v1870_v26 = vor.u32 %v1868_v24, %v1866_v21  ;;  %v703_v63 = vshll.u32 %v4143_v59, 16 }
  0x25   : > { %3641 = vmatprep.mubr.msk.bf16.mxu0 %vm4200_vm0, %v4199_v1  ;;  %v685_v51 = vor.u32 %v684_v42, %v680_v41  ;;  %v693_v57 = vor.u32 %v691_v54, %v689_v46  ;;  %v707_v9 = vshrl.u32 %v4143_v59, 16  ;;  %v882_v33 = vshll.u32 %v4151_v30, 16 }
  0x26   : > { %v1874_v27 = vrot.slane %v1872_v25, 1  ;;  %v894_v42 = vshrl.u32 %v4152_v35, 16 }
  0x27   : > { %v690_v53 = vsel %vm678_vm2, %v685_v51, %v689_v46  ;;  %v884_v34 = vrot.slane %v882_v33, 1  ;;  %v4153_v51 = vld [vmem:[%s4373_s24] sm:$0xff]  }
  0x2a   : > { %3470 = vmatmul.mubr.msk.bf16.gmra.mrb[12].mxu1 %vm436_vm1, %v4122_v31  ;;  %v1875_v31 = vsel %vm678_vm2, %v1870_v26, %v1874_v27 }
  0x2b   : > { %3473 = vmatprep.mubr.msk.bf16.mxu1 %vm4200_vm0, %v4199_v1 }
  0x2c   : > { %3642 = vmatmul.mubr.msk.bf16.gmra.mrb[8].mxu0 %vm436_vm1, %v1696_v36  ;;  %v1878_v36 = vor.u32 %v1876_v32, %v1874_v27  ;;  %v4147_v27 = vld [vmem:[%s4878_s4 + $0x20] sm:$0xff]  }
  0x2d   : > { %3645 = vmatprep.mubr.msk.bf16.mxu0 %vm4200_vm0, %v4199_v1 }
  0x2e   : > { %v1883_v43 = vsel %vm678_vm2, %v1878_v36, %v1882_v37 }
  0x32   : > { %3474 = vmatmul.mubr.msk.bf16.gmra.mrb[16].mxu1 %vm436_vm1, %v4124_v48  ;;  %v4142_v48 = vld [vmem:[%s4287_s19 + $0x10] sm:$0xff]  }
  0x33   : > { %3479 = vmatprep.mubr.msk.bf16.mxu1 %vm4200_vm0, %v4199_v1  ;;  %v695_v55 = vshll.u32 %v4142_v48, 16  ;;  %v699_v61 = vshrl.u32 %v4142_v48, 16 }
  0x34   : > { %3646 = vmatmul.mubr.msk.bf16.gmra.mrb[12].mxu0 %vm436_vm1, %v1704_v52  ;;  %v1886_v52 = vor.u32 %v1884_v44, %v1882_v37  ;;  %v886_v37 = vshrl.u32 %v4151_v30, 16 }
  0x35   : > { %3649 = vmatprep.mubr.msk.bf16.mxu0 %vm4200_vm0, %v4199_v1  ;;  %v697_v58 = vrot.slane %v695_v55, 1 }
  0x37   : > { %v698_v60 = vsel %vm678_vm2, %v693_v57, %v697_v58  ;;  %v701_v3 = vor.u32 %v699_v61, %v697_v58  ;;  %v4567_v57 = vld [vmem:[%s4373_s24 + $0x14] sm:$0xff]   ;;  %v4158_v58 = vld [vmem:[%s4373_s24 + $0x8] sm:$0xff]  }
  0x3a   : > { %3480 = vmatmul.mubr.msk.bf16.vlgmr.msra.gmra.mrb[0].mxu1 %vm436_vm1, %v4125_v0  ;;  %v4141_v0 = vld [vmem:[%s4878_s4 + $0x58] sm:$0xff]  }
  0x3b   : > { %3483 = vmatprep.mubr.msk.bf16.mxu1 %vm4200_vm0, %v4199_v1  ;;  %3500 = vmatpush3.bf16.msra.mxu1 %v4126_v7  ;;  %v4144_v7 = vld [vmem:[%s4287_s19 + $0x20] sm:$0x1f]   ;;  %s379_s19 = scalar_lea.vmem %s4881_s7, %s4884_s28 }
  0x3c   : > { %3650 = vmatmul.mubr.msk.bf16.gmra.mrb[16].mxu0 %vm436_vm1, %v1707_v4  ;;  %3521 = vmatprep.subr.bf16.mxu1 %v4199_v1  ;;  %v705_v4 = vrot.slane %v703_v63, 1  ;;  %v711_v10 = vshll.u32 %v4144_v7, 16 }
  0x3d   : > { %3655 = vmatprep.mubr.msk.bf16.mxu0 %vm4200_vm0, %v4199_v1 }
  0x3e   : > { %v706_v8 = vsel %vm678_vm2, %v701_v3, %v705_v4  ;;  %v713_v13 = vrot.slane %v711_v10, 1  ;;  %v4160_v3 = vld [vmem:[%s4373_s24 + $0x10] sm:$0xff]  }
  0x42   : > { %3484 = vmatmul.mubr.msk.bf16.gmra.mrb[4].mxu1 %vm436_vm1, %v4130_v16  ;;  %v715_v16 = vshrl.u32 %v4144_v7, 16  ;;  %v2284_v7 = vshrl.u32 %v4567_v57, 16 }
  0x43   : > { %3487 = vmatprep.mubr.msk.bf16.mxu1 %vm4200_vm0, %v4199_v1 }
  0x44   : > { %3656 = vmatmul.mubr.msk.bf16.vlgmr.msra.gmra.mrb[0].mxu0 %vm436_vm1, %v1859_v19  ;;  %v717_v18 = vor.u32 %v715_v16, %v713_v13 }
  0x45   : > { %3676 = vmatpush3.bf16.msra.mxu0 %v4129_v15  ;;  %3659 = vmatprep.mubr.msk.bf16.mxu0 %vm4200_vm0, %v4199_v1  ;;  %v4145_v15 = vld [vmem:[%s4278_s14] sm:$0xff]  }
  0x46   : > { %3697 = vmatprep.subr.bf16.mxu0 %v4199_v1  ;;  %v861_v17 = vshll.u32 %v4145_v15, 16  ;;  %v859_v19 = vshrl.u32 %v4145_v15, 16 }
  0x48   : > { %v863_v20 = vrot.slane %v861_v17, 1 }
  0x4a   : > { %3488 = vmatmul.mubr.msk.bf16.gmra.mrb[8].mxu1 %vm436_vm1, %v4132_v22 }
  0x4b   : > { %3491 = vmatprep.mubr.msk.bf16.mxu1 %vm4200_vm0, %v4199_v1 }
  0x4c   : > { %3660 = vmatmul.mubr.msk.bf16.gmra.mrb[4].mxu0 %vm436_vm1, %v1867_v23  ;;  %v4150_v23 = vld [vmem:[%s4278_s14 + $0x10] sm:$0xff]  }
  0x4d   : > { %3663 = vmatprep.mubr.msk.bf16.mxu0 %vm4200_vm0, %v4199_v1  ;;  %v874_v26 = vshll.u32 %v4150_v23, 16  ;;  %v878_v32 = vshrl.u32 %v4150_v23, 16  ;;  %v2867_v23 = vld [vmem:[%s4879_s5] sm:$0xff] }
  0x52   : > { %3492 = vmatmul.mubr.msk.bf16.gmra.mrb[12].mxu1 %vm436_vm1, %v4134_v29  ;;  %v876_v29 = vrot.slane %v874_v26, 1 }
  0x53   : > { %3495 = vmatprep.mubr.msk.bf16.mxu1 %vm4200_vm0, %v4199_v1 }
  0x54   : > { %3664 = vmatmul.mubr.msk.bf16.gmra.mrb[8].mxu0 %vm436_vm1, %v1875_v31 }
  0x55   : > { %3667 = vmatprep.mubr.msk.bf16.mxu0 %vm4200_vm0, %v4199_v1 }
  0x5a   : > { %3496 = vmatmul.mubr.msk.bf16.gmra.mrb[16].mxu1 %vm436_vm1, %v4136_v38  ;;  %v890_v38 = vshll.u32 %v4152_v35, 16  ;;  %v2872_v35 = vld [vmem:[%s4879_s5 + $0x28] sm:$0xff] }
  0x5b   : > { %3501 = vmatprep.mubr.msk.bf16.mxu1 %vm4200_vm0, %v4199_v1 }
  0x5c   : > { %3668 = vmatmul.mubr.msk.bf16.gmra.mrb[12].mxu0 %vm436_vm1, %v1883_v43  ;;  %v892_v40 = vrot.slane %v890_v38, 1  ;;  %v4540_v43 = vld [vmem:[%s4373_s24 + $0x8] sm:$0xf]  ;;  %v4657_v38 = vld [vmem:[%s4434_s12 + $0x14] sm:$0xff]  }
  0x5d   : > { %3671 = vmatprep.mubr.msk.bf16.mxu0 %vm4200_vm0, %v4199_v1 }
  0x5e   : > { %v896_v44 = vor.u32 %v894_v42, %v892_v40 }
  0x62   : > { %3502 = vmatmul.mubr.msk.bf16.vlgmr.msra.gmra.mrb[0].mxu1 %vm436_vm1, %v690_v53 }
  0x63   : > { %3505 = vmatprep.mubr.msk.bf16.mxu1 %vm4200_vm0, %v4199_v1  ;;  %3522 = vmatpush3.bf16.msra.mxu1 %v4139_v56 }
  0x64   : > { %3672 = vmatmul.mubr.msk.bf16.gmra.mrb[16].mxu0 %vm436_vm1, %v1886_v52  ;;  %3543 = vmatprep.subr.bf16.mxu1 %v4199_v1  ;;  %v4154_v52 = vld [vmem:[%s4878_s4 + $0x28] sm:$0xff]  }
  0x65   : > { %3677 = vmatprep.mubr.msk.bf16.mxu0 %vm4200_vm0, %v4199_v1 }
  0x6a   : > { %3506 = vmatmul.mubr.msk.bf16.gmra.mrb[4].mxu1 %vm436_vm1, %v698_v60  ;;  %v2280_v60 = vshll.u32 %v4567_v57, 16 }
  0x6b   : > { %3509 = vmatprep.mubr.msk.bf16.mxu1 %vm4200_vm0, %v4199_v1 }
  0x6c   : > { %3678 = vmatmul.mubr.msk.bf16.vlgmr.msra.gmra.mrb[0].mxu0 %vm436_vm1, %v4338_v45  ;;  %v709_v45 = vor.u32 %v707_v9, %v705_v4  ;;  %v2282_v63 = vrot.slane %v2280_v60, 1  ;;  %v4177_v60 = vld [vmem:[%s4373_s24] sm:$0xff]  }
  0x6d   : > { %3698 = vmatpush3.bf16.msra.mxu0 %v4141_v0  ;;  %3681 = vmatprep.mubr.msk.bf16.mxu0 %vm4200_vm0, %v4199_v1  ;;  %v4584_v0 = vld [vmem:[%s4373_s24 + $0x1c] sm:$0xff]  }
  0x6e   : > { %3719 = vmatprep.subr.bf16.mxu0 %v4199_v1  ;;  %v714_v14 = vsel %vm678_vm2, %v709_v45, %v713_v13  ;;  %v2286_v9 = vor.u32 %v2284_v7, %v2282_v63  ;;  %v4598_v45 = vld [vmem:[%s4373_s24 + $0x24] sm:$0x1f]   ;;  %v4162_v13 = vld [vmem:[%s4373_s24 + $0x18] sm:$0xff]   ;;  %v2292_v15 = vshrl.u32 %v4584_v0, 16  ;;  %v1314_v7 = vshll.u32 %v4177_v60, 16 }
  0x6f   : > { %v2296_v16 = vshll.u32 %v4598_v45, 16 }
  0x71   : > { %v2298_v17 = vrot.slane %v2296_v16, 1 }
  0x72   : > { %3510 = vmatmul.mubr.msk.bf16.gmra.mrb[8].mxu1 %vm436_vm1, %v706_v8  ;;  %v2288_v8 = vshll.u32 %v4584_v0, 16 }
  0x73   : > { %3513 = vmatprep.mubr.msk.bf16.mxu1 %vm4200_vm0, %v4199_v1 }
  0x74   : > { %3682 = vmatmul.mubr.msk.bf16.gmra.mrb[4].mxu0 %vm436_vm1, %v4327_v39  ;;  %v4146_v39 = vld [vmem:[%s4278_s14 + $0x8] sm:$0xff]   ;;  %v2290_v10 = vrot.slane %v2288_v8, 1 }
  0x75   : > { %3685 = vmatprep.mubr.msk.bf16.mxu0 %vm4200_vm0, %v4199_v1  ;;  %v866_v21 = vshll.u32 %v4146_v39, 16  ;;  %v870_v25 = vshrl.u32 %v4146_v39, 16 }
  0x76   : > { %v2294_v39 = vor.u32 %v2292_v15, %v2290_v10 }
  0x77   : > { %v868_v22 = vrot.slane %v866_v21, 1 }
  0x78   : > { %v2299_v21 = vsel %vm678_vm2, %v2294_v39, %v2298_v17 }
  0x7a   : > { %3514 = vmatmul.mubr.msk.bf16.gmra.mrb[12].mxu1 %vm436_vm1, %v714_v14  ;;  %v2291_v14 = vsel %vm678_vm2, %v2286_v9, %v2290_v10  ;;  %v4176_v10 = vld [vmem:[%s4434_s12 + $0x20] ss:$0 sps:$4 sm:$0xff]  }
  0x7b   : > { %3517 = vmatprep.mubr.msk.bf16.mxu1 %vm4200_vm0, %v4199_v1 }
  0x7c   : > { %3686 = vmatmul.mubr.msk.bf16.gmra.mrb[8].mxu0 %vm436_vm1, %v4343_v49  ;;  %v864_v49 = vor.u32 %v863_v20, %v859_v19  ;;  %v4612_v19 = vld [vmem:[%s4434_s12 + $0x8] sm:$0xf]  ;;  %v4164_v20 = vld [vmem:[%s4373_s24 + $0x20] ss:$0 sps:$4 sm:$0xff]  }
  0x7d   : > { %3689 = vmatprep.mubr.msk.bf16.mxu0 %vm4200_vm0, %v4199_v1 }
  0x7e   : > { %v869_v24 = vsel %vm678_vm2, %v864_v49, %v868_v22 }
  0x82   : > { %3518 = vmatmul.mubr.msk.bf16.gmra.mrb[16].mxu1 %vm436_vm1, %v717_v18  ;;  %v2405_v18 = vld [vmem:[%s4434_s12 + $0x4] sm:$0xf] }
  0x83   : > { %3523 = vmatprep.mubr.msk.bf16.mxu1 %vm4200_vm0, %v4199_v1  ;;  %v3310_v49 = vcombine.low %v2405_v18, %v4612_v19 }
  0x84   : > { %3690 = vmatmul.mubr.msk.bf16.gmra.mrb[12].mxu0 %vm436_vm1, %v4348_v50  ;;  %v872_v50 = vor.u32 %v870_v25, %v868_v22  ;;  %v2300_v22 = vshrl.u32 %v4598_v45, 16  ;;  %v4631_v25 = vld [vmem:[%s4434_s12 + $0xc] sm:$0xff]  }
  0x85   : > { %3693 = vmatprep.mubr.msk.bf16.mxu0 %vm4200_vm0, %v4199_v1  ;;  %v2446_v26 = vshll.u32 %v3310_v49, 16  ;;  %v2444_v33 = vshrl.u32 %v3310_v49, 16 }
  0x86   : > { %v877_v31 = vsel %vm678_vm2, %v872_v50, %v876_v29  ;;  %v4165_v50 = vld [vmem:[%s4434_s12] sm:$0xff]   ;;  %v2302_v30 = vor.u32 %v2300_v22, %v2298_v17 }
  0x8a   : > { %3524 = vmatmul.mubr.msk.bf16.vlgmr.msra.gmra.mrb[0].mxu1 %vm436_vm1, %v869_v24  ;;  %v2869_v24 = vld [vmem:[%s4879_s5 + $0x10] sm:$0xff] }
  0x8b   : > { %3527 = vmatprep.mubr.msk.bf16.mxu1 %vm4200_vm0, %v4199_v1  ;;  %3544 = vmatpush3.bf16.msra.mxu1 %v4147_v27  ;;  %v4201_v27 = vmov 0  }
  0x8c   : > { %3694 = vmatmul.mubr.msk.bf16.gmra.mrb[16].mxu0 %vm436_vm1, %v2004_v47  ;;  %3565 = vmatprep.subr.bf16.mxu1 %v4199_v1  ;;  %v880_v47 = vor.u32 %v878_v32, %v876_v29  ;;  %v2868_v29 = vld [vmem:[%s4879_s5 + $0x8] sm:$0xff]  ;;  %v4166_v32 = vld [vmem:[%s4878_s4 + $0x30] sm:$0xff]  }
  0x8d   : > { %3699 = vmatprep.mubr.msk.bf16.mxu0 %vm4200_vm0, %v4199_v1  ;;  %4109 = vset.pattern.permute.xlu0 %v4201_v27 }
  0x8e   : > { %v885_v36 = vsel %vm678_vm2, %v880_v47, %v884_v34  ;;  %2878 = vperm.xlu0 %4109, %v2867_v23   ;;  %4110 = vset.pattern.permute.xlu1 %v4201_v27  ;;  %v2451_v47 = vshll.u32 %v4631_v25, 16 }
  0x8f   : > { %2888 = vperm.xlu1 %4110, %v2869_v24  }
  0x92   : > { %3528 = vmatmul.mubr.msk.bf16.gmra.mrb[4].mxu1 %vm436_vm1, %v877_v31  ;;  %v2870_v31 = vld [vmem:[%s4879_s5 + $0x18] sm:$0xff]  ;;  %2883 = vperm.xlu0 %4109, %v2868_v29  }
  0x93   : > { %3531 = vmatprep.mubr.msk.bf16.mxu1 %vm4200_vm0, %v4199_v1  ;;  %2893 = vperm.xlu1 %4110, %v2870_v31  }
  0x94   : > { %3700 = vmatmul.mubr.msk.bf16.vlgmr.msra.gmra.mrb[0].mxu0 %vm436_vm1, %v4367_v2  ;;  %v888_v2 = vor.u32 %v886_v37, %v884_v34  ;;  %v2871_v34 = vld [vmem:[%s4879_s5 + $0x20] sm:$0xff]  ;;  %v2453_v37 = vrot.slane %v2451_v47, 1 }
  0x95   : > { %3720 = vmatpush3.bf16.msra.mxu0 %v4149_v28  ;;  %3703 = vmatprep.mubr.msk.bf16.mxu0 %vm4200_vm0, %v4199_v1  ;;  %v2448_v28 = vrot.slane %v2446_v26, 1  ;;  %v4179_v26 = vld [vmem:[%s4878_s4 + $0x38] sm:$0xff]  }
  0x96   : > { %3741 = vmatprep.subr.bf16.mxu0 %v4199_v1  ;;  %v893_v41 = vsel %vm678_vm2, %v888_v2, %v892_v40  ;;  %2898 = vperm.xlu0 %4109, %v2871_v34   ;;  %v4170_v2 = vld [vmem:[%s4434_s12 + $0x8] sm:$0xff]   ;;  %v2873_v40 = vld [vmem:[%s4879_s5 + $0x30] sm:$0xff]  ;;  %v4181_v34 = vld [vmem:[%s4878_s4 + $0x78] sm:$0xff]  }
  0x97   : > { %2903 = vperm.xlu1 %4110, %v2872_v35  }
  0x9a   : > { %3532 = vmatmul.mubr.msk.bf16.gmra.mrb[8].mxu1 %vm436_vm1, %v885_v36  ;;  %v2449_v36 = vor.u32 %v2448_v28, %v2444_v33  ;;  %2908 = vperm.xlu0 %4109, %v2873_v40  }
  0x9b   : > { %3535 = vmatprep.mubr.msk.bf16.mxu1 %vm4200_vm0, %v4199_v1 }
  0x9c   : > { %3704 = vmatmul.mubr.msk.bf16.gmra.mrb[4].mxu0 %vm436_vm1, %v4376_v5  ;;  %v2226_v5 = vld [vmem:[%s4373_s24 + $0x4] sm:$0xf]  ;;  %v2454_v42 = vsel %vm678_vm2, %v2449_v36, %v2453_v37 }
  0x9d   : > { %3707 = vmatprep.mubr.msk.bf16.mxu0 %vm4200_vm0, %v4199_v1  ;;  %v3297_v46 = vcombine.low %v2226_v5, %v4540_v43  ;;  %v4169_v5 = vld [vmem:[%s4878_s4 + $0x70] sm:$0xff]  }
  0x9f   : > { %v2267_v48 = vshll.u32 %v3297_v46, 16  ;;  %v2265_v53 = vshrl.u32 %v3297_v46, 16  ;;  %v2459_v46 = vshll.u32 %v4657_v38, 16 }
  0xa1   : > { %v2269_v54 = vrot.slane %v2267_v48, 1  ;;  %v2875_v48 = vld [vmem:[%s4879_s5 + $0x40] sm:$0xff] }
  0xa2   : > { %3536 = vmatmul.mubr.msk.bf16.gmra.mrb[12].mxu1 %vm436_vm1, %v893_v41  ;;  %v2874_v41 = vld [vmem:[%s4879_s5 + $0x38] sm:$0xff]  ;;  %2918 = vperm.xlu0 %4109, %v2875_v48   ;;  %v4185_v48 = vld [vmem:[%s4434_s12] sm:$0xff]  }
  0xa3   : > { %3539 = vmatprep.mubr.msk.bf16.mxu1 %vm4200_vm0, %v4199_v1  ;;  %v2270_v55 = vor.u32 %v2269_v54, %v2265_v53  ;;  %2913 = vperm.xlu1 %4110, %v2874_v41   ;;  %v4683_v53 = vld [vmem:[%s4434_s12 + $0x1c] sm:$0xff]   ;;  %v4172_v54 = vld [vmem:[%s4434_s12 + $0x10] sm:$0xff]  }
  0xa4   : > { %3708 = vmatmul.mubr.msk.bf16.gmra.mrb[8].mxu0 %vm436_vm1, %v4383_v11  ;;  %v4551_v11 = vld [vmem:[%s4373_s24 + $0xc] sm:$0xff]  }
  0xa5   : > { %3711 = vmatprep.mubr.msk.bf16.mxu0 %vm4200_vm0, %v4199_v1  ;;  %v2276_v59 = vshrl.u32 %v4551_v11, 16 }
  0xaa   : > { %3540 = vmatmul.mubr.msk.bf16.gmra.mrb[16].mxu1 %vm436_vm1, %v896_v44  ;;  %v2455_v44 = vshrl.u32 %v4631_v25, 16 }
  0xab   : > { %3545 = vmatprep.mubr.msk.bf16.mxu1 %vm4200_vm0, %v4199_v1 }
  0xac   : > { %3712 = vmatmul.mubr.msk.bf16.gmra.mrb[12].mxu0 %vm436_vm1, %v4388_v12  ;;  %v2272_v12 = vshll.u32 %v4551_v11, 16 }
  0xad   : > { %3715 = vmatprep.mubr.msk.bf16.mxu0 %vm4200_vm0, %v4199_v1 }
  0xae   : > { %v2274_v56 = vrot.slane %v2272_v12, 1 }
  0xb0   : > { %v2275_v62 = vsel %vm678_vm2, %v2270_v55, %v2274_v56  ;;  %v2278_v61 = vor.u32 %v2276_v59, %v2274_v56  ;;  %v2463_v55 = vshrl.u32 %v4657_v38, 16  ;;  %v2467_v56 = vshll.u32 %v4683_v53, 16  ;;  %v4174_v59 = vld [vmem:[%s4434_s12 + $0x18] sm:$0xff]  }
  0xb2   : > { %3546 = vmatmul.mubr.msk.bf16.vlgmr.msra.gmra.mrb[0].mxu1 %vm436_vm1, %v4153_v51  ;;  %v2283_v4 = vsel %vm678_vm2, %v2278_v61, %v2282_v63  ;;  %v2457_v51 = vor.u32 %v2455_v44, %v2453_v37  ;;  %v2471_v63 = vshrl.u32 %v4683_v53, 16  ;;  %v2594_v37 = vrot.slane %v4567_v57, 1 }
  0xb3   : > { %3549 = vmatprep.mubr.msk.bf16.mxu1 %vm4200_vm0, %v4199_v1  ;;  %3566 = vmatpush3.bf16.msra.mxu1 %v4154_v52  ;;  %v2461_v52 = vrot.slane %v2459_v46, 1  ;;  %v2596_v57 = vrot.slane %v4584_v0, 1  ;;  %v2598_v0 = vrot.slane %v4598_v45, 1  ;;  %v2702_v45 = vld [vmem:[%s4434_s12 + $0x4] sm:$0xe] }
  0xb4   : > { %3716 = vmatmul.mubr.msk.bf16.gmra.mrb[16].mxu0 %vm436_vm1, %v2122_v6  ;;  %3587 = vmatprep.subr.bf16.mxu1 %v4199_v1  ;;  %v4157_v6 = vld [vmem:[%s4878_s4 + $0x68] sm:$0xff]  }
  0xb5   : > { %3721 = vmatprep.mubr.msk.bf16.mxu0 %vm4200_vm0, %v4199_v1  ;;  %v2462_v12 = vsel %vm678_vm2, %v2457_v51, %v2461_v52  ;;  %v2597_v51 = vsel %vm1996_vm3, %v2594_v37, %v2596_v57 }
  0xba   : > { %3550 = vmatmul.mubr.msk.bf16.gmra.mrb[4].mxu1 %vm436_vm1, %v4158_v58  ;;  %v2465_v58 = vor.u32 %v2463_v55, %v2461_v52 }
  0xbb   : > { %3553 = vmatprep.mubr.msk.bf16.mxu1 %vm4200_vm0, %v4199_v1 }
  0xbc   : > { %3722 = vmatmul.mubr.msk.bf16.vlgmr.msra.gmra.mrb[0].mxu0 %vm436_vm1, %v2275_v62  ;;  %v2469_v62 = vrot.slane %v2467_v56, 1  ;;  %v1491_v56 = vshrl.u32 %v4185_v48, 16 }
  0xbd   : > { %3742 = vmatpush3.bf16.msra.mxu0 %v4157_v6  ;;  %3725 = vmatprep.mubr.msk.bf16.mxu0 %vm4200_vm0, %v4199_v1  ;;  %v4697_v6 = vld [vmem:[%s4434_s12 + $0x24] sm:$0x1f]  }
  0xbe   : > { %3763 = vmatprep.subr.bf16.mxu0 %v4199_v1  ;;  %v2470_v61 = vsel %vm678_vm2, %v2465_v58, %v2469_v62  ;;  %v2473_v8 = vor.u32 %v2471_v63, %v2469_v62  ;;  %v2479_v39 = vshrl.u32 %v4697_v6, 16  ;;  %v4188_v63 = vld [vmem:[%s4434_s12 + $0x10] sm:$0xff]  }
  0xc2   : > { %3554 = vmatmul.mubr.msk.bf16.gmra.mrb[8].mxu1 %vm436_vm1, %v4160_v3  ;;  %v2475_v3 = vshll.u32 %v4697_v6, 16 }
  0xc3   : > { %3557 = vmatprep.mubr.msk.bf16.mxu1 %vm4200_vm0, %v4199_v1 }
  0xc4   : > { %3726 = vmatmul.mubr.msk.bf16.gmra.mrb[4].mxu0 %vm436_vm1, %v2283_v4  ;;  %v4178_v4 = vld [vmem:[%s4373_s24 + $0x8] sm:$0xff]   ;;  %v2477_v9 = vrot.slane %v2475_v3, 1 }
  0xc5   : > { %3729 = vmatprep.mubr.msk.bf16.mxu0 %vm4200_vm0, %v4199_v1  ;;  %v1319_v15 = vshll.u32 %v4178_v4, 16  ;;  %v1323_v23 = vshrl.u32 %v4178_v4, 16 }
  0xc6   : > { %v2478_v16 = vsel %vm678_vm2, %v2473_v8, %v2477_v9  ;;  %v2481_v49 = vor.u32 %v2479_v39, %v2477_v9  ;;  %v3332_v8 = vcombine.low %v2702_v45, %v4612_v19  ;;  %v1510_v19 = vshrl.u32 %v4188_v63, 16 }
  0xc7   : > { %v1321_v18 = vrot.slane %v1319_v15, 1  ;;  %v2710_v15 = vrot.slane %v4631_v25, 1  ;;  %v2712_v25 = vrot.slane %v4657_v38, 1  ;;  %v2714_v38 = vrot.slane %v4683_v53, 1 }
  0xca   : > { %3558 = vmatmul.mubr.msk.bf16.gmra.mrb[12].mxu1 %vm436_vm1, %v4162_v13  ;;  %v1312_v13 = vshrl.u32 %v4177_v60, 16 }
  0xcb   : > { %3561 = vmatprep.mubr.msk.bf16.mxu1 %vm4200_vm0, %v4199_v1 }
  0xcc   : > { %3730 = vmatmul.mubr.msk.bf16.gmra.mrb[8].mxu0 %vm436_vm1, %v2291_v14  ;;  %v1316_v14 = vrot.slane %v1314_v7, 1  ;;  %v1506_v7 = vshll.u32 %v4188_v63, 16 }
  0xcd   : > { %3733 = vmatprep.mubr.msk.bf16.mxu0 %vm4200_vm0, %v4199_v1 }
  0xce   : > { %v1317_v17 = vor.u32 %v1316_v14, %v1312_v13  ;;  %v4189_v13 = vld [vmem:[%s4434_s12 + $0x18] sm:$0xff]   ;;  %v2709_v14 = vrot.slane %v3332_v8, 1 }
  0xcf   : > { %v1514_v39 = vshll.u32 %v4189_v13, 16 }
  0xd0   : > { %v1322_v22 = vsel %vm678_vm2, %v1317_v17, %v1321_v18  ;;  %v2711_v17 = vsel %vm1996_vm3, %v2709_v14, %v2710_v15 }
  0xd2   : > { %3562 = vmatmul.mubr.msk.bf16.gmra.mrb[16].mxu1 %vm436_vm1, %v4164_v20  ;;  %v4182_v20 = vld [vmem:[%s4373_s24 + $0x10] sm:$0xff]  }
  0xd3   : > { %3567 = vmatprep.mubr.msk.bf16.mxu1 %vm4200_vm0, %v4199_v1  ;;  %v1327_v24 = vshll.u32 %v4182_v20, 16  ;;  %v1331_v33 = vshrl.u32 %v4182_v20, 16  ;;  %v1516_v20 = vrot.slane %v1514_v39, 1 }
  0xd4   : > { %3734 = vmatmul.mubr.msk.bf16.gmra.mrb[12].mxu0 %vm436_vm1, %v2299_v21  ;;  %v2584_v21 = vld [vmem:[%s4373_s24 + $0x4] sm:$0xe] }
  0xd5   : > { %3737 = vmatprep.mubr.msk.bf16.mxu0 %vm4200_vm0, %v4199_v1  ;;  %v3323_v27 = vcombine.low %v2584_v21, %v4540_v43  ;;  %v1329_v29 = vrot.slane %v1327_v24, 1  ;;  %v4190_v21 = vld [vmem:[%s4434_s12 + $0x20] sm:$0x1f]   ;;  %v2713_v24 = vsel %vm1996_vm3, %v2710_v15, %v2712_v25 }
  0xd7   : > { %v2591_v31 = vrot.slane %v3323_v27, 1  ;;  %v1333_v35 = vor.u32 %v1331_v33, %v1329_v29 }
  0xda   : > { %3568 = vmatmul.mubr.msk.bf16.vlgmr.msra.gmra.mrb[0].mxu1 %vm436_vm1, %v4165_v50  ;;  %v1325_v50 = vor.u32 %v1323_v23, %v1321_v18  ;;  %v1522_v23 = vshll.u32 %v4190_v21, 16 }
  0xdb   : > { %3571 = vmatprep.mubr.msk.bf16.mxu1 %vm4200_vm0, %v4199_v1  ;;  %3588 = vmatpush3.bf16.msra.mxu1 %v4166_v32  ;;  %v2592_v32 = vrot.slane %v4551_v11, 1  ;;  %v4184_v11 = vld [vmem:[%s4373_s24 + $0x20] sm:$0x1f]  }
  0xdc   : > { %3738 = vmatmul.mubr.msk.bf16.gmra.mrb[16].mxu0 %vm436_vm1, %v2302_v30  ;;  %3609 = vmatprep.subr.bf16.mxu1 %v4199_v1  ;;  %v4183_v30 = vld [vmem:[%s4373_s24 + $0x18] sm:$0xff]   ;;  %v1330_v43 = vsel %vm678_vm2, %v1325_v50, %v1329_v29  ;;  %v1343_v41 = vshll.u32 %v4184_v11, 16  ;;  %v1347_v52 = vshrl.u32 %v4184_v11, 16  ;;  %v1524_v27 = vrot.slane %v1522_v23, 1  ;;  %s4097_s24 = smul.u32 36, %s4884_s28 }
  0xdd   : > { %3743 = vmatprep.mubr.msk.bf16.mxu0 %vm4200_vm0, %v4199_v1  ;;  %v1335_v28 = vshll.u32 %v4183_v30, 16  ;;  %v2593_v47 = vsel %vm1996_vm3, %v2591_v31, %v2592_v32  ;;  %v1339_v40 = vshrl.u32 %v4183_v30, 16  ;;  %v2715_v29 = vsel %vm1996_vm3, %v2712_v25, %v2714_v38 }
  0xde   : > { %v1345_v44 = vrot.slane %v1343_v41, 1  ;;  %v1526_v30 = vshrl.u32 %v4190_v21, 16  ;;  %v2716_v31 = vrot.slane %v4697_v6, 1  ;;  %s4825_s16 = scalar_lea.vmem %s4880_s6, %s4097_s24 }
  0xdf   : > { %v1337_v36 = vrot.slane %v1335_v28, 1 }
  0xe0   : > { %v1349_v55 = vor.u32 %v1347_v52, %v1345_v44  ;;  %v2717_v53 = vsel %vm1996_vm3, %v2714_v38, %v2716_v31 }
  0xe2   : > { %3572 = vmatmul.mubr.msk.bf16.gmra.mrb[4].mxu1 %vm436_vm1, %v4170_v2  ;;  %v1338_v2 = vsel %vm678_vm2, %v1333_v35, %v1337_v36 }
  0xe3   : > { %3575 = vmatprep.mubr.msk.bf16.mxu1 %vm4200_vm0, %v4199_v1 }
  0xe4   : > { %3744 = vmatmul.mubr.msk.bf16.vlgmr.msra.gmra.mrb[0].mxu0 %vm436_vm1, %v2454_v42  ;;  %v2595_v42 = vsel %vm1996_vm3, %v2592_v32, %v2594_v37  ;;  %v1528_v32 = vor.u32 %v1526_v30, %v1524_v27 }
  0xe5   : > { %3764 = vmatpush3.bf16.msra.mxu0 %v4169_v5  ;;  %3747 = vmatprep.mubr.msk.bf16.mxu0 %vm4200_vm0, %v4199_v1  ;;  %v1341_v5 = vor.u32 %v1339_v40, %v1337_v36 }
  0xe6   : > { %3785 = vmatprep.subr.bf16.mxu0 %v4199_v1 }
  0xe7   : > { %v1346_v46 = vsel %vm678_vm2, %v1341_v5, %v1345_v44 }
  0xea   : > { %3576 = vmatmul.mubr.msk.bf16.gmra.mrb[8].mxu1 %vm436_vm1, %v4172_v54  ;;  %v4186_v54 = vld [vmem:[%s4434_s12 + $0x8] sm:$0xff]  }
  0xeb   : > { %3579 = vmatprep.mubr.msk.bf16.mxu1 %vm4200_vm0, %v4199_v1  ;;  %v1498_v62 = vshll.u32 %v4186_v54, 16  ;;  %v1502_v4 = vshrl.u32 %v4186_v54, 16 }
  0xec   : > { %3748 = vmatmul.mubr.msk.bf16.gmra.mrb[4].mxu0 %vm436_vm1, %v2462_v12  ;;  %v1493_v12 = vshll.u32 %v4185_v48, 16 }
  0xed   : > { %3751 = vmatprep.mubr.msk.bf16.mxu0 %vm4200_vm0, %v4199_v1 }
  0xee   : > { %v1495_v58 = vrot.slane %v1493_v12, 1 }
  0xf0   : > { %v1496_v60 = vor.u32 %v1495_v58, %v1491_v56 }
  0xf2   : > { %3580 = vmatmul.mubr.msk.bf16.gmra.mrb[12].mxu1 %vm436_vm1, %v4174_v59  ;;  %v2599_v59 = vsel %vm1996_vm3, %v2596_v57, %v2598_v0 }
  0xf3   : > { %3583 = vmatprep.mubr.msk.bf16.mxu1 %vm4200_vm0, %v4199_v1 }
  0xf4   : > { %3752 = vmatmul.mubr.msk.bf16.gmra.mrb[8].mxu0 %vm436_vm1, %v2470_v61  ;;  %v1500_v61 = vrot.slane %v1498_v62, 1 }
  0xf5   : > { %3755 = vmatprep.mubr.msk.bf16.mxu0 %vm4200_vm0, %v4199_v1 }
  0xf6   : > { %v1501_v3 = vsel %vm678_vm2, %v1496_v60, %v1500_v61  ;;  %v1504_v9 = vor.u32 %v1502_v4, %v1500_v61 }
  0xfa   : > { %3584 = vmatmul.mubr.msk.bf16.gmra.mrb[16].mxu1 %vm436_vm1, %v4176_v10  ;;  %v1508_v10 = vrot.slane %v1506_v7, 1 }
  0xfb   : > { %3589 = vmatprep.mubr.msk.bf16.mxu1 %vm4200_vm0, %v4199_v1 }
  0xfc   : > { %3756 = vmatmul.mubr.msk.bf16.gmra.mrb[12].mxu0 %vm436_vm1, %v2478_v16  ;;  %v1509_v16 = vsel %vm678_vm2, %v1504_v9, %v1508_v10  ;;  %v1512_v18 = vor.u32 %v1510_v19, %v1508_v10 }
  0xfd   : > { %3759 = vmatprep.mubr.msk.bf16.mxu0 %vm4200_vm0, %v4199_v1 }
 0x102   : > { %3590 = vmatmul.mubr.msk.bf16.vlgmr.msra.gmra.mrb[0].mxu1 %vm436_vm1, %v1322_v22  ;;  %v1518_v22 = vshrl.u32 %v4189_v13, 16 }
 0x103   : > { %3593 = vmatprep.mubr.msk.bf16.mxu1 %vm4200_vm0, %v4199_v1  ;;  %3610 = vmatpush3.bf16.msra.mxu1 %v4179_v26 }
 0x104   : > { %3760 = vmatmul.mubr.msk.bf16.gmra.mrb[16].mxu0 %vm436_vm1, %v2481_v49  ;;  %v1517_v49 = vsel %vm678_vm2, %v1512_v18, %v1516_v20  ;;  %v1520_v26 = vor.u32 %v1518_v22, %v1516_v20 }
 0x105   : > { %3765 = vmatprep.mubr.msk.bf16.mxu0 %vm4200_vm0, %v4199_v1 }
 0x106   : > { %v1525_v50 = vsel %vm678_vm2, %v1520_v26, %v1524_v27 }
 0x10a   : > { %3594 = vmatmul.mubr.msk.bf16.gmra.mrb[4].mxu1 %vm436_vm1, %v1330_v43 }
 0x10b   : > { %3597 = vmatprep.mubr.msk.bf16.mxu1 %vm4200_vm0, %v4199_v1 }
 0x10c   : > { %3766 = vmatmul.mubr.msk.bf16.vlgmr.msra.gmra.mrb[0].mxu0 %vm436_vm1, %v2593_v47 }
 0x10d   : > { %3786 = vmatpush3.bf16.msra.mxu0 %v4181_v34  ;;  %3769 = vmatprep.mubr.msk.bf16.mxu0 %vm4200_vm0, %v4199_v1  ;;  %v2879_v47 = vpop.permute.xlu0 %2878 }
 0x10e   : > { %v2889_v52 = vpop.permute.xlu1 %2888 }
 0x111   : > { %v2884_v6 = vpop.permute.xlu0 %2883 }
 0x112   : > { %3598 = vmatmul.mubr.msk.bf16.gmra.mrb[8].mxu1 %vm436_vm1, %v1338_v2 }
 0x113   : > { %3601 = vmatprep.mubr.msk.bf16.mxu1 %vm4200_vm0, %v4199_v1 }
 0x114   : > { %3770 = vmatmul.mubr.msk.bf16.gmra.mrb[4].mxu0 %vm436_vm1, %v2595_v42 }
 0x115   : > { %3773 = vmatprep.mubr.msk.bf16.mxu0 %vm4200_vm0, %v4199_v1 }
 0x11a   : > { %3602 = vmatmul.mubr.msk.bf16.gmra.mrb[12].mxu1 %vm436_vm1, %v1346_v46 }
 0x11b   : > { %3605 = vmatprep.mubr.msk.bf16.mxu1 %vm4200_vm0, %v4199_v1 }
 0x11c   : > { %3774 = vmatmul.mubr.msk.bf16.gmra.mrb[8].mxu0 %vm436_vm1, %v2597_v51 }
 0x11d   : > { %3777 = vmatprep.mubr.msk.bf16.mxu0 %vm4200_vm0, %v4199_v1 }
 0x122   : > { %3606 = vmatmul.mubr.msk.bf16.gmra.mrb[16].mxu1 %vm436_vm1, %v1349_v55 }
 0x123   : > { %3611 = vmatprep.mubr.msk.bf16.mxu1 %vm4200_vm0, %v4199_v1 }
 0x124   : > { %3778 = vmatmul.mubr.msk.bf16.gmra.mrb[12].mxu0 %vm436_vm1, %v2599_v59 }
 0x125   : > { %3781 = vmatprep.mubr.msk.bf16.mxu0 %vm4200_vm0, %v4199_v1 }
 0x12a   : > { %3612 = vmatmul.mubr.msk.bf16.vlgmr.msra.gmra.mrb[0].mxu1 %vm436_vm1, %v1501_v3 }
 0x12b   : > { %3615 = vmatprep.mubr.msk.bf16.mxu1 %vm4200_vm0, %v4199_v1 }
 0x12c   : > { %3782 = vmatmul.mubr.msk.bf16.gmra.mrb[16].mxu0 %vm436_vm1, %v2598_v0 }
 0x12d   : > { %3787 = vmatprep.mubr.msk.bf16.mxu0 %vm4200_vm0, %v4199_v1 }
 0x132   : > { %3616 = vmatmul.mubr.msk.bf16.gmra.mrb[4].mxu1 %vm436_vm1, %v1509_v16  ;;  %v2894_v16 = vpop.permute.xlu1 %2893 }
 0x133   : > { %3619 = vmatprep.mubr.msk.bf16.mxu1 %vm4200_vm0, %v4199_v1 }
 0x134   : > { %3788 = vmatmul.mubr.msk.bf16.vlgmr.msra.gmra.mrb[0].mxu0 %vm436_vm1, %v2711_v17 }
 0x135   : > { %3791 = vmatprep.mubr.msk.bf16.mxu0 %vm4200_vm0, %v4199_v1 }
 0x13a   : > { %3620 = vmatmul.mubr.msk.bf16.gmra.mrb[8].mxu1 %vm436_vm1, %v1517_v49  ;;  %v2899_v49 = vpop.permute.xlu0 %2898 }
 0x13b   : > { %3623 = vmatprep.mubr.msk.bf16.mxu1 %vm4200_vm0, %v4199_v1 }
 0x13c   : > { %3792 = vmatmul.mubr.msk.bf16.gmra.mrb[4].mxu0 %vm436_vm1, %v2713_v24 }
 0x13d   : > { %3795 = vmatprep.mubr.msk.bf16.mxu0 %vm4200_vm0, %v4199_v1 }
 0x142   : > { %3624 = vmatmul.mubr.msk.bf16.gmra.mrb[12].mxu1 %vm436_vm1, %v1525_v50 }
 0x143   : > { %3627 = vmatprep.mubr.msk.bf16.mxu1 %vm4200_vm0, %v4199_v1 }
 0x144   : > { %3796 = vmatmul.mubr.msk.bf16.gmra.mrb[8].mxu0 %vm436_vm1, %v2715_v29 }
 0x145   : > { %3799 = vmatprep.mubr.msk.bf16.mxu0 %vm4200_vm0, %v4199_v1 }
 0x14a   : > { %3628 = vmatmul.mubr.msk.bf16.gmra.mrb[16].mxu1 %vm436_vm1, %v1528_v32 }
 0x14c   : > { %3800 = vmatmul.mubr.msk.bf16.gmra.mrb[12].mxu0 %vm436_vm1, %v2717_v53 }
 0x14d   : > { %3803 = vmatprep.mubr.msk.bf16.mxu0 %vm4200_vm0, %v4199_v1 }
 0x154   : > { %3804 = vmatmul.mubr.msk.bf16.gmra.mrb[16].mxu0 %vm436_vm1, %v2716_v31 }
 0x1fd   : > { %v1584_v43 = vpop.f32.mrb[0].mxu1 }
 0x1fe   : > { %v3613_v33 = vpop.f32.mrb[1].mxu1 }
 0x1ff   : > { %v1587_v28 = vpop.f32.mrb[2].mxu1 }
 0x200   : > { %v3614_v34 = vpop.f32.mrb[3].mxu1 }
 0x205   : > { %v1592_v35 = vpop.f32.mrb[4].mxu1 }
 0x206   : > { %v3617_v11 = vpop.f32.mrb[5].mxu1 }
 0x207   : > { %v2773_v36 = vpop.f32.mrb[0].mxu0  ;;  %v1595_v40 = vpop.f32.mrb[6].mxu1 }
 0x208   : > { %v3807_v37 = vadd.f32 %v2773_v36, %v1584_v43  ;;  %v3789_v2 = vpop.f32.mrb[1].mxu0  ;;  %v3618_v41 = vpop.f32.mrb[7].mxu1 }
 0x209   : > { %v2776_v1 = vpop.f32.mrb[2].mxu0  ;;  %v2904_v2 = vpop.permute.xlu1 %2903 }
 0x20a   : > { %v3350_v42 = vpack.c.bf16 %v3807_v37, %v3807_v37  ;;  %v2921_v5 = vmul.f32 %v3807_v37, %v2879_v47  ;;  %v2956_v44 = vmul.f32 %v3807_v37, %v3807_v37  ;;  %v3808_v57 = vadd.f32 %v2776_v1, %v1587_v28  ;;  %v3790_v46 = vpop.f32.mrb[3].mxu0 }
 0x20c   : > { %2858 = vst.msk [vmem:[%s4825_s16] sm:$0xf] %vm2857_vm4, %v3350_v42  ;;  %v3351_v48 = vpack.c.bf16 %v3808_v57, %v3808_v57  ;;  %v2922_v51 = vmul.f32 %v3808_v57, %v2884_v6  ;;  %v2965_v54 = vmul.f32 %v2956_v44, %v2879_v47  ;;  %v2957_v12 = vmul.f32 %v3808_v57, %v3808_v57 }
 0x20d   : > { %v2931_v0 = vsel %vm2930_vm5, %v2921_v5, 0.0  ;;  %v1600_v56 = vpop.f32.mrb[8].mxu1  ;;  %v2909_v5 = vpop.permute.xlu0 %2908 }
 0x20e   : > { %2859 = vst.msk [vmem:[%s4825_s16 + $0x4] sm:$0xf] %vm2857_vm4, %v3351_v48  ;;  %v2932_v55 = vsel %vm2930_vm5, %v2922_v51, 0.0  ;;  %v2966_v62 = vmul.f32 %v2957_v12, %v2884_v6  ;;  %v3621_v60 = vpop.f32.mrb[9].mxu1  ;;  %v2974_v3 = vsel %vm2930_vm5, %v2965_v54, 0.0 }
 0x20f   : > { %v2933_v58 = vadd.f32 %v2932_v55, %v2931_v0  ;;  %v2781_v59 = vpop.f32.mrb[4].mxu0  ;;  %v1603_v45 = vpop.f32.mrb[10].mxu1 }
 0x210   : > { %v3809_v61 = vadd.f32 %v2781_v59, %v1592_v35  ;;  %v3793_v63 = vpop.f32.mrb[5].mxu0  ;;  %v2975_v4 = vsel %vm2930_vm5, %v2966_v62, 0.0  ;;  %v3622_v8 = vpop.f32.mrb[11].mxu1 }
 0x211   : > { %v2784_v7 = vpop.f32.mrb[6].mxu0  ;;  %v2976_v9 = vadd.f32 %v2975_v4, %v2974_v3 }
 0x212   : > { %v3352_v10 = vpack.c.bf16 %v3809_v61, %v3809_v61  ;;  %v2923_v13 = vmul.f32 %v3809_v61, %v2889_v52  ;;  %v2958_v14 = vmul.f32 %v3809_v61, %v3809_v61  ;;  %v3794_v15 = vpop.f32.mrb[7].mxu0  ;;  %v3810_v19 = vadd.f32 %v2784_v7, %v1595_v40  ;;  %v2914_v7 = vpop.permute.xlu1 %2913 }
 0x214   : > { %2860 = vst.msk [vmem:[%s4825_s16 + $0x8] sm:$0xf] %vm2857_vm4, %v3352_v10  ;;  %v2934_v39 = vsel %vm2930_vm5, %v2923_v13, 0.0  ;;  %v2967_v17 = vmul.f32 %v2958_v14, %v2889_v52  ;;  %v3353_v18 = vpack.c.bf16 %v3810_v19, %v3810_v19  ;;  %v2924_v20 = vmul.f32 %v3810_v19, %v2894_v16 }
 0x215   : > { %v2935_v21 = vadd.f32 %v2934_v39, %v2933_v58  ;;  %v2959_v25 = vmul.f32 %v3810_v19, %v3810_v19  ;;  %v1608_v23 = vpop.f32.mrb[12].mxu1 }
 0x216   : > { %v2977_v22 = vsel %vm2930_vm5, %v2967_v17, 0.0  ;;  %2861 = vst.msk [vmem:[%s4825_s16 + $0xc] sm:$0xf] %vm2857_vm4, %v3353_v18  ;;  %v2936_v24 = vsel %vm2930_vm5, %v2924_v20, 0.0  ;;  %v3625_v50 = vpop.f32.mrb[13].mxu1 }
 0x217   : > { %v2968_v26 = vmul.f32 %v2959_v25, %v2894_v16  ;;  %v2978_v27 = vadd.f32 %v2977_v22, %v2976_v9  ;;  %v2789_v38 = vpop.f32.mrb[8].mxu0  ;;  %v2937_v29 = vadd.f32 %v2936_v24, %v2935_v21  ;;  %v1611_v32 = vpop.f32.mrb[14].mxu1 }
 0x218   : > { %v3811_v30 = vadd.f32 %v2789_v38, %v1600_v56  ;;  %v3797_v31 = vpop.f32.mrb[9].mxu0  ;;  %v3626_v33 = vpop.f32.mrb[15].mxu1 }
 0x219   : > { %v2979_v53 = vsel %vm2930_vm5, %v2968_v26, 0.0  ;;  %v2792_v43 = vpop.f32.mrb[10].mxu0 }
 0x21a   : > { %v2980_v28 = vadd.f32 %v2979_v53, %v2978_v27  ;;  %v3354_v47 = vpack.c.bf16 %v3811_v30, %v3811_v30  ;;  %v2925_v34 = vmul.f32 %v3811_v30, %v2899_v49  ;;  %v2960_v35 = vmul.f32 %v3811_v30, %v3811_v30  ;;  %v3798_v6 = vpop.f32.mrb[11].mxu0 }
 0x21b   : > { %v3812_v36 = vadd.f32 %v2792_v43, %v1603_v45 }
 0x21c   : > { %2862 = vst.msk [vmem:[%s4825_s16 + $0x10] sm:$0xf] %vm2857_vm4, %v3354_v47  ;;  %v2938_v11 = vsel %vm2930_vm5, %v2925_v34, 0.0  ;;  %v2969_v37 = vmul.f32 %v2960_v35, %v2899_v49  ;;  %v2919_v49 = vpop.permute.xlu0 %2918 }
 0x21d   : > { %v2939_v40 = vadd.f32 %v2938_v11, %v2937_v29  ;;  %v3355_v1 = vpack.c.bf16 %v3812_v36, %v3812_v36  ;;  %v2926_v41 = vmul.f32 %v3812_v36, %v2904_v2  ;;  %v2961_v42 = vmul.f32 %v3812_v36, %v3812_v36  ;;  %v1616_v57 = vpop.f32.mrb[16].mxu1 }
 0x21e   : > { %v2981_v44 = vsel %vm2930_vm5, %v2969_v37, 0.0  ;;  %v3629_v54 = vpop.f32.mrb[17].mxu1 }
 0x21f   : > { %v2982_v46 = vadd.f32 %v2981_v44, %v2980_v28  ;;  %2863 = vst.msk [vmem:[%s4825_s16 + $0x14] sm:$0xf] %vm2857_vm4, %v3355_v1  ;;  %v2940_v48 = vsel %vm2930_vm5, %v2926_v41, 0.0  ;;  %v2970_v51 = vmul.f32 %v2961_v42, %v2904_v2  ;;  %v2797_v52 = vpop.f32.mrb[12].mxu0  ;;  %v1619_v56 = vpop.f32.mrb[18].mxu1 }
 0x220   : > { %v2941_v12 = vadd.f32 %v2940_v48, %v2939_v40  ;;  %v3813_v0 = vadd.f32 %v2797_v52, %v1608_v23  ;;  %v3801_v55 = vpop.f32.mrb[13].mxu0  ;;  %v3630_v59 = vpop.f32.mrb[19].mxu1 }
 0x221   : > { %v2983_v58 = vsel %vm2930_vm5, %v2970_v51, 0.0  ;;  %v2800_v62 = vpop.f32.mrb[14].mxu0 }
 0x222   : > { %v2984_v60 = vadd.f32 %v2983_v58, %v2982_v46  ;;  %v3356_v61 = vpack.c.bf16 %v3813_v0, %v3813_v0  ;;  %v2927_v63 = vmul.f32 %v3813_v0, %v2909_v5  ;;  %v2962_v45 = vmul.f32 %v3813_v0, %v3813_v0  ;;  %v3802_v3 = vpop.f32.mrb[15].mxu0 }
 0x223   : > { %v3814_v4 = vadd.f32 %v2800_v62, %v1611_v32 }
 0x224   : > { %2864 = vst.msk [vmem:[%s4825_s16 + $0x18] sm:$0xf] %vm2857_vm4, %v3356_v61  ;;  %v2942_v8 = vsel %vm2930_vm5, %v2927_v63, 0.0  ;;  %v2971_v9 = vmul.f32 %v2962_v45, %v2909_v5 }
 0x225   : > { %v2943_v10 = vadd.f32 %v2942_v8, %v2941_v12  ;;  %v3357_v13 = vpack.c.bf16 %v3814_v4, %v3814_v4  ;;  %v2928_v14 = vmul.f32 %v3814_v4, %v2914_v7  ;;  %v2963_v15 = vmul.f32 %v3814_v4, %v3814_v4 }
 0x226   : > { %v2985_v16 = vsel %vm2930_vm5, %v2971_v9, 0.0 }
 0x227   : > { %v2986_v19 = vadd.f32 %v2985_v16, %v2984_v60  ;;  %2865 = vst.msk [vmem:[%s4825_s16 + $0x1c] sm:$0xf] %vm2857_vm4, %v3357_v13  ;;  %v2944_v39 = vsel %vm2930_vm5, %v2928_v14, 0.0  ;;  %v2972_v17 = vmul.f32 %v2963_v15, %v2914_v7  ;;  %v2805_v18 = vpop.f32.mrb[16].mxu0 }
 0x228   : > { %v2945_v20 = vadd.f32 %v2944_v39, %v2943_v10  ;;  %v3815_v21 = vadd.f32 %v2805_v18, %v1616_v57  ;;  %v3805_v25 = vpop.f32.mrb[17].mxu0 }
 0x229   : > { %v2987_v22 = vsel %vm2930_vm5, %v2972_v17, 0.0  ;;  %v2808_v23 = vpop.f32.mrb[18].mxu0 }
 0x22a   : > { %v2988_v24 = vadd.f32 %v2987_v22, %v2986_v19  ;;  %v3358_v26 = vpack.c.bf16 %v3815_v21, %v3815_v21  ;;  %v2929_v27 = vmul.f32 %v3815_v21, %v2919_v49  ;;  %v2964_v38 = vmul.f32 %v3815_v21, %v3815_v21  ;;  %v3806_v50 = vpop.f32.mrb[19].mxu0 }
 0x22c   : > { %2866 = vst.msk [vmem:[%s4825_s16 + $0x20] sm:$0xf] %vm2857_vm4, %v3358_v26  ;;  %v2946_v29 = vsel %vm2930_vm5, %v2929_v27, 0.0  ;;  %v2973_v30 = vmul.f32 %v2964_v38, %v2919_v49 }
 0x22d   : > { %v2947_v31 = vadd.f32 %v2946_v29, %v2945_v20 }
 0x22e   : > { %v2989_v32 = vsel %vm2930_vm5, %v2973_v30, 0.0 }
 0x22f   : > { %v2948_v53 = vrot.slane %v2947_v31, 4  ;;  %v2990_v43 = vadd.f32 %v2989_v32, %v2988_v24 }
 0x231   : > { %v2949_v33 = vadd.f32 %v2948_v53, %v2947_v31  ;;  %v2991_v28 = vrot.slane %v2990_v43, 4 }
 0x233   : > { %v2950_v47 = vrot.slane %v2949_v33, 2  ;;  %v2992_v34 = vadd.f32 %v2991_v28, %v2990_v43 }
 0x235   : > { %v2951_v35 = vadd.f32 %v2950_v47, %v2949_v33  ;;  %v2993_v6 = vrot.slane %v2992_v34, 2 }
 0x237   : > { %v2952_v36 = vrot.slane %v2951_v35, 1  ;;  %v2994_v11 = vadd.f32 %v2993_v6, %v2992_v34 }
 0x239   : > { %v2953_v37 = vadd.f32 %v2952_v36, %v2951_v35  ;;  %v2995_v2 = vrot.slane %v2994_v11, 1 }
 0x23b   : > { %2955 = vst.msk [vmem:[%s379_s19] sm:$0x1] %vm2954_vm6, %v2953_v37  ;;  %v2996_v40 = vadd.f32 %v2995_v2, %v2994_v11 }
 0x23d   : > { %2997 = vst.msk [vmem:[%s382_s21] sm:$0x1] %vm2954_vm6, %v2996_v40 }
 0x23e PF: > { %s19_s27 = sadd.s32 1, %s4197_s27  }
 0x23f   : > { %p16_p4 = scmp.ge.s32.totalorder %s19_s27, 4  }
 0x241   :  { %18 = sbr.rel (!%p16_p4) target bundleno = 1 (0x1), region = 122 }

// kernel: nlayer_discriminator_forward.5
= control target key start
LH: loop header
LB: loop body
LE: loop exit
PB: predicated region body
PF: predicated region fallthrough
CT: control target
= control target key end

     0   :  { %s9805_s21 = smov 0   ;;  %s12412_s0 = inlined_call_operand.vmem [shape: bf16[2,296,4], index: 0, kind: input, shape index: {}]   ;;  %s12413_s1 = inlined_call_operand.vmem [shape: bf16[2,296,4], index: 1, kind: input, shape index: {}]   ;;  %s12414_s2 = inlined_call_operand.vmem [shape: bf16[2,296,4], index: 2, kind: input, shape index: {}]   ;;  %s12415_s3 = inlined_call_operand.vmem [shape: bf16[2,296,4], index: 3, kind: input, shape index: {}]   ;;  %s12416_s4 = inlined_call_operand.vmem [shape: bf16[16,4,16], index: 4, kind: input, shape index: {}]   ;;  %s12417_s5 = inlined_call_operand.vmem [shape: f32[1,16], index: 5, kind: input, shape index: {}]   ;;  %s12418_s6 = inlined_call_operand.vmem [shape: bf16[2,272,16], index: 6, kind: output, shape index: {}]  }
   0x1 LB: > { %s7533_s22 = sadd.s32 4294967295, %s9766_s21   ;;  %p7537_p0 = scmp.ge.s32.totalorder %s9766_s21, 1  ;;  %s9766_s21 = sphi %s9805_s21, %s16_s21  }
   0x2   : > { %p242_p1 = scmp.lt.s32.totalorder %s9766_s21, 3 }
   0x4   : > { %p243_p2 = pnand %p7537_p0, %p242_p1 }
   0x6   : > { %246 = sbr.rel (%p243_p2) target bundleno = 1327 (0x52f), region = 44 }
   0xd   : > { %v7543_v0 = vld [vmem:[%s12416_s4 + $0x2] sm:$0x3]  ;;  %vm521_vm0 = vcmask 1041408   ;;  %v347_v1 = vld [vmem:[%s12416_s4] sm:$0x3]  ;;  %v12419_v2 = vmov 0.0  }
   0xe   : > { %8405 = vmatprep.subr.bf16.mxu0 %v12419_v2  ;;  %v523_v3 = vsel %vm521_vm0, %v7543_v0, 0  ;;  %8475 = vmatprep.subr.bf16.mxu1 %v12419_v2  ;;  %v831_v4 = vsel %vm521_vm0, %v347_v1, 0  ;;  %p287_p3 = scmp.lt.s32.totalorder %s7533_s22, 1  ;;  %vm9769_vm1 = vmmov 0   ;;  %v7612_v5 = vld [vmem:[%s12416_s4 + $0x4] sm:$0x3] }
   0xf   : > { %8406 = vmatpush3.bf16.msra.mxu0 %v523_v3  ;;  %8476 = vmatpush3.bf16.msra.mxu1 %v831_v4  ;;  %v7648_v6 = vld [vmem:[%s12416_s4 + $0x6] sm:$0x3]  ;;  %vm469_vm2 = vcmask 31744   ;;  %v1320_v8 = vsel %vm521_vm0, %v7612_v5, 0  ;;  %vm1127_vm3 = vsmask.f32 7424 }
  0x10   : > { %8407 = vmatprep.mubr.msk.bf16.mxu0 %vm9769_vm1, %v12419_v2  ;;  %8477 = vmatprep.mubr.msk.bf16.mxu1 %vm9769_vm1, %v12419_v2  ;;  %s12541_s22 = smov (!%p287_p3, %s7533_s22), 1  ;;  %v1842_v10 = vsel %vm521_vm0, %v7648_v6, 0  ;;  %v7684_v61 = vld [vmem:[%s12416_s4 + $0x8] sm:$0x3]  ;;  %v7719_v62 = vld [vmem:[%s12416_s4 + $0xa] sm:$0x3] }
  0x11   : > { %8545 = vmatprep.subr.bf16.mxu0 %v12419_v2  ;;  %8615 = vmatprep.subr.bf16.mxu1 %v12419_v2  ;;  %s9832_s27 = smul.u32 148, %s12541_s22  ;;  %vm4897_vm4 = vcmask 1046528   ;;  %vm7407_vm6 = vcmask 125952  }
  0x12   : > { %s9526_s26 = smul.u32 136, %s12541_s22 }
  0x13   : > { %s9844_s10 = scalar_lea.vmem %s12413_s1, %s9832_s27  ;;  %s9850_s13 = scalar_lea.vmem %s12412_s0, %s9832_s27 }
  0x14   : > { %v9537_v7 = vld [vmem:[%s9844_s10] sm:$0xff]   ;;  %v9539_v11 = vld [vmem:[%s9844_s10 + $0x8] sm:$0xff]   ;;  %v9541_v13 = vld [vmem:[%s9844_s10 + $0x10] sm:$0xff]   ;;  %s10071_s20 = scalar_lea.vmem %s12414_s2, %s9832_s27  ;;  %s10077_s25 = scalar_lea.vmem %s12415_s3, %s9832_s27 }
  0x15   : > { %v9538_v9 = vld [vmem:[%s9850_s13] sm:$0xff]   ;;  %8408 = vmatmul.mubr.msk.bf16.vlgmr.msra.gmra.mrb[0].mxu0 %vm469_vm2, %v9537_v7  ;;  %v9540_v12 = vld [vmem:[%s9850_s13 + $0x8] sm:$0xff]   ;;  %v9542_v14 = vld [vmem:[%s9850_s13 + $0x10] sm:$0xff]   ;;  %s12275_s29 = scalar_lea.vmem %s12418_s6, %s9526_s26 }
  0x16   : > { %8478 = vmatmul.mubr.msk.bf16.vlgmr.msra.gmra.mrb[0].mxu1 %vm469_vm2, %v9538_v9  ;;  %8546 = vmatpush3.bf16.msra.mxu0 %v1320_v8  ;;  %v9543_v15 = vld [vmem:[%s9844_s10 + $0x18] sm:$0xff]   ;;  %v9545_v17 = vld [vmem:[%s9844_s10 + $0x20] sm:$0xff]   ;;  %v9547_v19 = vld [vmem:[%s9844_s10 + $0x28] sm:$0xff]   ;;  %v2220_v8 = vsel %vm521_vm0, %v7684_v61, 0 }
  0x17   : > { %8616 = vmatpush3.bf16.msra.mxu1 %v1842_v10  ;;  %8411 = vmatprep.mubr.msk.bf16.mxu0 %vm9769_vm1, %v12419_v2  ;;  %v9544_v16 = vld [vmem:[%s9850_s13 + $0x18] sm:$0xff]   ;;  %v9546_v18 = vld [vmem:[%s9850_s13 + $0x20] sm:$0xff]   ;;  %v9548_v20 = vld [vmem:[%s9850_s13 + $0x28] sm:$0xff]   ;;  %v2598_v10 = vsel %vm521_vm0, %v7719_v62, 0 }
  0x18   : > { %8481 = vmatprep.mubr.msk.bf16.mxu1 %vm9769_vm1, %v12419_v2  ;;  %8685 = vmatprep.subr.bf16.mxu0 %v12419_v2  ;;  %v9549_v21 = vld [vmem:[%s9844_s10 + $0x30] sm:$0xff]   ;;  %v9551_v23 = vld [vmem:[%s9844_s10 + $0x38] sm:$0xff]   ;;  %v9553_v25 = vld [vmem:[%s9844_s10 + $0x40] sm:$0xff]  }
  0x19   : > { %8755 = vmatprep.subr.bf16.mxu1 %v12419_v2  ;;  %v9550_v22 = vld [vmem:[%s9850_s13 + $0x30] sm:$0xff]   ;;  %v9552_v24 = vld [vmem:[%s9850_s13 + $0x38] sm:$0xff]   ;;  %v9554_v26 = vld [vmem:[%s9850_s13 + $0x40] sm:$0xff]  }
  0x1a   : > { %v9555_v27 = vld [vmem:[%s9844_s10 + $0x48] sm:$0xff]   ;;  %v9557_v29 = vld [vmem:[%s9844_s10 + $0x50] sm:$0xff]   ;;  %v9559_v31 = vld [vmem:[%s9844_s10 + $0x58] sm:$0xff]  }
  0x1b   : > { %v9556_v28 = vld [vmem:[%s9850_s13 + $0x48] sm:$0xff]   ;;  %v9558_v30 = vld [vmem:[%s9850_s13 + $0x50] sm:$0xff]   ;;  %v9560_v32 = vld [vmem:[%s9850_s13 + $0x58] sm:$0xff]  }
  0x1c   : > { %v9561_v33 = vld [vmem:[%s9844_s10 + $0x60] sm:$0xff]   ;;  %v9563_v35 = vld [vmem:[%s9844_s10 + $0x68] sm:$0xff]   ;;  %v9565_v37 = vld [vmem:[%s9844_s10 + $0x70] sm:$0xff]  }
  0x1d   : > { %8412 = vmatmul.mubr.msk.bf16.gmra.mrb[4].mxu0 %vm469_vm2, %v9539_v11  ;;  %v9562_v34 = vld [vmem:[%s9850_s13 + $0x60] sm:$0xff]   ;;  %v9564_v36 = vld [vmem:[%s9850_s13 + $0x68] sm:$0xff]   ;;  %v9566_v38 = vld [vmem:[%s9850_s13 + $0x70] sm:$0xff]  }
  0x1e   : > { %8482 = vmatmul.mubr.msk.bf16.gmra.mrb[4].mxu1 %vm469_vm2, %v9540_v12  ;;  %8415 = vmatprep.mubr.msk.bf16.mxu0 %vm9769_vm1, %v12419_v2  ;;  %v9567_v39 = vld [vmem:[%s9844_s10 + $0x78] sm:$0xff]   ;;  %v9571_v41 = vld [vmem:[%s9850_s13] sm:$0xff]   ;;  %v9572_v43 = vld [vmem:[%s9850_s13 + $0x8] sm:$0xff]  }
  0x1f   : > { %8485 = vmatprep.mubr.msk.bf16.mxu1 %vm9769_vm1, %v12419_v2  ;;  %v9568_v40 = vld [vmem:[%s9850_s13 + $0x78] sm:$0xff]   ;;  %v9573_v42 = vld [vmem:[%s9844_s10] sm:$0xff]   ;;  %v1131_v44 = vshll.u32 %v9571_v41, 16  ;;  %v9574_v45 = vld [vmem:[%s9844_s10 + $0x8] sm:$0xff]   ;;  %v1129_v49 = vshrl.u32 %v9571_v41, 16  ;;  %v1136_v51 = vshll.u32 %v9572_v43, 16 }
  0x20   : > { %v1653_v46 = vshll.u32 %v9573_v42, 16  ;;  %v9569_v47 = vld [vmem:[%s9844_s10 + $0x80] sm:$0xff]   ;;  %v1651_v52 = vshrl.u32 %v9573_v42, 16  ;;  %v1658_v54 = vshll.u32 %v9574_v45, 16  ;;  %v9992_v55 = vld [vmem:[%s9850_s13 + $0x10] sm:$0xff]   ;;  %v1140_v63 = vshrl.u32 %v9572_v43, 16 }
  0x21   : > { %v9570_v48 = vld [vmem:[%s9850_s13 + $0x80] sm:$0xff]   ;;  %v1133_v50 = vrot.slane %v1131_v44, 1  ;;  %v1138_v57 = vrot.slane %v1136_v51, 1  ;;  %v9998_v58 = vld [vmem:[%s9844_s10 + $0x10] sm:$0xff]   ;;  %v1144_v0 = vshll.u32 %v9992_v55, 16  ;;  %v10010_v1 = vld [vmem:[%s9850_s13 + $0x18] sm:$0xff]  }
  0x22   : > { %v1655_v53 = vrot.slane %v1653_v46, 1  ;;  %v1660_v60 = vrot.slane %v1658_v54, 1  ;;  %v1662_v4 = vshrl.u32 %v9574_v45, 16  ;;  %v1666_v5 = vshll.u32 %v9998_v58, 16  ;;  %v10015_v6 = vld [vmem:[%s9844_s10 + $0x18] sm:$0xff]   ;;  %v10020_v9 = vld [vmem:[%s9850_s13 + $0x20] sm:$0xff]  }
  0x23   : > { %v1134_v56 = vor.u32 %v1133_v50, %v1129_v49  ;;  %v10024_v11 = vld [vmem:[%s9844_s10 + $0x20] sm:$0xff]   ;;  %v10027_v12 = vld [vmem:[%s9850_s13 + $0x28] sm:$0xff]  }
  0x24   : > { %v1656_v59 = vor.u32 %v1655_v53, %v1651_v52  ;;  %v1172_v44 = vshrl.u32 %v10027_v12, 16 }
  0x25   : > { %8416 = vmatmul.mubr.msk.bf16.gmra.mrb[8].mxu0 %vm469_vm2, %v9541_v13  ;;  %v1139_v3 = vsel %vm1127_vm3, %v1134_v56, %v1138_v57  ;;  %v1142_v13 = vor.u32 %v1140_v63, %v1138_v57 }
  0x26   : > { %8486 = vmatmul.mubr.msk.bf16.gmra.mrb[8].mxu1 %vm469_vm2, %v9542_v14  ;;  %8419 = vmatprep.mubr.msk.bf16.mxu0 %vm9769_vm1, %v12419_v2  ;;  %v1661_v7 = vsel %vm1127_vm3, %v1656_v59, %v1660_v60  ;;  %v1146_v14 = vrot.slane %v1144_v0, 1  ;;  %v10099_v59 = vld [vmem:[%s9850_s13 + $0x40] sm:$0xff]  }
  0x27   : > { %8489 = vmatprep.mubr.msk.bf16.mxu1 %vm9769_vm1, %v12419_v2 }
  0x2d   : > { %8420 = vmatmul.mubr.msk.bf16.gmra.mrb[12].mxu0 %vm469_vm2, %v9543_v15  ;;  %v1152_v15 = vshll.u32 %v10010_v1, 16 }
  0x2e   : > { %8490 = vmatmul.mubr.msk.bf16.gmra.mrb[12].mxu1 %vm469_vm2, %v9544_v16  ;;  %8423 = vmatprep.mubr.msk.bf16.mxu0 %vm9769_vm1, %v12419_v2  ;;  %v10032_v16 = vld [vmem:[%s9844_s10 + $0x28] sm:$0xff]  }
  0x2f   : > { %8493 = vmatprep.mubr.msk.bf16.mxu1 %vm9769_vm1, %v12419_v2  ;;  %v1694_v46 = vshrl.u32 %v10032_v16, 16 }
  0x35   : > { %8424 = vmatmul.mubr.msk.bf16.gmra.mrb[16].mxu0 %vm469_vm2, %v9545_v17  ;;  %v1664_v17 = vor.u32 %v1662_v4, %v1660_v60  ;;  %v10102_v60 = vld [vmem:[%s9844_s10 + $0x40] sm:$0xff]  }
  0x36   : > { %8494 = vmatmul.mubr.msk.bf16.gmra.mrb[16].mxu1 %vm469_vm2, %v9546_v18  ;;  %8427 = vmatprep.mubr.msk.bf16.mxu0 %vm9769_vm1, %v12419_v2  ;;  %v1668_v18 = vrot.slane %v1666_v5, 1  ;;  %v1714_v4 = vshll.u32 %v10102_v60, 16 }
  0x37   : > { %8497 = vmatprep.mubr.msk.bf16.mxu1 %vm9769_vm1, %v12419_v2 }
  0x3d   : > { %8428 = vmatmul.mubr.msk.bf16.gmra.mrb[20].mxu0 %vm469_vm2, %v9547_v19  ;;  %v1674_v19 = vshll.u32 %v10015_v6, 16 }
  0x3e   : > { %8498 = vmatmul.mubr.msk.bf16.gmra.mrb[20].mxu1 %vm469_vm2, %v9548_v20  ;;  %8431 = vmatprep.mubr.msk.bf16.mxu0 %vm9769_vm1, %v12419_v2  ;;  %v10037_v20 = vld [vmem:[%s9850_s13 + $0x30] sm:$0xff]  }
  0x3f   : > { %8501 = vmatprep.mubr.msk.bf16.mxu1 %vm9769_vm1, %v12419_v2 }
  0x45   : > { %8432 = vmatmul.mubr.msk.bf16.gmra.mrb[24].mxu0 %vm469_vm2, %v9549_v21  ;;  %v1160_v21 = vshll.u32 %v10020_v9, 16 }
  0x46   : > { %8502 = vmatmul.mubr.msk.bf16.gmra.mrb[24].mxu1 %vm469_vm2, %v9550_v22  ;;  %8435 = vmatprep.mubr.msk.bf16.mxu0 %vm9769_vm1, %v12419_v2  ;;  %v1148_v22 = vshrl.u32 %v9992_v55, 16 }
  0x47   : > { %8505 = vmatprep.mubr.msk.bf16.mxu1 %vm9769_vm1, %v12419_v2 }
  0x48   : > { %v1150_v42 = vor.u32 %v1148_v22, %v1146_v14 }
  0x4d   : > { %8436 = vmatmul.mubr.msk.bf16.gmra.mrb[28].mxu0 %vm469_vm2, %v9551_v23  ;;  %v1682_v23 = vshll.u32 %v10024_v11, 16 }
  0x4e   : > { %8506 = vmatmul.mubr.msk.bf16.gmra.mrb[28].mxu1 %vm469_vm2, %v9552_v24  ;;  %8439 = vmatprep.mubr.msk.bf16.mxu0 %vm9769_vm1, %v12419_v2  ;;  %v1168_v24 = vshll.u32 %v10027_v12, 16  ;;  %v1716_v12 = vrot.slane %v1714_v4, 1 }
  0x4f   : > { %8509 = vmatprep.mubr.msk.bf16.mxu1 %vm9769_vm1, %v12419_v2 }
  0x50   : > { %v1170_v41 = vrot.slane %v1168_v24, 1  ;;  %v9591_v24 = vld [vmem:[%s9850_s13 + $0x50] sm:$0xff]  }
  0x55   : > { %8440 = vmatmul.mubr.msk.bf16.gmra.mrb[32].mxu0 %vm469_vm2, %v9553_v25  ;;  %v1147_v25 = vsel %vm1127_vm3, %v1142_v13, %v1146_v14 }
  0x56   : > { %8510 = vmatmul.mubr.msk.bf16.gmra.mrb[32].mxu1 %vm469_vm2, %v9554_v26  ;;  %8443 = vmatprep.mubr.msk.bf16.mxu0 %vm9769_vm1, %v12419_v2  ;;  %v1154_v26 = vrot.slane %v1152_v15, 1  ;;  %v1174_v15 = vor.u32 %v1172_v44, %v1170_v41 }
  0x57   : > { %8513 = vmatprep.mubr.msk.bf16.mxu1 %vm9769_vm1, %v12419_v2 }
  0x58   : > { %v1155_v52 = vsel %vm1127_vm3, %v1150_v42, %v1154_v26 }
  0x5d   : > { %8444 = vmatmul.mubr.msk.bf16.gmra.mrb[36].mxu0 %vm469_vm2, %v9555_v27  ;;  %v1670_v27 = vshrl.u32 %v9998_v58, 16 }
  0x5e   : > { %8514 = vmatmul.mubr.msk.bf16.gmra.mrb[36].mxu1 %vm469_vm2, %v9556_v28  ;;  %8447 = vmatprep.mubr.msk.bf16.mxu0 %vm9769_vm1, %v12419_v2  ;;  %v1690_v28 = vshll.u32 %v10032_v16, 16 }
  0x5f   : > { %8517 = vmatprep.mubr.msk.bf16.mxu1 %vm9769_vm1, %v12419_v2  ;;  %v1672_v49 = vor.u32 %v1670_v27, %v1668_v18 }
  0x60   : > { %v1692_v43 = vrot.slane %v1690_v28, 1 }
  0x62   : > { %v1696_v16 = vor.u32 %v1694_v46, %v1692_v43 }
  0x65   : > { %8448 = vmatmul.mubr.msk.bf16.gmra.mrb[40].mxu0 %vm469_vm2, %v9557_v29  ;;  %v1669_v29 = vsel %vm1127_vm3, %v1664_v17, %v1668_v18 }
  0x66   : > { %8518 = vmatmul.mubr.msk.bf16.gmra.mrb[40].mxu1 %vm469_vm2, %v9558_v30  ;;  %8451 = vmatprep.mubr.msk.bf16.mxu0 %vm9769_vm1, %v12419_v2  ;;  %v1676_v30 = vrot.slane %v1674_v19, 1  ;;  %v1196_v19 = vshrl.u32 %v10099_v59, 16 }
  0x67   : > { %8521 = vmatprep.mubr.msk.bf16.mxu1 %vm9769_vm1, %v12419_v2 }
  0x68   : > { %v1677_v53 = vsel %vm1127_vm3, %v1672_v49, %v1676_v30 }
  0x6d   : > { %8452 = vmatmul.mubr.msk.bf16.gmra.mrb[44].mxu0 %vm469_vm2, %v9559_v31  ;;  %v1156_v31 = vshrl.u32 %v10010_v1, 16  ;;  %v1192_v1 = vshll.u32 %v10099_v59, 16 }
  0x6e   : > { %8522 = vmatmul.mubr.msk.bf16.gmra.mrb[44].mxu1 %vm469_vm2, %v9560_v32  ;;  %8455 = vmatprep.mubr.msk.bf16.mxu0 %vm9769_vm1, %v12419_v2  ;;  %v1176_v32 = vshll.u32 %v10037_v20, 16 }
  0x6f   : > { %8525 = vmatprep.mubr.msk.bf16.mxu1 %vm9769_vm1, %v12419_v2  ;;  %v1158_v58 = vor.u32 %v1156_v31, %v1154_v26 }
  0x70   : > { %v1178_v45 = vrot.slane %v1176_v32, 1 }
  0x72   : > { %v1179_v17 = vsel %vm1127_vm3, %v1174_v15, %v1178_v45  ;;  %v9598_v15 = vld [vmem:[%s9844_s10 + $0x68] sm:$0xff]  }
  0x75   : > { %8456 = vmatmul.mubr.msk.bf16.gmra.mrb[48].mxu0 %vm469_vm2, %v9561_v33  ;;  %v10056_v33 = vld [vmem:[%s9844_s10 + $0x30] sm:$0xff]  }
  0x76   : > { %8526 = vmatmul.mubr.msk.bf16.gmra.mrb[48].mxu1 %vm469_vm2, %v9562_v34  ;;  %8459 = vmatprep.mubr.msk.bf16.mxu0 %vm9769_vm1, %v12419_v2  ;;  %v1162_v34 = vrot.slane %v1160_v21, 1  ;;  %v1702_v56 = vshrl.u32 %v10056_v33, 16  ;;  %v1718_v21 = vshrl.u32 %v10102_v60, 16 }
  0x77   : > { %8529 = vmatprep.mubr.msk.bf16.mxu1 %vm9769_vm1, %v12419_v2 }
  0x78   : > { %v1163_v62 = vsel %vm1127_vm3, %v1158_v58, %v1162_v34  ;;  %v1720_v44 = vor.u32 %v1718_v21, %v1716_v12  ;;  %v9596_v58 = vld [vmem:[%s9844_s10 + $0x60] sm:$0xff]  }
  0x7d   : > { %8460 = vmatmul.mubr.msk.bf16.gmra.mrb[52].mxu0 %vm469_vm2, %v9563_v35  ;;  %v1678_v35 = vshrl.u32 %v10015_v6, 16  ;;  %v10117_v6 = vld [vmem:[%s9850_s13 + $0x48] sm:$0xff]  }
  0x7e   : > { %8530 = vmatmul.mubr.msk.bf16.gmra.mrb[52].mxu1 %vm469_vm2, %v9564_v36  ;;  %8463 = vmatprep.mubr.msk.bf16.mxu0 %vm9769_vm1, %v12419_v2  ;;  %v1164_v36 = vshrl.u32 %v10020_v9, 16  ;;  %v1200_v13 = vshll.u32 %v10117_v6, 16 }
  0x7f   : > { %8533 = vmatprep.mubr.msk.bf16.mxu1 %vm9769_vm1, %v12419_v2  ;;  %v1680_v61 = vor.u32 %v1678_v35, %v1676_v30  ;;  %v1208_v30 = vshll.u32 %v9591_v24, 16  ;;  %v10156_v35 = vld [vmem:[%s9844_s10 + $0x58] sm:$0xff]  }
  0x80   : > { %v1166_v5 = vor.u32 %v1164_v36, %v1162_v34  ;;  %v9593_v34 = vld [vmem:[%s9850_s13 + $0x58] sm:$0xff]   ;;  %v1738_v42 = vshll.u32 %v10156_v35, 16  ;;  %v1742_v59 = vshrl.u32 %v10156_v35, 16 }
  0x82   : > { %v1171_v9 = vsel %vm1127_vm3, %v1166_v5, %v1170_v41  ;;  %v1216_v41 = vshll.u32 %v9593_v34, 16 }
  0x85   : > { %8464 = vmatmul.mubr.msk.bf16.gmra.mrb[56].mxu0 %vm469_vm2, %v9565_v37  ;;  %v1686_v37 = vshrl.u32 %v10024_v11, 16  ;;  %v1194_v11 = vrot.slane %v1192_v1, 1 }
  0x86   : > { %8534 = vmatmul.mubr.msk.bf16.gmra.mrb[56].mxu1 %vm469_vm2, %v9566_v38  ;;  %8467 = vmatprep.mubr.msk.bf16.mxu0 %vm9769_vm1, %v12419_v2  ;;  %v10062_v38 = vld [vmem:[%s9850_s13 + $0x38] sm:$0xff]  }
  0x87   : > { %8537 = vmatprep.mubr.msk.bf16.mxu1 %vm9769_vm1, %v12419_v2  ;;  %v1184_v50 = vshll.u32 %v10062_v38, 16  ;;  %v1188_v0 = vshrl.u32 %v10062_v38, 16 }
  0x89   : > { %v1186_v55 = vrot.slane %v1184_v50, 1  ;;  %v1740_v50 = vrot.slane %v1738_v42, 1 }
  0x8d   : > { %8468 = vmatmul.mubr.msk.bf16.gmra.mrb[60].mxu0 %vm469_vm2, %v9567_v39  ;;  %v10065_v39 = vld [vmem:[%s9844_s10 + $0x38] sm:$0xff]  }
  0x8e   : > { %8538 = vmatmul.mubr.msk.bf16.gmra.mrb[60].mxu1 %vm469_vm2, %v9568_v40  ;;  %8471 = vmatprep.mubr.msk.bf16.mxu0 %vm9769_vm1, %v12419_v2  ;;  %v1684_v40 = vrot.slane %v1682_v23, 1  ;;  %v1706_v51 = vshll.u32 %v10065_v39, 16 }
  0x8f   : > { %8541 = vmatprep.mubr.msk.bf16.mxu1 %vm9769_vm1, %v12419_v2 }
  0x90   : > { %v1708_v57 = vrot.slane %v1706_v51, 1  ;;  %v1685_v63 = vsel %vm1127_vm3, %v1680_v61, %v1684_v40 }
  0x95   : > { %8472 = vmatmul.mubr.msk.bf16.gmra.mrb[64].mxu0 %vm469_vm2, %v9569_v47  ;;  %v1698_v47 = vshll.u32 %v10056_v33, 16  ;;  %v1190_v33 = vor.u32 %v1188_v0, %v1186_v55 }
  0x96   : > { %8542 = vmatmul.mubr.msk.bf16.gmra.mrb[64].mxu1 %vm469_vm2, %v9570_v48  ;;  %8547 = vmatprep.mubr.msk.bf16.mxu0 %vm9769_vm1, %v12419_v2  ;;  %v1180_v48 = vshrl.u32 %v10037_v20, 16  ;;  %v1202_v20 = vrot.slane %v1200_v13, 1 }
  0x97   : > { %8617 = vmatprep.mubr.msk.bf16.mxu1 %vm9769_vm1, %v12419_v2  ;;  %v1700_v54 = vrot.slane %v1698_v47, 1  ;;  %v1212_v47 = vshrl.u32 %v9591_v24, 16 }
  0x98   : > { %v1182_v23 = vor.u32 %v1180_v48, %v1178_v45  ;;  %v1218_v48 = vrot.slane %v1216_v41, 1 }
  0x99   : > { %v1701_v18 = vsel %vm1127_vm3, %v1696_v16, %v1700_v54  ;;  %v1704_v26 = vor.u32 %v1702_v56, %v1700_v54  ;;  %v1220_v56 = vshrl.u32 %v9593_v34, 16 }
  0x9a   : > { %v1187_v27 = vsel %vm1127_vm3, %v1182_v23, %v1186_v55 }
  0x9b   : > { %v1709_v28 = vsel %vm1127_vm3, %v1704_v26, %v1708_v57  ;;  %v1222_v16 = vor.u32 %v1220_v56, %v1218_v48 }
  0x9d   : > { %8548 = vmatmul.mubr.msk.bf16.vlgmr.msra.gmra.mrb[68].mxu0 %vm469_vm2, %v1139_v3  ;;  %v1710_v3 = vshrl.u32 %v10065_v39, 16  ;;  %v1210_v39 = vrot.slane %v1208_v30, 1  ;;  %v1750_v30 = vshrl.u32 %v9596_v58, 16 }
  0x9e   : > { %8618 = vmatmul.mubr.msk.bf16.vlgmr.msra.gmra.mrb[68].mxu1 %vm469_vm2, %v1661_v7  ;;  %8686 = vmatpush3.bf16.msra.mxu0 %v2220_v8  ;;  %v10120_v7 = vld [vmem:[%s9844_s10 + $0x48] sm:$0xff]   ;;  %v1688_v8 = vor.u32 %v1686_v37, %v1684_v40  ;;  %v1195_v37 = vsel %vm1127_vm3, %v1190_v33, %v1194_v11 }
  0x9f   : > { %8756 = vmatpush3.bf16.msra.mxu1 %v2598_v10  ;;  %8551 = vmatprep.mubr.msk.bf16.mxu0 %vm9769_vm1, %v12419_v2  ;;  %v1722_v14 = vshll.u32 %v10120_v7, 16  ;;  %v1726_v31 = vshrl.u32 %v10120_v7, 16  ;;  %v1712_v36 = vor.u32 %v1710_v3, %v1708_v57  ;;  %v1214_v60 = vor.u32 %v1212_v47, %v1210_v39 }
  0xa0   : > { %8621 = vmatprep.mubr.msk.bf16.mxu1 %vm9769_vm1, %v12419_v2  ;;  %8825 = vmatprep.subr.bf16.mxu0 %v12419_v2  ;;  %v1693_v10 = vsel %vm1127_vm3, %v1688_v8, %v1692_v43  ;;  %v1198_v43 = vor.u32 %v1196_v19, %v1194_v11 }
  0xa1   : > { %8895 = vmatprep.subr.bf16.mxu1 %v12419_v2  ;;  %v1724_v22 = vrot.slane %v1722_v14, 1  ;;  %v1717_v38 = vsel %vm1127_vm3, %v1712_v36, %v1716_v12  ;;  %v9597_v14 = vld [vmem:[%s9850_s13 + $0x68] sm:$0xff]   ;;  %v9599_v36 = vld [vmem:[%s9850_s13 + $0x70] sm:$0xff]  }
  0xa2   : > { %v1203_v45 = vsel %vm1127_vm3, %v1198_v43, %v1202_v20  ;;  %v1232_v26 = vshll.u32 %v9597_v14, 16  ;;  %v1236_v47 = vshrl.u32 %v9597_v14, 16 }
  0xa3   : > { %v1725_v46 = vsel %vm1127_vm3, %v1720_v44, %v1724_v22 }
  0xa4   : > { %v1234_v35 = vrot.slane %v1232_v26, 1 }
  0xa5   : > { %8552 = vmatmul.mubr.msk.bf16.gmra.mrb[72].mxu0 %vm469_vm2, %v1147_v25  ;;  %v9592_v25 = vld [vmem:[%s9844_s10 + $0x50] sm:$0xff]  }
  0xa6   : > { %8622 = vmatmul.mubr.msk.bf16.gmra.mrb[72].mxu1 %vm469_vm2, %v1669_v29  ;;  %8555 = vmatprep.mubr.msk.bf16.mxu0 %vm9769_vm1, %v12419_v2  ;;  %v1204_v29 = vshrl.u32 %v10117_v6, 16  ;;  %v1730_v32 = vshll.u32 %v9592_v25, 16  ;;  %v1734_v49 = vshrl.u32 %v9592_v25, 16  ;;  %v1219_v6 = vsel %vm1127_vm3, %v1214_v60, %v1218_v48 }
  0xa7   : > { %8625 = vmatprep.mubr.msk.bf16.mxu1 %vm9769_vm1, %v12419_v2  ;;  %v1240_v48 = vshll.u32 %v9599_v36, 16  ;;  %v1238_v56 = vor.u32 %v1236_v47, %v1234_v35  ;;  %v9606_v47 = vld [vmem:[%s9844_s10 + $0x88] ss:$0 sps:$4 sm:$0x11]  }
  0xa8   : > { %v1732_v40 = vrot.slane %v1730_v32, 1  ;;  %v1206_v51 = vor.u32 %v1204_v29, %v1202_v20 }
  0xaa   : > { %v1211_v54 = vsel %vm1127_vm3, %v1206_v51, %v1210_v39  ;;  %v1736_v61 = vor.u32 %v1734_v49, %v1732_v40  ;;  %v9600_v39 = vld [vmem:[%s9844_s10 + $0x70] sm:$0xff]  }
  0xad   : > { %8556 = vmatmul.mubr.msk.bf16.gmra.mrb[76].mxu0 %vm469_vm2, %v1155_v52  ;;  %v9595_v52 = vld [vmem:[%s9850_s13 + $0x60] sm:$0xff]  }
  0xae   : > { %8626 = vmatmul.mubr.msk.bf16.gmra.mrb[76].mxu1 %vm469_vm2, %v1677_v53  ;;  %8559 = vmatprep.mubr.msk.bf16.mxu0 %vm9769_vm1, %v12419_v2  ;;  %v1728_v53 = vor.u32 %v1726_v31, %v1724_v22  ;;  %v1224_v57 = vshll.u32 %v9595_v52, 16  ;;  %v1228_v25 = vshrl.u32 %v9595_v52, 16  ;;  %v1754_v31 = vshll.u32 %v9598_v15, 16 }
  0xaf   : > { %8629 = vmatprep.mubr.msk.bf16.mxu1 %vm9769_vm1, %v12419_v2  ;;  %v1758_v52 = vshrl.u32 %v9598_v15, 16 }
  0xb0   : > { %v1733_v55 = vsel %vm1127_vm3, %v1728_v53, %v1732_v40  ;;  %v1226_v12 = vrot.slane %v1224_v57, 1  ;;  %v1762_v53 = vshll.u32 %v9600_v39, 16  ;;  %v1242_v57 = vrot.slane %v1240_v48, 1 }
  0xb2   : > { %v1227_v24 = vsel %vm1127_vm3, %v1222_v16, %v1226_v12  ;;  %v1230_v34 = vor.u32 %v1228_v25, %v1226_v12  ;;  %v1764_v60 = vrot.slane %v1762_v53, 1 }
  0xb5   : > { %8560 = vmatmul.mubr.msk.bf16.gmra.mrb[80].mxu0 %vm469_vm2, %v1163_v62 }
  0xb6   : > { %8630 = vmatmul.mubr.msk.bf16.gmra.mrb[80].mxu1 %vm469_vm2, %v1685_v63  ;;  %8563 = vmatprep.mubr.msk.bf16.mxu0 %vm9769_vm1, %v12419_v2  ;;  %v1746_v63 = vshll.u32 %v9596_v58, 16  ;;  %v9601_v58 = vld [vmem:[%s9850_s13 + $0x78] sm:$0xff]  }
  0xb7   : > { %8633 = vmatprep.mubr.msk.bf16.mxu1 %vm9769_vm1, %v12419_v2 }
  0xb8   : > { %v1748_v13 = vrot.slane %v1746_v63, 1 }
  0xbd   : > { %8564 = vmatmul.mubr.msk.bf16.gmra.mrb[84].mxu0 %vm469_vm2, %v1171_v9  ;;  %v1741_v9 = vsel %vm1127_vm3, %v1736_v61, %v1740_v50  ;;  %v9602_v61 = vld [vmem:[%s9844_s10 + $0x78] sm:$0xff]  }
  0xbe   : > { %8634 = vmatmul.mubr.msk.bf16.gmra.mrb[84].mxu1 %vm469_vm2, %v1693_v10  ;;  %8567 = vmatprep.mubr.msk.bf16.mxu0 %vm9769_vm1, %v12419_v2  ;;  %v1770_v14 = vshll.u32 %v9602_v61, 16 }
  0xbf   : > { %8637 = vmatprep.mubr.msk.bf16.mxu1 %vm9769_vm1, %v12419_v2 }
  0xc5   : > { %8568 = vmatmul.mubr.msk.bf16.gmra.mrb[88].mxu0 %vm469_vm2, %v1179_v17  ;;  %v1744_v17 = vor.u32 %v1742_v59, %v1740_v50 }
  0xc6   : > { %8638 = vmatmul.mubr.msk.bf16.gmra.mrb[88].mxu1 %vm469_vm2, %v1701_v18  ;;  %8571 = vmatprep.mubr.msk.bf16.mxu0 %vm9769_vm1, %v12419_v2 }
  0xc7   : > { %8641 = vmatprep.mubr.msk.bf16.mxu1 %vm9769_vm1, %v12419_v2  ;;  %v1749_v29 = vsel %vm1127_vm3, %v1744_v17, %v1748_v13 }
  0xcd   : > { %8572 = vmatmul.mubr.msk.bf16.gmra.mrb[92].mxu0 %vm469_vm2, %v1187_v27 }
  0xce   : > { %8642 = vmatmul.mubr.msk.bf16.gmra.mrb[92].mxu1 %vm469_vm2, %v1709_v28  ;;  %8575 = vmatprep.mubr.msk.bf16.mxu0 %vm9769_vm1, %v12419_v2 }
  0xcf   : > { %8645 = vmatprep.mubr.msk.bf16.mxu1 %vm9769_vm1, %v12419_v2 }
  0xd5   : > { %8576 = vmatmul.mubr.msk.bf16.gmra.mrb[96].mxu0 %vm469_vm2, %v1195_v37  ;;  %v1752_v37 = vor.u32 %v1750_v30, %v1748_v13  ;;  %v1766_v13 = vshrl.u32 %v9600_v39, 16 }
  0xd6   : > { %8646 = vmatmul.mubr.msk.bf16.gmra.mrb[96].mxu1 %vm469_vm2, %v1717_v38  ;;  %8579 = vmatprep.mubr.msk.bf16.mxu0 %vm9769_vm1, %v12419_v2  ;;  %v1756_v38 = vrot.slane %v1754_v31, 1  ;;  %v1252_v31 = vshrl.u32 %v9601_v58, 16 }
  0xd7   : > { %8649 = vmatprep.mubr.msk.bf16.mxu1 %vm9769_vm1, %v12419_v2 }
  0xd8   : > { %v1757_v51 = vsel %vm1127_vm3, %v1752_v37, %v1756_v38  ;;  %v1760_v59 = vor.u32 %v1758_v52, %v1756_v38  ;;  %v1774_v37 = vshrl.u32 %v9602_v61, 16 }
  0xda   : > { %v1765_v12 = vsel %vm1127_vm3, %v1760_v59, %v1764_v60 }
  0xdd   : > { %8580 = vmatmul.mubr.msk.bf16.gmra.mrb[100].mxu0 %vm469_vm2, %v1203_v45 }
  0xde   : > { %8650 = vmatmul.mubr.msk.bf16.gmra.mrb[100].mxu1 %vm469_vm2, %v1725_v46  ;;  %8583 = vmatprep.mubr.msk.bf16.mxu0 %vm9769_vm1, %v12419_v2  ;;  %v1235_v46 = vsel %vm1127_vm3, %v1230_v34, %v1234_v35 }
  0xdf   : > { %8653 = vmatprep.mubr.msk.bf16.mxu1 %vm9769_vm1, %v12419_v2 }
  0xe5   : > { %8584 = vmatmul.mubr.msk.bf16.gmra.mrb[104].mxu0 %vm469_vm2, %v1211_v54 }
  0xe6   : > { %8654 = vmatmul.mubr.msk.bf16.gmra.mrb[104].mxu1 %vm469_vm2, %v1733_v55  ;;  %8587 = vmatprep.mubr.msk.bf16.mxu0 %vm9769_vm1, %v12419_v2 }
  0xe7   : > { %8657 = vmatprep.mubr.msk.bf16.mxu1 %vm9769_vm1, %v12419_v2 }
  0xe8   : > { %v559_v62 = vpop.f32.mrb[0].mxu0 }
  0xe9   : > { %v867_v0 = vpop.f32.mrb[0].mxu1  ;;  %v8409_v1 = vpop.f32.mrb[1].mxu0 }
  0xea   : > { %v10188_v3 = vadd.f32 %v867_v0, %v559_v62  ;;  %v8479_v4 = vpop.f32.mrb[1].mxu1  ;;  %v562_v5 = vpop.f32.mrb[2].mxu0 }
  0xeb   : > { %v870_v7 = vpop.f32.mrb[2].mxu1  ;;  %v8410_v8 = vpop.f32.mrb[3].mxu0 }
  0xec   : > { %v10192_v10 = vadd.f32 %v870_v7, %v562_v5  ;;  %v8480_v11 = vpop.f32.mrb[3].mxu1  ;;  %v1244_v7 = vshrl.u32 %v9599_v36, 16  ;;  %v1248_v8 = vshll.u32 %v9601_v58, 16 }
  0xed   : > { %8588 = vmatmul.mubr.msk.bf16.gmra.mrb[108].mxu0 %vm469_vm2, %v1219_v6  ;;  %v1243_v6 = vsel %vm1127_vm3, %v1238_v56, %v1242_v57 }
  0xee   : > { %8658 = vmatmul.mubr.msk.bf16.gmra.mrb[108].mxu1 %vm469_vm2, %v1741_v9  ;;  %8591 = vmatprep.mubr.msk.bf16.mxu0 %vm9769_vm1, %v12419_v2  ;;  %v1246_v17 = vor.u32 %v1244_v7, %v1242_v57 }
  0xef   : > { %8661 = vmatprep.mubr.msk.bf16.mxu1 %vm9769_vm1, %v12419_v2 }
  0xf0   : > { %v567_v18 = vpop.f32.mrb[4].mxu0 }
  0xf1   : > { %v875_v19 = vpop.f32.mrb[4].mxu1  ;;  %v8413_v20 = vpop.f32.mrb[5].mxu0 }
  0xf2   : > { %v10202_v21 = vadd.f32 %v875_v19, %v567_v18  ;;  %v8483_v22 = vpop.f32.mrb[5].mxu1  ;;  %v570_v23 = vpop.f32.mrb[6].mxu0  ;;  %v1250_v18 = vrot.slane %v1248_v8, 1  ;;  %v9603_v19 = vld [vmem:[%s9850_s13 + $0x80] sm:$0xff]   ;;  %v1768_v20 = vor.u32 %v1766_v13, %v1764_v60 }
  0xf3   : > { %v878_v27 = vpop.f32.mrb[6].mxu1  ;;  %v8414_v28 = vpop.f32.mrb[7].mxu0  ;;  %v1772_v22 = vrot.slane %v1770_v14, 1  ;;  %v1260_v56 = vshrl.u32 %v9603_v19, 16 }
  0xf4   : > { %v10206_v32 = vadd.f32 %v878_v27, %v570_v23  ;;  %v8484_v33 = vpop.f32.mrb[7].mxu1  ;;  %v9604_v23 = vld [vmem:[%s9844_s10 + $0x80] sm:$0xff]   ;;  %v1251_v30 = vsel %vm1127_vm3, %v1246_v17, %v1250_v18 }
  0xf5   : > { %8592 = vmatmul.mubr.msk.bf16.gmra.mrb[112].mxu0 %vm469_vm2, %v1227_v24  ;;  %v1256_v33 = vshll.u32 %v9603_v19, 16  ;;  %v1773_v36 = vsel %vm1127_vm3, %v1768_v20, %v1772_v22  ;;  %v1778_v38 = vshll.u32 %v9604_v23, 16  ;;  %v1782_v61 = vshrl.u32 %v9604_v23, 16 }
  0xf6   : > { %8662 = vmatmul.mubr.msk.bf16.gmra.mrb[112].mxu1 %vm469_vm2, %v1749_v29  ;;  %8595 = vmatprep.mubr.msk.bf16.mxu0 %vm9769_vm1, %v12419_v2 }
  0xf7   : > { %8665 = vmatprep.mubr.msk.bf16.mxu1 %vm9769_vm1, %v12419_v2 }
  0xf8   : > { %v575_v40 = vpop.f32.mrb[8].mxu0 }
  0xf9   : > { %v883_v41 = vpop.f32.mrb[8].mxu1  ;;  %v8417_v42 = vpop.f32.mrb[9].mxu0 }
  0xfa   : > { %v10216_v43 = vadd.f32 %v883_v41, %v575_v40  ;;  %v8487_v44 = vpop.f32.mrb[9].mxu1  ;;  %v578_v45 = vpop.f32.mrb[10].mxu0  ;;  %v1254_v41 = vor.u32 %v1252_v31, %v1250_v18  ;;  %v1258_v42 = vrot.slane %v1256_v33, 1 }
  0xfb   : > { %v886_v49 = vpop.f32.mrb[10].mxu1  ;;  %v8418_v50 = vpop.f32.mrb[11].mxu0  ;;  %v9605_v44 = vld [vmem:[%s9850_s13 + $0x88] ss:$0 sps:$4 sm:$0x11]  }
  0xfc   : > { %v10220_v54 = vadd.f32 %v886_v49, %v578_v45  ;;  %v8488_v55 = vpop.f32.mrb[11].mxu1  ;;  %v1776_v45 = vor.u32 %v1774_v37, %v1772_v22  ;;  %v1264_v57 = vshll.u32 %v9605_v44, 16 }
  0xfd   : > { %8596 = vmatmul.mubr.msk.bf16.gmra.mrb[116].mxu0 %vm469_vm2, %v1235_v46  ;;  %v1780_v46 = vrot.slane %v1778_v38, 1  ;;  %v1259_v55 = vsel %vm1127_vm3, %v1254_v41, %v1258_v42 }
  0xfe   : > { %8666 = vmatmul.mubr.msk.bf16.gmra.mrb[116].mxu1 %vm469_vm2, %v1757_v51  ;;  %8599 = vmatprep.mubr.msk.bf16.mxu0 %vm9769_vm1, %v12419_v2 }
  0xff   : > { %8669 = vmatprep.mubr.msk.bf16.mxu1 %vm9769_vm1, %v12419_v2  ;;  %v1781_v60 = vsel %vm1127_vm3, %v1776_v45, %v1780_v46 }
 0x100   : > { %v583_v62 = vpop.f32.mrb[12].mxu0 }
 0x101   : > { %v891_v63 = vpop.f32.mrb[12].mxu1  ;;  %v8421_v0 = vpop.f32.mrb[13].mxu0 }
 0x102   : > { %v10230_v1 = vadd.f32 %v891_v63, %v583_v62  ;;  %v8491_v4 = vpop.f32.mrb[13].mxu1  ;;  %v586_v5 = vpop.f32.mrb[14].mxu0  ;;  %v1786_v62 = vshll.u32 %v9606_v47, 16 }
 0x103   : > { %v894_v9 = vpop.f32.mrb[14].mxu1  ;;  %v8422_v11 = vpop.f32.mrb[15].mxu0  ;;  %v1262_v4 = vor.u32 %v1260_v56, %v1258_v42 }
 0x104   : > { %v10234_v15 = vadd.f32 %v894_v9, %v586_v5  ;;  %v8492_v16 = vpop.f32.mrb[15].mxu1  ;;  %v1266_v5 = vrot.slane %v1264_v57, 1  ;;  %v1788_v7 = vrot.slane %v1786_v62, 1 }
 0x105   : > { %8600 = vmatmul.mubr.msk.bf16.gmra.mrb[120].mxu0 %vm469_vm2, %v1243_v6  ;;  %v1784_v6 = vor.u32 %v1782_v61, %v1780_v46  ;;  %v9609_v46 = vld [vmem:[%s10071_s20 + $0x8] sm:$0xff]  }
 0x106   : > { %8670 = vmatmul.mubr.msk.bf16.gmra.mrb[120].mxu1 %vm469_vm2, %v1765_v12  ;;  %8603 = vmatprep.mubr.msk.bf16.mxu0 %vm9769_vm1, %v12419_v2  ;;  %v1267_v16 = vsel %vm1127_vm3, %v1262_v4, %v1266_v5  ;;  %v9612_v4 = vld [vmem:[%s10077_s25 + $0x10] sm:$0xff]  }
 0x107   : > { %8673 = vmatprep.mubr.msk.bf16.mxu1 %vm9769_vm1, %v12419_v2  ;;  %v1789_v19 = vsel %vm1127_vm3, %v1784_v6, %v1788_v7 }
 0x108   : > { %v591_v24 = vpop.f32.mrb[16].mxu0 }
 0x109   : > { %v899_v25 = vpop.f32.mrb[16].mxu1  ;;  %v8425_v26 = vpop.f32.mrb[17].mxu0 }
 0x10a   : > { %v10244_v27 = vadd.f32 %v899_v25, %v591_v24  ;;  %v8495_v28 = vpop.f32.mrb[17].mxu1  ;;  %v594_v29 = vpop.f32.mrb[18].mxu0  ;;  %v7754_v24 = vld [vmem:[%s12416_s4 + $0xc] sm:$0x3] }
 0x10b   : > { %v902_v34 = vpop.f32.mrb[18].mxu1  ;;  %v8426_v35 = vpop.f32.mrb[19].mxu0  ;;  %v9607_v28 = vld [vmem:[%s10071_s20] sm:$0xff]   ;;  %v3120_v37 = vsel %vm521_vm0, %v7754_v24, 0 }
 0x10c   : > { %v10248_v39 = vadd.f32 %v902_v34, %v594_v29  ;;  %v8496_v40 = vpop.f32.mrb[19].mxu1  ;;  %v7790_v29 = vld [vmem:[%s12416_s4 + $0xe] sm:$0x3]  ;;  %v9608_v34 = vld [vmem:[%s10077_s25] sm:$0xff]  }
 0x10d   : > { %8604 = vmatmul.mubr.msk.bf16.gmra.mrb[124].mxu0 %vm469_vm2, %v1251_v30  ;;  %v3642_v41 = vsel %vm521_vm0, %v7790_v29, 0 }
 0x10e   : > { %8674 = vmatmul.mubr.msk.bf16.gmra.mrb[124].mxu1 %vm469_vm2, %v1773_v36  ;;  %8607 = vmatprep.mubr.msk.bf16.mxu0 %vm9769_vm1, %v12419_v2 }
 0x10f   : > { %8677 = vmatprep.mubr.msk.bf16.mxu1 %vm9769_vm1, %v12419_v2 }
 0x110   : > { %v599_v48 = vpop.f32.mrb[20].mxu0 }
 0x111   : > { %v907_v49 = vpop.f32.mrb[20].mxu1  ;;  %v8429_v50 = vpop.f32.mrb[21].mxu0 }
 0x112   : > { %v10258_v51 = vadd.f32 %v907_v49, %v599_v48  ;;  %v8499_v52 = vpop.f32.mrb[21].mxu1  ;;  %v602_v53 = vpop.f32.mrb[22].mxu0  ;;  %v9610_v50 = vld [vmem:[%s10077_s25 + $0x8] sm:$0xff]  }
 0x113   : > { %v910_v58 = vpop.f32.mrb[22].mxu1  ;;  %v8430_v59 = vpop.f32.mrb[23].mxu0 }
 0x114   : > { %v10262_v63 = vadd.f32 %v910_v58, %v602_v53  ;;  %v8500_v0 = vpop.f32.mrb[23].mxu1 }
 0x115   : > { %8608 = vmatmul.mubr.msk.bf16.gmra.mrb[128].mxu0 %vm469_vm2, %v1259_v55 }
 0x116   : > { %8678 = vmatmul.mubr.msk.bf16.gmra.mrb[128].mxu1 %vm469_vm2, %v1781_v60  ;;  %8611 = vmatprep.mubr.msk.bf16.mxu0 %vm9769_vm1, %v12419_v2  ;;  %v9611_v60 = vld [vmem:[%s10071_s20 + $0x10] sm:$0xff]  }
 0x117   : > { %8681 = vmatprep.mubr.msk.bf16.mxu1 %vm9769_vm1, %v12419_v2 }
 0x118   : > { %v607_v8 = vpop.f32.mrb[24].mxu0 }
 0x119   : > { %v915_v9 = vpop.f32.mrb[24].mxu1  ;;  %v8433_v11 = vpop.f32.mrb[25].mxu0 }
 0x11a   : > { %v10270_v12 = vadd.f32 %v915_v9, %v607_v8  ;;  %v8503_v13 = vpop.f32.mrb[25].mxu1  ;;  %v610_v14 = vpop.f32.mrb[26].mxu0 }
 0x11b   : > { %v918_v17 = vpop.f32.mrb[26].mxu1  ;;  %v8434_v18 = vpop.f32.mrb[27].mxu0 }
 0x11c   : > { %v10274_v20 = vadd.f32 %v918_v17, %v610_v14  ;;  %v8504_v22 = vpop.f32.mrb[27].mxu1  ;;  %v9613_v14 = vld [vmem:[%s10071_s20 + $0x18] sm:$0xff]  }
 0x11d   : > { %8612 = vmatmul.mubr.msk.bf16.gmra.mrb[132].mxu0 %vm469_vm2, %v1267_v16 }
 0x11e   : > { %8682 = vmatmul.mubr.msk.bf16.gmra.mrb[132].mxu1 %vm469_vm2, %v1789_v19  ;;  %8687 = vmatprep.mubr.msk.bf16.mxu0 %vm9769_vm1, %v12419_v2  ;;  %v9614_v19 = vld [vmem:[%s10077_s25 + $0x18] sm:$0xff]  }
 0x11f   : > { %8757 = vmatprep.mubr.msk.bf16.mxu1 %vm9769_vm1, %v12419_v2 }
 0x120   : > { %v615_v23 = vpop.f32.mrb[28].mxu0 }
 0x121   : > { %v923_v25 = vpop.f32.mrb[28].mxu1  ;;  %v8437_v26 = vpop.f32.mrb[29].mxu0 }
 0x122   : > { %v10289_v30 = vadd.f32 %v923_v25, %v615_v23  ;;  %v8507_v31 = vpop.f32.mrb[29].mxu1  ;;  %v618_v33 = vpop.f32.mrb[30].mxu0 }
 0x123   : > { %v926_v35 = vpop.f32.mrb[30].mxu1  ;;  %v8438_v36 = vpop.f32.mrb[31].mxu0  ;;  %v9615_v31 = vld [vmem:[%s10071_s20 + $0x20] sm:$0xff]  }
 0x124   : > { %v10293_v38 = vadd.f32 %v926_v35, %v618_v33  ;;  %v8508_v40 = vpop.f32.mrb[31].mxu1  ;;  %v9616_v36 = vld [vmem:[%s10077_s25 + $0x20] sm:$0xff]  }
 0x125   : > { %8688 = vmatmul.mubr.msk.bf16.vlgmr.msra.gmra.mrb[136].mxu0 %vm469_vm2, %v9607_v28 }
 0x126   : > { %8758 = vmatmul.mubr.msk.bf16.vlgmr.msra.gmra.mrb[136].mxu1 %vm469_vm2, %v9608_v34  ;;  %8826 = vmatpush3.bf16.msra.mxu0 %v3120_v37 }
 0x127   : > { %8896 = vmatpush3.bf16.msra.mxu1 %v3642_v41  ;;  %8691 = vmatprep.mubr.msk.bf16.mxu0 %vm9769_vm1, %v12419_v2 }
 0x128   : > { %v623_v42 = vpop.f32.mrb[32].mxu0  ;;  %8761 = vmatprep.mubr.msk.bf16.mxu1 %vm9769_vm1, %v12419_v2  ;;  %8965 = vmatprep.subr.bf16.mxu0 %v12419_v2 }
 0x129   : > { %v931_v44 = vpop.f32.mrb[32].mxu1  ;;  %v8441_v45 = vpop.f32.mrb[33].mxu0  ;;  %9035 = vmatprep.subr.bf16.mxu1 %v12419_v2 }
 0x12a   : > { %v10305_v47 = vadd.f32 %v931_v44, %v623_v42  ;;  %v8511_v48 = vpop.f32.mrb[33].mxu1  ;;  %v626_v49 = vpop.f32.mrb[34].mxu0 }
 0x12b   : > { %v934_v52 = vpop.f32.mrb[34].mxu1  ;;  %v8442_v53 = vpop.f32.mrb[35].mxu0  ;;  %v9617_v48 = vld [vmem:[%s10071_s20 + $0x28] sm:$0xff]  }
 0x12c   : > { %v10308_v55 = vadd.f32 %v934_v52, %v626_v49  ;;  %v8512_v56 = vpop.f32.mrb[35].mxu1  ;;  %v9618_v53 = vld [vmem:[%s10077_s25 + $0x28] sm:$0xff]  }
 0x12d   : > { %8692 = vmatmul.mubr.msk.bf16.gmra.mrb[140].mxu0 %vm469_vm2, %v9609_v46 }
 0x12e   : > { %8762 = vmatmul.mubr.msk.bf16.gmra.mrb[140].mxu1 %vm469_vm2, %v9610_v50  ;;  %8695 = vmatprep.mubr.msk.bf16.mxu0 %vm9769_vm1, %v12419_v2 }
 0x12f   : > { %8765 = vmatprep.mubr.msk.bf16.mxu1 %vm9769_vm1, %v12419_v2 }
 0x130   : > { %v631_v57 = vpop.f32.mrb[36].mxu0 }
 0x131   : > { %v939_v58 = vpop.f32.mrb[36].mxu1  ;;  %v8445_v59 = vpop.f32.mrb[37].mxu0 }
 0x132   : > { %v10317_v61 = vadd.f32 %v939_v58, %v631_v57  ;;  %v8515_v62 = vpop.f32.mrb[37].mxu1  ;;  %v634_v0 = vpop.f32.mrb[38].mxu0 }
 0x133   : > { %v942_v5 = vpop.f32.mrb[38].mxu1  ;;  %v8446_v6 = vpop.f32.mrb[39].mxu0 }
 0x134   : > { %v10320_v7 = vadd.f32 %v942_v5, %v634_v0  ;;  %v8516_v8 = vpop.f32.mrb[39].mxu1 }
 0x135   : > { %8696 = vmatmul.mubr.msk.bf16.gmra.mrb[144].mxu0 %vm469_vm2, %v9611_v60 }
 0x136   : > { %8766 = vmatmul.mubr.msk.bf16.gmra.mrb[144].mxu1 %vm469_vm2, %v9612_v4  ;;  %8699 = vmatprep.mubr.msk.bf16.mxu0 %vm9769_vm1, %v12419_v2  ;;  %v9619_v4 = vld [vmem:[%s10071_s20 + $0x30] sm:$0xff]  }
 0x137   : > { %8769 = vmatprep.mubr.msk.bf16.mxu1 %vm9769_vm1, %v12419_v2 }
 0x138   : > { %v639_v9 = vpop.f32.mrb[40].mxu0 }
 0x139   : > { %v947_v11 = vpop.f32.mrb[40].mxu1  ;;  %v8449_v13 = vpop.f32.mrb[41].mxu0 }
 0x13a   : > { %v10329_v16 = vadd.f32 %v947_v11, %v639_v9  ;;  %v8519_v17 = vpop.f32.mrb[41].mxu1  ;;  %v642_v18 = vpop.f32.mrb[42].mxu0  ;;  %v9620_v9 = vld [vmem:[%s10077_s25 + $0x30] sm:$0xff]  }
 0x13b   : > { %v950_v22 = vpop.f32.mrb[42].mxu1  ;;  %v8450_v23 = vpop.f32.mrb[43].mxu0 }
 0x13c   : > { %v10332_v24 = vadd.f32 %v950_v22, %v642_v18  ;;  %v8520_v25 = vpop.f32.mrb[43].mxu1  ;;  %v9621_v23 = vld [vmem:[%s10071_s20 + $0x38] sm:$0xff]  }
 0x13d   : > { %8700 = vmatmul.mubr.msk.bf16.gmra.mrb[148].mxu0 %vm469_vm2, %v9613_v14 }
 0x13e   : > { %8770 = vmatmul.mubr.msk.bf16.gmra.mrb[148].mxu1 %vm469_vm2, %v9614_v19  ;;  %8703 = vmatprep.mubr.msk.bf16.mxu0 %vm9769_vm1, %v12419_v2 }
 0x13f   : > { %8773 = vmatprep.mubr.msk.bf16.mxu1 %vm9769_vm1, %v12419_v2 }
 0x140   : > { %v647_v26 = vpop.f32.mrb[44].mxu0 }
 0x141   : > { %v955_v28 = vpop.f32.mrb[44].mxu1  ;;  %v8453_v29 = vpop.f32.mrb[45].mxu0 }
 0x142   : > { %v10341_v33 = vadd.f32 %v955_v28, %v647_v26  ;;  %v8523_v34 = vpop.f32.mrb[45].mxu1  ;;  %v650_v35 = vpop.f32.mrb[46].mxu0  ;;  %v9622_v29 = vld [vmem:[%s10077_s25 + $0x38] sm:$0xff]  }
 0x143   : > { %v958_v37 = vpop.f32.mrb[46].mxu1  ;;  %v8454_v40 = vpop.f32.mrb[47].mxu0 }
 0x144   : > { %v10344_v41 = vadd.f32 %v958_v37, %v650_v35  ;;  %v8524_v42 = vpop.f32.mrb[47].mxu1 }
 0x145   : > { %8704 = vmatmul.mubr.msk.bf16.gmra.mrb[152].mxu0 %vm469_vm2, %v9615_v31 }
 0x146   : > { %8774 = vmatmul.mubr.msk.bf16.gmra.mrb[152].mxu1 %vm469_vm2, %v9616_v36  ;;  %8707 = vmatprep.mubr.msk.bf16.mxu0 %vm9769_vm1, %v12419_v2 }
 0x147   : > { %8777 = vmatprep.mubr.msk.bf16.mxu1 %vm9769_vm1, %v12419_v2 }
 0x148   : > { %v655_v44 = vpop.f32.mrb[48].mxu0 }
 0x149   : > { %v963_v45 = vpop.f32.mrb[48].mxu1  ;;  %v8457_v46 = vpop.f32.mrb[49].mxu0 }
 0x14a   : > { %v10353_v49 = vadd.f32 %v963_v45, %v655_v44  ;;  %v8527_v50 = vpop.f32.mrb[49].mxu1  ;;  %v658_v52 = vpop.f32.mrb[50].mxu0  ;;  %v9623_v44 = vld [vmem:[%s10071_s20 + $0x40] sm:$0xff]  }
 0x14b   : > { %v966_v56 = vpop.f32.mrb[50].mxu1  ;;  %v8458_v57 = vpop.f32.mrb[51].mxu0  ;;  %v9624_v50 = vld [vmem:[%s10077_s25 + $0x40] sm:$0xff]  }
 0x14c   : > { %v10356_v58 = vadd.f32 %v966_v56, %v658_v52  ;;  %v8528_v59 = vpop.f32.mrb[51].mxu1 }
 0x14d   : > { %8708 = vmatmul.mubr.msk.bf16.gmra.mrb[156].mxu0 %vm469_vm2, %v9617_v48 }
 0x14e   : > { %8778 = vmatmul.mubr.msk.bf16.gmra.mrb[156].mxu1 %vm469_vm2, %v9618_v53  ;;  %8711 = vmatprep.mubr.msk.bf16.mxu0 %vm9769_vm1, %v12419_v2 }
 0x14f   : > { %8781 = vmatprep.mubr.msk.bf16.mxu1 %vm9769_vm1, %v12419_v2 }
 0x150   : > { %v663_v60 = vpop.f32.mrb[52].mxu0 }
 0x151   : > { %v971_v62 = vpop.f32.mrb[52].mxu1  ;;  %v8461_v0 = vpop.f32.mrb[53].mxu0 }
 0x152   : > { %v10365_v5 = vadd.f32 %v971_v62, %v663_v60  ;;  %v8531_v6 = vpop.f32.mrb[53].mxu1  ;;  %v666_v8 = vpop.f32.mrb[54].mxu0  ;;  %v9625_v0 = vld [vmem:[%s10071_s20 + $0x48] sm:$0xff]  }
 0x153   : > { %v974_v11 = vpop.f32.mrb[54].mxu1  ;;  %v8462_v13 = vpop.f32.mrb[55].mxu0 }
 0x154   : > { %v10368_v14 = vadd.f32 %v974_v11, %v666_v8  ;;  %v8532_v17 = vpop.f32.mrb[55].mxu1 }
 0x155   : > { %8712 = vmatmul.mubr.msk.bf16.gmra.mrb[160].mxu0 %vm469_vm2, %v9619_v4 }
 0x156   : > { %8782 = vmatmul.mubr.msk.bf16.gmra.mrb[160].mxu1 %vm469_vm2, %v9620_v9  ;;  %8715 = vmatprep.mubr.msk.bf16.mxu0 %vm9769_vm1, %v12419_v2  ;;  %v9626_v9 = vld [vmem:[%s10077_s25 + $0x48] sm:$0xff]  }
 0x157   : > { %8785 = vmatprep.mubr.msk.bf16.mxu1 %vm9769_vm1, %v12419_v2 }
 0x158   : > { %v671_v18 = vpop.f32.mrb[56].mxu0 }
 0x159   : > { %v979_v19 = vpop.f32.mrb[56].mxu1  ;;  %v8465_v22 = vpop.f32.mrb[57].mxu0 }
 0x15a   : > { %v10377_v25 = vadd.f32 %v979_v19, %v671_v18  ;;  %v8535_v26 = vpop.f32.mrb[57].mxu1  ;;  %v674_v28 = vpop.f32.mrb[58].mxu0 }
 0x15b   : > { %v982_v31 = vpop.f32.mrb[58].mxu1  ;;  %v8466_v34 = vpop.f32.mrb[59].mxu0 }
 0x15c   : > { %v10380_v35 = vadd.f32 %v982_v31, %v674_v28  ;;  %v8536_v36 = vpop.f32.mrb[59].mxu1  ;;  %v9627_v28 = vld [vmem:[%s10071_s20 + $0x50] sm:$0xff]  }
 0x15d   : > { %8716 = vmatmul.mubr.msk.bf16.gmra.mrb[164].mxu0 %vm469_vm2, %v9621_v23  ;;  %v9628_v34 = vld [vmem:[%s10077_s25 + $0x50] sm:$0xff]  }
 0x15e   : > { %8786 = vmatmul.mubr.msk.bf16.gmra.mrb[164].mxu1 %vm469_vm2, %v9622_v29  ;;  %8719 = vmatprep.mubr.msk.bf16.mxu0 %vm9769_vm1, %v12419_v2 }
 0x15f   : > { %8789 = vmatprep.mubr.msk.bf16.mxu1 %vm9769_vm1, %v12419_v2 }
 0x160   : > { %v679_v37 = vpop.f32.mrb[60].mxu0 }
 0x161   : > { %v987_v40 = vpop.f32.mrb[60].mxu1  ;;  %v8469_v42 = vpop.f32.mrb[61].mxu0 }
 0x162   : > { %v10389_v45 = vadd.f32 %v987_v40, %v679_v37  ;;  %v8539_v46 = vpop.f32.mrb[61].mxu1  ;;  %v682_v48 = vpop.f32.mrb[62].mxu0 }
 0x163   : > { %v990_v52 = vpop.f32.mrb[62].mxu1  ;;  %v8470_v53 = vpop.f32.mrb[63].mxu0 }
 0x164   : > { %v10392_v56 = vadd.f32 %v990_v52, %v682_v48  ;;  %v8540_v57 = vpop.f32.mrb[63].mxu1  ;;  %v9629_v52 = vld [vmem:[%s10071_s20 + $0x58] sm:$0xff]  }
 0x165   : > { %8720 = vmatmul.mubr.msk.bf16.gmra.mrb[168].mxu0 %vm469_vm2, %v9623_v44 }
 0x166   : > { %8790 = vmatmul.mubr.msk.bf16.gmra.mrb[168].mxu1 %vm469_vm2, %v9624_v50  ;;  %8723 = vmatprep.mubr.msk.bf16.mxu0 %vm9769_vm1, %v12419_v2 }
 0x167   : > { %8793 = vmatprep.mubr.msk.bf16.mxu1 %vm9769_vm1, %v12419_v2 }
 0x168   : > { %v687_v59 = vpop.f32.mrb[64].mxu0 }
 0x169   : > { %v995_v60 = vpop.f32.mrb[64].mxu1  ;;  %v8473_v62 = vpop.f32.mrb[65].mxu0 }
 0x16a   : > { %v10401_v4 = vadd.f32 %v995_v60, %v687_v59  ;;  %v8543_v6 = vpop.f32.mrb[65].mxu1  ;;  %v690_v8 = vpop.f32.mrb[66].mxu0  ;;  %v9630_v59 = vld [vmem:[%s10077_s25 + $0x58] sm:$0xff]  }
 0x16b   : > { %v998_v11 = vpop.f32.mrb[66].mxu1  ;;  %v8474_v13 = vpop.f32.mrb[67].mxu0 }
 0x16c   : > { %v10404_v17 = vadd.f32 %v998_v11, %v690_v8  ;;  %v8544_v18 = vpop.f32.mrb[67].mxu1 }
 0x16d   : > { %8724 = vmatmul.mubr.msk.bf16.gmra.mrb[172].mxu0 %vm469_vm2, %v9625_v0  ;;  %v9631_v18 = vld [vmem:[%s10071_s20 + $0x60] sm:$0xff]  }
 0x16e   : > { %8794 = vmatmul.mubr.msk.bf16.gmra.mrb[172].mxu1 %vm469_vm2, %v9626_v9  ;;  %8727 = vmatprep.mubr.msk.bf16.mxu0 %vm9769_vm1, %v12419_v2 }
 0x16f   : > { %8797 = vmatprep.mubr.msk.bf16.mxu1 %vm9769_vm1, %v12419_v2 }
 0x170   : > { %v1356_v19 = vpop.f32.mrb[68].mxu0 }
 0x171   : > { %v1491_v22 = vadd.f32 %v1356_v19, %v10188_v3  ;;  %v1878_v23 = vpop.f32.mrb[68].mxu1  ;;  %v8549_v26 = vpop.f32.mrb[69].mxu0 }
 0x172   : > { %v8619_v29 = vpop.f32.mrb[69].mxu1  ;;  %v1359_v31 = vpop.f32.mrb[70].mxu0 }
 0x173   : > { %v10415_v36 = vadd.f32 %v1878_v23, %v1491_v22  ;;  %v1492_v37 = vadd.f32 %v1359_v31, %v10192_v10  ;;  %v1881_v40 = vpop.f32.mrb[70].mxu1  ;;  %v8550_v42 = vpop.f32.mrb[71].mxu0  ;;  %v9632_v23 = vld [vmem:[%s10077_s25 + $0x60] sm:$0xff]  }
 0x174   : > { %v8620_v44 = vpop.f32.mrb[71].mxu1 }
 0x175   : > { %v10418_v46 = vadd.f32 %v1881_v40, %v1492_v37  ;;  %8728 = vmatmul.mubr.msk.bf16.gmra.mrb[176].mxu0 %vm469_vm2, %v9627_v28  ;;  %v9633_v44 = vld [vmem:[%s10071_s20 + $0x68] sm:$0xff]  }
 0x176   : > { %8798 = vmatmul.mubr.msk.bf16.gmra.mrb[176].mxu1 %vm469_vm2, %v9628_v34  ;;  %8731 = vmatprep.mubr.msk.bf16.mxu0 %vm9769_vm1, %v12419_v2 }
 0x177   : > { %8801 = vmatprep.mubr.msk.bf16.mxu1 %vm9769_vm1, %v12419_v2 }
 0x178   : > { %v1364_v3 = vpop.f32.mrb[72].mxu0 }
 0x179   : > { %v1493_v48 = vadd.f32 %v1364_v3, %v10202_v21  ;;  %v1886_v10 = vpop.f32.mrb[72].mxu1  ;;  %v8553_v50 = vpop.f32.mrb[73].mxu0 }
 0x17a   : > { %v8623_v53 = vpop.f32.mrb[73].mxu1  ;;  %v1367_v57 = vpop.f32.mrb[74].mxu0 }
 0x17b   : > { %v10429_v60 = vadd.f32 %v1886_v10, %v1493_v48  ;;  %v1494_v62 = vadd.f32 %v1367_v57, %v10206_v32  ;;  %v1889_v0 = vpop.f32.mrb[74].mxu1  ;;  %v8554_v6 = vpop.f32.mrb[75].mxu0  ;;  %v9634_v10 = vld [vmem:[%s10077_s25 + $0x68] sm:$0xff]  }
 0x17c   : > { %v8624_v8 = vpop.f32.mrb[75].mxu1 }
 0x17d   : > { %v10432_v9 = vadd.f32 %v1889_v0, %v1494_v62  ;;  %8732 = vmatmul.mubr.msk.bf16.gmra.mrb[180].mxu0 %vm469_vm2, %v9629_v52  ;;  %v9635_v8 = vld [vmem:[%s10071_s20 + $0x70] sm:$0xff]  }
 0x17e   : > { %8802 = vmatmul.mubr.msk.bf16.gmra.mrb[180].mxu1 %vm469_vm2, %v9630_v59  ;;  %8735 = vmatprep.mubr.msk.bf16.mxu0 %vm9769_vm1, %v12419_v2 }
 0x17f   : > { %8805 = vmatprep.mubr.msk.bf16.mxu1 %vm9769_vm1, %v12419_v2 }
 0x180   : > { %v1372_v21 = vpop.f32.mrb[76].mxu0 }
 0x181   : > { %v1495_v11 = vadd.f32 %v1372_v21, %v10216_v43  ;;  %v1894_v32 = vpop.f32.mrb[76].mxu1  ;;  %v8557_v13 = vpop.f32.mrb[77].mxu0 }
 0x182   : > { %v8627_v19 = vpop.f32.mrb[77].mxu1  ;;  %v1375_v22 = vpop.f32.mrb[78].mxu0 }
 0x183   : > { %v10443_v26 = vadd.f32 %v1894_v32, %v1495_v11  ;;  %v1496_v28 = vadd.f32 %v1375_v22, %v10220_v54  ;;  %v1897_v29 = vpop.f32.mrb[78].mxu1  ;;  %v8558_v31 = vpop.f32.mrb[79].mxu0  ;;  %v9636_v32 = vld [vmem:[%s10077_s25 + $0x70] sm:$0xff]  }
 0x184   : > { %v8628_v34 = vpop.f32.mrb[79].mxu1 }
 0x185   : > { %v10446_v37 = vadd.f32 %v1897_v29, %v1496_v28  ;;  %8736 = vmatmul.mubr.msk.bf16.gmra.mrb[184].mxu0 %vm469_vm2, %v9631_v18  ;;  %v9637_v34 = vld [vmem:[%s10071_s20 + $0x78] sm:$0xff]  }
 0x186   : > { %8806 = vmatmul.mubr.msk.bf16.gmra.mrb[184].mxu1 %vm469_vm2, %v9632_v23  ;;  %8739 = vmatprep.mubr.msk.bf16.mxu0 %vm9769_vm1, %v12419_v2 }
 0x187   : > { %8809 = vmatprep.mubr.msk.bf16.mxu1 %vm9769_vm1, %v12419_v2 }
 0x188   : > { %v1380_v43 = vpop.f32.mrb[80].mxu0 }
 0x189   : > { %v1497_v40 = vadd.f32 %v1380_v43, %v10230_v1  ;;  %v1902_v54 = vpop.f32.mrb[80].mxu1  ;;  %v8561_v42 = vpop.f32.mrb[81].mxu0  ;;  %v9641_v43 = vld [vmem:[%s10071_s20] sm:$0xff]  }
 0x18a   : > { %v8631_v3 = vpop.f32.mrb[81].mxu1  ;;  %v1383_v48 = vpop.f32.mrb[82].mxu0  ;;  %v9638_v42 = vld [vmem:[%s10077_s25 + $0x78] sm:$0xff]  }
 0x18b   : > { %v10457_v50 = vadd.f32 %v1902_v54, %v1497_v40  ;;  %v1498_v52 = vadd.f32 %v1383_v48, %v10234_v15  ;;  %v1905_v53 = vpop.f32.mrb[82].mxu1  ;;  %v8562_v57 = vpop.f32.mrb[83].mxu0 }
 0x18c   : > { %v8632_v59 = vpop.f32.mrb[83].mxu1 }
 0x18d   : > { %v10460_v62 = vadd.f32 %v1905_v53, %v1498_v52  ;;  %8740 = vmatmul.mubr.msk.bf16.gmra.mrb[188].mxu0 %vm469_vm2, %v9633_v44  ;;  %v9643_v52 = vld [vmem:[%s10077_s25] sm:$0xff]   ;;  %v2931_v59 = vshll.u32 %v9641_v43, 16 }
 0x18e   : > { %8810 = vmatmul.mubr.msk.bf16.gmra.mrb[188].mxu1 %vm469_vm2, %v9634_v10  ;;  %8743 = vmatprep.mubr.msk.bf16.mxu0 %vm9769_vm1, %v12419_v2 }
 0x18f   : > { %8813 = vmatprep.mubr.msk.bf16.mxu1 %vm9769_vm1, %v12419_v2 }
 0x190   : > { %v1388_v1 = vpop.f32.mrb[84].mxu0 }
 0x191   : > { %v1499_v0 = vadd.f32 %v1388_v1, %v10244_v27  ;;  %v1910_v15 = vpop.f32.mrb[84].mxu1  ;;  %v8565_v6 = vpop.f32.mrb[85].mxu0  ;;  %v3453_v1 = vshll.u32 %v9643_v52, 16 }
 0x192   : > { %v8635_v21 = vpop.f32.mrb[85].mxu1  ;;  %v1391_v11 = vpop.f32.mrb[86].mxu0 }
 0x193   : > { %v10471_v13 = vadd.f32 %v1910_v15, %v1499_v0  ;;  %v1500_v18 = vadd.f32 %v1391_v11, %v10248_v39  ;;  %v1913_v19 = vpop.f32.mrb[86].mxu1  ;;  %v8566_v22 = vpop.f32.mrb[87].mxu0  ;;  %v9639_v21 = vld [vmem:[%s10071_s20 + $0x80] sm:$0xff]   ;;  %v2929_v11 = vshrl.u32 %v9641_v43, 16 }
 0x194   : > { %v8636_v23 = vpop.f32.mrb[87].mxu1 }
 0x195   : > { %v10474_v28 = vadd.f32 %v1913_v19, %v1500_v18  ;;  %8744 = vmatmul.mubr.msk.bf16.gmra.mrb[192].mxu0 %vm469_vm2, %v9635_v8  ;;  %v9640_v23 = vld [vmem:[%s10077_s25 + $0x80] sm:$0xff]  }
 0x196   : > { %8814 = vmatmul.mubr.msk.bf16.gmra.mrb[192].mxu1 %vm469_vm2, %v9636_v32  ;;  %8747 = vmatprep.mubr.msk.bf16.mxu0 %vm9769_vm1, %v12419_v2  ;;  %v2933_v32 = vrot.slane %v2931_v59, 1  ;;  %v7826_v59 = vld [vmem:[%s12416_s4 + $0x10] sm:$0x3] }
 0x197   : > { %8817 = vmatprep.mubr.msk.bf16.mxu1 %vm9769_vm1, %v12419_v2 }
 0x198   : > { %v1396_v27 = vpop.f32.mrb[88].mxu0  ;;  %v2934_v43 = vor.u32 %v2933_v32, %v2929_v11 }
 0x199   : > { %v1501_v39 = vadd.f32 %v1396_v27, %v10258_v51  ;;  %v1918_v29 = vpop.f32.mrb[88].mxu1  ;;  %v8569_v31 = vpop.f32.mrb[89].mxu0  ;;  %v10494_v51 = vld [vmem:[%s10071_s20 + $0x8] sm:$0xff]   ;;  %v3451_v27 = vshrl.u32 %v9643_v52, 16 }
 0x19a   : > { %v8639_v40 = vpop.f32.mrb[89].mxu1  ;;  %v1399_v54 = vpop.f32.mrb[90].mxu0  ;;  %v2936_v18 = vshll.u32 %v10494_v51, 16  ;;  %v2940_v32 = vshrl.u32 %v10494_v51, 16  ;;  %v10541_v51 = vld [vmem:[%s10071_s20 + $0x18] sm:$0xff]  }
 0x19b   : > { %v10486_v44 = vadd.f32 %v1918_v29, %v1501_v39  ;;  %v1502_v3 = vadd.f32 %v1399_v54, %v10262_v63  ;;  %v1921_v48 = vpop.f32.mrb[90].mxu1  ;;  %v8570_v10 = vpop.f32.mrb[91].mxu0  ;;  %v9644_v63 = vld [vmem:[%s10077_s25 + $0x8] sm:$0xff]  }
 0x19c   : > { %v8640_v53 = vpop.f32.mrb[91].mxu1  ;;  %v3458_v40 = vshll.u32 %v9644_v63, 16  ;;  %v10517_v10 = vld [vmem:[%s10077_s25 + $0x10] sm:$0xff]  }
 0x19d   : > { %v10490_v57 = vadd.f32 %v1921_v48, %v1502_v3  ;;  %8748 = vmatmul.mubr.msk.bf16.gmra.mrb[196].mxu0 %vm469_vm2, %v9637_v34  ;;  %v2938_v3 = vrot.slane %v2936_v18, 1  ;;  %v9645_v48 = vld [vmem:[%s10071_s20 + $0x10] sm:$0xff]  }
 0x19e   : > { %8818 = vmatmul.mubr.msk.bf16.gmra.mrb[196].mxu1 %vm469_vm2, %v9638_v42  ;;  %8751 = vmatprep.mubr.msk.bf16.mxu0 %vm9769_vm1, %v12419_v2  ;;  %v3460_v52 = vrot.slane %v3458_v40, 1  ;;  %v2944_v18 = vshll.u32 %v9645_v48, 16 }
 0x19f   : > { %8821 = vmatprep.mubr.msk.bf16.mxu1 %vm9769_vm1, %v12419_v2 }
 0x1a0   : > { %v1404_v0 = vpop.f32.mrb[92].mxu0 }
 0x1a1   : > { %v1503_v15 = vadd.f32 %v1404_v0, %v10270_v12  ;;  %v1926_v6 = vpop.f32.mrb[92].mxu1  ;;  %v8573_v8 = vpop.f32.mrb[93].mxu0  ;;  %v3455_v12 = vrot.slane %v3453_v1, 1 }
 0x1a2   : > { %v8643_v19 = vpop.f32.mrb[93].mxu1  ;;  %v1407_v22 = vpop.f32.mrb[94].mxu0  ;;  %v7862_v8 = vld [vmem:[%s12416_s4 + $0x12] sm:$0x3] }
 0x1a3   : > { %v10506_v39 = vadd.f32 %v1926_v6, %v1503_v15  ;;  %v1504_v29 = vadd.f32 %v1407_v22, %v10274_v20  ;;  %v1929_v31 = vpop.f32.mrb[94].mxu1  ;;  %v8574_v34 = vpop.f32.mrb[95].mxu0  ;;  %v3456_v20 = vor.u32 %v3455_v12, %v3451_v27  ;;  %v2939_v6 = vsel %vm1127_vm3, %v2934_v43, %v2938_v3 }
 0x1a4   : > { %v8644_v54 = vpop.f32.mrb[95].mxu1  ;;  %v3462_v19 = vshrl.u32 %v9644_v63, 16  ;;  %v3466_v22 = vshll.u32 %v10517_v10, 16  ;;  %v4164_v34 = vsel %vm521_vm0, %v7826_v59, 0  ;;  %v4686_v40 = vsel %vm521_vm0, %v7862_v8, 0 }
 0x1a5   : > { %v10509_v42 = vadd.f32 %v1929_v31, %v1504_v29  ;;  %8752 = vmatmul.mubr.msk.bf16.gmra.mrb[200].mxu0 %vm469_vm2, %v9639_v21  ;;  %v3461_v31 = vsel %vm1127_vm3, %v3456_v20, %v3460_v52  ;;  %v2946_v63 = vrot.slane %v2944_v18, 1  ;;  %v9648_v20 = vld [vmem:[%s10077_s25 + $0x18] sm:$0xff]  }
 0x1a6   : > { %8822 = vmatmul.mubr.msk.bf16.gmra.mrb[200].mxu1 %vm469_vm2, %v9640_v23  ;;  %8827 = vmatprep.mubr.msk.bf16.mxu0 %vm9769_vm1, %v12419_v2  ;;  %v3464_v43 = vor.u32 %v3462_v19, %v3460_v52 }
 0x1a7   : > { %8897 = vmatprep.mubr.msk.bf16.mxu1 %vm9769_vm1, %v12419_v2 }
 0x1a8   : > { %v1412_v53 = vpop.f32.mrb[96].mxu0 }
 0x1a9   : > { %v1505_v1 = vadd.f32 %v1412_v53, %v10289_v30  ;;  %v1934_v0 = vpop.f32.mrb[96].mxu1  ;;  %v8577_v15 = vpop.f32.mrb[97].mxu0  ;;  %v3468_v53 = vrot.slane %v3466_v22, 1  ;;  %v3474_v22 = vshll.u32 %v9648_v20, 16 }
 0x1aa   : > { %v8647_v21 = vpop.f32.mrb[97].mxu1  ;;  %v1415_v11 = vpop.f32.mrb[98].mxu0 }
 0x1ab   : > { %v10531_v23 = vadd.f32 %v1934_v0, %v1505_v1  ;;  %v1506_v30 = vadd.f32 %v1415_v11, %v10293_v38  ;;  %v1937_v27 = vpop.f32.mrb[98].mxu1  ;;  %v8578_v29 = vpop.f32.mrb[99].mxu0  ;;  %v2942_v38 = vor.u32 %v2940_v32, %v2938_v3  ;;  %v2952_v3 = vshll.u32 %v10541_v51, 16 }
 0x1ac   : > { %v8648_v12 = vpop.f32.mrb[99].mxu1  ;;  %v3469_v11 = vsel %vm1127_vm3, %v3464_v43, %v3468_v53 }
 0x1ad   : > { %v10537_v54 = vadd.f32 %v1937_v27, %v1506_v30  ;;  %8828 = vmatmul.mubr.msk.bf16.vlgmr.msra.gmra.mrb[204].mxu0 %vm469_vm2, %v2939_v6  ;;  %v2948_v6 = vshrl.u32 %v9645_v48, 16  ;;  %v2947_v21 = vsel %vm1127_vm3, %v2942_v38, %v2946_v63  ;;  %v3470_v48 = vshrl.u32 %v10517_v10, 16  ;;  %v9650_v12 = vld [vmem:[%s10077_s25 + $0x20] sm:$0xff]  }
 0x1ae   : > { %8898 = vmatmul.mubr.msk.bf16.vlgmr.msra.gmra.mrb[204].mxu1 %vm469_vm2, %v3461_v31  ;;  %8966 = vmatpush3.bf16.msra.mxu0 %v4164_v34  ;;  %v2954_v31 = vrot.slane %v2952_v3, 1  ;;  %v9649_v34 = vld [vmem:[%s10071_s20 + $0x20] sm:$0xff]   ;;  %v3476_v10 = vrot.slane %v3474_v22, 1  ;;  %v3478_v3 = vshrl.u32 %v9648_v20, 16 }
 0x1af   : > { %9036 = vmatpush3.bf16.msra.mxu1 %v4686_v40  ;;  %8831 = vmatprep.mubr.msk.bf16.mxu0 %vm9769_vm1, %v12419_v2  ;;  %v2950_v29 = vor.u32 %v2948_v6, %v2946_v63  ;;  %v2960_v6 = vshll.u32 %v9649_v34, 16 }
 0x1b0   : > { %v1420_v59 = vpop.f32.mrb[100].mxu0  ;;  %8901 = vmatprep.mubr.msk.bf16.mxu1 %vm9769_vm1, %v12419_v2  ;;  %9105 = vmatprep.subr.bf16.mxu0 %v12419_v2 }
 0x1b1   : > { %v1507_v1 = vadd.f32 %v1420_v59, %v10305_v47  ;;  %v1942_v0 = vpop.f32.mrb[100].mxu1  ;;  %v8581_v15 = vpop.f32.mrb[101].mxu0  ;;  %9175 = vmatprep.subr.bf16.mxu1 %v12419_v2  ;;  %v2955_v63 = vsel %vm1127_vm3, %v2950_v29, %v2954_v31  ;;  %v2962_v20 = vrot.slane %v2960_v6, 1 }
 0x1b2   : > { %v8651_v52 = vpop.f32.mrb[101].mxu1  ;;  %v1423_v8 = vpop.f32.mrb[102].mxu0  ;;  %v2956_v15 = vshrl.u32 %v10541_v51, 16 }
 0x1b3   : > { %v10555_v32 = vadd.f32 %v1942_v0, %v1507_v1  ;;  %v1508_v18 = vadd.f32 %v1423_v8, %v10308_v55  ;;  %v1945_v47 = vpop.f32.mrb[102].mxu1  ;;  %v8582_v19 = vpop.f32.mrb[103].mxu0  ;;  %v3472_v55 = vor.u32 %v3470_v48, %v3468_v53  ;;  %v3482_v52 = vshll.u32 %v9650_v12, 16 }
 0x1b4   : > { %v8652_v30 = vpop.f32.mrb[103].mxu1  ;;  %v9651_v19 = vld [vmem:[%s10071_s20 + $0x28] sm:$0xff]   ;;  %v2958_v51 = vor.u32 %v2956_v15, %v2954_v31  ;;  %v3480_v48 = vor.u32 %v3478_v3, %v3476_v10  ;;  %v3486_v3 = vshrl.u32 %v9650_v12, 16 }
 0x1b5   : > { %v10559_v27 = vadd.f32 %v1945_v47, %v1508_v18  ;;  %8832 = vmatmul.mubr.msk.bf16.gmra.mrb[208].mxu0 %vm469_vm2, %v2947_v21  ;;  %v3484_v22 = vrot.slane %v3482_v52, 1 }
 0x1b6   : > { %8902 = vmatmul.mubr.msk.bf16.gmra.mrb[208].mxu1 %vm469_vm2, %v3469_v11  ;;  %8835 = vmatprep.mubr.msk.bf16.mxu0 %vm9769_vm1, %v12419_v2 }
 0x1b7   : > { %8905 = vmatprep.mubr.msk.bf16.mxu1 %vm9769_vm1, %v12419_v2  ;;  %v3485_v31 = vsel %vm1127_vm3, %v3480_v48, %v3484_v22 }
 0x1b8   : > { %v1428_v40 = vpop.f32.mrb[104].mxu0 }
 0x1b9   : > { %v1509_v38 = vadd.f32 %v1428_v40, %v10317_v61  ;;  %v1950_v43 = vpop.f32.mrb[104].mxu1  ;;  %v8585_v59 = vpop.f32.mrb[105].mxu0  ;;  %v3477_v61 = vsel %vm1127_vm3, %v3472_v55, %v3476_v10 }
 0x1ba   : > { %v8655_v1 = vpop.f32.mrb[105].mxu1  ;;  %v1431_v0 = vpop.f32.mrb[106].mxu0 }
 0x1bb   : > { %v10572_v8 = vadd.f32 %v1950_v43, %v1509_v38  ;;  %v1510_v53 = vadd.f32 %v1431_v0, %v10320_v7  ;;  %v1953_v21 = vpop.f32.mrb[106].mxu1  ;;  %v8586_v11 = vpop.f32.mrb[107].mxu0  ;;  %v9652_v7 = vld [vmem:[%s10077_s25 + $0x28] sm:$0xff]   ;;  %v2964_v38 = vshrl.u32 %v9649_v34, 16  ;;  %v2968_v43 = vshll.u32 %v9651_v19, 16 }
 0x1bc   : > { %v8656_v18 = vpop.f32.mrb[107].mxu1  ;;  %v2963_v1 = vsel %vm1127_vm3, %v2958_v51, %v2962_v20  ;;  %v9653_v11 = vld [vmem:[%s10071_s20 + $0x30] sm:$0xff]  }
 0x1bd   : > { %v10576_v47 = vadd.f32 %v1953_v21, %v1510_v53  ;;  %8836 = vmatmul.mubr.msk.bf16.gmra.mrb[212].mxu0 %vm469_vm2, %v2955_v63  ;;  %v2966_v34 = vor.u32 %v2964_v38, %v2962_v20  ;;  %v2970_v21 = vrot.slane %v2968_v43, 1  ;;  %v2976_v38 = vshll.u32 %v9653_v11, 16 }
 0x1be   : > { %8906 = vmatmul.mubr.msk.bf16.gmra.mrb[212].mxu1 %vm469_vm2, %v3477_v61  ;;  %8839 = vmatprep.mubr.msk.bf16.mxu0 %vm9769_vm1, %v12419_v2  ;;  %v9654_v61 = vld [vmem:[%s10077_s25 + $0x30] sm:$0xff]   ;;  %v3494_v43 = vshrl.u32 %v9652_v7, 16 }
 0x1bf   : > { %8909 = vmatprep.mubr.msk.bf16.mxu1 %vm9769_vm1, %v12419_v2  ;;  %v2971_v20 = vsel %vm1127_vm3, %v2966_v34, %v2970_v21 }
 0x1c0   : > { %v1436_v30 = vpop.f32.mrb[108].mxu0 }
 0x1c1   : > { %v1511_v29 = vadd.f32 %v1436_v30, %v10329_v16  ;;  %v1958_v55 = vpop.f32.mrb[108].mxu1  ;;  %v8589_v40 = vpop.f32.mrb[109].mxu0  ;;  %v3490_v16 = vshll.u32 %v9652_v7, 16  ;;  %v2978_v7 = vrot.slane %v2976_v38, 1 }
 0x1c2   : > { %v8659_v59 = vpop.f32.mrb[109].mxu1  ;;  %v1439_v63 = vpop.f32.mrb[110].mxu0  ;;  %v2972_v40 = vshrl.u32 %v9651_v19, 16 }
 0x1c3   : > { %v10589_v10 = vadd.f32 %v1958_v55, %v1511_v29  ;;  %v1512_v0 = vadd.f32 %v1439_v63, %v10332_v24  ;;  %v1961_v15 = vpop.f32.mrb[110].mxu1  ;;  %v8590_v6 = vpop.f32.mrb[111].mxu0  ;;  %v3488_v24 = vor.u32 %v3486_v3, %v3484_v22  ;;  %v3492_v12 = vrot.slane %v3490_v16, 1 }
 0x1c4   : > { %v8660_v52 = vpop.f32.mrb[111].mxu1  ;;  %v3498_v59 = vshll.u32 %v9654_v61, 16  ;;  %v9655_v6 = vld [vmem:[%s10071_s20 + $0x38] sm:$0xff]   ;;  %v2974_v19 = vor.u32 %v2972_v40, %v2970_v21 }
 0x1c5   : > { %v10592_v53 = vadd.f32 %v1961_v15, %v1512_v0  ;;  %8840 = vmatmul.mubr.msk.bf16.gmra.mrb[216].mxu0 %vm469_vm2, %v2963_v1  ;;  %v3496_v3 = vor.u32 %v3494_v43, %v3492_v12  ;;  %v3502_v43 = vshrl.u32 %v9654_v61, 16 }
 0x1c6   : > { %8910 = vmatmul.mubr.msk.bf16.gmra.mrb[216].mxu1 %vm469_vm2, %v3485_v31  ;;  %8843 = vmatprep.mubr.msk.bf16.mxu0 %vm9769_vm1, %v12419_v2  ;;  %v3500_v16 = vrot.slane %v3498_v59, 1 }
 0x1c7   : > { %8913 = vmatprep.mubr.msk.bf16.mxu1 %vm9769_vm1, %v12419_v2 }
 0x1c8   : > { %v1444_v18 = vpop.f32.mrb[112].mxu0  ;;  %v3501_v21 = vsel %vm1127_vm3, %v3496_v3, %v3500_v16 }
 0x1c9   : > { %v1513_v51 = vadd.f32 %v1444_v18, %v10341_v33  ;;  %v1966_v48 = vpop.f32.mrb[112].mxu1  ;;  %v8593_v30 = vpop.f32.mrb[113].mxu0  ;;  %v3493_v33 = vsel %vm1127_vm3, %v3488_v24, %v3492_v12 }
 0x1ca   : > { %v8663_v29 = vpop.f32.mrb[113].mxu1  ;;  %v1447_v55 = vpop.f32.mrb[114].mxu0 }
 0x1cb   : > { %v10604_v63 = vadd.f32 %v1966_v48, %v1513_v51  ;;  %v1514_v22 = vadd.f32 %v1447_v55, %v10344_v41  ;;  %v1969_v1 = vpop.f32.mrb[114].mxu1  ;;  %v8594_v31 = vpop.f32.mrb[115].mxu0  ;;  %v9656_v41 = vld [vmem:[%s10077_s25 + $0x38] sm:$0xff]   ;;  %v2980_v51 = vshrl.u32 %v9653_v11, 16  ;;  %v2984_v48 = vshll.u32 %v9655_v6, 16 }
 0x1cc   : > { %v8664_v0 = vpop.f32.mrb[115].mxu1  ;;  %v2979_v29 = vsel %vm1127_vm3, %v2974_v19, %v2978_v7  ;;  %v9657_v31 = vld [vmem:[%s10071_s20 + $0x40] sm:$0xff]  }
 0x1cd   : > { %v10608_v15 = vadd.f32 %v1969_v1, %v1514_v22  ;;  %8844 = vmatmul.mubr.msk.bf16.gmra.mrb[220].mxu0 %vm469_vm2, %v2971_v20  ;;  %v2982_v11 = vor.u32 %v2980_v51, %v2978_v7  ;;  %v2986_v1 = vrot.slane %v2984_v48, 1  ;;  %v2992_v51 = vshll.u32 %v9657_v31, 16 }
 0x1ce   : > { %8914 = vmatmul.mubr.msk.bf16.gmra.mrb[220].mxu1 %vm469_vm2, %v3493_v33  ;;  %8847 = vmatprep.mubr.msk.bf16.mxu0 %vm9769_vm1, %v12419_v2  ;;  %v9658_v33 = vld [vmem:[%s10077_s25 + $0x40] sm:$0xff]   ;;  %v3510_v48 = vshrl.u32 %v9656_v41, 16 }
 0x1cf   : > { %8917 = vmatprep.mubr.msk.bf16.mxu1 %vm9769_vm1, %v12419_v2  ;;  %v2987_v7 = vsel %vm1127_vm3, %v2982_v11, %v2986_v1 }
 0x1d0   : > { %v1452_v52 = vpop.f32.mrb[116].mxu0 }
 0x1d1   : > { %v1515_v34 = vadd.f32 %v1452_v52, %v10353_v49  ;;  %v1974_v24 = vpop.f32.mrb[116].mxu1  ;;  %v8597_v18 = vpop.f32.mrb[117].mxu0  ;;  %v3506_v49 = vshll.u32 %v9656_v41, 16  ;;  %v2994_v41 = vrot.slane %v2992_v51, 1 }
 0x1d2   : > { %v8667_v30 = vpop.f32.mrb[117].mxu1  ;;  %v1455_v20 = vpop.f32.mrb[118].mxu0  ;;  %v2988_v18 = vshrl.u32 %v9655_v6, 16 }
 0x1d3   : > { %v10621_v12 = vadd.f32 %v1974_v24, %v1515_v34  ;;  %v1516_v55 = vadd.f32 %v1455_v20, %v10356_v58  ;;  %v1977_v40 = vpop.f32.mrb[118].mxu1  ;;  %v8598_v38 = vpop.f32.mrb[119].mxu0  ;;  %v3504_v58 = vor.u32 %v3502_v43, %v3500_v16  ;;  %v3508_v61 = vrot.slane %v3506_v49, 1 }
 0x1d4   : > { %v8668_v59 = vpop.f32.mrb[119].mxu1  ;;  %v3514_v30 = vshll.u32 %v9658_v33, 16  ;;  %v9659_v38 = vld [vmem:[%s10071_s20 + $0x48] sm:$0xff]   ;;  %v2990_v6 = vor.u32 %v2988_v18, %v2986_v1 }
 0x1d5   : > { %v10624_v22 = vadd.f32 %v1977_v40, %v1516_v55  ;;  %8848 = vmatmul.mubr.msk.bf16.gmra.mrb[224].mxu0 %vm469_vm2, %v2979_v29  ;;  %v3512_v43 = vor.u32 %v3510_v48, %v3508_v61  ;;  %v3518_v48 = vshrl.u32 %v9658_v33, 16 }
 0x1d6   : > { %8918 = vmatmul.mubr.msk.bf16.gmra.mrb[224].mxu1 %vm469_vm2, %v3501_v21  ;;  %8851 = vmatprep.mubr.msk.bf16.mxu0 %vm9769_vm1, %v12419_v2  ;;  %v3516_v49 = vrot.slane %v3514_v30, 1 }
 0x1d7   : > { %8921 = vmatprep.mubr.msk.bf16.mxu1 %vm9769_vm1, %v12419_v2 }
 0x1d8   : > { %v1460_v0 = vpop.f32.mrb[120].mxu0  ;;  %v3517_v1 = vsel %vm1127_vm3, %v3512_v43, %v3516_v49 }
 0x1d9   : > { %v1517_v19 = vadd.f32 %v1460_v0, %v10365_v5  ;;  %v1982_v3 = vpop.f32.mrb[120].mxu1  ;;  %v8601_v52 = vpop.f32.mrb[121].mxu0  ;;  %v3509_v5 = vsel %vm1127_vm3, %v3504_v58, %v3508_v61 }
 0x1da   : > { %v8671_v34 = vpop.f32.mrb[121].mxu1  ;;  %v1463_v24 = vpop.f32.mrb[122].mxu0 }
 0x1db   : > { %v10636_v20 = vadd.f32 %v1982_v3, %v1517_v19  ;;  %v1518_v16 = vadd.f32 %v1463_v24, %v10368_v14  ;;  %v1985_v29 = vpop.f32.mrb[122].mxu1  ;;  %v8602_v21 = vpop.f32.mrb[123].mxu0  ;;  %v9660_v14 = vld [vmem:[%s10077_s25 + $0x48] sm:$0xff]   ;;  %v2996_v19 = vshrl.u32 %v9657_v31, 16  ;;  %v3000_v3 = vshll.u32 %v9659_v38, 16 }
 0x1dc   : > { %v8672_v55 = vpop.f32.mrb[123].mxu1  ;;  %v2995_v34 = vsel %vm1127_vm3, %v2990_v6, %v2994_v41  ;;  %v9661_v21 = vld [vmem:[%s10071_s20 + $0x50] sm:$0xff]  }
 0x1dd   : > { %v10640_v40 = vadd.f32 %v1985_v29, %v1518_v16  ;;  %8852 = vmatmul.mubr.msk.bf16.gmra.mrb[228].mxu0 %vm469_vm2, %v2987_v7  ;;  %v2998_v31 = vor.u32 %v2996_v19, %v2994_v41  ;;  %v3002_v29 = vrot.slane %v3000_v3, 1  ;;  %v3008_v19 = vshll.u32 %v9661_v21, 16 }
 0x1de   : > { %8922 = vmatmul.mubr.msk.bf16.gmra.mrb[228].mxu1 %vm469_vm2, %v3509_v5  ;;  %8855 = vmatprep.mubr.msk.bf16.mxu0 %vm9769_vm1, %v12419_v2  ;;  %v9662_v5 = vld [vmem:[%s10077_s25 + $0x50] sm:$0xff]   ;;  %v3526_v3 = vshrl.u32 %v9660_v14, 16 }
 0x1df   : > { %8925 = vmatprep.mubr.msk.bf16.mxu1 %vm9769_vm1, %v12419_v2  ;;  %v3003_v41 = vsel %vm1127_vm3, %v2998_v31, %v3002_v29 }
 0x1e0   : > { %v1468_v59 = vpop.f32.mrb[124].mxu0 }
 0x1e1   : > { %v1519_v11 = vadd.f32 %v1468_v59, %v10377_v25  ;;  %v1990_v58 = vpop.f32.mrb[124].mxu1  ;;  %v8605_v0 = vpop.f32.mrb[125].mxu0  ;;  %v3522_v25 = vshll.u32 %v9660_v14, 16  ;;  %v3010_v14 = vrot.slane %v3008_v19, 1 }
 0x1e2   : > { %v8675_v52 = vpop.f32.mrb[125].mxu1  ;;  %v1471_v7 = vpop.f32.mrb[126].mxu0  ;;  %v3004_v0 = vshrl.u32 %v9659_v38, 16 }
 0x1e3   : > { %v10653_v61 = vadd.f32 %v1990_v58, %v1519_v11  ;;  %v1520_v24 = vadd.f32 %v1471_v7, %v10380_v35  ;;  %v1993_v18 = vpop.f32.mrb[126].mxu1  ;;  %v8606_v51 = vpop.f32.mrb[127].mxu0  ;;  %v3520_v35 = vor.u32 %v3518_v48, %v3516_v49  ;;  %v3524_v33 = vrot.slane %v3522_v25, 1 }
 0x1e4   : > { %v8676_v30 = vpop.f32.mrb[127].mxu1  ;;  %v3530_v52 = vshll.u32 %v9662_v5, 16  ;;  %v9663_v51 = vld [vmem:[%s10071_s20 + $0x58] sm:$0xff]   ;;  %v3006_v38 = vor.u32 %v3004_v0, %v3002_v29 }
 0x1e5   : > { %v10656_v16 = vadd.f32 %v1993_v18, %v1520_v24  ;;  %8856 = vmatmul.mubr.msk.bf16.gmra.mrb[232].mxu0 %vm469_vm2, %v2995_v34  ;;  %v3528_v48 = vor.u32 %v3526_v3, %v3524_v33  ;;  %v3534_v3 = vshrl.u32 %v9662_v5, 16 }
 0x1e6   : > { %8926 = vmatmul.mubr.msk.bf16.gmra.mrb[232].mxu1 %vm469_vm2, %v3517_v1  ;;  %8859 = vmatprep.mubr.msk.bf16.mxu0 %vm9769_vm1, %v12419_v2  ;;  %v3532_v25 = vrot.slane %v3530_v52, 1 }
 0x1e7   : > { %8929 = vmatprep.mubr.msk.bf16.mxu1 %vm9769_vm1, %v12419_v2 }
 0x1e8   : > { %v1476_v55 = vpop.f32.mrb[128].mxu0  ;;  %v3533_v29 = vsel %vm1127_vm3, %v3528_v48, %v3532_v25 }
 0x1e9   : > { %v1521_v6 = vadd.f32 %v1476_v55, %v10389_v45  ;;  %v1998_v43 = vpop.f32.mrb[128].mxu1  ;;  %v8609_v59 = vpop.f32.mrb[129].mxu0  ;;  %v3525_v45 = vsel %vm1127_vm3, %v3520_v35, %v3524_v33 }
 0x1ea   : > { %v8679_v11 = vpop.f32.mrb[129].mxu1  ;;  %v1479_v58 = vpop.f32.mrb[130].mxu0 }
 0x1eb   : > { %v10668_v7 = vadd.f32 %v1998_v43, %v1521_v6  ;;  %v1522_v49 = vadd.f32 %v1479_v58, %v10392_v56  ;;  %v2001_v34 = vpop.f32.mrb[130].mxu1  ;;  %v8610_v1 = vpop.f32.mrb[131].mxu0  ;;  %v9664_v56 = vld [vmem:[%s10077_s25 + $0x58] sm:$0xff]   ;;  %v3012_v6 = vshrl.u32 %v9661_v21, 16  ;;  %v3016_v43 = vshll.u32 %v9663_v51, 16 }
 0x1ec   : > { %v8680_v24 = vpop.f32.mrb[131].mxu1  ;;  %v3011_v11 = vsel %vm1127_vm3, %v3006_v38, %v3010_v14  ;;  %v9665_v1 = vld [vmem:[%s10071_s20 + $0x60] sm:$0xff]  }
 0x1ed   : > { %v10672_v18 = vadd.f32 %v2001_v34, %v1522_v49  ;;  %8860 = vmatmul.mubr.msk.bf16.gmra.mrb[236].mxu0 %vm469_vm2, %v3003_v41  ;;  %v3014_v21 = vor.u32 %v3012_v6, %v3010_v14  ;;  %v3018_v34 = vrot.slane %v3016_v43, 1  ;;  %v3024_v6 = vshll.u32 %v9665_v1, 16 }
 0x1ee   : > { %8930 = vmatmul.mubr.msk.bf16.gmra.mrb[236].mxu1 %vm469_vm2, %v3525_v45  ;;  %8863 = vmatprep.mubr.msk.bf16.mxu0 %vm9769_vm1, %v12419_v2  ;;  %v9666_v45 = vld [vmem:[%s10077_s25 + $0x60] sm:$0xff]   ;;  %v3542_v43 = vshrl.u32 %v9664_v56, 16 }
 0x1ef   : > { %8933 = vmatprep.mubr.msk.bf16.mxu1 %vm9769_vm1, %v12419_v2  ;;  %v3019_v14 = vsel %vm1127_vm3, %v3014_v21, %v3018_v34 }
 0x1f0   : > { %v1484_v30 = vpop.f32.mrb[132].mxu0 }
 0x1f1   : > { %v1523_v31 = vadd.f32 %v1484_v30, %v10401_v4  ;;  %v2006_v35 = vpop.f32.mrb[132].mxu1  ;;  %v8613_v55 = vpop.f32.mrb[133].mxu0  ;;  %v3538_v4 = vshll.u32 %v9664_v56, 16  ;;  %v3026_v56 = vrot.slane %v3024_v6, 1 }
 0x1f2   : > { %v8683_v59 = vpop.f32.mrb[133].mxu1  ;;  %v1487_v41 = vpop.f32.mrb[134].mxu0  ;;  %v3020_v55 = vshrl.u32 %v9663_v51, 16 }
 0x1f3   : > { %v10685_v33 = vadd.f32 %v2006_v35, %v1523_v31  ;;  %v1524_v58 = vadd.f32 %v1487_v41, %v10404_v17  ;;  %v2009_v0 = vpop.f32.mrb[134].mxu1  ;;  %v8614_v19 = vpop.f32.mrb[135].mxu0  ;;  %v3536_v17 = vor.u32 %v3534_v3, %v3532_v25  ;;  %v3540_v5 = vrot.slane %v3538_v4, 1  ;;  %v9667_v4 = vld [vmem:[%s10071_s20 + $0x68] sm:$0xff]  }
 0x1f4   : > { %v8684_v52 = vpop.f32.mrb[135].mxu1  ;;  %v3546_v59 = vshll.u32 %v9666_v45, 16  ;;  %v3022_v51 = vor.u32 %v3020_v55, %v3018_v34 }
 0x1f5   : > { %v10688_v49 = vadd.f32 %v2009_v0, %v1524_v58  ;;  %8864 = vmatmul.mubr.msk.bf16.gmra.mrb[240].mxu0 %vm469_vm2, %v3011_v11  ;;  %v3544_v19 = vor.u32 %v3542_v43, %v3540_v5  ;;  %v3550_v43 = vshrl.u32 %v9666_v45, 16 }
 0x1f6   : > { %8934 = vmatmul.mubr.msk.bf16.gmra.mrb[240].mxu1 %vm469_vm2, %v3533_v29  ;;  %8867 = vmatprep.mubr.msk.bf16.mxu0 %vm9769_vm1, %v12419_v2  ;;  %v3548_v3 = vrot.slane %v3546_v59, 1 }
 0x1f7   : > { %8937 = vmatprep.mubr.msk.bf16.mxu1 %vm9769_vm1, %v12419_v2 }
 0x1f8   : > { %v2256_v24 = vpop.f32.mrb[136].mxu0  ;;  %v3549_v34 = vsel %vm1127_vm3, %v3544_v19, %v3548_v3 }
 0x1f9   : > { %v2391_v38 = vadd.f32 %v2256_v24, %v10415_v36  ;;  %v2634_v48 = vpop.f32.mrb[136].mxu1  ;;  %v8689_v30 = vpop.f32.mrb[137].mxu0  ;;  %v3541_v36 = vsel %vm1127_vm3, %v3536_v17, %v3540_v5  ;;  %v3032_v5 = vshll.u32 %v9667_v4, 16 }
 0x1fa   : > { %v8759_v31 = vpop.f32.mrb[137].mxu1  ;;  %v2259_v35 = vpop.f32.mrb[138].mxu0  ;;  %v3027_v30 = vsel %vm1127_vm3, %v3022_v51, %v3026_v56 }
 0x1fb   : > { %v10700_v41 = vadd.f32 %v2634_v48, %v2391_v38  ;;  %v2392_v25 = vadd.f32 %v2259_v35, %v10418_v46  ;;  %v2637_v11 = vpop.f32.mrb[138].mxu1  ;;  %v8690_v29 = vpop.f32.mrb[139].mxu0  ;;  %v9669_v46 = vld [vmem:[%s10077_s25 + $0x68] sm:$0xff]  }
 0x1fc   : > { %v8760_v58 = vpop.f32.mrb[139].mxu1  ;;  %v3034_v29 = vrot.slane %v3032_v5, 1 }
 0x1fd   : > { %v10704_v0 = vadd.f32 %v2637_v11, %v2392_v25  ;;  %8868 = vmatmul.mubr.msk.bf16.gmra.mrb[244].mxu0 %vm469_vm2, %v3019_v14  ;;  %v3028_v14 = vshrl.u32 %v9665_v1, 16  ;;  %v9668_v11 = vld [vmem:[%s10071_s20 + $0x70] sm:$0xff]  }
 0x1fe   : > { %8938 = vmatmul.mubr.msk.bf16.gmra.mrb[244].mxu1 %vm469_vm2, %v3541_v36  ;;  %8871 = vmatprep.mubr.msk.bf16.mxu0 %vm9769_vm1, %v12419_v2  ;;  %v3552_v36 = vor.u32 %v3550_v43, %v3548_v3  ;;  %v9672_v43 = vld [vmem:[%s10077_s25 + $0x78] sm:$0xff]  }
 0x1ff   : > { %8941 = vmatprep.mubr.msk.bf16.mxu1 %vm9769_vm1, %v12419_v2  ;;  %v3030_v1 = vor.u32 %v3028_v14, %v3026_v56  ;;  %v3558_v56 = vshrl.u32 %v9669_v46, 16 }
 0x200   : > { %v2264_v52 = vpop.f32.mrb[140].mxu0 }
 0x201   : > { %v2393_v21 = vadd.f32 %v2264_v52, %v10429_v60  ;;  %v2642_v17 = vpop.f32.mrb[140].mxu1  ;;  %v8693_v24 = vpop.f32.mrb[141].mxu0  ;;  %v3554_v60 = vshll.u32 %v9669_v46, 16  ;;  %v9671_v46 = vld [vmem:[%s10071_s20 + $0x78] sm:$0xff]  }
 0x202   : > { %v8763_v38 = vpop.f32.mrb[141].mxu1  ;;  %v2267_v48 = vpop.f32.mrb[142].mxu0 }
 0x203   : > { %v10717_v31 = vadd.f32 %v2642_v17, %v2393_v21  ;;  %v2394_v35 = vadd.f32 %v2267_v48, %v10432_v9  ;;  %v2645_v55 = vpop.f32.mrb[142].mxu1  ;;  %v8694_v6 = vpop.f32.mrb[143].mxu0  ;;  %v9670_v9 = vld [vmem:[%s10077_s25 + $0x70] sm:$0xff]   ;;  %v3556_v45 = vrot.slane %v3554_v60, 1  ;;  %v3036_v21 = vshrl.u32 %v9667_v4, 16 }
 0x204   : > { %v8764_v59 = vpop.f32.mrb[143].mxu1  ;;  %v3040_v17 = vshll.u32 %v9668_v11, 16  ;;  %v3035_v48 = vsel %vm1127_vm3, %v3030_v1, %v3034_v29 }
 0x205   : > { %v10720_v25 = vadd.f32 %v2645_v55, %v2394_v35  ;;  %8872 = vmatmul.mubr.msk.bf16.gmra.mrb[248].mxu0 %vm469_vm2, %v3027_v30  ;;  %v3557_v5 = vsel %vm1127_vm3, %v3552_v36, %v3556_v45  ;;  %v3038_v4 = vor.u32 %v3036_v21, %v3034_v29  ;;  %v3048_v21 = vshll.u32 %v9671_v46, 16 }
 0x206   : > { %8942 = vmatmul.mubr.msk.bf16.gmra.mrb[248].mxu1 %vm469_vm2, %v3549_v34  ;;  %8875 = vmatprep.mubr.msk.bf16.mxu0 %vm9769_vm1, %v12419_v2  ;;  %v3042_v6 = vrot.slane %v3040_v17, 1  ;;  %v3566_v17 = vshrl.u32 %v9670_v9, 16 }
 0x207   : > { %8945 = vmatprep.mubr.msk.bf16.mxu1 %vm9769_vm1, %v12419_v2 }
 0x208   : > { %v2272_v58 = vpop.f32.mrb[144].mxu0  ;;  %v3043_v1 = vsel %vm1127_vm3, %v3038_v4, %v3042_v6 }
 0x209   : > { %v2395_v51 = vadd.f32 %v2272_v58, %v10443_v26  ;;  %v2650_v19 = vpop.f32.mrb[144].mxu1  ;;  %v8697_v52 = vpop.f32.mrb[145].mxu0  ;;  %v3562_v26 = vshll.u32 %v9670_v9, 16  ;;  %v3050_v9 = vrot.slane %v3048_v21, 1 }
 0x20a   : > { %v8767_v24 = vpop.f32.mrb[145].mxu1  ;;  %v2275_v38 = vpop.f32.mrb[146].mxu0  ;;  %v3044_v52 = vshrl.u32 %v9668_v11, 16 }
 0x20b   : > { %v10732_v30 = vadd.f32 %v2650_v19, %v2395_v51  ;;  %v2396_v34 = vadd.f32 %v2275_v38, %v10446_v37  ;;  %v2653_v3 = vpop.f32.mrb[146].mxu1  ;;  %v8698_v14 = vpop.f32.mrb[147].mxu0  ;;  %v3560_v37 = vor.u32 %v3558_v56, %v3556_v45  ;;  %v3564_v60 = vrot.slane %v3562_v26, 1 }
 0x20c   : > { %v8768_v35 = vpop.f32.mrb[147].mxu1  ;;  %v3570_v24 = vshll.u32 %v9672_v43, 16  ;;  %v10753_v14 = vld [vmem:[%s10071_s20 + $0x80] sm:$0xff]   ;;  %v3046_v11 = vor.u32 %v3044_v52, %v3042_v6 }
 0x20d   : > { %v10736_v55 = vadd.f32 %v2653_v3, %v2396_v34  ;;  %8876 = vmatmul.mubr.msk.bf16.gmra.mrb[252].mxu0 %vm469_vm2, %v3035_v48  ;;  %v3565_v45 = vsel %vm1127_vm3, %v3560_v37, %v3564_v60  ;;  %v3056_v4 = vshll.u32 %v10753_v14, 16 }
 0x20e   : > { %8946 = vmatmul.mubr.msk.bf16.gmra.mrb[252].mxu1 %vm469_vm2, %v3557_v5  ;;  %8879 = vmatprep.mubr.msk.bf16.mxu0 %vm9769_vm1, %v12419_v2  ;;  %v3568_v5 = vor.u32 %v3566_v17, %v3564_v60  ;;  %v3572_v26 = vrot.slane %v3570_v24, 1  ;;  %v3051_v6 = vsel %vm1127_vm3, %v3046_v11, %v3050_v9 }
 0x20f   : > { %8949 = vmatprep.mubr.msk.bf16.mxu1 %vm9769_vm1, %v12419_v2  ;;  %v3058_v24 = vrot.slane %v3056_v4, 1  ;;  %v4370_v4 = vld [vmem:[%s9844_s10 + $0xc] sm:$0xf] }
 0x210   : > { %v2280_v59 = vpop.f32.mrb[148].mxu0  ;;  %v3573_v60 = vsel %vm1127_vm3, %v3568_v5, %v3572_v26 }
 0x211   : > { %v2397_v29 = vadd.f32 %v2280_v59, %v10457_v50  ;;  %v2658_v36 = vpop.f32.mrb[148].mxu1  ;;  %v8701_v58 = vpop.f32.mrb[149].mxu0 }
 0x212   : > { %v8771_v51 = vpop.f32.mrb[149].mxu1  ;;  %v2283_v19 = vpop.f32.mrb[150].mxu0 }
 0x213   : > { %v10749_v38 = vadd.f32 %v2658_v36, %v2397_v29  ;;  %v2398_v48 = vadd.f32 %v2283_v19, %v10460_v62  ;;  %v2661_v56 = vpop.f32.mrb[150].mxu1  ;;  %v8702_v34 = vpop.f32.mrb[151].mxu0  ;;  %v9674_v62 = vld [vmem:[%s10077_s25 + $0x80] sm:$0xff]   ;;  %v3052_v29 = vshrl.u32 %v9671_v46, 16 }
 0x214   : > { %v8772_v3 = vpop.f32.mrb[151].mxu1  ;;  %v3578_v17 = vshll.u32 %v9674_v62, 16  ;;  %v9676_v34 = vld [vmem:[%s10077_s25 + $0x88] ss:$0 sps:$4 sm:$0x11]  }
 0x215   : > { %v10755_v50 = vadd.f32 %v2661_v56, %v2398_v48  ;;  %8880 = vmatmul.mubr.msk.bf16.gmra.mrb[0].mxu0 %vm469_vm2, %v3043_v1  ;;  %v3054_v48 = vor.u32 %v3052_v29, %v3050_v9  ;;  %v9675_v56 = vld [vmem:[%s10071_s20 + $0x88] ss:$0 sps:$4 sm:$0x11]   ;;  %v3848_v3 = vld [vmem:[%s9850_s13 + $0xc] sm:$0xf] }
 0x216   : > { %8950 = vmatmul.mubr.msk.bf16.gmra.mrb[0].mxu1 %vm469_vm2, %v3565_v45  ;;  %8883 = vmatprep.mubr.msk.bf16.mxu0 %vm9769_vm1, %v12419_v2  ;;  %v3580_v11 = vrot.slane %v3578_v17, 1 }
 0x217   : > { %8953 = vmatprep.mubr.msk.bf16.mxu1 %vm9769_vm1, %v12419_v2 }
 0x218   : > { %v2288_v35 = vpop.f32.mrb[152].mxu0 }
 0x219   : > { %v2399_v37 = vadd.f32 %v2288_v35, %v10471_v13  ;;  %v2666_v59 = vpop.f32.mrb[152].mxu1  ;;  %v8705_v1 = vpop.f32.mrb[153].mxu0  ;;  %v3574_v13 = vshrl.u32 %v9672_v43, 16  ;;  %v4369_v35 = vld [vmem:[%s9844_s10 + $0x8] sm:$0xf] }
 0x21a   : > { %v8775_v36 = vpop.f32.mrb[153].mxu1  ;;  %v2291_v58 = vpop.f32.mrb[154].mxu0  ;;  %v3059_v1 = vsel %vm1127_vm3, %v3054_v48, %v3058_v24 }
 0x21b   : > { %v10768_v51 = vadd.f32 %v2666_v59, %v2399_v37  ;;  %v2400_v19 = vadd.f32 %v2291_v58, %v10474_v28  ;;  %v2669_v52 = vpop.f32.mrb[154].mxu1  ;;  %v8706_v21 = vpop.f32.mrb[155].mxu0  ;;  %v3847_v28 = vld [vmem:[%s9850_s13 + $0x8] sm:$0xf]  ;;  %v3576_v43 = vor.u32 %v3574_v13, %v3572_v26 }
 0x21c   : > { %v8776_v46 = vpop.f32.mrb[155].mxu1  ;;  %v7827_v29 = vcombine.low %v3847_v28, %v3848_v3  ;;  %v10796_v3 = vld [vmem:[%s9850_s13 + $0x10] sm:$0xff]  }
 0x21d   : > { %v10771_v45 = vadd.f32 %v2669_v52, %v2400_v19  ;;  %8884 = vmatmul.mubr.msk.bf16.gmra.mrb[4].mxu0 %vm469_vm2, %v3051_v6  ;;  %v3060_v6 = vshrl.u32 %v10753_v14, 16  ;;  %v3582_v19 = vshrl.u32 %v9674_v62, 16  ;;  %v3586_v52 = vshll.u32 %v9676_v34, 16 }
 0x21e   : > { %8954 = vmatmul.mubr.msk.bf16.gmra.mrb[4].mxu1 %vm469_vm2, %v3573_v60  ;;  %8887 = vmatprep.mubr.msk.bf16.mxu0 %vm9769_vm1, %v12419_v2  ;;  %v3064_v60 = vshll.u32 %v9675_v56, 16  ;;  %v3581_v17 = vsel %vm1127_vm3, %v3576_v43, %v3580_v11  ;;  %v7863_v46 = vcombine.low %v4369_v35, %v4370_v4  ;;  %v3975_v14 = vshll.u32 %v7827_v29, 16  ;;  %v9680_v43 = vld [vmem:[%s9844_s10 + $0x10] sm:$0xff]  }
 0x21f   : > { %8957 = vmatprep.mubr.msk.bf16.mxu1 %vm9769_vm1, %v12419_v2  ;;  %v3584_v56 = vor.u32 %v3582_v19, %v3580_v11  ;;  %v3588_v34 = vrot.slane %v3586_v52, 1 }
 0x220   : > { %v2296_v5 = vpop.f32.mrb[156].mxu0  ;;  %v3066_v62 = vrot.slane %v3064_v60, 1 }
 0x221   : > { %v2401_v37 = vadd.f32 %v2296_v5, %v10486_v44  ;;  %v2674_v9 = vpop.f32.mrb[156].mxu1  ;;  %v8709_v59 = vpop.f32.mrb[157].mxu0  ;;  %v4497_v5 = vshll.u32 %v7863_v46, 16  ;;  %v3589_v11 = vsel %vm1127_vm3, %v3584_v56, %v3588_v34  ;;  %v7898_v34 = vld [vmem:[%s12416_s4 + $0x14] sm:$0x3] }
 0x222   : > { %v8779_v36 = vpop.f32.mrb[157].mxu1  ;;  %v2299_v58 = vpop.f32.mrb[158].mxu0  ;;  %v3973_v59 = vshrl.u32 %v7827_v29, 16  ;;  %v4502_v29 = vshll.u32 %v9680_v43, 16 }
 0x223   : > { %v10788_v26 = vadd.f32 %v2674_v9, %v2401_v37  ;;  %v2402_v21 = vadd.f32 %v2299_v58, %v10490_v57  ;;  %v2677_v13 = vpop.f32.mrb[158].mxu1  ;;  %v8710_v44 = vpop.f32.mrb[159].mxu0  ;;  %v3062_v57 = vor.u32 %v3060_v6, %v3058_v24  ;;  %v3980_v36 = vshll.u32 %v10796_v3, 16 }
 0x224   : > { %v8780_v48 = vpop.f32.mrb[159].mxu1  ;;  %v4495_v6 = vshrl.u32 %v7863_v46, 16  ;;  %v10818_v46 = vld [vmem:[%s9850_s13 + $0x18] sm:$0xff]  }
 0x225   : > { %v10792_v28 = vadd.f32 %v2677_v13, %v2402_v21  ;;  %8888 = vmatmul.mubr.msk.bf16.gmra.mrb[8].mxu0 %vm469_vm2, %v3059_v1  ;;  %v3977_v1 = vrot.slane %v3975_v14, 1  ;;  %v3067_v24 = vsel %vm1127_vm3, %v3062_v57, %v3066_v62  ;;  %v4499_v13 = vrot.slane %v4497_v5, 1  ;;  %v10821_v57 = vld [vmem:[%s9844_s10 + $0x18] sm:$0xff]  }
 0x226   : > { %8958 = vmatmul.mubr.msk.bf16.gmra.mrb[8].mxu1 %vm469_vm2, %v3581_v17  ;;  %8891 = vmatprep.mubr.msk.bf16.mxu0 %vm9769_vm1, %v12419_v2  ;;  %v3982_v14 = vrot.slane %v3980_v36, 1  ;;  %v4504_v62 = vrot.slane %v4502_v29, 1  ;;  %v3984_v36 = vshrl.u32 %v10796_v3, 16 }
 0x227   : > { %8961 = vmatprep.mubr.msk.bf16.mxu1 %vm9769_vm1, %v12419_v2  ;;  %v3978_v48 = vor.u32 %v3977_v1, %v3973_v59 }
 0x228   : > { %v2304_v35 = vpop.f32.mrb[160].mxu0 }
 0x229   : > { %v2403_v4 = vadd.f32 %v2304_v35, %v10506_v39  ;;  %v2682_v37 = vpop.f32.mrb[160].mxu1  ;;  %v8713_v9 = vpop.f32.mrb[161].mxu0 }
 0x22a   : > { %v8783_v58 = vpop.f32.mrb[161].mxu1  ;;  %v2307_v21 = vpop.f32.mrb[162].mxu0  ;;  %v7917_v9 = vld [vmem:[%s12416_s4 + $0x16] sm:$0x3] }
 0x22b   : > { %v10808_v60 = vadd.f32 %v2682_v37, %v2403_v4  ;;  %v2404_v19 = vadd.f32 %v2307_v21, %v10509_v42  ;;  %v2685_v39 = vpop.f32.mrb[162].mxu1  ;;  %v8714_v52 = vpop.f32.mrb[163].mxu0  ;;  %v4500_v42 = vor.u32 %v4499_v13, %v4495_v6  ;;  %v3983_v37 = vsel %vm1127_vm3, %v3978_v48, %v3982_v14 }
 0x22c   : > { %v8784_v44 = vpop.f32.mrb[163].mxu1  ;;  %v3988_v58 = vshll.u32 %v10818_v46, 16  ;;  %v4506_v21 = vshrl.u32 %v9680_v43, 16  ;;  %v4985_v52 = vsel %vm521_vm0, %v7898_v34, 0  ;;  %v5283_v29 = vsel %vm521_vm0, %v7917_v9, 0  ;;  %v10846_v43 = vld [vmem:[%s9850_s13 + $0x20] sm:$0xff]  }
 0x22d   : > { %v10811_v17 = vadd.f32 %v2685_v39, %v2404_v19  ;;  %8892 = vmatmul.mubr.msk.bf16.gmra.mrb[12].mxu0 %vm469_vm2, %v3067_v24  ;;  %v4510_v24 = vshll.u32 %v10821_v57, 16  ;;  %v4505_v39 = vsel %vm1127_vm3, %v4500_v42, %v4504_v62  ;;  %v10852_v42 = vld [vmem:[%s9844_s10 + $0x20] sm:$0xff]  }
 0x22e   : > { %8962 = vmatmul.mubr.msk.bf16.gmra.mrb[12].mxu1 %vm469_vm2, %v3589_v11  ;;  %8967 = vmatprep.mubr.msk.bf16.mxu0 %vm9769_vm1, %v12419_v2  ;;  %v3990_v44 = vrot.slane %v3988_v58, 1  ;;  %v4508_v48 = vor.u32 %v4506_v21, %v4504_v62  ;;  %v3996_v62 = vshll.u32 %v10846_v43, 16 }
 0x22f   : > { %9037 = vmatprep.mubr.msk.bf16.mxu1 %vm9769_vm1, %v12419_v2 }
 0x230   : > { %v2312_v56 = vpop.f32.mrb[164].mxu0 }
 0x231   : > { %v2405_v5 = vadd.f32 %v2312_v56, %v10531_v23  ;;  %v2690_v35 = vpop.f32.mrb[164].mxu1  ;;  %v8717_v4 = vpop.f32.mrb[165].mxu0  ;;  %v4512_v56 = vrot.slane %v4510_v24, 1  ;;  %v4514_v24 = vshrl.u32 %v10821_v57, 16 }
 0x232   : > { %v8787_v59 = vpop.f32.mrb[165].mxu1  ;;  %v2315_v1 = vpop.f32.mrb[166].mxu0 }
 0x233   : > { %v10836_v11 = vadd.f32 %v2690_v35, %v2405_v5  ;;  %v2406_v23 = vadd.f32 %v2315_v1, %v10537_v54  ;;  %v2693_v6 = vpop.f32.mrb[166].mxu1  ;;  %v8718_v19 = vpop.f32.mrb[167].mxu0  ;;  %v3986_v54 = vor.u32 %v3984_v36, %v3982_v14  ;;  %v3992_v14 = vshrl.u32 %v10818_v46, 16 }
 0x234   : > { %v8788_v13 = vpop.f32.mrb[167].mxu1  ;;  %v4513_v1 = vsel %vm1127_vm3, %v4508_v48, %v4512_v56 }
 0x235   : > { %v10842_v3 = vadd.f32 %v2693_v6, %v2406_v23  ;;  %8968 = vmatmul.mubr.msk.bf16.vlgmr.msra.gmra.mrb[16].mxu0 %vm469_vm2, %v3983_v37  ;;  %v3991_v59 = vsel %vm1127_vm3, %v3986_v54, %v3990_v44  ;;  %v4518_v23 = vshll.u32 %v10852_v42, 16  ;;  %v10875_v13 = vld [vmem:[%s9850_s13 + $0x28] sm:$0xff]  }
 0x236   : > { %9038 = vmatmul.mubr.msk.bf16.vlgmr.msra.gmra.mrb[16].mxu1 %vm469_vm2, %v4505_v39  ;;  %9106 = vmatpush3.bf16.msra.mxu0 %v4985_v52  ;;  %v3994_v39 = vor.u32 %v3992_v14, %v3990_v44  ;;  %v3998_v52 = vrot.slane %v3996_v62, 1  ;;  %v4000_v62 = vshrl.u32 %v10846_v43, 16 }
 0x237   : > { %9176 = vmatpush3.bf16.msra.mxu1 %v5283_v29  ;;  %8971 = vmatprep.mubr.msk.bf16.mxu0 %vm9769_vm1, %v12419_v2  ;;  %v4516_v29 = vor.u32 %v4514_v24, %v4512_v56  ;;  %v4520_v54 = vrot.slane %v4518_v23, 1  ;;  %v10896_v23 = vld [vmem:[%s9850_s13 + $0x30] sm:$0xff]  }
 0x238   : > { %v2320_v34 = vpop.f32.mrb[168].mxu0  ;;  %9041 = vmatprep.mubr.msk.bf16.mxu1 %vm9769_vm1, %v12419_v2  ;;  %9245 = vmatprep.subr.bf16.mxu0 %v12419_v2 }
 0x239   : > { %v2407_v5 = vadd.f32 %v2320_v34, %v10555_v32  ;;  %v2698_v35 = vpop.f32.mrb[168].mxu1  ;;  %v8721_v4 = vpop.f32.mrb[169].mxu0  ;;  %9315 = vmatprep.subr.bf16.mxu1 %v12419_v2 }
 0x23a   : > { %v8791_v37 = vpop.f32.mrb[169].mxu1  ;;  %v2323_v9 = vpop.f32.mrb[170].mxu0 }
 0x23b   : > { %v10863_v36 = vadd.f32 %v2698_v35, %v2407_v5  ;;  %v2408_v32 = vadd.f32 %v2323_v9, %v10559_v27  ;;  %v2701_v58 = vpop.f32.mrb[170].mxu1  ;;  %v8722_v21 = vpop.f32.mrb[171].mxu0  ;;  %v10878_v27 = vld [vmem:[%s9844_s10 + $0x28] sm:$0xff]   ;;  %v3999_v35 = vsel %vm1127_vm3, %v3994_v39, %v3998_v52  ;;  %v4004_v37 = vshll.u32 %v10875_v13, 16 }
 0x23c   : > { %v8792_v6 = vpop.f32.mrb[171].mxu1  ;;  %v4522_v9 = vshrl.u32 %v10852_v42, 16 }
 0x23d   : > { %v10868_v19 = vadd.f32 %v2701_v58, %v2408_v32  ;;  %8972 = vmatmul.mubr.msk.bf16.gmra.mrb[20].mxu0 %vm469_vm2, %v3991_v59  ;;  %v4526_v59 = vshll.u32 %v10878_v27, 16  ;;  %v4521_v58 = vsel %vm1127_vm3, %v4516_v29, %v4520_v54  ;;  %v4002_v6 = vor.u32 %v4000_v62, %v3998_v52  ;;  %v10904_v29 = vld [vmem:[%s9844_s10 + $0x30] sm:$0xff]  }
 0x23e   : > { %9042 = vmatmul.mubr.msk.bf16.gmra.mrb[20].mxu1 %vm469_vm2, %v4513_v1  ;;  %8975 = vmatprep.mubr.msk.bf16.mxu0 %vm9769_vm1, %v12419_v2  ;;  %v4006_v39 = vrot.slane %v4004_v37, 1 }
 0x23f   : > { %9045 = vmatprep.mubr.msk.bf16.mxu1 %vm9769_vm1, %v12419_v2 }
 0x240   : > { %v2328_v48 = vpop.f32.mrb[172].mxu0  ;;  %v4007_v52 = vsel %vm1127_vm3, %v4002_v6, %v4006_v39 }
 0x241   : > { %v2409_v34 = vadd.f32 %v2328_v48, %v10572_v8  ;;  %v2706_v5 = vpop.f32.mrb[172].mxu1  ;;  %v8725_v44 = vpop.f32.mrb[173].mxu0  ;;  %v4524_v48 = vor.u32 %v4522_v9, %v4520_v54 }
 0x242   : > { %v8795_v4 = vpop.f32.mrb[173].mxu1  ;;  %v2331_v14 = vpop.f32.mrb[174].mxu0 }
 0x243   : > { %v10888_v56 = vadd.f32 %v2706_v5, %v2409_v34  ;;  %v2410_v8 = vadd.f32 %v2331_v14, %v10576_v47  ;;  %v2709_v1 = vpop.f32.mrb[174].mxu1  ;;  %v8726_v32 = vpop.f32.mrb[175].mxu0  ;;  %v4528_v47 = vrot.slane %v4526_v59, 1  ;;  %v4008_v4 = vshrl.u32 %v10875_v13, 16 }
 0x244   : > { %v8796_v21 = vpop.f32.mrb[175].mxu1  ;;  %v4012_v14 = vshll.u32 %v10896_v23, 16  ;;  %v4530_v59 = vshrl.u32 %v10878_v27, 16  ;;  %v4534_v32 = vshll.u32 %v10904_v29, 16 }
 0x245   : > { %v10892_v24 = vadd.f32 %v2709_v1, %v2410_v8  ;;  %8976 = vmatmul.mubr.msk.bf16.gmra.mrb[24].mxu0 %vm469_vm2, %v3999_v35  ;;  %v4529_v54 = vsel %vm1127_vm3, %v4524_v48, %v4528_v47  ;;  %v10923_v48 = vld [vmem:[%s9850_s13 + $0x38] sm:$0xff]  }
 0x246   : > { %9046 = vmatmul.mubr.msk.bf16.gmra.mrb[24].mxu1 %vm469_vm2, %v4521_v58  ;;  %8979 = vmatprep.mubr.msk.bf16.mxu0 %vm9769_vm1, %v12419_v2  ;;  %v4014_v6 = vrot.slane %v4012_v14, 1 }
 0x247   : > { %9049 = vmatprep.mubr.msk.bf16.mxu1 %vm9769_vm1, %v12419_v2 }
 0x248   : > { %v2336_v34 = vpop.f32.mrb[176].mxu0 }
 0x249   : > { %v2411_v5 = vadd.f32 %v2336_v34, %v10589_v10  ;;  %v2714_v44 = vpop.f32.mrb[176].mxu1  ;;  %v8729_v35 = vpop.f32.mrb[177].mxu0  ;;  %v4010_v34 = vor.u32 %v4008_v4, %v4006_v39 }
 0x24a   : > { %v8799_v8 = vpop.f32.mrb[177].mxu1  ;;  %v2339_v1 = vpop.f32.mrb[178].mxu0 }
 0x24b   : > { %v10911_v62 = vadd.f32 %v2714_v44, %v2411_v5  ;;  %v2412_v37 = vadd.f32 %v2339_v1, %v10592_v53  ;;  %v2717_v9 = vpop.f32.mrb[178].mxu1  ;;  %v8730_v10 = vpop.f32.mrb[179].mxu0  ;;  %v10926_v53 = vld [vmem:[%s9844_s10 + $0x38] sm:$0xff]   ;;  %v4532_v5 = vor.u32 %v4530_v59, %v4528_v47  ;;  %v4536_v44 = vrot.slane %v4534_v32, 1 }
 0x24c   : > { %v8800_v58 = vpop.f32.mrb[179].mxu1  ;;  %v4015_v4 = vsel %vm1127_vm3, %v4010_v34, %v4014_v6  ;;  %v4542_v10 = vshll.u32 %v10926_v53, 16 }
 0x24d   : > { %v10916_v21 = vadd.f32 %v2717_v9, %v2412_v37  ;;  %8980 = vmatmul.mubr.msk.bf16.gmra.mrb[28].mxu0 %vm469_vm2, %v4007_v52  ;;  %v4020_v37 = vshll.u32 %v10923_v48, 16  ;;  %v4538_v9 = vshrl.u32 %v10904_v29, 16  ;;  %v4537_v58 = vsel %vm1127_vm3, %v4532_v5, %v4536_v44  ;;  %v10952_v5 = vld [vmem:[%s9844_s10 + $0x40] sm:$0xff]  }
 0x24e   : > { %9050 = vmatmul.mubr.msk.bf16.gmra.mrb[28].mxu1 %vm469_vm2, %v4529_v54  ;;  %8983 = vmatprep.mubr.msk.bf16.mxu0 %vm9769_vm1, %v12419_v2  ;;  %v4016_v54 = vshrl.u32 %v10896_v23, 16 }
 0x24f   : > { %9053 = vmatprep.mubr.msk.bf16.mxu1 %vm9769_vm1, %v12419_v2 }
 0x250   : > { %v2344_v35 = vpop.f32.mrb[180].mxu0 }
 0x251   : > { %v2413_v8 = vadd.f32 %v2344_v35, %v10604_v63  ;;  %v2722_v1 = vpop.f32.mrb[180].mxu1  ;;  %v8733_v39 = vpop.f32.mrb[181].mxu0 }
 0x252   : > { %v8803_v14 = vpop.f32.mrb[181].mxu1  ;;  %v2347_v52 = vpop.f32.mrb[182].mxu0  ;;  %v10944_v39 = vld [vmem:[%s9850_s13 + $0x40] sm:$0xff]  }
 0x253   : > { %v10936_v47 = vadd.f32 %v2722_v1, %v2413_v8  ;;  %v2414_v63 = vadd.f32 %v2347_v52, %v10608_v15  ;;  %v2725_v59 = vpop.f32.mrb[182].mxu1  ;;  %v8734_v32 = vpop.f32.mrb[183].mxu0  ;;  %v4018_v8 = vor.u32 %v4016_v54, %v4014_v6  ;;  %v4022_v1 = vrot.slane %v4020_v37, 1 }
 0x254   : > { %v8804_v34 = vpop.f32.mrb[183].mxu1  ;;  %v4540_v14 = vor.u32 %v4538_v9, %v4536_v44  ;;  %v4544_v15 = vrot.slane %v4542_v10, 1  ;;  %v4024_v32 = vshrl.u32 %v10923_v48, 16  ;;  %v4546_v10 = vshrl.u32 %v10926_v53, 16 }
 0x255   : > { %v10940_v35 = vadd.f32 %v2725_v59, %v2414_v63  ;;  %8984 = vmatmul.mubr.msk.bf16.gmra.mrb[32].mxu0 %vm469_vm2, %v4015_v4  ;;  %v4023_v6 = vsel %vm1127_vm3, %v4018_v8, %v4022_v1 }
 0x256   : > { %9054 = vmatmul.mubr.msk.bf16.gmra.mrb[32].mxu1 %vm469_vm2, %v4537_v58  ;;  %8987 = vmatprep.mubr.msk.bf16.mxu0 %vm9769_vm1, %v12419_v2  ;;  %v4028_v58 = vshll.u32 %v10944_v39, 16  ;;  %v4545_v44 = vsel %vm1127_vm3, %v4540_v14, %v4544_v15  ;;  %v12440_v14 = vmov 0.0  }
 0x257   : > { %12437 = vst [vmem:[#allocation2_spill] sm:$0xff] %v10940_v35  ;;  %9057 = vmatprep.mubr.msk.bf16.mxu1 %vm9769_vm1, %v12419_v2 }
 0x258   : > { %v2352_v52 = vpop.f32.mrb[184].mxu0  ;;  %v4030_v8 = vrot.slane %v4028_v58, 1 }
 0x259   : > { %v2415_v63 = vadd.f32 %v2352_v52, %v10621_v12  ;;  %v2730_v4 = vpop.f32.mrb[184].mxu1  ;;  %v8737_v59 = vpop.f32.mrb[185].mxu0  ;;  %v4550_v52 = vshll.u32 %v10952_v5, 16 }
 0x25a   : > { %v8807_v34 = vpop.f32.mrb[185].mxu1  ;;  %v2355_v35 = vpop.f32.mrb[186].mxu0 }
 0x25b   : > { %v10959_v54 = vadd.f32 %v2730_v4, %v2415_v63  ;;  %v2416_v37 = vadd.f32 %v2355_v35, %v10624_v22  ;;  %v2733_v9 = vpop.f32.mrb[186].mxu1  ;;  %v8738_v12 = vpop.f32.mrb[187].mxu0  ;;  %v4026_v34 = vor.u32 %v4024_v32, %v4022_v1  ;;  %v10971_v63 = vld [vmem:[%s9850_s13 + $0x48] sm:$0xff]   ;;  %v4548_v35 = vor.u32 %v4546_v10, %v4544_v15 }
 0x25c   : > { %v8808_v59 = vpop.f32.mrb[187].mxu1  ;;  %12441 = vst [vmem:[#allocation5_spill] sm:$0xff] %v10971_v63  ;;  %v10974_v22 = vld [vmem:[%s9844_s10 + $0x48] sm:$0xff]   ;;  %v4552_v4 = vrot.slane %v4550_v52, 1  ;;  %v4032_v12 = vshrl.u32 %v10944_v39, 16 }
 0x25d   : > { %12438 = vst [vmem:[#allocation3_spill] sm:$0xff] %v10959_v54  ;;  %v10964_v2 = vadd.f32 %v2733_v9, %v2416_v37  ;;  %8988 = vmatmul.mubr.msk.bf16.gmra.mrb[36].mxu0 %vm469_vm2, %v4023_v6  ;;  %v4031_v32 = vsel %vm1127_vm3, %v4026_v34, %v4030_v8  ;;  %v4036_v59 = vshll.u32 %v10971_v63, 16  ;;  %v4558_v54 = vshll.u32 %v10974_v22, 16 }
 0x25e   : > { %9058 = vmatmul.mubr.msk.bf16.gmra.mrb[36].mxu1 %vm469_vm2, %v4545_v44  ;;  %8991 = vmatprep.mubr.msk.bf16.mxu0 %vm9769_vm1, %v12440_v14 }
 0x25f   : > { %12439 = vst [vmem:[#allocation4_spill] sm:$0xff] %v10964_v2  ;;  %9061 = vmatprep.mubr.msk.bf16.mxu1 %vm9769_vm1, %v12440_v14  ;;  %v4554_v2 = vshrl.u32 %v10952_v5, 16 }
 0x260   : > { %v2360_v37 = vpop.f32.mrb[188].mxu0 }
 0x261   : > { %v2417_v9 = vadd.f32 %v2360_v37, %v10636_v20  ;;  %v2738_v6 = vpop.f32.mrb[188].mxu1  ;;  %v8741_v1 = vpop.f32.mrb[189].mxu0  ;;  %v4553_v37 = vsel %vm1127_vm3, %v4548_v35, %v4552_v4  ;;  %v11000_v35 = vld [vmem:[%s9844_s10 + $0x50] sm:$0xff]  }
 0x262   : > { %v8811_v58 = vpop.f32.mrb[189].mxu1  ;;  %v2363_v44 = vpop.f32.mrb[190].mxu0 }
 0x263   : > { %v10984_v15 = vadd.f32 %v2738_v6, %v2417_v9  ;;  %v2418_v20 = vadd.f32 %v2363_v44, %v10640_v40  ;;  %v2741_v10 = vpop.f32.mrb[190].mxu1  ;;  %v8742_v52 = vpop.f32.mrb[191].mxu0  ;;  %v10992_v58 = vld [vmem:[%s9850_s13 + $0x50] sm:$0xff]   ;;  %v4034_v9 = vor.u32 %v4032_v12, %v4030_v8  ;;  %v4038_v6 = vrot.slane %v4036_v59, 1 }
 0x264   : > { %v8812_v34 = vpop.f32.mrb[191].mxu1  ;;  %v4560_v40 = vrot.slane %v4558_v54, 1  ;;  %v4040_v52 = vshrl.u32 %v10971_v63, 16  ;;  %v4562_v59 = vshrl.u32 %v10974_v22, 16 }
 0x265   : > { %12442 = vst [vmem:[#allocation6_spill] sm:$0xff] %v10984_v15  ;;  %v10988_v1 = vadd.f32 %v2741_v10, %v2418_v20  ;;  %8992 = vmatmul.mubr.msk.bf16.gmra.mrb[40].mxu0 %vm469_vm2, %v4031_v32  ;;  %v4556_v15 = vor.u32 %v4554_v2, %v4552_v4  ;;  %v4039_v2 = vsel %vm1127_vm3, %v4034_v9, %v4038_v6 }
 0x266   : > { %9062 = vmatmul.mubr.msk.bf16.gmra.mrb[40].mxu1 %vm469_vm2, %v4553_v37  ;;  %8995 = vmatprep.mubr.msk.bf16.mxu0 %vm9769_vm1, %v12440_v14  ;;  %v4044_v37 = vshll.u32 %v10992_v58, 16 }
 0x267   : > { %12443 = vst [vmem:[#allocation7_spill] sm:$0xff] %v10988_v1  ;;  %9065 = vmatprep.mubr.msk.bf16.mxu1 %vm9769_vm1, %v12440_v14  ;;  %v4561_v54 = vsel %vm1127_vm3, %v4556_v15, %v4560_v40  ;;  %v11019_v15 = vld [vmem:[%s9850_s13 + $0x58] sm:$0xff]  }
 0x268   : > { %v2368_v44 = vpop.f32.mrb[192].mxu0  ;;  %v4046_v9 = vrot.slane %v4044_v37, 1  ;;  %12445 = vst [vmem:[#allocation9_spill] sm:$0xff] %v11019_v15 }
 0x269   : > { %v2419_v20 = vadd.f32 %v2368_v44, %v10653_v61  ;;  %v2746_v32 = vpop.f32.mrb[192].mxu1  ;;  %v8745_v10 = vpop.f32.mrb[193].mxu0  ;;  %v4566_v44 = vshll.u32 %v11000_v35, 16 }
 0x26a   : > { %v8815_v34 = vpop.f32.mrb[193].mxu1  ;;  %v2371_v1 = vpop.f32.mrb[194].mxu0 }
 0x26b   : > { %v11007_v8 = vadd.f32 %v2746_v32, %v2419_v20  ;;  %v2420_v4 = vadd.f32 %v2371_v1, %v10656_v16  ;;  %v2749_v12 = vpop.f32.mrb[194].mxu1  ;;  %v8746_v61 = vpop.f32.mrb[195].mxu0  ;;  %v4042_v34 = vor.u32 %v4040_v52, %v4038_v6  ;;  %v11022_v16 = vld [vmem:[%s9844_s10 + $0x58] sm:$0xff]   ;;  %v4564_v1 = vor.u32 %v4562_v59, %v4560_v40 }
 0x26c   : > { %v8816_v10 = vpop.f32.mrb[195].mxu1  ;;  %v4568_v20 = vrot.slane %v4566_v44, 1  ;;  %v4052_v61 = vshll.u32 %v11019_v15, 16 }
 0x26d   : > { %v11012_v63 = vadd.f32 %v2749_v12, %v2420_v4  ;;  %8996 = vmatmul.mubr.msk.bf16.gmra.mrb[44].mxu0 %vm469_vm2, %v4039_v2  ;;  %v4047_v52 = vsel %vm1127_vm3, %v4042_v34, %v4046_v9  ;;  %v4048_v12 = vshrl.u32 %v10992_v58, 16  ;;  %v4570_v10 = vshrl.u32 %v11000_v35, 16 }
 0x26e   : > { %9066 = vmatmul.mubr.msk.bf16.gmra.mrb[44].mxu1 %vm469_vm2, %v4561_v54  ;;  %8999 = vmatprep.mubr.msk.bf16.mxu0 %vm9769_vm1, %v12440_v14 }
 0x26f   : > { %12444 = vst [vmem:[#allocation8_spill] sm:$0xff] %v11012_v63  ;;  %9069 = vmatprep.mubr.msk.bf16.mxu1 %vm9769_vm1, %v12440_v14  ;;  %v4574_v63 = vshll.u32 %v11022_v16, 16 }
 0x270   : > { %v2376_v32 = vpop.f32.mrb[196].mxu0 }
 0x271   : > { %v2421_v4 = vadd.f32 %v2376_v32, %v10668_v7  ;;  %v2754_v2 = vpop.f32.mrb[196].mxu1  ;;  %v8749_v6 = vpop.f32.mrb[197].mxu0  ;;  %v4569_v32 = vsel %vm1127_vm3, %v4564_v1, %v4568_v20  ;;  %v11048_v1 = vld [vmem:[%s9844_s10 + $0x60] sm:$0xff]  }
 0x272   : > { %v8819_v37 = vpop.f32.mrb[197].mxu1  ;;  %v2379_v54 = vpop.f32.mrb[198].mxu0 }
 0x273   : > { %v11032_v40 = vadd.f32 %v2754_v2, %v2421_v4  ;;  %v2422_v7 = vadd.f32 %v2379_v54, %v10672_v18  ;;  %v2757_v59 = vpop.f32.mrb[198].mxu1  ;;  %v8750_v44 = vpop.f32.mrb[199].mxu0  ;;  %v11040_v37 = vld [vmem:[%s9850_s13 + $0x60] sm:$0xff]   ;;  %v4050_v4 = vor.u32 %v4048_v12, %v4046_v9  ;;  %v4054_v2 = vrot.slane %v4052_v61, 1 }
 0x274   : > { %v8820_v34 = vpop.f32.mrb[199].mxu1  ;;  %v4576_v18 = vrot.slane %v4574_v63, 1  ;;  %v4056_v44 = vshrl.u32 %v11019_v15, 16 }
 0x275   : > { %12446 = vst [vmem:[#allocation10_spill] sm:$0xff] %v11032_v40  ;;  %v11036_v6 = vadd.f32 %v2757_v59, %v2422_v7  ;;  %9000 = vmatmul.mubr.msk.bf16.gmra.mrb[48].mxu0 %vm469_vm2, %v4047_v52  ;;  %v4572_v40 = vor.u32 %v4570_v10, %v4568_v20  ;;  %v4055_v9 = vsel %vm1127_vm3, %v4050_v4, %v4054_v2  ;;  %v4578_v10 = vshrl.u32 %v11022_v16, 16 }
 0x276   : > { %9070 = vmatmul.mubr.msk.bf16.gmra.mrb[48].mxu1 %vm469_vm2, %v4569_v32  ;;  %9003 = vmatprep.mubr.msk.bf16.mxu0 %vm9769_vm1, %v12440_v14  ;;  %v4060_v32 = vshll.u32 %v11040_v37, 16 }
 0x277   : > { %12447 = vst [vmem:[#allocation11_spill] sm:$0xff] %v11036_v6  ;;  %9073 = vmatprep.mubr.msk.bf16.mxu1 %vm9769_vm1, %v12440_v14  ;;  %v4577_v63 = vsel %vm1127_vm3, %v4572_v40, %v4576_v18  ;;  %v11067_v40 = vld [vmem:[%s9850_s13 + $0x68] sm:$0xff]  }
 0x278   : > { %v2384_v54 = vpop.f32.mrb[200].mxu0  ;;  %v4062_v4 = vrot.slane %v4060_v32, 1  ;;  %12449 = vst [vmem:[#allocation13_spill] sm:$0xff] %v11067_v40 }
 0x279   : > { %v2423_v7 = vadd.f32 %v2384_v54, %v10685_v33  ;;  %v2762_v52 = vpop.f32.mrb[200].mxu1  ;;  %v8753_v59 = vpop.f32.mrb[201].mxu0  ;;  %v4582_v54 = vshll.u32 %v11048_v1, 16 }
 0x27a   : > { %v8823_v34 = vpop.f32.mrb[201].mxu1  ;;  %v2387_v6 = vpop.f32.mrb[202].mxu0 }
 0x27b   : > { %v11055_v20 = vadd.f32 %v2762_v52, %v2423_v7  ;;  %v2424_v12 = vadd.f32 %v2387_v6, %v10688_v49  ;;  %v2765_v61 = vpop.f32.mrb[202].mxu1  ;;  %v8754_v33 = vpop.f32.mrb[203].mxu0  ;;  %v4058_v34 = vor.u32 %v4056_v44, %v4054_v2  ;;  %v11070_v49 = vld [vmem:[%s9844_s10 + $0x68] sm:$0xff]   ;;  %v4580_v6 = vor.u32 %v4578_v10, %v4576_v18 }
 0x27c   : > { %v8824_v59 = vpop.f32.mrb[203].mxu1  ;;  %v4584_v7 = vrot.slane %v4582_v54, 1  ;;  %v4068_v33 = vshll.u32 %v11067_v40, 16 }
 0x27d   : > { %v11060_v15 = vadd.f32 %v2765_v61, %v2424_v12  ;;  %9004 = vmatmul.mubr.msk.bf16.gmra.mrb[52].mxu0 %vm469_vm2, %v4055_v9  ;;  %v4063_v44 = vsel %vm1127_vm3, %v4058_v34, %v4062_v4  ;;  %v4064_v61 = vshrl.u32 %v11040_v37, 16  ;;  %v4586_v59 = vshrl.u32 %v11048_v1, 16 }
 0x27e   : > { %9074 = vmatmul.mubr.msk.bf16.gmra.mrb[52].mxu1 %vm469_vm2, %v4577_v63  ;;  %9007 = vmatprep.mubr.msk.bf16.mxu0 %vm9769_vm1, %v12440_v14 }
 0x27f   : > { %12448 = vst [vmem:[#allocation12_spill] sm:$0xff] %v11060_v15  ;;  %9077 = vmatprep.mubr.msk.bf16.mxu1 %vm9769_vm1, %v12440_v14  ;;  %v4590_v15 = vshll.u32 %v11070_v49, 16 }
 0x280   : > { %v3156_v52 = vpop.f32.mrb[204].mxu0 }
 0x281   : > { %v3291_v12 = vadd.f32 %v3156_v52, %v10700_v41  ;;  %v3678_v9 = vpop.f32.mrb[204].mxu1  ;;  %v8829_v2 = vpop.f32.mrb[205].mxu0  ;;  %v4585_v52 = vsel %vm1127_vm3, %v4580_v6, %v4584_v7  ;;  %v11096_v6 = vld [vmem:[%s9844_s10 + $0x70] sm:$0xff]  }
 0x282   : > { %v8899_v32 = vpop.f32.mrb[205].mxu1  ;;  %v3159_v63 = vpop.f32.mrb[206].mxu0 }
 0x283   : > { %v11080_v18 = vadd.f32 %v3678_v9, %v3291_v12  ;;  %v3292_v41 = vadd.f32 %v3159_v63, %v10704_v0  ;;  %v3681_v10 = vpop.f32.mrb[206].mxu1  ;;  %v8830_v54 = vpop.f32.mrb[207].mxu0  ;;  %v11088_v32 = vld [vmem:[%s9850_s13 + $0x70] sm:$0xff]   ;;  %v4066_v12 = vor.u32 %v4064_v61, %v4062_v4  ;;  %v4070_v9 = vrot.slane %v4068_v33, 1 }
 0x284   : > { %v8900_v34 = vpop.f32.mrb[207].mxu1  ;;  %v4592_v0 = vrot.slane %v4590_v15, 1  ;;  %v4072_v54 = vshrl.u32 %v11067_v40, 16 }
 0x285   : > { %12450 = vst [vmem:[#allocation14_spill] sm:$0xff] %v11080_v18  ;;  %v11084_v2 = vadd.f32 %v3681_v10, %v3292_v41  ;;  %9008 = vmatmul.mubr.msk.bf16.gmra.mrb[56].mxu0 %vm469_vm2, %v4063_v44  ;;  %v4588_v18 = vor.u32 %v4586_v59, %v4584_v7  ;;  %v4071_v4 = vsel %vm1127_vm3, %v4066_v12, %v4070_v9  ;;  %v4594_v59 = vshrl.u32 %v11070_v49, 16 }
 0x286   : > { %9078 = vmatmul.mubr.msk.bf16.gmra.mrb[56].mxu1 %vm469_vm2, %v4585_v52  ;;  %9011 = vmatprep.mubr.msk.bf16.mxu0 %vm9769_vm1, %v12440_v14  ;;  %v4076_v52 = vshll.u32 %v11088_v32, 16 }
 0x287   : > { %12451 = vst [vmem:[#allocation15_spill] sm:$0xff] %v11084_v2  ;;  %9081 = vmatprep.mubr.msk.bf16.mxu1 %vm9769_vm1, %v12440_v14  ;;  %v4593_v15 = vsel %vm1127_vm3, %v4588_v18, %v4592_v0  ;;  %v11115_v18 = vld [vmem:[%s9850_s13 + $0x78] sm:$0xff]  }
 0x288   : > { %v3164_v63 = vpop.f32.mrb[208].mxu0  ;;  %v4078_v12 = vrot.slane %v4076_v52, 1  ;;  %12453 = vst [vmem:[#allocation17_spill] sm:$0xff] %v11115_v18 }
 0x289   : > { %v3293_v41 = vadd.f32 %v3164_v63, %v10717_v31  ;;  %v3686_v44 = vpop.f32.mrb[208].mxu1  ;;  %v8833_v10 = vpop.f32.mrb[209].mxu0  ;;  %v4598_v63 = vshll.u32 %v11096_v6, 16 }
 0x28a   : > { %v8903_v34 = vpop.f32.mrb[209].mxu1  ;;  %v3167_v2 = vpop.f32.mrb[210].mxu0 }
 0x28b   : > { %v11103_v7 = vadd.f32 %v3686_v44, %v3293_v41  ;;  %v3294_v61 = vadd.f32 %v3167_v2, %v10720_v25  ;;  %v3689_v33 = vpop.f32.mrb[210].mxu1  ;;  %v8834_v31 = vpop.f32.mrb[211].mxu0  ;;  %v4074_v34 = vor.u32 %v4072_v54, %v4070_v9  ;;  %v11118_v25 = vld [vmem:[%s9844_s10 + $0x78] sm:$0xff]   ;;  %v4596_v2 = vor.u32 %v4594_v59, %v4592_v0 }
 0x28c   : > { %v8904_v10 = vpop.f32.mrb[211].mxu1  ;;  %v4600_v41 = vrot.slane %v4598_v63, 1  ;;  %v4084_v31 = vshll.u32 %v11115_v18, 16 }
 0x28d   : > { %v11108_v40 = vadd.f32 %v3689_v33, %v3294_v61  ;;  %9012 = vmatmul.mubr.msk.bf16.gmra.mrb[60].mxu0 %vm469_vm2, %v4071_v4  ;;  %v4079_v54 = vsel %vm1127_vm3, %v4074_v34, %v4078_v12  ;;  %v4080_v33 = vshrl.u32 %v11088_v32, 16  ;;  %v4602_v10 = vshrl.u32 %v11096_v6, 16 }
 0x28e   : > { %9082 = vmatmul.mubr.msk.bf16.gmra.mrb[60].mxu1 %vm469_vm2, %v4593_v15  ;;  %9015 = vmatprep.mubr.msk.bf16.mxu0 %vm9769_vm1, %v12440_v14 }
 0x28f   : > { %12452 = vst [vmem:[#allocation16_spill] sm:$0xff] %v11108_v40  ;;  %9085 = vmatprep.mubr.msk.bf16.mxu1 %vm9769_vm1, %v12440_v14  ;;  %v4606_v40 = vshll.u32 %v11118_v25, 16 }
 0x290   : > { %v3172_v44 = vpop.f32.mrb[212].mxu0 }
 0x291   : > { %v3295_v61 = vadd.f32 %v3172_v44, %v10732_v30  ;;  %v3694_v4 = vpop.f32.mrb[212].mxu1  ;;  %v8837_v9 = vpop.f32.mrb[213].mxu0  ;;  %v4601_v44 = vsel %vm1127_vm3, %v4596_v2, %v4600_v41  ;;  %v11144_v2 = vld [vmem:[%s9844_s10 + $0x80] sm:$0xff]  }
 0x292   : > { %v8907_v52 = vpop.f32.mrb[213].mxu1  ;;  %v3175_v15 = vpop.f32.mrb[214].mxu0  ;;  %12457 = vst [vmem:[#allocation21_spill] sm:$0xff] %v11144_v2 }
 0x293   : > { %v11128_v0 = vadd.f32 %v3694_v4, %v3295_v61  ;;  %v3296_v30 = vadd.f32 %v3175_v15, %v10736_v55  ;;  %v3697_v59 = vpop.f32.mrb[214].mxu1  ;;  %v8838_v63 = vpop.f32.mrb[215].mxu0  ;;  %v11136_v52 = vld [vmem:[%s9850_s13 + $0x80] sm:$0xff]   ;;  %v4082_v61 = vor.u32 %v4080_v33, %v4078_v12  ;;  %v4086_v4 = vrot.slane %v4084_v31, 1 }
 0x294   : > { %v8908_v34 = vpop.f32.mrb[215].mxu1  ;;  %12456 = vst [vmem:[#allocation20_spill] sm:$0xff] %v11136_v52  ;;  %v4608_v55 = vrot.slane %v4606_v40, 1  ;;  %v4088_v63 = vshrl.u32 %v11115_v18, 16 }
 0x295   : > { %12454 = vst [vmem:[#allocation18_spill] sm:$0xff] %v11128_v0  ;;  %v11132_v9 = vadd.f32 %v3697_v59, %v3296_v30  ;;  %9016 = vmatmul.mubr.msk.bf16.gmra.mrb[64].mxu0 %vm469_vm2, %v4079_v54  ;;  %v4604_v0 = vor.u32 %v4602_v10, %v4600_v41  ;;  %v4087_v12 = vsel %vm1127_vm3, %v4082_v61, %v4086_v4  ;;  %v4610_v10 = vshrl.u32 %v11118_v25, 16 }
 0x296   : > { %9086 = vmatmul.mubr.msk.bf16.gmra.mrb[64].mxu1 %vm469_vm2, %v4601_v44  ;;  %9019 = vmatprep.mubr.msk.bf16.mxu0 %vm9769_vm1, %v12440_v14  ;;  %v4092_v44 = vshll.u32 %v11136_v52, 16 }
 0x297   : > { %12455 = vst [vmem:[#allocation19_spill] sm:$0xff] %v11132_v9  ;;  %9089 = vmatprep.mubr.msk.bf16.mxu1 %vm9769_vm1, %v12440_v14  ;;  %v4609_v40 = vsel %vm1127_vm3, %v4604_v0, %v4608_v55  ;;  %v11163_v0 = vld [vmem:[%s9850_s13 + $0x88] sm:$0xff]  }
 0x298   : > { %v3180_v15 = vpop.f32.mrb[216].mxu0  ;;  %v4094_v61 = vrot.slane %v4092_v44, 1 }
 0x299   : > { %v3297_v30 = vadd.f32 %v3180_v15, %v10749_v38  ;;  %v3702_v54 = vpop.f32.mrb[216].mxu1  ;;  %v8841_v59 = vpop.f32.mrb[217].mxu0  ;;  %v4614_v15 = vshll.u32 %v11144_v2, 16 }
 0x29a   : > { %v8911_v34 = vpop.f32.mrb[217].mxu1  ;;  %v3183_v9 = vpop.f32.mrb[218].mxu0 }
 0x29b   : > { %v11151_v41 = vadd.f32 %v3702_v54, %v3297_v30  ;;  %v3298_v33 = vadd.f32 %v3183_v9, %v10755_v50  ;;  %v3705_v31 = vpop.f32.mrb[218].mxu1  ;;  %v8842_v38 = vpop.f32.mrb[219].mxu0  ;;  %v4090_v34 = vor.u32 %v4088_v63, %v4086_v4  ;;  %v11166_v50 = vld [vmem:[%s9844_s10 + $0x88] sm:$0xff]   ;;  %v4612_v9 = vor.u32 %v4610_v10, %v4608_v55 }
 0x29c   : > { %v8912_v59 = vpop.f32.mrb[219].mxu1  ;;  %v4616_v30 = vrot.slane %v4614_v15, 1  ;;  %v4100_v38 = vshll.u32 %v11163_v0, 16 }
 0x29d   : > { %v11156_v18 = vadd.f32 %v3705_v31, %v3298_v33  ;;  %9020 = vmatmul.mubr.msk.bf16.gmra.mrb[68].mxu0 %vm469_vm2, %v4087_v12  ;;  %v4095_v63 = vsel %vm1127_vm3, %v4090_v34, %v4094_v61  ;;  %v4096_v31 = vshrl.u32 %v11136_v52, 16  ;;  %v4618_v59 = vshrl.u32 %v11144_v2, 16  ;;  %v11187_v52 = vld [vmem:[%s9850_s13 + $0x90] ss:$0 sps:$4 sm:$0x11]  }
 0x29e   : > { %9090 = vmatmul.mubr.msk.bf16.gmra.mrb[68].mxu1 %vm469_vm2, %v4609_v40  ;;  %9023 = vmatprep.mubr.msk.bf16.mxu0 %vm9769_vm1, %v12440_v14  ;;  %v4617_v15 = vsel %vm1127_vm3, %v4612_v9, %v4616_v30  ;;  %v4102_v2 = vrot.slane %v4100_v38, 1  ;;  %12459 = vst [vmem:[#allocation23_spill] sm:$0xff] %v11187_v52  ;;  %v11192_v9 = vld [vmem:[%s9844_s10 + $0x90] ss:$0 sps:$4 sm:$0x11]  }
 0x29f   : > { %12458 = vst [vmem:[#allocation22_spill] sm:$0xff] %v11156_v18  ;;  %9093 = vmatprep.mubr.msk.bf16.mxu1 %vm9769_vm1, %v12440_v14  ;;  %v4622_v18 = vshll.u32 %v11166_v50, 16  ;;  %12460 = vst [vmem:[#allocation24_spill] sm:$0xff] %v11192_v9 }
 0x2a0   : > { %v3188_v54 = vpop.f32.mrb[220].mxu0 }
 0x2a1   : > { %v3299_v33 = vadd.f32 %v3188_v54, %v10768_v51  ;;  %v3710_v12 = vpop.f32.mrb[220].mxu1  ;;  %v8845_v4 = vpop.f32.mrb[221].mxu0 }
 0x2a2   : > { %v8915_v44 = vpop.f32.mrb[221].mxu1  ;;  %v3191_v40 = vpop.f32.mrb[222].mxu0 }
 0x2a3   : > { %v3300_v55 = vadd.f32 %v3191_v40, %v10771_v45  ;;  %v3713_v10 = vpop.f32.mrb[222].mxu1  ;;  %v8846_v51 = vpop.f32.mrb[223].mxu0  ;;  %v11178_v54 = vadd.f32 %v3710_v12, %v3299_v33  ;;  %v4098_v44 = vor.u32 %v4096_v31, %v4094_v61  ;;  %v4620_v45 = vor.u32 %v4618_v59, %v4616_v30 }
 0x2a4   : > { %v8916_v34 = vpop.f32.mrb[223].mxu1  ;;  %v4624_v40 = vrot.slane %v4622_v18, 1  ;;  %v4104_v18 = vshrl.u32 %v11163_v0, 16  ;;  %v4108_v30 = vshll.u32 %v11187_v52, 16 }
 0x2a5   : > { %9024 = vmatmul.mubr.msk.bf16.gmra.mrb[72].mxu0 %vm469_vm2, %v4095_v63  ;;  %v11181_v4 = vadd.f32 %v3713_v10, %v3300_v55  ;;  %v4630_v34 = vshll.u32 %v11192_v9, 16 }
 0x2a6   : > { %9094 = vmatmul.mubr.msk.bf16.gmra.mrb[72].mxu1 %vm469_vm2, %v4617_v15  ;;  %9027 = vmatprep.mubr.msk.bf16.mxu0 %vm9769_vm1, %v12440_v14  ;;  %v4103_v15 = vsel %vm1127_vm3, %v4098_v44, %v4102_v2  ;;  %v4625_v61 = vsel %vm1127_vm3, %v4620_v45, %v4624_v40  ;;  %v4110_v45 = vrot.slane %v4108_v30, 1 }
 0x2a7   : > { %9097 = vmatprep.mubr.msk.bf16.mxu1 %vm9769_vm1, %v12440_v14 }
 0x2a8   : > { %v3196_v33 = vpop.f32.mrb[224].mxu0 }
 0x2a9   : > { %v3301_v12 = vadd.f32 %v3196_v33, %v10788_v26  ;;  %v3718_v63 = vpop.f32.mrb[224].mxu1  ;;  %v8849_v55 = vpop.f32.mrb[225].mxu0  ;;  %v4626_v26 = vshrl.u32 %v11166_v50, 16 }
 0x2aa   : > { %v8919_v10 = vpop.f32.mrb[225].mxu1  ;;  %v3199_v51 = vpop.f32.mrb[226].mxu0 }
 0x2ab   : > { %v3302_v31 = vadd.f32 %v3199_v51, %v10792_v28  ;;  %v3721_v38 = vpop.f32.mrb[226].mxu1  ;;  %v8850_v59 = vpop.f32.mrb[227].mxu0  ;;  %v11202_v33 = vadd.f32 %v3718_v63, %v3301_v12  ;;  %v4106_v28 = vor.u32 %v4104_v18, %v4102_v2  ;;  %v4628_v10 = vor.u32 %v4626_v26, %v4624_v40  ;;  %v4891_v12 = vld [vmem:[%s9850_s13 + $0x8] sm:$0xe]  ;;  %v9753_v2 = vld [vmem:[%s9850_s13 + $0xc] sm:$0xf] }
 0x2ac   : > { %v8920_v55 = vpop.f32.mrb[227].mxu1  ;;  %v4632_v51 = vrot.slane %v4630_v34, 1  ;;  %v5190_v59 = vld [vmem:[%s9844_s10 + $0x8] sm:$0xe]  ;;  %v7899_v18 = vcombine.low %v4891_v12, %v9753_v2  ;;  %v9754_v34 = vld [vmem:[%s9844_s10 + $0xc] sm:$0xf] }
 0x2ad   : > { %12461 = vst [vmem:[#allocation25_spill] sm:$0xff] %v11202_v33  ;;  %9028 = vmatmul.mubr.msk.bf16.gmra.mrb[76].mxu0 %vm469_vm2, %v4103_v15  ;;  %v11205_v44 = vadd.f32 %v3721_v38, %v3302_v31  ;;  %v4111_v9 = vsel %vm1127_vm3, %v4106_v28, %v4110_v45  ;;  %v9755_v28 = vld [vmem:[%s9850_s13 + $0x10] sm:$0xff]  }
 0x2ae   : > { %9098 = vmatmul.mubr.msk.bf16.gmra.mrb[76].mxu1 %vm469_vm2, %v4625_v61  ;;  %9031 = vmatprep.mubr.msk.bf16.mxu0 %vm9769_vm1, %v12440_v14  ;;  %v4633_v26 = vsel %vm1127_vm3, %v4628_v10, %v4632_v51  ;;  %v4899_v45 = vrot.slane %v9755_v28, 1  ;;  %v9756_v51 = vld [vmem:[%s9844_s10 + $0x10] sm:$0xff]  }
 0x2af   : > { %12462 = vst [vmem:[#allocation26_spill] sm:$0xff] %v11205_v44  ;;  %9101 = vmatprep.mubr.msk.bf16.mxu1 %vm9769_vm1, %v12440_v14  ;;  %v7918_v44 = vcombine.low %v5190_v59, %v9754_v34  ;;  %v5197_v12 = vrot.slane %v9756_v51, 1 }
 0x2b0   : > { %v3204_v63 = vpop.f32.mrb[228].mxu0 }
 0x2b1   : > { %v3303_v15 = vadd.f32 %v3204_v63, %v10808_v60  ;;  %v3726_v31 = vpop.f32.mrb[228].mxu1  ;;  %v8853_v38 = vpop.f32.mrb[229].mxu0  ;;  %v5196_v10 = vrot.slane %v7918_v44, 1 }
 0x2b2   : > { %v8923_v61 = vpop.f32.mrb[229].mxu1  ;;  %v3207_v55 = vpop.f32.mrb[230].mxu0  ;;  %v7972_v38 = vld [vmem:[%s12416_s4 + $0x1a] sm:$0x3] }
 0x2b3   : > { %v3304_v30 = vadd.f32 %v3207_v55, %v10811_v17  ;;  %v3729_v52 = vpop.f32.mrb[230].mxu1  ;;  %v8854_v40 = vpop.f32.mrb[231].mxu0  ;;  %v11220_v33 = vadd.f32 %v3726_v31, %v3303_v15  ;;  %v4898_v17 = vrot.slane %v7899_v18, 1 }
 0x2b4   : > { %v8924_v60 = vpop.f32.mrb[231].mxu1  ;;  %v5198_v40 = vsel %vm4897_vm4, %v5196_v10, %v5197_v12 }
 0x2b5   : > { %9032 = vmatmul.mubr.msk.bf16.gmra.mrb[80].mxu0 %vm469_vm2, %v4111_v9  ;;  %v11223_v63 = vadd.f32 %v3729_v52, %v3304_v30  ;;  %v7936_v52 = vld [vmem:[%s12416_s4 + $0x18] sm:$0x3]  ;;  %v4900_v2 = vsel %vm4897_vm4, %v4898_v17, %v4899_v45  ;;  %v6327_v60 = vsel %vm521_vm0, %v7972_v38, 0  ;;  %v5199_v17 = vrot.slane %v10821_v57, 1 }
 0x2b6   : > { %9102 = vmatmul.mubr.msk.bf16.gmra.mrb[80].mxu1 %vm469_vm2, %v4633_v26  ;;  %9107 = vmatprep.mubr.msk.bf16.mxu0 %vm9769_vm1, %v12440_v14  ;;  %v5805_v26 = vsel %vm521_vm0, %v7936_v52, 0 }
 0x2b7   : > { %9177 = vmatprep.mubr.msk.bf16.mxu1 %vm9769_vm1, %v12440_v14 }
 0x2b8   : > { %v3212_v59 = vpop.f32.mrb[232].mxu0 }
 0x2b9   : > { %v3305_v9 = vadd.f32 %v3212_v59, %v10836_v11  ;;  %v3734_v15 = vpop.f32.mrb[232].mxu1  ;;  %v8857_v31 = vpop.f32.mrb[233].mxu0 }
 0x2ba   : > { %v8927_v61 = vpop.f32.mrb[233].mxu1  ;;  %v3215_v55 = vpop.f32.mrb[234].mxu0 }
 0x2bb   : > { %v3306_v44 = vadd.f32 %v3215_v55, %v10842_v3  ;;  %v3737_v18 = vpop.f32.mrb[234].mxu1  ;;  %v8858_v30 = vpop.f32.mrb[235].mxu0  ;;  %v11243_v34 = vadd.f32 %v3734_v15, %v3305_v9  ;;  %v4901_v3 = vrot.slane %v10818_v46, 1  ;;  %v5200_v61 = vsel %vm4897_vm4, %v5197_v12, %v5199_v17 }
 0x2bc   : > { %v8928_v11 = vpop.f32.mrb[235].mxu1 }
 0x2bd   : > { %9108 = vmatmul.mubr.msk.bf16.vlgmr.msra.gmra.mrb[84].mxu0 %vm469_vm2, %v4900_v2  ;;  %v11247_v28 = vadd.f32 %v3737_v18, %v3306_v44  ;;  %v4902_v15 = vsel %vm4897_vm4, %v4899_v45, %v4901_v3  ;;  %v4903_v45 = vrot.slane %v10846_v43, 1 }
 0x2be   : > { %9178 = vmatmul.mubr.msk.bf16.vlgmr.msra.gmra.mrb[84].mxu1 %vm469_vm2, %v5198_v40  ;;  %9246 = vmatpush3.bf16.msra.mxu0 %v5805_v26 }
 0x2bf   : > { %9316 = vmatpush3.bf16.msra.mxu1 %v6327_v60  ;;  %9111 = vmatprep.mubr.msk.bf16.mxu0 %vm9769_vm1, %v12440_v14  ;;  %v4904_v11 = vsel %vm4897_vm4, %v4901_v3, %v4903_v45 }
 0x2c0   : > { %v3220_v10 = vpop.f32.mrb[236].mxu0  ;;  %9181 = vmatprep.mubr.msk.bf16.mxu1 %vm9769_vm1, %v12440_v14  ;;  %9385 = vmatprep.subr.bf16.mxu0 %v12440_v14 }
 0x2c1   : > { %v3307_v51 = vadd.f32 %v3220_v10, %v10863_v36  ;;  %v3742_v59 = vpop.f32.mrb[236].mxu1  ;;  %v8861_v52 = vpop.f32.mrb[237].mxu0  ;;  %9455 = vmatprep.subr.bf16.mxu1 %v12440_v14 }
 0x2c2   : > { %v8931_v9 = vpop.f32.mrb[237].mxu1  ;;  %v3223_v46 = vpop.f32.mrb[238].mxu0 }
 0x2c3   : > { %v3308_v31 = vadd.f32 %v3223_v46, %v10868_v19  ;;  %v3745_v38 = vpop.f32.mrb[238].mxu1  ;;  %v8862_v57 = vpop.f32.mrb[239].mxu0  ;;  %v11262_v55 = vadd.f32 %v3742_v59, %v3307_v51  ;;  %v5201_v19 = vrot.slane %v10852_v42, 1 }
 0x2c4   : > { %v8932_v2 = vpop.f32.mrb[239].mxu1 }
 0x2c5   : > { %9112 = vmatmul.mubr.msk.bf16.gmra.mrb[88].mxu0 %vm469_vm2, %v4902_v15  ;;  %v11265_v36 = vadd.f32 %v3745_v38, %v3308_v31  ;;  %v5202_v43 = vsel %vm4897_vm4, %v5199_v17, %v5201_v19 }
 0x2c6   : > { %9182 = vmatmul.mubr.msk.bf16.gmra.mrb[88].mxu1 %vm469_vm2, %v5200_v61  ;;  %9115 = vmatprep.mubr.msk.bf16.mxu0 %vm9769_vm1, %v12440_v14 }
 0x2c7   : > { %9185 = vmatprep.mubr.msk.bf16.mxu1 %vm9769_vm1, %v12440_v14 }
 0x2c8   : > { %v3228_v12 = vpop.f32.mrb[240].mxu0 }
 0x2c9   : > { %v3309_v44 = vadd.f32 %v3228_v12, %v10888_v56  ;;  %v3750_v18 = vpop.f32.mrb[240].mxu1  ;;  %v8865_v30 = vpop.f32.mrb[241].mxu0  ;;  %v4905_v56 = vrot.slane %v10875_v13, 1 }
 0x2ca   : > { %v8935_v40 = vpop.f32.mrb[241].mxu1  ;;  %v3231_v26 = vpop.f32.mrb[242].mxu0 }
 0x2cb   : > { %v3310_v60 = vadd.f32 %v3231_v26, %v10892_v24  ;;  %v3753_v10 = vpop.f32.mrb[242].mxu1  ;;  %v8866_v51 = vpop.f32.mrb[243].mxu0  ;;  %v11278_v52 = vadd.f32 %v3750_v18, %v3309_v44  ;;  %v5203_v24 = vrot.slane %v10878_v27, 1  ;;  %v4906_v38 = vsel %vm4897_vm4, %v4903_v45, %v4905_v56 }
 0x2cc   : > { %v8936_v59 = vpop.f32.mrb[243].mxu1 }
 0x2cd   : > { %9116 = vmatmul.mubr.msk.bf16.gmra.mrb[92].mxu0 %vm469_vm2, %v4904_v11  ;;  %v11281_v42 = vadd.f32 %v3753_v10, %v3310_v60  ;;  %v5204_v13 = vsel %vm4897_vm4, %v5201_v19, %v5203_v24  ;;  %v12463_v60 = vld [vmem:[#allocation2_spill] sm:$0xff] }
 0x2ce   : > { %9186 = vmatmul.mubr.msk.bf16.gmra.mrb[92].mxu1 %vm469_vm2, %v5202_v43  ;;  %9119 = vmatprep.mubr.msk.bf16.mxu0 %vm9769_vm1, %v12440_v14 }
 0x2cf   : > { %9189 = vmatprep.mubr.msk.bf16.mxu1 %vm9769_vm1, %v12440_v14 }
 0x2d0   : > { %v3236_v3 = vpop.f32.mrb[244].mxu0 }
 0x2d1   : > { %v3311_v17 = vadd.f32 %v3236_v3, %v10911_v62  ;;  %v3758_v9 = vpop.f32.mrb[244].mxu1  ;;  %v8869_v46 = vpop.f32.mrb[245].mxu0  ;;  %v4907_v62 = vrot.slane %v10896_v23, 1 }
 0x2d2   : > { %v8939_v15 = vpop.f32.mrb[245].mxu1  ;;  %v3239_v31 = vpop.f32.mrb[246].mxu0 }
 0x2d3   : > { %v3312_v57 = vadd.f32 %v3239_v31, %v10916_v21  ;;  %v3761_v61 = vpop.f32.mrb[246].mxu1  ;;  %v8870_v2 = vpop.f32.mrb[247].mxu0  ;;  %v11294_v44 = vadd.f32 %v3758_v9, %v3311_v17  ;;  %v5205_v21 = vrot.slane %v10904_v29, 1  ;;  %v4908_v11 = vsel %vm4897_vm4, %v4905_v56, %v4907_v62  ;;  %v12464_v17 = vld [vmem:[#allocation3_spill] sm:$0xff] }
 0x2d4   : > { %v8940_v12 = vpop.f32.mrb[247].mxu1  ;;  %v5207_v56 = vrot.slane %v10926_v53, 1 }
 0x2d5   : > { %9120 = vmatmul.mubr.msk.bf16.gmra.mrb[96].mxu0 %vm469_vm2, %v4906_v38  ;;  %v11297_v27 = vadd.f32 %v3761_v61, %v3312_v57  ;;  %v5206_v23 = vsel %vm4897_vm4, %v5203_v24, %v5205_v21  ;;  %v12465_v61 = vld [vmem:[#allocation4_spill] sm:$0xff] }
 0x2d6   : > { %9190 = vmatmul.mubr.msk.bf16.gmra.mrb[96].mxu1 %vm469_vm2, %v5204_v13  ;;  %9123 = vmatprep.mubr.msk.bf16.mxu0 %vm9769_vm1, %v12440_v14 }
 0x2d7   : > { %9193 = vmatprep.mubr.msk.bf16.mxu1 %vm9769_vm1, %v12440_v14 }
 0x2d8   : > { %v3244_v45 = vpop.f32.mrb[248].mxu0 }
 0x2d9   : > { %v3313_v19 = vadd.f32 %v3244_v45, %v10936_v47  ;;  %v3766_v18 = vpop.f32.mrb[248].mxu1  ;;  %v8873_v30 = vpop.f32.mrb[249].mxu0  ;;  %v4909_v47 = vrot.slane %v10923_v48, 1  ;;  %v5208_v48 = vsel %vm4897_vm4, %v5205_v21, %v5207_v56 }
 0x2da   : > { %v8943_v40 = vpop.f32.mrb[249].mxu1  ;;  %v3247_v26 = vpop.f32.mrb[250].mxu0  ;;  %v12466_v30 = vld [vmem:[#allocation6_spill] sm:$0xff] }
 0x2db   : > { %v3314_v10 = vadd.f32 %v3247_v26, %v12463_v60  ;;  %v3769_v51 = vpop.f32.mrb[250].mxu1  ;;  %v8874_v43 = vpop.f32.mrb[251].mxu0  ;;  %v11310_v3 = vadd.f32 %v3766_v18, %v3313_v19  ;;  %v4910_v57 = vsel %vm4897_vm4, %v4907_v62, %v4909_v47  ;;  %v4911_v62 = vrot.slane %v10944_v39, 1 }
 0x2dc   : > { %v8944_v59 = vpop.f32.mrb[251].mxu1  ;;  %v5209_v18 = vrot.slane %v10952_v5, 1  ;;  %v12467_v43 = vld [vmem:[#allocation7_spill] sm:$0xff] }
 0x2dd   : > { %9124 = vmatmul.mubr.msk.bf16.gmra.mrb[100].mxu0 %vm469_vm2, %v4908_v11  ;;  %v11313_v29 = vadd.f32 %v3769_v51, %v3314_v10  ;;  %v4912_v51 = vsel %vm4897_vm4, %v4909_v47, %v4911_v62 }
 0x2de   : > { %9194 = vmatmul.mubr.msk.bf16.gmra.mrb[100].mxu1 %vm469_vm2, %v5206_v23  ;;  %9127 = vmatprep.mubr.msk.bf16.mxu0 %vm9769_vm1, %v12440_v14  ;;  %v5210_v39 = vsel %vm4897_vm4, %v5207_v56, %v5209_v18 }
 0x2df   : > { %9197 = vmatprep.mubr.msk.bf16.mxu1 %vm9769_vm1, %v12440_v14 }
 0x2e0   : > { %v3252_v24 = vpop.f32.mrb[252].mxu0 }
 0x2e1   : > { %v3315_v9 = vadd.f32 %v3252_v24, %v12464_v17  ;;  %v3774_v46 = vpop.f32.mrb[252].mxu1  ;;  %v8877_v15 = vpop.f32.mrb[253].mxu0 }
 0x2e2   : > { %v8947_v31 = vpop.f32.mrb[253].mxu1  ;;  %v3255_v38 = vpop.f32.mrb[254].mxu0  ;;  %v5211_v15 = vrot.slane %v10974_v22, 1 }
 0x2e3   : > { %v3316_v2 = vadd.f32 %v3255_v38, %v12465_v61  ;;  %v3777_v13 = vpop.f32.mrb[254].mxu1  ;;  %v8878_v12 = vpop.f32.mrb[255].mxu0  ;;  %v11326_v19 = vadd.f32 %v3774_v46, %v3315_v9  ;;  %v12468_v46 = vld [vmem:[#allocation5_spill] sm:$0xff] }
 0x2e4   : > { %v8948_v45 = vpop.f32.mrb[255].mxu1  ;;  %v4913_v47 = vrot.slane %v12468_v46, 1  ;;  %v12469_v12 = vld [vmem:[#allocation8_spill] sm:$0xff] }
 0x2e5   : > { %9128 = vmatmul.mubr.msk.bf16.gmra.mrb[104].mxu0 %vm469_vm2, %v4910_v57  ;;  %v11329_v53 = vadd.f32 %v3777_v13, %v3316_v2 }
 0x2e6   : > { %9198 = vmatmul.mubr.msk.bf16.gmra.mrb[104].mxu1 %vm469_vm2, %v5208_v48  ;;  %9131 = vmatprep.mubr.msk.bf16.mxu0 %vm9769_vm1, %v12440_v14  ;;  %v4914_v13 = vsel %vm4897_vm4, %v4911_v62, %v4913_v47  ;;  %v5213_v62 = vrot.slane %v11000_v35, 1 }
 0x2e7   : > { %9201 = vmatprep.mubr.msk.bf16.mxu1 %vm9769_vm1, %v12440_v14 }
 0x2e8   : > { %v3260_v21 = vpop.f32.mrb[0].mxu0 }
 0x2e9   : > { %v3317_v40 = vadd.f32 %v3260_v21, %v12466_v30  ;;  %v3782_v26 = vpop.f32.mrb[0].mxu1  ;;  %v8881_v11 = vpop.f32.mrb[1].mxu0  ;;  %v5212_v30 = vsel %vm4897_vm4, %v5209_v18, %v5211_v15 }
 0x2ea   : > { %v8951_v60 = vpop.f32.mrb[1].mxu1  ;;  %v3263_v10 = vpop.f32.mrb[2].mxu0  ;;  %v12470_v11 = vld [vmem:[#allocation10_spill] sm:$0xff] }
 0x2eb   : > { %v3318_v23 = vadd.f32 %v3263_v10, %v12467_v43  ;;  %v3785_v59 = vpop.f32.mrb[2].mxu1  ;;  %v8882_v24 = vpop.f32.mrb[3].mxu0  ;;  %v11342_v9 = vadd.f32 %v3782_v26, %v3317_v40 }
 0x2ec   : > { %v8952_v17 = vpop.f32.mrb[3].mxu1  ;;  %v12471_v24 = vld [vmem:[#allocation11_spill] sm:$0xff] }
 0x2ed   : > { %9132 = vmatmul.mubr.msk.bf16.gmra.mrb[108].mxu0 %vm469_vm2, %v4912_v51  ;;  %v11345_v5 = vadd.f32 %v3785_v59, %v3318_v23 }
 0x2ee   : > { %9202 = vmatmul.mubr.msk.bf16.gmra.mrb[108].mxu1 %vm469_vm2, %v5210_v39  ;;  %9135 = vmatprep.mubr.msk.bf16.mxu0 %vm9769_vm1, %v12440_v14 }
 0x2ef   : > { %9205 = vmatprep.mubr.msk.bf16.mxu1 %vm9769_vm1, %v12440_v14 }
 0x2f0   : > { %v3268_v56 = vpop.f32.mrb[4].mxu0 }
 0x2f1   : > { %v3319_v31 = vadd.f32 %v3268_v56, %v11007_v8  ;;  %v3790_v38 = vpop.f32.mrb[4].mxu1  ;;  %v8885_v57 = vpop.f32.mrb[5].mxu0  ;;  %v4915_v8 = vrot.slane %v10992_v58, 1  ;;  %v5214_v58 = vsel %vm4897_vm4, %v5211_v15, %v5213_v62 }
 0x2f2   : > { %v8955_v61 = vpop.f32.mrb[5].mxu1  ;;  %v3271_v2 = vpop.f32.mrb[6].mxu0  ;;  %v5215_v57 = vrot.slane %v11022_v16, 1 }
 0x2f3   : > { %v3320_v48 = vadd.f32 %v3271_v2, %v12469_v12  ;;  %v3793_v45 = vpop.f32.mrb[6].mxu1  ;;  %v8886_v21 = vpop.f32.mrb[7].mxu0  ;;  %v11358_v26 = vadd.f32 %v3790_v38, %v3319_v31  ;;  %v4916_v59 = vsel %vm4897_vm4, %v4913_v47, %v4915_v8  ;;  %v12472_v38 = vld [vmem:[#allocation9_spill] sm:$0xff] }
 0x2f4   : > { %v8956_v40 = vpop.f32.mrb[7].mxu1  ;;  %v4917_v47 = vrot.slane %v12472_v38, 1  ;;  %v12473_v21 = vld [vmem:[#allocation12_spill] sm:$0xff] }
 0x2f5   : > { %9136 = vmatmul.mubr.msk.bf16.gmra.mrb[112].mxu0 %vm469_vm2, %v4914_v13  ;;  %v11361_v22 = vadd.f32 %v3793_v45, %v3320_v48 }
 0x2f6   : > { %9206 = vmatmul.mubr.msk.bf16.gmra.mrb[112].mxu1 %vm469_vm2, %v5212_v30  ;;  %9139 = vmatprep.mubr.msk.bf16.mxu0 %vm9769_vm1, %v12440_v14  ;;  %v4918_v45 = vsel %vm4897_vm4, %v4915_v8, %v4917_v47  ;;  %v5217_v8 = vrot.slane %v11048_v1, 1 }
 0x2f7   : > { %9209 = vmatprep.mubr.msk.bf16.mxu1 %vm9769_vm1, %v12440_v14 }
 0x2f8   : > { %v3276_v18 = vpop.f32.mrb[8].mxu0 }
 0x2f9   : > { %v3321_v60 = vadd.f32 %v3276_v18, %v12470_v11  ;;  %v3798_v10 = vpop.f32.mrb[8].mxu1  ;;  %v8889_v51 = vpop.f32.mrb[9].mxu0  ;;  %v5216_v11 = vsel %vm4897_vm4, %v5213_v62, %v5215_v57 }
 0x2fa   : > { %v8959_v43 = vpop.f32.mrb[9].mxu1  ;;  %v3279_v23 = vpop.f32.mrb[10].mxu0  ;;  %v12474_v51 = vld [vmem:[#allocation14_spill] sm:$0xff] }
 0x2fb   : > { %v3322_v39 = vadd.f32 %v3279_v23, %v12471_v24  ;;  %v3801_v17 = vpop.f32.mrb[10].mxu1  ;;  %v8890_v46 = vpop.f32.mrb[11].mxu0  ;;  %v11374_v31 = vadd.f32 %v3798_v10, %v3321_v60 }
 0x2fc   : > { %v8960_v56 = vpop.f32.mrb[11].mxu1  ;;  %v12475_v46 = vld [vmem:[#allocation15_spill] sm:$0xff] }
 0x2fd   : > { %9140 = vmatmul.mubr.msk.bf16.gmra.mrb[116].mxu0 %vm469_vm2, %v4916_v59  ;;  %v11377_v35 = vadd.f32 %v3801_v17, %v3322_v39 }
 0x2fe   : > { %9210 = vmatmul.mubr.msk.bf16.gmra.mrb[116].mxu1 %vm469_vm2, %v5214_v58  ;;  %9143 = vmatprep.mubr.msk.bf16.mxu0 %vm9769_vm1, %v12440_v14 }
 0x2ff   : > { %9213 = vmatprep.mubr.msk.bf16.mxu1 %vm9769_vm1, %v12440_v14 }
 0x300   : > { %v3284_v15 = vpop.f32.mrb[12].mxu0 }
 0x301   : > { %v3323_v61 = vadd.f32 %v3284_v15, %v11055_v20  ;;  %v3806_v2 = vpop.f32.mrb[12].mxu1  ;;  %v8893_v13 = vpop.f32.mrb[13].mxu0  ;;  %v4919_v20 = vrot.slane %v11040_v37, 1  ;;  %v5218_v37 = vsel %vm4897_vm4, %v5215_v57, %v5217_v8 }
 0x302   : > { %v8963_v12 = vpop.f32.mrb[13].mxu1  ;;  %v3287_v48 = vpop.f32.mrb[14].mxu0  ;;  %v5219_v13 = vrot.slane %v11070_v49, 1 }
 0x303   : > { %v3324_v30 = vadd.f32 %v3287_v48, %v12473_v21  ;;  %v3809_v40 = vpop.f32.mrb[14].mxu1  ;;  %v8894_v18 = vpop.f32.mrb[15].mxu0  ;;  %v11390_v10 = vadd.f32 %v3806_v2, %v3323_v61  ;;  %v4920_v17 = vsel %vm4897_vm4, %v4917_v47, %v4919_v20  ;;  %v12476_v2 = vld [vmem:[#allocation13_spill] sm:$0xff] }
 0x304   : > { %v8964_v60 = vpop.f32.mrb[15].mxu1  ;;  %v4921_v47 = vrot.slane %v12476_v2, 1  ;;  %v12477_v18 = vld [vmem:[#allocation16_spill] sm:$0xff] }
 0x305   : > { %9144 = vmatmul.mubr.msk.bf16.gmra.mrb[120].mxu0 %vm469_vm2, %v4918_v45  ;;  %v11393_v16 = vadd.f32 %v3809_v40, %v3324_v30 }
 0x306   : > { %9214 = vmatmul.mubr.msk.bf16.gmra.mrb[120].mxu1 %vm469_vm2, %v5216_v11  ;;  %9147 = vmatprep.mubr.msk.bf16.mxu0 %vm9769_vm1, %v12440_v14  ;;  %v4922_v40 = vsel %vm4897_vm4, %v4919_v20, %v4921_v47  ;;  %v5221_v20 = vrot.slane %v11096_v6, 1 }
 0x307   : > { %9217 = vmatprep.mubr.msk.bf16.mxu1 %vm9769_vm1, %v12440_v14 }
 0x308   : > { %v4200_v62 = vpop.f32.mrb[16].mxu0 }
 0x309   : > { %v4335_v43 = vadd.f32 %v4200_v62, %v12474_v51  ;;  %v4722_v23 = vpop.f32.mrb[16].mxu1  ;;  %v8969_v59 = vpop.f32.mrb[17].mxu0  ;;  %v5220_v51 = vsel %vm4897_vm4, %v5217_v8, %v5219_v13 }
 0x30a   : > { %v9039_v24 = vpop.f32.mrb[17].mxu1  ;;  %v4203_v39 = vpop.f32.mrb[18].mxu0  ;;  %v12478_v59 = vld [vmem:[#allocation18_spill] sm:$0xff] }
 0x30b   : > { %v4336_v58 = vadd.f32 %v4203_v39, %v12475_v46  ;;  %v4725_v56 = vpop.f32.mrb[18].mxu1  ;;  %v8970_v38 = vpop.f32.mrb[19].mxu0  ;;  %v11406_v61 = vadd.f32 %v4722_v23, %v4335_v43 }
 0x30c   : > { %v9040_v15 = vpop.f32.mrb[19].mxu1  ;;  %v12479_v38 = vld [vmem:[#allocation19_spill] sm:$0xff] }
 0x30d   : > { %9148 = vmatmul.mubr.msk.bf16.gmra.mrb[124].mxu0 %vm469_vm2, %v4920_v17  ;;  %v11409_v1 = vadd.f32 %v4725_v56, %v4336_v58 }
 0x30e   : > { %9218 = vmatmul.mubr.msk.bf16.gmra.mrb[124].mxu1 %vm469_vm2, %v5218_v37  ;;  %9151 = vmatprep.mubr.msk.bf16.mxu0 %vm9769_vm1, %v12440_v14 }
 0x30f   : > { %9221 = vmatprep.mubr.msk.bf16.mxu1 %vm9769_vm1, %v12440_v14 }
 0x310   : > { %v4208_v57 = vpop.f32.mrb[20].mxu0 }
 0x311   : > { %v4337_v12 = vadd.f32 %v4208_v57, %v11103_v7  ;;  %v4730_v48 = vpop.f32.mrb[20].mxu1  ;;  %v8973_v45 = vpop.f32.mrb[21].mxu0  ;;  %v4923_v7 = vrot.slane %v11088_v32, 1  ;;  %v5222_v32 = vsel %vm4897_vm4, %v5219_v13, %v5221_v20 }
 0x312   : > { %v9043_v21 = vpop.f32.mrb[21].mxu1  ;;  %v4211_v30 = vpop.f32.mrb[22].mxu0  ;;  %v5223_v45 = vrot.slane %v11118_v25, 1 }
 0x313   : > { %v4338_v11 = vadd.f32 %v4211_v30, %v12477_v18  ;;  %v4733_v60 = vpop.f32.mrb[22].mxu1  ;;  %v8974_v62 = vpop.f32.mrb[23].mxu0  ;;  %v11422_v23 = vadd.f32 %v4730_v48, %v4337_v12  ;;  %v4924_v56 = vsel %vm4897_vm4, %v4921_v47, %v4923_v7  ;;  %v12480_v48 = vld [vmem:[#allocation17_spill] sm:$0xff] }
 0x314   : > { %v9044_v43 = vpop.f32.mrb[23].mxu1  ;;  %v4925_v47 = vrot.slane %v12480_v48, 1  ;;  %v12481_v62 = vld [vmem:[#allocation22_spill] sm:$0xff] }
 0x315   : > { %9152 = vmatmul.mubr.msk.bf16.gmra.mrb[128].mxu0 %vm469_vm2, %v4922_v40  ;;  %v11425_v49 = vadd.f32 %v4733_v60, %v4338_v11 }
 0x316   : > { %9222 = vmatmul.mubr.msk.bf16.gmra.mrb[128].mxu1 %vm469_vm2, %v5220_v51  ;;  %9155 = vmatprep.mubr.msk.bf16.mxu0 %vm9769_vm1, %v12440_v14  ;;  %v4926_v60 = vsel %vm4897_vm4, %v4923_v7, %v4925_v47 }
 0x317   : > { %9225 = vmatprep.mubr.msk.bf16.mxu1 %vm9769_vm1, %v12440_v14 }
 0x318   : > { %v4216_v8 = vpop.f32.mrb[24].mxu0 }
 0x319   : > { %v4339_v24 = vadd.f32 %v4216_v8, %v12478_v59  ;;  %v4738_v39 = vpop.f32.mrb[24].mxu1  ;;  %v8977_v17 = vpop.f32.mrb[25].mxu0  ;;  %v5224_v59 = vsel %vm4897_vm4, %v5221_v20, %v5223_v45 }
 0x31a   : > { %v9047_v46 = vpop.f32.mrb[25].mxu1  ;;  %v4219_v58 = vpop.f32.mrb[26].mxu0  ;;  %v12483_v17 = vld [vmem:[#allocation21_spill] sm:$0xff] }
 0x31b   : > { %v4340_v37 = vadd.f32 %v4219_v58, %v12479_v38  ;;  %v4741_v15 = vpop.f32.mrb[26].mxu1  ;;  %v8978_v2 = vpop.f32.mrb[27].mxu0  ;;  %v11438_v12 = vadd.f32 %v4738_v39, %v4339_v24  ;;  %v5225_v46 = vrot.slane %v12483_v17, 1 }
 0x31c   : > { %v9048_v57 = vpop.f32.mrb[27].mxu1 }
 0x31d   : > { %9156 = vmatmul.mubr.msk.bf16.gmra.mrb[132].mxu0 %vm469_vm2, %v4924_v56  ;;  %v11441_v6 = vadd.f32 %v4741_v15, %v4340_v37 }
 0x31e   : > { %9226 = vmatmul.mubr.msk.bf16.gmra.mrb[132].mxu1 %vm469_vm2, %v5222_v32  ;;  %9159 = vmatprep.mubr.msk.bf16.mxu0 %vm9769_vm1, %v12440_v14 }
 0x31f   : > { %9229 = vmatprep.mubr.msk.bf16.mxu1 %vm9769_vm1, %v12440_v14 }
 0x320   : > { %v4224_v13 = vpop.f32.mrb[28].mxu0 }
 0x321   : > { %v4341_v21 = vadd.f32 %v4224_v13, %v11151_v41  ;;  %v4746_v30 = vpop.f32.mrb[28].mxu1  ;;  %v8981_v40 = vpop.f32.mrb[29].mxu0  ;;  %v12482_v41 = vld [vmem:[#allocation20_spill] sm:$0xff] }
 0x322   : > { %v9051_v18 = vpop.f32.mrb[29].mxu1  ;;  %v4227_v11 = vpop.f32.mrb[30].mxu0  ;;  %v4927_v7 = vrot.slane %v12482_v41, 1  ;;  %v5488_v40 = vld [vmem:[%s10071_s20 + $0x8] sm:$0xf] }
 0x323   : > { %v4342_v51 = vadd.f32 %v4227_v11, %v12481_v62  ;;  %v4749_v43 = vpop.f32.mrb[30].mxu1  ;;  %v8982_v8 = vpop.f32.mrb[31].mxu0  ;;  %v11454_v39 = vadd.f32 %v4746_v30, %v4341_v21  ;;  %v5226_v21 = vsel %vm4897_vm4, %v5223_v45, %v5225_v46  ;;  %v5489_v18 = vld [vmem:[%s10071_s20 + $0xc] sm:$0xf]  ;;  %v6010_v11 = vld [vmem:[%s10077_s25 + $0x8] sm:$0xf] }
 0x324   : > { %v9052_v24 = vpop.f32.mrb[31].mxu1  ;;  %v4928_v2 = vsel %vm4897_vm4, %v4925_v47, %v4927_v7  ;;  %v4929_v47 = vrot.slane %v11163_v0, 1  ;;  %v12484_v62 = vld [vmem:[#allocation25_spill] sm:$0xff] }
 0x325   : > { %9160 = vmatmul.mubr.msk.bf16.gmra.mrb[136].mxu0 %vm469_vm2, %v4926_v60  ;;  %v11457_v25 = vadd.f32 %v4749_v43, %v4342_v51  ;;  %v6011_v60 = vld [vmem:[%s10077_s25 + $0xc] sm:$0xf] }
 0x326   : > { %9230 = vmatmul.mubr.msk.bf16.gmra.mrb[136].mxu1 %vm469_vm2, %v5224_v59  ;;  %9163 = vmatprep.mubr.msk.bf16.mxu0 %vm9769_vm1, %v12440_v14  ;;  %v7937_v59 = vcombine.low %v5488_v40, %v5489_v18  ;;  %v4930_v0 = vsel %vm4897_vm4, %v4927_v7, %v4929_v47  ;;  %v12486_v7 = vld [vmem:[#allocation23_spill] sm:$0xff] }
 0x327   : > { %9233 = vmatprep.mubr.msk.bf16.mxu1 %vm9769_vm1, %v12440_v14 }
 0x328   : > { %v4232_v20 = vpop.f32.mrb[32].mxu0 }
 0x329   : > { %v4343_v58 = vadd.f32 %v4232_v20, %v11178_v54  ;;  %v4754_v56 = vpop.f32.mrb[32].mxu1  ;;  %v8985_v38 = vpop.f32.mrb[33].mxu0  ;;  %v12485_v20 = vld [vmem:[#allocation26_spill] sm:$0xff] }
 0x32a   : > { %v9055_v37 = vpop.f32.mrb[33].mxu1  ;;  %v4235_v15 = vpop.f32.mrb[34].mxu0 }
 0x32b   : > { %v11468_v32 = vadd.f32 %v4754_v56, %v4343_v58  ;;  %v4344_v57 = vadd.f32 %v4235_v15, %v11181_v4  ;;  %v4757_v48 = vpop.f32.mrb[34].mxu1  ;;  %v8986_v13 = vpop.f32.mrb[35].mxu0  ;;  %v5227_v4 = vrot.slane %v11166_v50, 1  ;;  %v7973_v37 = vcombine.low %v6010_v11, %v6011_v60 }
 0x32c   : > { %v9056_v30 = vpop.f32.mrb[35].mxu1  ;;  %v4931_v13 = vrot.slane %v12486_v7, 1 }
 0x32d   : > { %v11472_v54 = vadd.f32 %v4757_v48, %v4344_v57  ;;  %9164 = vmatmul.mubr.msk.bf16.gmra.mrb[140].mxu0 %vm469_vm2, %v4928_v2  ;;  %v5228_v38 = vsel %vm4897_vm4, %v5225_v46, %v5227_v4  ;;  %v11496_v57 = vld [vmem:[%s10071_s20 + $0x10] sm:$0xff]   ;;  %v5616_v48 = vshll.u32 %v7937_v59, 16  ;;  %v6138_v40 = vshll.u32 %v7973_v37, 16 }
 0x32e   : > { %9234 = vmatmul.mubr.msk.bf16.gmra.mrb[140].mxu1 %vm469_vm2, %v5226_v21  ;;  %9167 = vmatprep.mubr.msk.bf16.mxu0 %vm9769_vm1, %v12440_v14  ;;  %v12487_v21 = vld [vmem:[#allocation24_spill] sm:$0xff] }
 0x32f   : > { %9237 = vmatprep.mubr.msk.bf16.mxu1 %vm9769_vm1, %v12440_v14  ;;  %v5229_v30 = vrot.slane %v12487_v21, 1  ;;  %v11506_v46 = vld [vmem:[%s10077_s25 + $0x10] sm:$0xff]  }
 0x330   : > { %v4240_v45 = vpop.f32.mrb[36].mxu0 }
 0x331   : > { %v4345_v51 = vadd.f32 %v4240_v45, %v12484_v62  ;;  %v4762_v43 = vpop.f32.mrb[36].mxu1  ;;  %v8989_v8 = vpop.f32.mrb[37].mxu0  ;;  %v5614_v62 = vshrl.u32 %v7937_v59, 16  ;;  %v6143_v59 = vshll.u32 %v11506_v46, 16 }
 0x332   : > { %v9059_v24 = vpop.f32.mrb[37].mxu1  ;;  %v4243_v41 = vpop.f32.mrb[38].mxu0 }
 0x333   : > { %v11488_v17 = vadd.f32 %v4762_v43, %v4345_v51  ;;  %v4346_v58 = vadd.f32 %v4243_v41, %v12485_v20  ;;  %v4765_v56 = vpop.f32.mrb[38].mxu1  ;;  %v8990_v50 = vpop.f32.mrb[39].mxu0  ;;  %v5618_v51 = vrot.slane %v5616_v48, 1  ;;  %v5621_v43 = vshll.u32 %v11496_v57, 16 }
 0x334   : > { %v9060_v15 = vpop.f32.mrb[39].mxu1  ;;  %v4932_v41 = vsel %vm4897_vm4, %v4929_v47, %v4931_v13  ;;  %v6136_v20 = vshrl.u32 %v7973_v37, 16  ;;  %v6145_v13 = vrot.slane %v6143_v59, 1 }
 0x335   : > { %v11492_v2 = vadd.f32 %v4765_v56, %v4346_v58  ;;  %9168 = vmatmul.mubr.msk.bf16.gmra.mrb[144].mxu0 %vm469_vm2, %v4930_v0  ;;  %v5230_v0 = vsel %vm4897_vm4, %v5227_v4, %v5229_v30  ;;  %v5619_v47 = vor.u32 %v5618_v51, %v5614_v62  ;;  %v5623_v7 = vrot.slane %v5621_v43, 1  ;;  %v11523_v4 = vld [vmem:[%s10071_s20 + $0x18] sm:$0xff]  }
 0x336   : > { %9238 = vmatmul.mubr.msk.bf16.gmra.mrb[144].mxu1 %vm469_vm2, %v5228_v38  ;;  %9171 = vmatprep.mubr.msk.bf16.mxu0 %vm9769_vm1, %v12440_v14  ;;  %v6140_v38 = vrot.slane %v6138_v40, 1  ;;  %v8008_v30 = vld [vmem:[%s12416_s4 + $0x1c] sm:$0x3]  ;;  %v5625_v43 = vshrl.u32 %v11496_v57, 16 }
 0x337   : > { %9241 = vmatprep.mubr.msk.bf16.mxu1 %vm9769_vm1, %v12440_v14 }
 0x338   : > { %v4248_v18 = vpop.f32.mrb[40].mxu0  ;;  %v6141_v37 = vor.u32 %v6140_v38, %v6136_v20 }
 0x339   : > { %v4347_v45 = vadd.f32 %v4248_v18, %v11220_v33  ;;  %v4770_v11 = vpop.f32.mrb[40].mxu1  ;;  %v8993_v60 = vpop.f32.mrb[41].mxu0 }
 0x33a   : > { %v9063_v8 = vpop.f32.mrb[41].mxu1  ;;  %v4251_v24 = vpop.f32.mrb[42].mxu0  ;;  %v8027_v60 = vld [vmem:[%s12416_s4 + $0x1e] sm:$0x3] }
 0x33b   : > { %v11512_v58 = vadd.f32 %v4770_v11, %v4347_v45  ;;  %v4348_v56 = vadd.f32 %v4251_v24, %v11223_v63  ;;  %v4773_v33 = vpop.f32.mrb[42].mxu1  ;;  %v8994_v50 = vpop.f32.mrb[43].mxu0  ;;  %v11526_v63 = vld [vmem:[%s10077_s25 + $0x18] sm:$0xff]   ;;  %v5624_v11 = vsel %vm1127_vm3, %v5619_v47, %v5623_v7  ;;  %v5629_v8 = vshll.u32 %v11523_v4, 16 }
 0x33c   : > { %v9064_v15 = vpop.f32.mrb[43].mxu1  ;;  %v6147_v24 = vshrl.u32 %v11506_v46, 16  ;;  %v6625_v50 = vsel %vm521_vm0, %v8008_v30, 0  ;;  %v6923_v57 = vsel %vm521_vm0, %v8027_v60, 0  ;;  %v5633_v60 = vshrl.u32 %v11523_v4, 16 }
 0x33d   : > { %v11516_v48 = vadd.f32 %v4773_v33, %v4348_v56  ;;  %9172 = vmatmul.mubr.msk.bf16.gmra.mrb[148].mxu0 %vm469_vm2, %v4932_v41  ;;  %v6151_v41 = vshll.u32 %v11526_v63, 16  ;;  %v6146_v33 = vsel %vm1127_vm3, %v6141_v37, %v6145_v13  ;;  %v11552_v15 = vld [vmem:[%s10071_s20 + $0x20] sm:$0xff]   ;;  %v5631_v47 = vrot.slane %v5629_v8, 1 }
 0x33e   : > { %9242 = vmatmul.mubr.msk.bf16.gmra.mrb[148].mxu1 %vm469_vm2, %v5230_v0  ;;  %9247 = vmatprep.mubr.msk.bf16.mxu0 %vm9769_vm1, %v12440_v14  ;;  %v11558_v37 = vld [vmem:[%s10077_s25 + $0x20] sm:$0xff]  }
 0x33f   : > { %9317 = vmatprep.mubr.msk.bf16.mxu1 %vm9769_vm1, %v12440_v14 }
 0x340   : > { %v4256_v21 = vpop.f32.mrb[44].mxu0 }
 0x341   : > { %v4349_v40 = vadd.f32 %v4256_v21, %v11243_v34  ;;  %v4778_v18 = vpop.f32.mrb[44].mxu1  ;;  %v8997_v45 = vpop.f32.mrb[45].mxu0  ;;  %v6149_v21 = vor.u32 %v6147_v24, %v6145_v13 }
 0x342   : > { %v9067_v62 = vpop.f32.mrb[45].mxu1  ;;  %v4259_v51 = vpop.f32.mrb[46].mxu0 }
 0x343   : > { %v11542_v34 = vadd.f32 %v4778_v18, %v4349_v40  ;;  %v4350_v0 = vadd.f32 %v4259_v51, %v11247_v28  ;;  %v4781_v20 = vpop.f32.mrb[46].mxu1  ;;  %v8998_v56 = vpop.f32.mrb[47].mxu0  ;;  %v5627_v28 = vor.u32 %v5625_v43, %v5623_v7  ;;  %v6153_v40 = vrot.slane %v6151_v41, 1 }
 0x344   : > { %v9068_v38 = vpop.f32.mrb[47].mxu1  ;;  %v5637_v7 = vshll.u32 %v11552_v15, 16 }
 0x345   : > { %v11548_v59 = vadd.f32 %v4781_v20, %v4350_v0  ;;  %9248 = vmatmul.mubr.msk.bf16.vlgmr.msra.gmra.mrb[152].mxu0 %vm469_vm2, %v5624_v11  ;;  %v5632_v51 = vsel %vm1127_vm3, %v5627_v28, %v5631_v47  ;;  %v6154_v43 = vsel %vm1127_vm3, %v6149_v21, %v6153_v40  ;;  %v6155_v0 = vshrl.u32 %v11526_v63, 16 }
 0x346   : > { %9318 = vmatmul.mubr.msk.bf16.vlgmr.msra.gmra.mrb[152].mxu1 %vm469_vm2, %v6146_v33  ;;  %9386 = vmatpush3.bf16.msra.mxu0 %v6625_v50  ;;  %v6159_v20 = vshll.u32 %v11558_v37, 16  ;;  %v5635_v50 = vor.u32 %v5633_v60, %v5631_v47  ;;  %v5639_v38 = vrot.slane %v5637_v7, 1 }
 0x347   : > { %9456 = vmatpush3.bf16.msra.mxu1 %v6923_v57  ;;  %9251 = vmatprep.mubr.msk.bf16.mxu0 %vm9769_vm1, %v12440_v14  ;;  %v11579_v57 = vld [vmem:[%s10071_s20 + $0x28] sm:$0xff]   ;;  %v6157_v28 = vor.u32 %v6155_v0, %v6153_v40 }
 0x348   : > { %v4264_v30 = vpop.f32.mrb[48].mxu0  ;;  %9321 = vmatprep.mubr.msk.bf16.mxu1 %vm9769_vm1, %v12440_v14  ;;  %v6161_v21 = vrot.slane %v6159_v20, 1 }
 0x349   : > { %v4351_v18 = vadd.f32 %v4264_v30, %v11262_v55  ;;  %v4786_v45 = vpop.f32.mrb[48].mxu1  ;;  %v9001_v11 = vpop.f32.mrb[49].mxu0 }
 0x34a   : > { %v9071_v13 = vpop.f32.mrb[49].mxu1  ;;  %v4267_v62 = vpop.f32.mrb[50].mxu0  ;;  %v5640_v11 = vsel %vm1127_vm3, %v5635_v50, %v5639_v38 }
 0x34b   : > { %v11567_v8 = vadd.f32 %v4786_v45, %v4351_v18  ;;  %v4352_v24 = vadd.f32 %v4267_v62, %v11265_v36  ;;  %v4789_v41 = vpop.f32.mrb[50].mxu1  ;;  %v9002_v55 = vpop.f32.mrb[51].mxu0  ;;  %v11582_v36 = vld [vmem:[%s10077_s25 + $0x28] sm:$0xff]   ;;  %v5641_v13 = vshrl.u32 %v11552_v15, 16  ;;  %v5645_v62 = vshll.u32 %v11579_v57, 16 }
 0x34c   : > { %v9072_v56 = vpop.f32.mrb[51].mxu1  ;;  %v6162_v55 = vsel %vm1127_vm3, %v6157_v28, %v6161_v21  ;;  %v11608_v28 = vld [vmem:[%s10077_s25 + $0x30] sm:$0xff]  }
 0x34d   : > { %v11572_v33 = vadd.f32 %v4789_v41, %v4352_v24  ;;  %9252 = vmatmul.mubr.msk.bf16.gmra.mrb[156].mxu0 %vm469_vm2, %v5632_v51  ;;  %v6163_v51 = vshrl.u32 %v11558_v37, 16  ;;  %v11600_v56 = vld [vmem:[%s10071_s20 + $0x30] sm:$0xff]   ;;  %v5643_v50 = vor.u32 %v5641_v13, %v5639_v38 }
 0x34e   : > { %9322 = vmatmul.mubr.msk.bf16.gmra.mrb[156].mxu1 %vm469_vm2, %v6154_v43  ;;  %9255 = vmatprep.mubr.msk.bf16.mxu0 %vm9769_vm1, %v12440_v14  ;;  %v6167_v43 = vshll.u32 %v11582_v36, 16 }
 0x34f   : > { %9325 = vmatprep.mubr.msk.bf16.mxu1 %vm9769_vm1, %v12440_v14 }
 0x350   : > { %v4272_v30 = vpop.f32.mrb[52].mxu0 }
 0x351   : > { %v4353_v18 = vadd.f32 %v4272_v30, %v11278_v52  ;;  %v4794_v45 = vpop.f32.mrb[52].mxu1  ;;  %v9005_v47 = vpop.f32.mrb[53].mxu0  ;;  %v5647_v30 = vrot.slane %v5645_v62, 1 }
 0x352   : > { %v9075_v60 = vpop.f32.mrb[53].mxu1  ;;  %v4275_v7 = vpop.f32.mrb[54].mxu0 }
 0x353   : > { %v11592_v40 = vadd.f32 %v4794_v45, %v4353_v18  ;;  %v4354_v52 = vadd.f32 %v4275_v7, %v11281_v42  ;;  %v4797_v24 = vpop.f32.mrb[54].mxu1  ;;  %v9006_v41 = vpop.f32.mrb[55].mxu0  ;;  %v6165_v18 = vor.u32 %v6163_v51, %v6161_v21  ;;  %v6169_v42 = vrot.slane %v6167_v43, 1 }
 0x354   : > { %v9076_v0 = vpop.f32.mrb[55].mxu1  ;;  %v5649_v7 = vshrl.u32 %v11579_v57, 16  ;;  %v5648_v38 = vsel %vm1127_vm3, %v5643_v50, %v5647_v30  ;;  %v6171_v43 = vshrl.u32 %v11582_v36, 16 }
 0x355   : > { %v11596_v20 = vadd.f32 %v4797_v24, %v4354_v52  ;;  %9256 = vmatmul.mubr.msk.bf16.gmra.mrb[160].mxu0 %vm469_vm2, %v5640_v11  ;;  %v5653_v52 = vshll.u32 %v11600_v56, 16  ;;  %v6170_v21 = vsel %vm1127_vm3, %v6165_v18, %v6169_v42  ;;  %v11627_v18 = vld [vmem:[%s10071_s20 + $0x38] sm:$0xff]  }
 0x356   : > { %9326 = vmatmul.mubr.msk.bf16.gmra.mrb[160].mxu1 %vm469_vm2, %v6162_v55  ;;  %9259 = vmatprep.mubr.msk.bf16.mxu0 %vm9769_vm1, %v12440_v14  ;;  %v6175_v55 = vshll.u32 %v11608_v28, 16  ;;  %12488 = vst [vmem:[#allocation2_spill] sm:$0xff] %v11627_v18 }
 0x357   : > { %9329 = vmatprep.mubr.msk.bf16.mxu1 %vm9769_vm1, %v12440_v14  ;;  %v5655_v50 = vrot.slane %v5653_v52, 1 }
 0x358   : > { %v4280_v45 = vpop.f32.mrb[56].mxu0 }
 0x359   : > { %v4355_v47 = vadd.f32 %v4280_v45, %v11294_v44  ;;  %v4802_v11 = vpop.f32.mrb[56].mxu1  ;;  %v9009_v60 = vpop.f32.mrb[57].mxu0 }
 0x35a   : > { %v9079_v24 = vpop.f32.mrb[57].mxu1  ;;  %v4283_v41 = vpop.f32.mrb[58].mxu0  ;;  %v5651_v60 = vor.u32 %v5649_v7, %v5647_v30 }
 0x35b   : > { %v11615_v13 = vadd.f32 %v4802_v11, %v4355_v47  ;;  %v4356_v62 = vadd.f32 %v4283_v41, %v11297_v27  ;;  %v4805_v51 = vpop.f32.mrb[58].mxu1  ;;  %v9010_v44 = vpop.f32.mrb[59].mxu0  ;;  %v11630_v27 = vld [vmem:[%s10077_s25 + $0x38] sm:$0xff]   ;;  %v6173_v47 = vor.u32 %v6171_v43, %v6169_v42  ;;  %v6177_v11 = vrot.slane %v6175_v55, 1 }
 0x35c   : > { %v9080_v0 = vpop.f32.mrb[59].mxu1  ;;  %v5656_v7 = vsel %vm1127_vm3, %v5651_v60, %v5655_v50  ;;  %v6179_v44 = vshrl.u32 %v11608_v28, 16 }
 0x35d   : > { %v11620_v45 = vadd.f32 %v4805_v51, %v4356_v62  ;;  %9260 = vmatmul.mubr.msk.bf16.gmra.mrb[164].mxu0 %vm469_vm2, %v5648_v38  ;;  %v5657_v62 = vshrl.u32 %v11600_v56, 16  ;;  %v5661_v51 = vshll.u32 %v11627_v18, 16  ;;  %v6183_v0 = vshll.u32 %v11630_v27, 16 }
 0x35e   : > { %9330 = vmatmul.mubr.msk.bf16.gmra.mrb[164].mxu1 %vm469_vm2, %v6170_v21  ;;  %9263 = vmatprep.mubr.msk.bf16.mxu0 %vm9769_vm1, %v12440_v14 }
 0x35f   : > { %9333 = vmatprep.mubr.msk.bf16.mxu1 %vm9769_vm1, %v12440_v14 }
 0x360   : > { %v4288_v24 = vpop.f32.mrb[60].mxu0 }
 0x361   : > { %v4357_v41 = vadd.f32 %v4288_v24, %v11310_v3  ;;  %v4810_v38 = vpop.f32.mrb[60].mxu1  ;;  %v9013_v30 = vpop.f32.mrb[61].mxu0  ;;  %v6178_v24 = vsel %vm1127_vm3, %v6173_v47, %v6177_v11  ;;  %v11656_v47 = vld [vmem:[%s10077_s25 + $0x40] sm:$0xff]  }
 0x362   : > { %v9083_v52 = vpop.f32.mrb[61].mxu1  ;;  %v4291_v21 = vpop.f32.mrb[62].mxu0 }
 0x363   : > { %v11640_v42 = vadd.f32 %v4810_v38, %v4357_v41  ;;  %v4358_v3 = vadd.f32 %v4291_v21, %v11313_v29  ;;  %v4813_v43 = vpop.f32.mrb[62].mxu1  ;;  %v9014_v55 = vpop.f32.mrb[63].mxu0  ;;  %v11648_v52 = vld [vmem:[%s10071_s20 + $0x40] sm:$0xff]   ;;  %v5659_v41 = vor.u32 %v5657_v62, %v5655_v50  ;;  %v5663_v38 = vrot.slane %v5661_v51, 1 }
 0x364   : > { %v9084_v60 = vpop.f32.mrb[63].mxu1  ;;  %v6185_v29 = vrot.slane %v6183_v0, 1  ;;  %v5665_v55 = vshrl.u32 %v11627_v18, 16  ;;  %v6187_v0 = vshrl.u32 %v11630_v27, 16 }
 0x365   : > { %12489 = vst [vmem:[#allocation3_spill] sm:$0xff] %v11640_v42  ;;  %v11644_v30 = vadd.f32 %v4813_v43, %v4358_v3  ;;  %9264 = vmatmul.mubr.msk.bf16.gmra.mrb[168].mxu0 %vm469_vm2, %v5656_v7  ;;  %v6181_v42 = vor.u32 %v6179_v44, %v6177_v11  ;;  %v5664_v50 = vsel %vm1127_vm3, %v5659_v41, %v5663_v38 }
 0x366   : > { %9334 = vmatmul.mubr.msk.bf16.gmra.mrb[168].mxu1 %vm469_vm2, %v6178_v24  ;;  %9267 = vmatprep.mubr.msk.bf16.mxu0 %vm9769_vm1, %v12440_v14  ;;  %v5669_v24 = vshll.u32 %v11648_v52, 16 }
 0x367   : > { %12490 = vst [vmem:[#allocation4_spill] sm:$0xff] %v11644_v30  ;;  %9337 = vmatprep.mubr.msk.bf16.mxu1 %vm9769_vm1, %v12440_v14  ;;  %v6186_v11 = vsel %vm1127_vm3, %v6181_v42, %v6185_v29  ;;  %v11675_v42 = vld [vmem:[%s10071_s20 + $0x48] sm:$0xff]  }
 0x368   : > { %v4296_v21 = vpop.f32.mrb[64].mxu0  ;;  %v5671_v41 = vrot.slane %v5669_v24, 1  ;;  %12492 = vst [vmem:[#allocation7_spill] sm:$0xff] %v11675_v42 }
 0x369   : > { %v4359_v3 = vadd.f32 %v4296_v21, %v11326_v19  ;;  %v4818_v7 = vpop.f32.mrb[64].mxu1  ;;  %v9017_v43 = vpop.f32.mrb[65].mxu0  ;;  %v6191_v21 = vshll.u32 %v11656_v47, 16 }
 0x36a   : > { %v9087_v60 = vpop.f32.mrb[65].mxu1  ;;  %v4299_v30 = vpop.f32.mrb[66].mxu0 }
 0x36b   : > { %v11663_v62 = vadd.f32 %v4818_v7, %v4359_v3  ;;  %v4360_v51 = vadd.f32 %v4299_v30, %v11329_v53  ;;  %v4821_v44 = vpop.f32.mrb[66].mxu1  ;;  %v9018_v19 = vpop.f32.mrb[67].mxu0  ;;  %v5667_v60 = vor.u32 %v5665_v55, %v5663_v38  ;;  %v11678_v53 = vld [vmem:[%s10077_s25 + $0x48] sm:$0xff]   ;;  %v6189_v30 = vor.u32 %v6187_v0, %v6185_v29 }
 0x36c   : > { %v9088_v43 = vpop.f32.mrb[67].mxu1  ;;  %v6193_v3 = vrot.slane %v6191_v21, 1  ;;  %v5677_v19 = vshll.u32 %v11675_v42, 16 }
 0x36d   : > { %v11668_v18 = vadd.f32 %v4821_v44, %v4360_v51  ;;  %9268 = vmatmul.mubr.msk.bf16.gmra.mrb[172].mxu0 %vm469_vm2, %v5664_v50  ;;  %v5672_v55 = vsel %vm1127_vm3, %v5667_v60, %v5671_v41  ;;  %v5673_v44 = vshrl.u32 %v11648_v52, 16  ;;  %v6195_v43 = vshrl.u32 %v11656_v47, 16 }
 0x36e   : > { %9338 = vmatmul.mubr.msk.bf16.gmra.mrb[172].mxu1 %vm469_vm2, %v6186_v11  ;;  %9271 = vmatprep.mubr.msk.bf16.mxu0 %vm9769_vm1, %v12440_v14 }
 0x36f   : > { %12491 = vst [vmem:[#allocation6_spill] sm:$0xff] %v11668_v18  ;;  %9341 = vmatprep.mubr.msk.bf16.mxu1 %vm9769_vm1, %v12440_v14  ;;  %v6199_v18 = vshll.u32 %v11678_v53, 16 }
 0x370   : > { %v4304_v7 = vpop.f32.mrb[68].mxu0 }
 0x371   : > { %v4361_v51 = vadd.f32 %v4304_v7, %v11342_v9  ;;  %v4826_v50 = vpop.f32.mrb[68].mxu1  ;;  %v9021_v38 = vpop.f32.mrb[69].mxu0  ;;  %v6194_v7 = vsel %vm1127_vm3, %v6189_v30, %v6193_v3  ;;  %v11704_v30 = vld [vmem:[%s10077_s25 + $0x50] sm:$0xff]  }
 0x372   : > { %v9091_v24 = vpop.f32.mrb[69].mxu1  ;;  %v4307_v11 = vpop.f32.mrb[70].mxu0 }
 0x373   : > { %v11688_v29 = vadd.f32 %v4826_v50, %v4361_v51  ;;  %v4362_v9 = vadd.f32 %v4307_v11, %v11345_v5  ;;  %v4829_v0 = vpop.f32.mrb[70].mxu1  ;;  %v9022_v21 = vpop.f32.mrb[71].mxu0  ;;  %v11696_v24 = vld [vmem:[%s10071_s20 + $0x50] sm:$0xff]   ;;  %v5675_v51 = vor.u32 %v5673_v44, %v5671_v41  ;;  %v5679_v50 = vrot.slane %v5677_v19, 1 }
 0x374   : > { %v9092_v60 = vpop.f32.mrb[71].mxu1  ;;  %v6201_v5 = vrot.slane %v6199_v18, 1  ;;  %v5681_v21 = vshrl.u32 %v11675_v42, 16 }
 0x375   : > { %12493 = vst [vmem:[#allocation5_spill] sm:$0xff] %v11688_v29  ;;  %v11692_v38 = vadd.f32 %v4829_v0, %v4362_v9  ;;  %9272 = vmatmul.mubr.msk.bf16.gmra.mrb[176].mxu0 %vm469_vm2, %v5672_v55  ;;  %v6197_v29 = vor.u32 %v6195_v43, %v6193_v3  ;;  %v5680_v41 = vsel %vm1127_vm3, %v5675_v51, %v5679_v50  ;;  %v6203_v43 = vshrl.u32 %v11678_v53, 16 }
 0x376   : > { %9342 = vmatmul.mubr.msk.bf16.gmra.mrb[176].mxu1 %vm469_vm2, %v6194_v7  ;;  %9275 = vmatprep.mubr.msk.bf16.mxu0 %vm9769_vm1, %v12440_v14  ;;  %v5685_v7 = vshll.u32 %v11696_v24, 16 }
 0x377   : > { %12494 = vst [vmem:[#allocation8_spill] sm:$0xff] %v11692_v38  ;;  %9345 = vmatprep.mubr.msk.bf16.mxu1 %vm9769_vm1, %v12440_v14  ;;  %v6202_v18 = vsel %vm1127_vm3, %v6197_v29, %v6201_v5  ;;  %v11723_v29 = vld [vmem:[%s10071_s20 + $0x58] sm:$0xff]  }
 0x378   : > { %v4312_v11 = vpop.f32.mrb[72].mxu0  ;;  %v5687_v51 = vrot.slane %v5685_v7, 1  ;;  %12496 = vst [vmem:[#allocation11_spill] sm:$0xff] %v11723_v29 }
 0x379   : > { %v4363_v9 = vadd.f32 %v4312_v11, %v11358_v26  ;;  %v4834_v55 = vpop.f32.mrb[72].mxu1  ;;  %v9025_v0 = vpop.f32.mrb[73].mxu0  ;;  %v6207_v11 = vshll.u32 %v11704_v30, 16 }
 0x37a   : > { %v9095_v60 = vpop.f32.mrb[73].mxu1  ;;  %v4315_v38 = vpop.f32.mrb[74].mxu0 }
 0x37b   : > { %v11711_v3 = vadd.f32 %v4834_v55, %v4363_v9  ;;  %v4364_v44 = vadd.f32 %v4315_v38, %v11361_v22  ;;  %v4837_v19 = vpop.f32.mrb[74].mxu1  ;;  %v9026_v26 = vpop.f32.mrb[75].mxu0  ;;  %v5683_v60 = vor.u32 %v5681_v21, %v5679_v50  ;;  %v11726_v22 = vld [vmem:[%s10077_s25 + $0x58] sm:$0xff]   ;;  %v6205_v38 = vor.u32 %v6203_v43, %v6201_v5 }
 0x37c   : > { %v9096_v0 = vpop.f32.mrb[75].mxu1  ;;  %v6209_v9 = vrot.slane %v6207_v11, 1  ;;  %v5693_v26 = vshll.u32 %v11723_v29, 16 }
 0x37d   : > { %v11716_v42 = vadd.f32 %v4837_v19, %v4364_v44  ;;  %9276 = vmatmul.mubr.msk.bf16.gmra.mrb[180].mxu0 %vm469_vm2, %v5680_v41  ;;  %v5688_v21 = vsel %vm1127_vm3, %v5683_v60, %v5687_v51  ;;  %v5689_v19 = vshrl.u32 %v11696_v24, 16  ;;  %v6211_v0 = vshrl.u32 %v11704_v30, 16 }
 0x37e   : > { %9346 = vmatmul.mubr.msk.bf16.gmra.mrb[180].mxu1 %vm469_vm2, %v6202_v18  ;;  %9279 = vmatprep.mubr.msk.bf16.mxu0 %vm9769_vm1, %v12440_v14 }
 0x37f   : > { %12495 = vst [vmem:[#allocation10_spill] sm:$0xff] %v11716_v42  ;;  %9349 = vmatprep.mubr.msk.bf16.mxu1 %vm9769_vm1, %v12440_v14  ;;  %v6215_v42 = vshll.u32 %v11726_v22, 16 }
 0x380   : > { %v4320_v55 = vpop.f32.mrb[76].mxu0 }
 0x381   : > { %v4365_v44 = vadd.f32 %v4320_v55, %v11374_v31  ;;  %v4842_v41 = vpop.f32.mrb[76].mxu1  ;;  %v9029_v50 = vpop.f32.mrb[77].mxu0  ;;  %v6210_v55 = vsel %vm1127_vm3, %v6205_v38, %v6209_v9  ;;  %v11752_v38 = vld [vmem:[%s10077_s25 + $0x60] sm:$0xff]  }
 0x382   : > { %v9099_v7 = vpop.f32.mrb[77].mxu1  ;;  %v4323_v18 = vpop.f32.mrb[78].mxu0 }
 0x383   : > { %v11736_v5 = vadd.f32 %v4842_v41, %v4365_v44  ;;  %v4366_v31 = vadd.f32 %v4323_v18, %v11377_v35  ;;  %v4845_v43 = vpop.f32.mrb[78].mxu1  ;;  %v9030_v11 = vpop.f32.mrb[79].mxu0  ;;  %v11744_v7 = vld [vmem:[%s10071_s20 + $0x60] sm:$0xff]   ;;  %v5691_v44 = vor.u32 %v5689_v19, %v5687_v51  ;;  %v5695_v41 = vrot.slane %v5693_v26, 1 }
 0x384   : > { %v9100_v60 = vpop.f32.mrb[79].mxu1  ;;  %v6217_v35 = vrot.slane %v6215_v42, 1  ;;  %v5697_v11 = vshrl.u32 %v11723_v29, 16 }
 0x385   : > { %12497 = vst [vmem:[#allocation9_spill] sm:$0xff] %v11736_v5  ;;  %v11740_v50 = vadd.f32 %v4845_v43, %v4366_v31  ;;  %9280 = vmatmul.mubr.msk.bf16.gmra.mrb[184].mxu0 %vm469_vm2, %v5688_v21  ;;  %v6213_v5 = vor.u32 %v6211_v0, %v6209_v9  ;;  %v5696_v51 = vsel %vm1127_vm3, %v5691_v44, %v5695_v41  ;;  %v6219_v0 = vshrl.u32 %v11726_v22, 16 }
 0x386   : > { %9350 = vmatmul.mubr.msk.bf16.gmra.mrb[184].mxu1 %vm469_vm2, %v6210_v55  ;;  %9283 = vmatprep.mubr.msk.bf16.mxu0 %vm9769_vm1, %v12440_v14  ;;  %v5701_v55 = vshll.u32 %v11744_v7, 16 }
 0x387   : > { %12498 = vst [vmem:[#allocation12_spill] sm:$0xff] %v11740_v50  ;;  %9353 = vmatprep.mubr.msk.bf16.mxu1 %vm9769_vm1, %v12440_v14  ;;  %v6218_v42 = vsel %vm1127_vm3, %v6213_v5, %v6217_v35  ;;  %v11771_v5 = vld [vmem:[%s10071_s20 + $0x68] sm:$0xff]  }
 0x388   : > { %v4328_v18 = vpop.f32.mrb[80].mxu0  ;;  %v5703_v44 = vrot.slane %v5701_v55, 1  ;;  %12500 = vst [vmem:[#allocation15_spill] sm:$0xff] %v11771_v5 }
 0x389   : > { %v4367_v31 = vadd.f32 %v4328_v18, %v11390_v10  ;;  %v4850_v21 = vpop.f32.mrb[80].mxu1  ;;  %v9033_v43 = vpop.f32.mrb[81].mxu0  ;;  %v6223_v18 = vshll.u32 %v11752_v38, 16 }
 0x38a   : > { %v9103_v60 = vpop.f32.mrb[81].mxu1  ;;  %v4331_v50 = vpop.f32.mrb[82].mxu0 }
 0x38b   : > { %v11759_v9 = vadd.f32 %v4850_v21, %v4367_v31  ;;  %v4368_v19 = vadd.f32 %v4331_v50, %v11393_v16  ;;  %v4853_v26 = vpop.f32.mrb[82].mxu1  ;;  %v9034_v10 = vpop.f32.mrb[83].mxu0  ;;  %v5699_v60 = vor.u32 %v5697_v11, %v5695_v41  ;;  %v11774_v16 = vld [vmem:[%s10077_s25 + $0x68] sm:$0xff]   ;;  %v6221_v50 = vor.u32 %v6219_v0, %v6217_v35 }
 0x38c   : > { %v9104_v43 = vpop.f32.mrb[83].mxu1  ;;  %v6225_v31 = vrot.slane %v6223_v18, 1  ;;  %v5709_v10 = vshll.u32 %v11771_v5, 16 }
 0x38d   : > { %v11764_v29 = vadd.f32 %v4853_v26, %v4368_v19  ;;  %9284 = vmatmul.mubr.msk.bf16.gmra.mrb[188].mxu0 %vm469_vm2, %v5696_v51  ;;  %v5704_v11 = vsel %vm1127_vm3, %v5699_v60, %v5703_v44  ;;  %v5705_v26 = vshrl.u32 %v11744_v7, 16  ;;  %v6227_v43 = vshrl.u32 %v11752_v38, 16 }
 0x38e   : > { %9354 = vmatmul.mubr.msk.bf16.gmra.mrb[188].mxu1 %vm469_vm2, %v6218_v42  ;;  %9287 = vmatprep.mubr.msk.bf16.mxu0 %vm9769_vm1, %v12440_v14 }
 0x38f   : > { %12499 = vst [vmem:[#allocation14_spill] sm:$0xff] %v11764_v29  ;;  %9357 = vmatprep.mubr.msk.bf16.mxu1 %vm9769_vm1, %v12440_v14  ;;  %v6231_v29 = vshll.u32 %v11774_v16, 16 }
 0x390   : > { %v5021_v21 = vpop.f32.mrb[84].mxu0 }
 0x391   : > { %v5156_v19 = vadd.f32 %v5021_v21, %v11406_v61  ;;  %v5319_v51 = vpop.f32.mrb[84].mxu1  ;;  %v9109_v41 = vpop.f32.mrb[85].mxu0  ;;  %v6226_v21 = vsel %vm1127_vm3, %v6221_v50, %v6225_v31  ;;  %v11800_v50 = vld [vmem:[%s10077_s25 + $0x70] sm:$0xff]  }
 0x392   : > { %v9179_v55 = vpop.f32.mrb[85].mxu1  ;;  %v5024_v42 = vpop.f32.mrb[86].mxu0 }
 0x393   : > { %v11784_v35 = vadd.f32 %v5319_v51, %v5156_v19  ;;  %v5157_v61 = vadd.f32 %v5024_v42, %v11409_v1  ;;  %v5322_v0 = vpop.f32.mrb[86].mxu1  ;;  %v9110_v18 = vpop.f32.mrb[87].mxu0  ;;  %v11792_v55 = vld [vmem:[%s10071_s20 + $0x70] sm:$0xff]   ;;  %v5707_v19 = vor.u32 %v5705_v26, %v5703_v44  ;;  %v5711_v51 = vrot.slane %v5709_v10, 1 }
 0x394   : > { %v9180_v60 = vpop.f32.mrb[87].mxu1  ;;  %v6233_v1 = vrot.slane %v6231_v29, 1  ;;  %v5713_v18 = vshrl.u32 %v11771_v5, 16 }
 0x395   : > { %12501 = vst [vmem:[#allocation13_spill] sm:$0xff] %v11784_v35  ;;  %v11788_v41 = vadd.f32 %v5322_v0, %v5157_v61  ;;  %9288 = vmatmul.mubr.msk.bf16.gmra.mrb[192].mxu0 %vm469_vm2, %v5704_v11  ;;  %v6229_v35 = vor.u32 %v6227_v43, %v6225_v31  ;;  %v5712_v44 = vsel %vm1127_vm3, %v5707_v19, %v5711_v51  ;;  %v6235_v43 = vshrl.u32 %v11774_v16, 16 }
 0x396   : > { %9358 = vmatmul.mubr.msk.bf16.gmra.mrb[192].mxu1 %vm469_vm2, %v6226_v21  ;;  %9291 = vmatprep.mubr.msk.bf16.mxu0 %vm9769_vm1, %v12440_v14  ;;  %v5717_v21 = vshll.u32 %v11792_v55, 16 }
 0x397   : > { %12502 = vst [vmem:[#allocation16_spill] sm:$0xff] %v11788_v41  ;;  %9361 = vmatprep.mubr.msk.bf16.mxu1 %vm9769_vm1, %v12440_v14  ;;  %v6234_v29 = vsel %vm1127_vm3, %v6229_v35, %v6233_v1  ;;  %v11819_v35 = vld [vmem:[%s10071_s20 + $0x78] sm:$0xff]  }
 0x398   : > { %v5029_v42 = vpop.f32.mrb[88].mxu0  ;;  %v5719_v19 = vrot.slane %v5717_v21, 1  ;;  %12504 = vst [vmem:[#allocation19_spill] sm:$0xff] %v11819_v35 }
 0x399   : > { %v5158_v61 = vadd.f32 %v5029_v42, %v11422_v23  ;;  %v5327_v11 = vpop.f32.mrb[88].mxu1  ;;  %v9113_v0 = vpop.f32.mrb[89].mxu0  ;;  %v6239_v42 = vshll.u32 %v11800_v50, 16 }
 0x39a   : > { %v9183_v60 = vpop.f32.mrb[89].mxu1  ;;  %v5032_v41 = vpop.f32.mrb[90].mxu0 }
 0x39b   : > { %v11807_v31 = vadd.f32 %v5327_v11, %v5158_v61  ;;  %v5159_v26 = vadd.f32 %v5032_v41, %v11425_v49  ;;  %v5330_v10 = vpop.f32.mrb[90].mxu1  ;;  %v9114_v23 = vpop.f32.mrb[91].mxu0  ;;  %v5715_v60 = vor.u32 %v5713_v18, %v5711_v51  ;;  %v11822_v49 = vld [vmem:[%s10077_s25 + $0x78] sm:$0xff]   ;;  %v6237_v41 = vor.u32 %v6235_v43, %v6233_v1 }
 0x39c   : > { %v9184_v0 = vpop.f32.mrb[91].mxu1  ;;  %v6241_v61 = vrot.slane %v6239_v42, 1  ;;  %v5725_v23 = vshll.u32 %v11819_v35, 16 }
 0x39d   : > { %v11812_v5 = vadd.f32 %v5330_v10, %v5159_v26  ;;  %9292 = vmatmul.mubr.msk.bf16.gmra.mrb[196].mxu0 %vm469_vm2, %v5712_v44  ;;  %v5720_v18 = vsel %vm1127_vm3, %v5715_v60, %v5719_v19  ;;  %v5721_v10 = vshrl.u32 %v11792_v55, 16  ;;  %v6243_v0 = vshrl.u32 %v11800_v50, 16 }
 0x39e   : > { %9362 = vmatmul.mubr.msk.bf16.gmra.mrb[196].mxu1 %vm469_vm2, %v6234_v29  ;;  %9295 = vmatprep.mubr.msk.bf16.mxu0 %vm9769_vm1, %v12440_v14 }
 0x39f   : > { %12503 = vst [vmem:[#allocation18_spill] sm:$0xff] %v11812_v5  ;;  %9365 = vmatprep.mubr.msk.bf16.mxu1 %vm9769_vm1, %v12440_v14  ;;  %v6247_v5 = vshll.u32 %v11822_v49, 16 }
 0x3a0   : > { %v5037_v11 = vpop.f32.mrb[92].mxu0 }
 0x3a1   : > { %v5160_v26 = vadd.f32 %v5037_v11, %v11438_v12  ;;  %v5335_v44 = vpop.f32.mrb[92].mxu1  ;;  %v9117_v51 = vpop.f32.mrb[93].mxu0  ;;  %v6242_v11 = vsel %vm1127_vm3, %v6237_v41, %v6241_v61  ;;  %v11848_v41 = vld [vmem:[%s10077_s25 + $0x80] sm:$0xff]  }
 0x3a2   : > { %v9187_v21 = vpop.f32.mrb[93].mxu1  ;;  %v5040_v29 = vpop.f32.mrb[94].mxu0  ;;  %12507 = vst [vmem:[#allocation20_spill] sm:$0xff] %v11848_v41 }
 0x3a3   : > { %v11832_v1 = vadd.f32 %v5335_v44, %v5160_v26  ;;  %v5161_v12 = vadd.f32 %v5040_v29, %v11441_v6  ;;  %v5338_v43 = vpop.f32.mrb[94].mxu1  ;;  %v9118_v42 = vpop.f32.mrb[95].mxu0  ;;  %v11840_v21 = vld [vmem:[%s10071_s20 + $0x80] sm:$0xff]   ;;  %v5723_v26 = vor.u32 %v5721_v10, %v5719_v19  ;;  %v5727_v44 = vrot.slane %v5725_v23, 1 }
 0x3a4   : > { %v9188_v60 = vpop.f32.mrb[95].mxu1  ;;  %v6249_v6 = vrot.slane %v6247_v5, 1  ;;  %v5729_v42 = vshrl.u32 %v11819_v35, 16 }
 0x3a5   : > { %12505 = vst [vmem:[#allocation17_spill] sm:$0xff] %v11832_v1  ;;  %v11836_v51 = vadd.f32 %v5338_v43, %v5161_v12  ;;  %9296 = vmatmul.mubr.msk.bf16.gmra.mrb[200].mxu0 %vm469_vm2, %v5720_v18  ;;  %v6245_v1 = vor.u32 %v6243_v0, %v6241_v61  ;;  %v5728_v19 = vsel %vm1127_vm3, %v5723_v26, %v5727_v44  ;;  %v6251_v0 = vshrl.u32 %v11822_v49, 16 }
 0x3a6   : > { %9366 = vmatmul.mubr.msk.bf16.gmra.mrb[200].mxu1 %vm469_vm2, %v6242_v11  ;;  %9299 = vmatprep.mubr.msk.bf16.mxu0 %vm9769_vm1, %v12440_v14  ;;  %v5733_v11 = vshll.u32 %v11840_v21, 16 }
 0x3a7   : > { %12506 = vst [vmem:[#allocation22_spill] sm:$0xff] %v11836_v51  ;;  %9369 = vmatprep.mubr.msk.bf16.mxu1 %vm9769_vm1, %v12440_v14  ;;  %v6250_v5 = vsel %vm1127_vm3, %v6245_v1, %v6249_v6  ;;  %v11867_v1 = vld [vmem:[%s10071_s20 + $0x88] sm:$0xff]  }
 0x3a8   : > { %v5045_v29 = vpop.f32.mrb[96].mxu0  ;;  %v5735_v26 = vrot.slane %v5733_v11, 1 }
 0x3a9   : > { %v5162_v12 = vadd.f32 %v5045_v29, %v11454_v39  ;;  %v5343_v18 = vpop.f32.mrb[96].mxu1  ;;  %v9121_v43 = vpop.f32.mrb[97].mxu0  ;;  %v6255_v29 = vshll.u32 %v11848_v41, 16 }
 0x3aa   : > { %v9191_v60 = vpop.f32.mrb[97].mxu1  ;;  %v5048_v51 = vpop.f32.mrb[98].mxu0 }
 0x3ab   : > { %v11855_v61 = vadd.f32 %v5343_v18, %v5162_v12  ;;  %v5163_v10 = vadd.f32 %v5048_v51, %v11457_v25  ;;  %v5346_v23 = vpop.f32.mrb[98].mxu1  ;;  %v9122_v39 = vpop.f32.mrb[99].mxu0  ;;  %v5731_v60 = vor.u32 %v5729_v42, %v5727_v44  ;;  %v11870_v25 = vld [vmem:[%s10077_s25 + $0x88] sm:$0xff]   ;;  %v6253_v51 = vor.u32 %v6251_v0, %v6249_v6 }
 0x3ac   : > { %v9192_v43 = vpop.f32.mrb[99].mxu1  ;;  %v6257_v12 = vrot.slane %v6255_v29, 1  ;;  %v5741_v39 = vshll.u32 %v11867_v1, 16 }
 0x3ad   : > { %v11860_v35 = vadd.f32 %v5346_v23, %v5163_v10  ;;  %9300 = vmatmul.mubr.msk.bf16.gmra.mrb[204].mxu0 %vm469_vm2, %v5728_v19  ;;  %v5736_v42 = vsel %vm1127_vm3, %v5731_v60, %v5735_v26  ;;  %v5737_v23 = vshrl.u32 %v11840_v21, 16  ;;  %v6259_v43 = vshrl.u32 %v11848_v41, 16  ;;  %v11891_v41 = vld [vmem:[%s10071_s20 + $0x90] ss:$0 sps:$4 sm:$0x11]  }
 0x3ae   : > { %9370 = vmatmul.mubr.msk.bf16.gmra.mrb[204].mxu1 %vm469_vm2, %v6250_v5  ;;  %9303 = vmatprep.mubr.msk.bf16.mxu0 %vm9769_vm1, %v12440_v14  ;;  %v6258_v60 = vsel %vm1127_vm3, %v6253_v51, %v6257_v12  ;;  %12510 = vst [vmem:[#allocation26_spill] sm:$0xff] %v11891_v41 }
 0x3af   : > { %12508 = vst [vmem:[#allocation21_spill] sm:$0xff] %v11860_v35  ;;  %9373 = vmatprep.mubr.msk.bf16.mxu1 %vm9769_vm1, %v12440_v14  ;;  %v6263_v35 = vshll.u32 %v11870_v25, 16 }
 0x3b0   : > { %v5053_v18 = vpop.f32.mrb[100].mxu0 }
 0x3b1   : > { %v5164_v10 = vadd.f32 %v5053_v18, %v11468_v32  ;;  %v5351_v19 = vpop.f32.mrb[100].mxu1  ;;  %v9125_v44 = vpop.f32.mrb[101].mxu0 }
 0x3b2   : > { %v9195_v11 = vpop.f32.mrb[101].mxu1  ;;  %v5056_v5 = vpop.f32.mrb[102].mxu0 }
 0x3b3   : > { %v11880_v6 = vadd.f32 %v5351_v19, %v5164_v10  ;;  %v5165_v32 = vadd.f32 %v5056_v5, %v11472_v54  ;;  %v5354_v0 = vpop.f32.mrb[102].mxu1  ;;  %v9126_v29 = vpop.f32.mrb[103].mxu0  ;;  %v5739_v11 = vor.u32 %v5737_v23, %v5735_v26  ;;  %v5743_v10 = vrot.slane %v5741_v39, 1  ;;  %v11896_v54 = vld [vmem:[%s10077_s25 + $0x90] ss:$0 sps:$4 sm:$0x11]  }
 0x3b4   : > { %v9196_v18 = vpop.f32.mrb[103].mxu1  ;;  %v6261_v19 = vor.u32 %v6259_v43, %v6257_v12  ;;  %12511 = vst [vmem:[#allocation23_spill] sm:$0xff] %v11896_v54  ;;  %v5749_v12 = vshll.u32 %v11891_v41, 16 }
 0x3b5   : > { %12509 = vst [vmem:[#allocation25_spill] sm:$0xff] %v11880_v6  ;;  %v11884_v44 = vadd.f32 %v5354_v0, %v5165_v32  ;;  %9304 = vmatmul.mubr.msk.bf16.gmra.mrb[208].mxu0 %vm469_vm2, %v5736_v42  ;;  %v6265_v6 = vrot.slane %v6263_v35, 1  ;;  %v5745_v35 = vshrl.u32 %v11867_v1, 16  ;;  %v6267_v18 = vshrl.u32 %v11870_v25, 16 }
 0x3b6   : > { %9374 = vmatmul.mubr.msk.bf16.gmra.mrb[208].mxu1 %vm469_vm2, %v6258_v60  ;;  %9307 = vmatprep.mubr.msk.bf16.mxu0 %vm9769_vm1, %v12440_v14  ;;  %v5744_v60 = vsel %vm1127_vm3, %v5739_v11, %v5743_v10 }
 0x3b7   : > { %9377 = vmatprep.mubr.msk.bf16.mxu1 %vm9769_vm1, %v12440_v14  ;;  %v6266_v26 = vsel %vm1127_vm3, %v6261_v19, %v6265_v6  ;;  %v5747_v19 = vor.u32 %v5745_v35, %v5743_v10  ;;  %v9757_v10 = vld [vmem:[%s10071_s20 + $0xc] sm:$0xf] }
 0x3b8   : > { %v5061_v51 = vpop.f32.mrb[104].mxu0 }
 0x3b9   : > { %v5166_v5 = vadd.f32 %v5061_v51, %v11488_v17  ;;  %v5359_v42 = vpop.f32.mrb[104].mxu1  ;;  %v9129_v32 = vpop.f32.mrb[105].mxu0  ;;  %v6271_v51 = vshll.u32 %v11896_v54, 16 }
 0x3ba   : > { %v9199_v0 = vpop.f32.mrb[105].mxu1  ;;  %v5064_v29 = vpop.f32.mrb[106].mxu0 }
 0x3bb   : > { %v11903_v23 = vadd.f32 %v5359_v42, %v5166_v5  ;;  %v5167_v39 = vadd.f32 %v5064_v29, %v11492_v2  ;;  %v5362_v43 = vpop.f32.mrb[106].mxu1  ;;  %v9130_v17 = vpop.f32.mrb[107].mxu0  ;;  %v5751_v2 = vrot.slane %v5749_v12, 1  ;;  %v6269_v5 = vor.u32 %v6267_v18, %v6265_v6  ;;  %v6532_v0 = vld [vmem:[%s10071_s20 + $0x8] sm:$0xe] }
 0x3bc   : > { %v9200_v32 = vpop.f32.mrb[107].mxu1  ;;  %v6273_v42 = vrot.slane %v6271_v51, 1  ;;  %v8009_v35 = vcombine.low %v6532_v0, %v9757_v10 }
 0x3bd   : > { %12512 = vst [vmem:[#allocation24_spill] sm:$0xff] %v11903_v23  ;;  %v11908_v11 = vadd.f32 %v5362_v43, %v5167_v39  ;;  %9308 = vmatmul.mubr.msk.bf16.gmra.mrb[212].mxu0 %vm469_vm2, %v5744_v60  ;;  %v6830_v39 = vld [vmem:[%s10077_s25 + $0x8] sm:$0xe]  ;;  %v5752_v54 = vsel %vm1127_vm3, %v5747_v19, %v5751_v2  ;;  %v9759_v2 = vld [vmem:[%s10071_s20 + $0x10] sm:$0xff]  }
 0x3be   : > { %9378 = vmatmul.mubr.msk.bf16.gmra.mrb[212].mxu1 %vm469_vm2, %v6266_v26  ;;  %9311 = vmatprep.mubr.msk.bf16.mxu0 %vm9769_vm1, %v12440_v14  ;;  %v6274_v41 = vsel %vm1127_vm3, %v6269_v5, %v6273_v42  ;;  %v6538_v19 = vrot.slane %v8009_v35, 1  ;;  %v6539_v0 = vrot.slane %v9759_v2, 1  ;;  %v6837_v5 = vrot.slane %v11506_v46, 1 }
 0x3bf   : > { %12513 = vst [vmem:[#allocation27_spill] sm:$0xff] %v11908_v11  ;;  %9381 = vmatprep.mubr.msk.bf16.mxu1 %vm9769_vm1, %v12440_v14  ;;  %v9758_v11 = vld [vmem:[%s10077_s25 + $0xc] sm:$0xf]  ;;  %v6541_v46 = vrot.slane %v11523_v4, 1 }
 0x3c0   : > { %v5069_v29 = vpop.f32.mrb[108].mxu0  ;;  %v8028_v23 = vcombine.low %v6830_v39, %v9758_v11 }
 0x3c1   : > { %v5168_v43 = vadd.f32 %v5069_v29, %v11512_v58  ;;  %v5367_v60 = vpop.f32.mrb[108].mxu1  ;;  %v9133_v17 = vpop.f32.mrb[109].mxu0 }
 0x3c2   : > { %v9203_v26 = vpop.f32.mrb[109].mxu1  ;;  %v5072_v32 = vpop.f32.mrb[110].mxu0 }
 0x3c3   : > { %v11921_v12 = vadd.f32 %v5367_v60, %v5168_v43  ;;  %v5169_v6 = vadd.f32 %v5072_v32, %v11516_v48  ;;  %v5370_v18 = vpop.f32.mrb[110].mxu1  ;;  %v9134_v51 = vpop.f32.mrb[111].mxu0  ;;  %v6836_v48 = vrot.slane %v8028_v23, 1 }
 0x3c4   : > { %v9204_v58 = vpop.f32.mrb[111].mxu1 }
 0x3c5   : > { %v11926_v29 = vadd.f32 %v5370_v18, %v5169_v6  ;;  %9312 = vmatmul.mubr.msk.bf16.gmra.mrb[216].mxu0 %vm469_vm2, %v5752_v54  ;;  %v6838_v35 = vsel %vm4897_vm4, %v6836_v48, %v6837_v5  ;;  %v6542_v48 = vsel %vm4897_vm4, %v6539_v0, %v6541_v46 }
 0x3c6   : > { %9382 = vmatmul.mubr.msk.bf16.gmra.mrb[216].mxu1 %vm469_vm2, %v6274_v41  ;;  %9387 = vmatprep.mubr.msk.bf16.mxu0 %vm9769_vm1, %v12440_v14  ;;  %v6540_v41 = vsel %vm4897_vm4, %v6538_v19, %v6539_v0 }
 0x3c7   : > { %9457 = vmatprep.mubr.msk.bf16.mxu1 %vm9769_vm1, %v12440_v14 }
 0x3c8   : > { %v5077_v11 = vpop.f32.mrb[112].mxu0 }
 0x3c9   : > { %v5170_v42 = vadd.f32 %v5077_v11, %v11542_v34  ;;  %v5375_v39 = vpop.f32.mrb[112].mxu1  ;;  %v9137_v43 = vpop.f32.mrb[113].mxu0  ;;  %v6839_v34 = vrot.slane %v11526_v63, 1  ;;  %v6543_v63 = vrot.slane %v11552_v15, 1 }
 0x3ca   : > { %v9207_v54 = vpop.f32.mrb[113].mxu1  ;;  %v5080_v60 = vpop.f32.mrb[114].mxu0 }
 0x3cb   : > { %v11938_v17 = vadd.f32 %v5375_v39, %v5170_v42  ;;  %v5171_v26 = vadd.f32 %v5080_v60, %v11548_v59  ;;  %v5378_v32 = vpop.f32.mrb[114].mxu1  ;;  %v9138_v10 = vpop.f32.mrb[115].mxu0  ;;  %v6840_v43 = vsel %vm4897_vm4, %v6837_v5, %v6839_v34 }
 0x3cc   : > { %v9208_v23 = vpop.f32.mrb[115].mxu1  ;;  %v6544_v10 = vsel %vm4897_vm4, %v6541_v46, %v6543_v63 }
 0x3cd   : > { %v11942_v6 = vadd.f32 %v5378_v32, %v5171_v26  ;;  %9388 = vmatmul.mubr.msk.bf16.vlgmr.msra.gmra.mrb[220].mxu0 %vm469_vm2, %v6540_v41 }
 0x3ce   : > { %9458 = vmatmul.mubr.msk.bf16.vlgmr.msra.gmra.mrb[220].mxu1 %vm469_vm2, %v6838_v35  ;;  %9391 = vmatprep.mubr.msk.bf16.mxu0 %vm9769_vm1, %v12440_v14 }
 0x3cf   : > { %9461 = vmatprep.mubr.msk.bf16.mxu1 %vm9769_vm1, %v12440_v14 }
 0x3d0   : > { %v5085_v59 = vpop.f32.mrb[116].mxu0 }
 0x3d1   : > { %v5172_v18 = vadd.f32 %v5085_v59, %v11567_v8  ;;  %v5383_v51 = vpop.f32.mrb[116].mxu1  ;;  %v9141_v58 = vpop.f32.mrb[117].mxu0  ;;  %v6841_v8 = vrot.slane %v11558_v37, 1  ;;  %v6545_v37 = vrot.slane %v11579_v57, 1 }
 0x3d2   : > { %v9211_v19 = vpop.f32.mrb[117].mxu1  ;;  %v5088_v2 = vpop.f32.mrb[118].mxu0 }
 0x3d3   : > { %v11954_v11 = vadd.f32 %v5383_v51, %v5172_v18  ;;  %v5173_v42 = vadd.f32 %v5088_v2, %v11572_v33  ;;  %v5386_v39 = vpop.f32.mrb[118].mxu1  ;;  %v9142_v4 = vpop.f32.mrb[119].mxu0  ;;  %v6842_v18 = vsel %vm4897_vm4, %v6839_v34, %v6841_v8 }
 0x3d4   : > { %v9212_v54 = vpop.f32.mrb[119].mxu1 }
 0x3d5   : > { %v11958_v60 = vadd.f32 %v5386_v39, %v5173_v42  ;;  %9392 = vmatmul.mubr.msk.bf16.gmra.mrb[224].mxu0 %vm469_vm2, %v6542_v48  ;;  %v6546_v42 = vsel %vm4897_vm4, %v6543_v63, %v6545_v37  ;;  %v12514_v63 = vld [vmem:[#allocation3_spill] sm:$0xff] }
 0x3d6   : > { %9462 = vmatmul.mubr.msk.bf16.gmra.mrb[224].mxu1 %vm469_vm2, %v6840_v43  ;;  %9395 = vmatprep.mubr.msk.bf16.mxu0 %vm9769_vm1, %v12440_v14 }
 0x3d7   : > { %9465 = vmatprep.mubr.msk.bf16.mxu1 %vm9769_vm1, %v12440_v14 }
 0x3d8   : > { %v5093_v33 = vpop.f32.mrb[120].mxu0 }
 0x3d9   : > { %v5174_v0 = vadd.f32 %v5093_v33, %v11592_v40  ;;  %v5391_v5 = vpop.f32.mrb[120].mxu1  ;;  %v9145_v41 = vpop.f32.mrb[121].mxu0  ;;  %v6843_v40 = vrot.slane %v11582_v36, 1  ;;  %v6547_v36 = vrot.slane %v11600_v56, 1 }
 0x3da   : > { %v9215_v26 = vpop.f32.mrb[121].mxu1  ;;  %v5096_v32 = vpop.f32.mrb[122].mxu0 }
 0x3db   : > { %v11970_v35 = vadd.f32 %v5391_v5, %v5174_v0  ;;  %v5175_v23 = vadd.f32 %v5096_v32, %v11596_v20  ;;  %v5394_v59 = vpop.f32.mrb[122].mxu1  ;;  %v9146_v15 = vpop.f32.mrb[123].mxu0  ;;  %v6844_v54 = vsel %vm4897_vm4, %v6841_v8, %v6843_v40 }
 0x3dc   : > { %v9216_v51 = vpop.f32.mrb[123].mxu1 }
 0x3dd   : > { %v11974_v58 = vadd.f32 %v5394_v59, %v5175_v23  ;;  %9396 = vmatmul.mubr.msk.bf16.gmra.mrb[228].mxu0 %vm469_vm2, %v6544_v10  ;;  %v6548_v10 = vsel %vm4897_vm4, %v6545_v37, %v6547_v36  ;;  %v12515_v59 = vld [vmem:[#allocation4_spill] sm:$0xff] }
 0x3de   : > { %9466 = vmatmul.mubr.msk.bf16.gmra.mrb[228].mxu1 %vm469_vm2, %v6842_v18  ;;  %9399 = vmatprep.mubr.msk.bf16.mxu0 %vm9769_vm1, %v12440_v14 }
 0x3df   : > { %9469 = vmatprep.mubr.msk.bf16.mxu1 %vm9769_vm1, %v12440_v14 }
 0x3e0   : > { %v5101_v20 = vpop.f32.mrb[124].mxu0 }
 0x3e1   : > { %v5176_v46 = vadd.f32 %v5101_v20, %v11615_v13  ;;  %v5399_v34 = vpop.f32.mrb[124].mxu1  ;;  %v9149_v19 = vpop.f32.mrb[125].mxu0  ;;  %v6845_v13 = vrot.slane %v11608_v28, 1  ;;  %v12516_v28 = vld [vmem:[#allocation2_spill] sm:$0xff] }
 0x3e2   : > { %v9219_v2 = vpop.f32.mrb[125].mxu1  ;;  %v5104_v48 = vpop.f32.mrb[126].mxu0  ;;  %v6549_v37 = vrot.slane %v12516_v28, 1 }
 0x3e3   : > { %v11986_v39 = vadd.f32 %v5399_v34, %v5176_v46  ;;  %v5177_v4 = vadd.f32 %v5104_v48, %v11620_v45  ;;  %v5402_v43 = vpop.f32.mrb[126].mxu1  ;;  %v9150_v57 = vpop.f32.mrb[127].mxu0  ;;  %v6846_v51 = vsel %vm4897_vm4, %v6843_v40, %v6845_v13  ;;  %v6847_v34 = vrot.slane %v11630_v27, 1 }
 0x3e4   : > { %v9220_v33 = vpop.f32.mrb[127].mxu1  ;;  %v6551_v27 = vrot.slane %v11648_v52, 1 }
 0x3e5   : > { %v11990_v0 = vadd.f32 %v5402_v43, %v5177_v4  ;;  %9400 = vmatmul.mubr.msk.bf16.gmra.mrb[232].mxu0 %vm469_vm2, %v6546_v42  ;;  %v6550_v43 = vsel %vm4897_vm4, %v6547_v36, %v6549_v37 }
 0x3e6   : > { %9470 = vmatmul.mubr.msk.bf16.gmra.mrb[232].mxu1 %vm469_vm2, %v6844_v54  ;;  %9403 = vmatprep.mubr.msk.bf16.mxu0 %vm9769_vm1, %v12440_v14  ;;  %v12517_v54 = vld [vmem:[#allocation6_spill] sm:$0xff] }
 0x3e7   : > { %9473 = vmatprep.mubr.msk.bf16.mxu1 %vm9769_vm1, %v12440_v14 }
 0x3e8   : > { %v5109_v45 = vpop.f32.mrb[128].mxu0 }
 0x3e9   : > { %v5178_v8 = vadd.f32 %v5109_v45, %v12514_v63  ;;  %v5407_v5 = vpop.f32.mrb[128].mxu1  ;;  %v9153_v41 = vpop.f32.mrb[129].mxu0 }
 0x3ea   : > { %v9223_v26 = vpop.f32.mrb[129].mxu1  ;;  %v5112_v32 = vpop.f32.mrb[130].mxu0 }
 0x3eb   : > { %v12002_v23 = vadd.f32 %v5407_v5, %v5178_v8  ;;  %v5179_v15 = vadd.f32 %v5112_v32, %v12515_v59  ;;  %v5410_v18 = vpop.f32.mrb[130].mxu1  ;;  %v9154_v56 = vpop.f32.mrb[131].mxu0  ;;  %v6848_v8 = vsel %vm4897_vm4, %v6845_v13, %v6847_v34  ;;  %v12518_v26 = vld [vmem:[#allocation5_spill] sm:$0xff] }
 0x3ec   : > { %v9224_v20 = vpop.f32.mrb[131].mxu1 }
 0x3ed   : > { %v12006_v46 = vadd.f32 %v5410_v18, %v5179_v15  ;;  %9404 = vmatmul.mubr.msk.bf16.gmra.mrb[236].mxu0 %vm469_vm2, %v6548_v10  ;;  %v6552_v18 = vsel %vm4897_vm4, %v6549_v37, %v6551_v27 }
 0x3ee   : > { %9474 = vmatmul.mubr.msk.bf16.gmra.mrb[236].mxu1 %vm469_vm2, %v6846_v51  ;;  %9407 = vmatprep.mubr.msk.bf16.mxu0 %vm9769_vm1, %v12440_v14  ;;  %v12519_v51 = vld [vmem:[#allocation8_spill] sm:$0xff] }
 0x3ef   : > { %9477 = vmatprep.mubr.msk.bf16.mxu1 %vm9769_vm1, %v12440_v14 }
 0x3f0   : > { %v5117_v19 = vpop.f32.mrb[132].mxu0 }
 0x3f1   : > { %v5180_v40 = vadd.f32 %v5117_v19, %v11663_v62  ;;  %v5415_v2 = vpop.f32.mrb[132].mxu1  ;;  %v9157_v48 = vpop.f32.mrb[133].mxu0  ;;  %v6849_v62 = vrot.slane %v11656_v47, 1  ;;  %v12520_v47 = vld [vmem:[#allocation7_spill] sm:$0xff] }
 0x3f2   : > { %v9227_v42 = vpop.f32.mrb[133].mxu1  ;;  %v5120_v4 = vpop.f32.mrb[134].mxu0  ;;  %v6553_v37 = vrot.slane %v12520_v47, 1  ;;  %v6851_v48 = vrot.slane %v11678_v53, 1  ;;  %v6555_v53 = vrot.slane %v11696_v24, 1 }
 0x3f3   : > { %v12018_v57 = vadd.f32 %v5415_v2, %v5180_v40  ;;  %v5181_v33 = vadd.f32 %v5120_v4, %v12517_v54  ;;  %v5418_v45 = vpop.f32.mrb[134].mxu1  ;;  %v9158_v63 = vpop.f32.mrb[135].mxu0  ;;  %v6850_v19 = vsel %vm4897_vm4, %v6847_v34, %v6849_v62 }
 0x3f4   : > { %v9228_v5 = vpop.f32.mrb[135].mxu1 }
 0x3f5   : > { %v12022_v41 = vadd.f32 %v5418_v45, %v5181_v33  ;;  %9408 = vmatmul.mubr.msk.bf16.gmra.mrb[240].mxu0 %vm469_vm2, %v6550_v43  ;;  %v6554_v45 = vsel %vm4897_vm4, %v6551_v27, %v6553_v37 }
 0x3f6   : > { %9478 = vmatmul.mubr.msk.bf16.gmra.mrb[240].mxu1 %vm469_vm2, %v6848_v8  ;;  %9411 = vmatprep.mubr.msk.bf16.mxu0 %vm9769_vm1, %v12440_v14  ;;  %v12521_v8 = vld [vmem:[#allocation10_spill] sm:$0xff] }
 0x3f7   : > { %9481 = vmatprep.mubr.msk.bf16.mxu1 %vm9769_vm1, %v12440_v14 }
 0x3f8   : > { %v5125_v36 = vpop.f32.mrb[136].mxu0 }
 0x3f9   : > { %v5182_v13 = vadd.f32 %v5125_v36, %v12518_v26  ;;  %v5423_v32 = vpop.f32.mrb[136].mxu1  ;;  %v9161_v10 = vpop.f32.mrb[137].mxu0 }
 0x3fa   : > { %v9231_v59 = vpop.f32.mrb[137].mxu1  ;;  %v5128_v15 = vpop.f32.mrb[138].mxu0 }
 0x3fb   : > { %v12034_v56 = vadd.f32 %v5423_v32, %v5182_v13  ;;  %v5183_v20 = vadd.f32 %v5128_v15, %v12519_v51  ;;  %v5426_v28 = vpop.f32.mrb[138].mxu1  ;;  %v9162_v52 = vpop.f32.mrb[139].mxu0  ;;  %v6852_v13 = vsel %vm4897_vm4, %v6849_v62, %v6851_v48  ;;  %v12522_v59 = vld [vmem:[#allocation9_spill] sm:$0xff] }
 0x3fc   : > { %v9232_v40 = vpop.f32.mrb[139].mxu1 }
 0x3fd   : > { %v12038_v2 = vadd.f32 %v5426_v28, %v5183_v20  ;;  %9412 = vmatmul.mubr.msk.bf16.gmra.mrb[244].mxu0 %vm469_vm2, %v6552_v18  ;;  %v6556_v28 = vsel %vm4897_vm4, %v6553_v37, %v6555_v53 }
 0x3fe   : > { %9482 = vmatmul.mubr.msk.bf16.gmra.mrb[244].mxu1 %vm469_vm2, %v6850_v19  ;;  %9415 = vmatprep.mubr.msk.bf16.mxu0 %vm9769_vm1, %v12440_v14  ;;  %v12523_v19 = vld [vmem:[#allocation12_spill] sm:$0xff] }
 0x3ff   : > { %9485 = vmatprep.mubr.msk.bf16.mxu1 %vm9769_vm1, %v12440_v14 }
 0x400   : > { %v5133_v42 = vpop.f32.mrb[140].mxu0 }
 0x401   : > { %v5184_v34 = vadd.f32 %v5133_v42, %v11711_v3  ;;  %v5431_v4 = vpop.f32.mrb[140].mxu1  ;;  %v9165_v43 = vpop.f32.mrb[141].mxu0  ;;  %v6853_v3 = vrot.slane %v11704_v30, 1  ;;  %v12524_v30 = vld [vmem:[#allocation11_spill] sm:$0xff] }
 0x402   : > { %v9235_v54 = vpop.f32.mrb[141].mxu1  ;;  %v5136_v33 = vpop.f32.mrb[142].mxu0  ;;  %v6557_v37 = vrot.slane %v12524_v30, 1  ;;  %v6855_v43 = vrot.slane %v11726_v22, 1  ;;  %v6559_v22 = vrot.slane %v11744_v7, 1 }
 0x403   : > { %v12050_v63 = vadd.f32 %v5431_v4, %v5184_v34  ;;  %v5185_v5 = vadd.f32 %v5136_v33, %v12521_v8  ;;  %v5434_v36 = vpop.f32.mrb[142].mxu1  ;;  %v9166_v26 = vpop.f32.mrb[143].mxu0  ;;  %v6854_v42 = vsel %vm4897_vm4, %v6851_v48, %v6853_v3 }
 0x404   : > { %v9236_v32 = vpop.f32.mrb[143].mxu1 }
 0x405   : > { %v12054_v10 = vadd.f32 %v5434_v36, %v5185_v5  ;;  %9416 = vmatmul.mubr.msk.bf16.gmra.mrb[248].mxu0 %vm469_vm2, %v6554_v45  ;;  %v6558_v36 = vsel %vm4897_vm4, %v6555_v53, %v6557_v37 }
 0x406   : > { %9486 = vmatmul.mubr.msk.bf16.gmra.mrb[248].mxu1 %vm469_vm2, %v6852_v13  ;;  %9419 = vmatprep.mubr.msk.bf16.mxu0 %vm9769_vm1, %v12440_v14  ;;  %v12525_v13 = vld [vmem:[#allocation14_spill] sm:$0xff] }
 0x407   : > { %9489 = vmatprep.mubr.msk.bf16.mxu1 %vm9769_vm1, %v12440_v14 }
 0x408   : > { %v5141_v27 = vpop.f32.mrb[144].mxu0 }
 0x409   : > { %v5186_v62 = vadd.f32 %v5141_v27, %v12522_v59  ;;  %v5439_v15 = vpop.f32.mrb[144].mxu1  ;;  %v9169_v18 = vpop.f32.mrb[145].mxu0 }
 0x40a   : > { %v9239_v51 = vpop.f32.mrb[145].mxu1  ;;  %v5144_v20 = vpop.f32.mrb[146].mxu0 }
 0x40b   : > { %v12066_v52 = vadd.f32 %v5439_v15, %v5186_v62  ;;  %v5187_v40 = vadd.f32 %v5144_v20, %v12523_v19  ;;  %v5442_v47 = vpop.f32.mrb[146].mxu1  ;;  %v9170_v24 = vpop.f32.mrb[147].mxu0  ;;  %v6856_v62 = vsel %vm4897_vm4, %v6853_v3, %v6855_v43  ;;  %v12526_v51 = vld [vmem:[#allocation13_spill] sm:$0xff] }
 0x40c   : > { %v9240_v34 = vpop.f32.mrb[147].mxu1 }
 0x40d   : > { %v12070_v4 = vadd.f32 %v5442_v47, %v5187_v40  ;;  %9420 = vmatmul.mubr.msk.bf16.gmra.mrb[252].mxu0 %vm469_vm2, %v6556_v28  ;;  %v6560_v47 = vsel %vm4897_vm4, %v6557_v37, %v6559_v22 }
 0x40e   : > { %9490 = vmatmul.mubr.msk.bf16.gmra.mrb[252].mxu1 %vm469_vm2, %v6854_v42  ;;  %9423 = vmatprep.mubr.msk.bf16.mxu0 %vm9769_vm1, %v12440_v14  ;;  %v12527_v42 = vld [vmem:[#allocation16_spill] sm:$0xff] }
 0x40f   : > { %9493 = vmatprep.mubr.msk.bf16.mxu1 %vm9769_vm1, %v12440_v14 }
 0x410   : > { %v5149_v54 = vpop.f32.mrb[148].mxu0 }
 0x411   : > { %v5188_v48 = vadd.f32 %v5149_v54, %v11759_v9  ;;  %v5447_v33 = vpop.f32.mrb[148].mxu1  ;;  %v9173_v45 = vpop.f32.mrb[149].mxu0  ;;  %v6857_v9 = vrot.slane %v11752_v38, 1  ;;  %v12528_v38 = vld [vmem:[#allocation15_spill] sm:$0xff] }
 0x412   : > { %v9243_v8 = vpop.f32.mrb[149].mxu1  ;;  %v5152_v5 = vpop.f32.mrb[150].mxu0  ;;  %v6561_v37 = vrot.slane %v12528_v38, 1  ;;  %v6859_v45 = vrot.slane %v11774_v16, 1  ;;  %v6563_v16 = vrot.slane %v11792_v55, 1 }
 0x413   : > { %v12082_v26 = vadd.f32 %v5447_v33, %v5188_v48  ;;  %v5189_v32 = vadd.f32 %v5152_v5, %v12525_v13  ;;  %v5450_v27 = vpop.f32.mrb[150].mxu1  ;;  %v9174_v59 = vpop.f32.mrb[151].mxu0  ;;  %v6858_v54 = vsel %vm4897_vm4, %v6855_v43, %v6857_v9 }
 0x414   : > { %v9244_v15 = vpop.f32.mrb[151].mxu1 }
 0x415   : > { %v12086_v18 = vadd.f32 %v5450_v27, %v5189_v32  ;;  %9424 = vmatmul.mubr.msk.bf16.gmra.mrb[0].mxu0 %vm469_vm2, %v6558_v36  ;;  %v6562_v27 = vsel %vm4897_vm4, %v6559_v22, %v6561_v37 }
 0x416   : > { %9494 = vmatmul.mubr.msk.bf16.gmra.mrb[0].mxu1 %vm469_vm2, %v6856_v62  ;;  %9427 = vmatprep.mubr.msk.bf16.mxu0 %vm9769_vm1, %v12440_v14  ;;  %v12529_v62 = vld [vmem:[#allocation18_spill] sm:$0xff] }
 0x417   : > { %9497 = vmatprep.mubr.msk.bf16.mxu1 %vm9769_vm1, %v12440_v14 }
 0x418   : > { %v5841_v53 = vpop.f32.mrb[152].mxu0 }
 0x419   : > { %v5976_v3 = vadd.f32 %v5841_v53, %v12526_v51  ;;  %v6363_v20 = vpop.f32.mrb[152].mxu1  ;;  %v9249_v28 = vpop.f32.mrb[153].mxu0 }
 0x41a   : > { %v9319_v19 = vpop.f32.mrb[153].mxu1  ;;  %v5844_v40 = vpop.f32.mrb[154].mxu0 }
 0x41b   : > { %v12098_v24 = vadd.f32 %v6363_v20, %v5976_v3  ;;  %v5977_v34 = vadd.f32 %v5844_v40, %v12527_v42  ;;  %v6366_v30 = vpop.f32.mrb[154].mxu1  ;;  %v9250_v7 = vpop.f32.mrb[155].mxu0  ;;  %v6860_v3 = vsel %vm4897_vm4, %v6857_v9, %v6859_v45  ;;  %v12530_v19 = vld [vmem:[#allocation17_spill] sm:$0xff] }
 0x41c   : > { %v9320_v48 = vpop.f32.mrb[155].mxu1 }
 0x41d   : > { %v12102_v33 = vadd.f32 %v6366_v30, %v5977_v34  ;;  %9428 = vmatmul.mubr.msk.bf16.gmra.mrb[4].mxu0 %vm469_vm2, %v6560_v47  ;;  %v6564_v30 = vsel %vm4897_vm4, %v6561_v37, %v6563_v16 }
 0x41e   : > { %9498 = vmatmul.mubr.msk.bf16.gmra.mrb[4].mxu1 %vm469_vm2, %v6858_v54  ;;  %9431 = vmatprep.mubr.msk.bf16.mxu0 %vm9769_vm1, %v12440_v14  ;;  %v12531_v54 = vld [vmem:[#allocation22_spill] sm:$0xff] }
 0x41f   : > { %9501 = vmatprep.mubr.msk.bf16.mxu1 %vm9769_vm1, %v12440_v14 }
 0x420   : > { %v5849_v8 = vpop.f32.mrb[156].mxu0 }
 0x421   : > { %v5978_v43 = vadd.f32 %v5849_v8, %v11807_v31  ;;  %v6371_v5 = vpop.f32.mrb[156].mxu1  ;;  %v9253_v36 = vpop.f32.mrb[157].mxu0  ;;  %v6861_v31 = vrot.slane %v11800_v50, 1  ;;  %v12532_v50 = vld [vmem:[#allocation19_spill] sm:$0xff] }
 0x422   : > { %v9323_v13 = vpop.f32.mrb[157].mxu1  ;;  %v5852_v32 = vpop.f32.mrb[158].mxu0  ;;  %v6565_v37 = vrot.slane %v12532_v50, 1  ;;  %v6863_v36 = vrot.slane %v11822_v49, 1  ;;  %v6567_v49 = vrot.slane %v11840_v21, 1 }
 0x423   : > { %v12114_v59 = vadd.f32 %v6371_v5, %v5978_v43  ;;  %v5979_v15 = vadd.f32 %v5852_v32, %v12529_v62  ;;  %v6374_v53 = vpop.f32.mrb[158].mxu1  ;;  %v9254_v51 = vpop.f32.mrb[159].mxu0  ;;  %v6862_v8 = vsel %vm4897_vm4, %v6859_v45, %v6861_v31 }
 0x424   : > { %v9324_v20 = vpop.f32.mrb[159].mxu1 }
 0x425   : > { %v12118_v28 = vadd.f32 %v6374_v53, %v5979_v15  ;;  %9432 = vmatmul.mubr.msk.bf16.gmra.mrb[8].mxu0 %vm469_vm2, %v6562_v27  ;;  %v6566_v53 = vsel %vm4897_vm4, %v6563_v16, %v6565_v37 }
 0x426   : > { %9502 = vmatmul.mubr.msk.bf16.gmra.mrb[8].mxu1 %vm469_vm2, %v6860_v3  ;;  %9435 = vmatprep.mubr.msk.bf16.mxu0 %vm9769_vm1, %v12440_v14  ;;  %v12533_v3 = vld [vmem:[#allocation21_spill] sm:$0xff] }
 0x427   : > { %9505 = vmatprep.mubr.msk.bf16.mxu1 %vm9769_vm1, %v12440_v14 }
 0x428   : > { %v5857_v22 = vpop.f32.mrb[160].mxu0 }
 0x429   : > { %v5980_v9 = vadd.f32 %v5857_v22, %v12530_v19  ;;  %v6379_v40 = vpop.f32.mrb[160].mxu1  ;;  %v9257_v47 = vpop.f32.mrb[161].mxu0 }
 0x42a   : > { %v9327_v42 = vpop.f32.mrb[161].mxu1  ;;  %v5860_v34 = vpop.f32.mrb[162].mxu0 }
 0x42b   : > { %v12130_v7 = vadd.f32 %v6379_v40, %v5980_v9  ;;  %v5981_v48 = vadd.f32 %v5860_v34, %v12531_v54  ;;  %v6382_v38 = vpop.f32.mrb[162].mxu1  ;;  %v9258_v55 = vpop.f32.mrb[163].mxu0  ;;  %v6864_v9 = vsel %vm4897_vm4, %v6861_v31, %v6863_v36  ;;  %v12535_v34 = vld [vmem:[#allocation25_spill] sm:$0xff] }
 0x42c   : > { %v9328_v43 = vpop.f32.mrb[163].mxu1  ;;  %v6568_v55 = vsel %vm4897_vm4, %v6565_v37, %v6567_v49  ;;  %v6569_v37 = vrot.slane %v11867_v1, 1 }
 0x42d   : > { %v12134_v5 = vadd.f32 %v6382_v38, %v5981_v48  ;;  %9436 = vmatmul.mubr.msk.bf16.gmra.mrb[12].mxu0 %vm469_vm2, %v6564_v30 }
 0x42e   : > { %9506 = vmatmul.mubr.msk.bf16.gmra.mrb[12].mxu1 %vm469_vm2, %v6862_v8  ;;  %9439 = vmatprep.mubr.msk.bf16.mxu0 %vm9769_vm1, %v12440_v14 }
 0x42f   : > { %9509 = vmatprep.mubr.msk.bf16.mxu1 %vm9769_vm1, %v12440_v14 }
 0x430   : > { %v5865_v13 = vpop.f32.mrb[164].mxu0 }
 0x431   : > { %v5982_v45 = vadd.f32 %v5865_v13, %v11855_v61  ;;  %v6387_v32 = vpop.f32.mrb[164].mxu1  ;;  %v9261_v27 = vpop.f32.mrb[165].mxu0  ;;  %v12534_v61 = vld [vmem:[#allocation20_spill] sm:$0xff] }
 0x432   : > { %v9331_v62 = vpop.f32.mrb[165].mxu1  ;;  %v5868_v15 = vpop.f32.mrb[166].mxu0  ;;  %v6865_v16 = vrot.slane %v12534_v61, 1 }
 0x433   : > { %v12146_v51 = vadd.f32 %v6387_v32, %v5982_v45  ;;  %v5983_v20 = vadd.f32 %v5868_v15, %v12533_v3  ;;  %v6390_v22 = vpop.f32.mrb[166].mxu1  ;;  %v9262_v19 = vpop.f32.mrb[167].mxu0  ;;  %v12536_v62 = vld [vmem:[#allocation24_spill] sm:$0xff] }
 0x434   : > { %v9332_v40 = vpop.f32.mrb[167].mxu1  ;;  %v6866_v13 = vsel %vm4897_vm4, %v6863_v36, %v6865_v16 }
 0x435   : > { %v12150_v47 = vadd.f32 %v6390_v22, %v5983_v20  ;;  %9440 = vmatmul.mubr.msk.bf16.gmra.mrb[16].mxu0 %vm469_vm2, %v6566_v53  ;;  %v6570_v22 = vsel %vm4897_vm4, %v6567_v49, %v6569_v37 }
 0x436   : > { %9510 = vmatmul.mubr.msk.bf16.gmra.mrb[16].mxu1 %vm469_vm2, %v6864_v9  ;;  %9443 = vmatprep.mubr.msk.bf16.mxu0 %vm9769_vm1, %v12440_v14  ;;  %v12537_v9 = vld [vmem:[#allocation27_spill] sm:$0xff] }
 0x437   : > { %9513 = vmatprep.mubr.msk.bf16.mxu1 %vm9769_vm1, %v12440_v14 }
 0x438   : > { %v5873_v42 = vpop.f32.mrb[168].mxu0 }
 0x439   : > { %v5984_v31 = vadd.f32 %v5873_v42, %v12535_v34  ;;  %v6395_v30 = vpop.f32.mrb[168].mxu1  ;;  %v9265_v54 = vpop.f32.mrb[169].mxu0 }
 0x43a   : > { %v9335_v48 = vpop.f32.mrb[169].mxu1  ;;  %v5876_v38 = vpop.f32.mrb[170].mxu0 }
 0x43b   : > { %v12162_v8 = vadd.f32 %v6395_v30, %v5984_v31  ;;  %v5985_v43 = vadd.f32 %v5876_v38, %v11884_v44  ;;  %v6398_v50 = vpop.f32.mrb[170].mxu1  ;;  %v9266_v21 = vpop.f32.mrb[171].mxu0  ;;  %v6867_v44 = vrot.slane %v11870_v25, 1  ;;  %v12538_v25 = vld [vmem:[#allocation26_spill] sm:$0xff]  ;;  %v12539_v30 = vld [vmem:[#allocation23_spill] sm:$0xff] }
 0x43c   : > { %v9336_v45 = vpop.f32.mrb[171].mxu1  ;;  %v6571_v49 = vrot.slane %v12538_v25, 1  ;;  %v6869_v54 = vrot.slane %v12539_v30, 1 }
 0x43d   : > { %v12166_v32 = vadd.f32 %v6398_v50, %v5985_v43  ;;  %9444 = vmatmul.mubr.msk.bf16.gmra.mrb[20].mxu0 %vm469_vm2, %v6568_v55  ;;  %v6868_v42 = vsel %vm4897_vm4, %v6865_v16, %v6867_v44 }
 0x43e   : > { %9514 = vmatmul.mubr.msk.bf16.gmra.mrb[20].mxu1 %vm469_vm2, %v6866_v13  ;;  %9447 = vmatprep.mubr.msk.bf16.mxu0 %vm9769_vm1, %v12440_v14  ;;  %v6572_v21 = vsel %vm4897_vm4, %v6569_v37, %v6571_v49 }
 0x43f   : > { %9517 = vmatprep.mubr.msk.bf16.mxu1 %vm9769_vm1, %v12440_v14 }
 0x440   : > { %v5881_v27 = vpop.f32.mrb[172].mxu0 }
 0x441   : > { %v5986_v36 = vadd.f32 %v5881_v27, %v12536_v62  ;;  %v6403_v15 = vpop.f32.mrb[172].mxu1  ;;  %v9269_v53 = vpop.f32.mrb[173].mxu0 }
 0x442   : > { %v9339_v3 = vpop.f32.mrb[173].mxu1  ;;  %v5884_v20 = vpop.f32.mrb[174].mxu0 }
 0x443   : > { %v12178_v19 = vadd.f32 %v6403_v15, %v5986_v36  ;;  %v5987_v40 = vadd.f32 %v5884_v20, %v12537_v9  ;;  %v6406_v61 = vpop.f32.mrb[174].mxu1  ;;  %v9270_v1 = vpop.f32.mrb[175].mxu0  ;;  %v6870_v36 = vsel %vm4897_vm4, %v6867_v44, %v6869_v54 }
 0x444   : > { %v9340_v34 = vpop.f32.mrb[175].mxu1 }
 0x445   : > { %v12182_v31 = vadd.f32 %v6406_v61, %v5987_v40  ;;  %9448 = vmatmul.mubr.msk.bf16.gmra.mrb[24].mxu0 %vm469_vm2, %v6570_v22 }
 0x446   : > { %9518 = vmatmul.mubr.msk.bf16.gmra.mrb[24].mxu1 %vm469_vm2, %v6868_v42  ;;  %9451 = vmatprep.mubr.msk.bf16.mxu0 %vm9769_vm1, %v12440_v14 }
 0x447   : > { %9521 = vmatprep.mubr.msk.bf16.mxu1 %vm9769_vm1, %v12440_v14 }
 0x448   : > { %v5889_v48 = vpop.f32.mrb[176].mxu0 }
 0x449   : > { %v5988_v16 = vadd.f32 %v5889_v48, %v11921_v12  ;;  %v6411_v38 = vpop.f32.mrb[176].mxu1  ;;  %v9273_v55 = vpop.f32.mrb[177].mxu0 }
 0x44a   : > { %v9343_v43 = vpop.f32.mrb[177].mxu1  ;;  %v5892_v50 = vpop.f32.mrb[178].mxu0 }
 0x44b   : > { %v12194_v13 = vadd.f32 %v6411_v38, %v5988_v16  ;;  %v5989_v45 = vadd.f32 %v5892_v50, %v11926_v29  ;;  %v6414_v27 = vpop.f32.mrb[178].mxu1  ;;  %v9274_v62 = vpop.f32.mrb[179].mxu0 }
 0x44c   : > { %v9344_v14 = vpop.f32.mrb[179].mxu1 }
 0x44d   : > { %v12198_v15 = vadd.f32 %v6414_v27, %v5989_v45  ;;  %9452 = vmatmul.mubr.msk.bf16.gmra.mrb[28].mxu0 %vm469_vm2, %v6572_v21 }
 0x44e   : > { %9522 = vmatmul.mubr.msk.bf16.gmra.mrb[28].mxu1 %vm469_vm2, %v6870_v36 }
 0x450   : > { %v5897_v12 = vpop.f32.mrb[180].mxu0 }
 0x451   : > { %v5990_v53 = vadd.f32 %v5897_v12, %v11938_v17  ;;  %v6419_v3 = vpop.f32.mrb[180].mxu1  ;;  %v9277_v37 = vpop.f32.mrb[181].mxu0 }
 0x452   : > { %v9347_v20 = vpop.f32.mrb[181].mxu1  ;;  %v5900_v22 = vpop.f32.mrb[182].mxu0 }
 0x453   : > { %v12203_v9 = vadd.f32 %v6419_v3, %v5990_v53  ;;  %v5991_v29 = vadd.f32 %v5900_v22, %v11942_v6  ;;  %v6422_v40 = vpop.f32.mrb[182].mxu1  ;;  %v9278_v44 = vpop.f32.mrb[183].mxu0 }
 0x454   : > { %v9348_v61 = vpop.f32.mrb[183].mxu1 }
 0x455   : > { %v12206_v1 = vadd.f32 %v6422_v40, %v5991_v29 }
 0x458   : > { %v5905_v42 = vpop.f32.mrb[184].mxu0 }
 0x459   : > { %v5992_v34 = vadd.f32 %v5905_v42, %v11954_v11  ;;  %v6427_v25 = vpop.f32.mrb[184].mxu1  ;;  %v9281_v49 = vpop.f32.mrb[185].mxu0 }
 0x45a   : > { %v9351_v30 = vpop.f32.mrb[185].mxu1  ;;  %v5908_v17 = vpop.f32.mrb[186].mxu0 }
 0x45b   : > { %v12209_v54 = vadd.f32 %v6427_v25, %v5992_v34  ;;  %v5993_v48 = vadd.f32 %v5908_v17, %v11958_v60  ;;  %v6430_v16 = vpop.f32.mrb[186].mxu1  ;;  %v9282_v38 = vpop.f32.mrb[187].mxu0 }
 0x45c   : > { %v9352_v55 = vpop.f32.mrb[187].mxu1 }
 0x45d   : > { %v12212_v6 = vadd.f32 %v6430_v16, %v5993_v48 }
 0x460   : > { %v5913_v43 = vpop.f32.mrb[188].mxu0 }
 0x461   : > { %v5994_v50 = vadd.f32 %v5913_v43, %v11970_v35  ;;  %v6435_v21 = vpop.f32.mrb[188].mxu1  ;;  %v9285_v45 = vpop.f32.mrb[189].mxu0 }
 0x462   : > { %v9355_v27 = vpop.f32.mrb[189].mxu1  ;;  %v5916_v11 = vpop.f32.mrb[190].mxu0 }
 0x463   : > { %v12215_v62 = vadd.f32 %v6435_v21, %v5994_v50  ;;  %v5995_v36 = vadd.f32 %v5916_v11, %v11974_v58  ;;  %v6438_v14 = vpop.f32.mrb[190].mxu1  ;;  %v9286_v12 = vpop.f32.mrb[191].mxu0 }
 0x464   : > { %v9356_v53 = vpop.f32.mrb[191].mxu1 }
 0x465   : > { %v12218_v60 = vadd.f32 %v6438_v14, %v5995_v36 }
 0x468   : > { %v5921_v3 = vpop.f32.mrb[192].mxu0 }
 0x469   : > { %v5996_v37 = vadd.f32 %v5921_v3, %v11986_v39  ;;  %v6443_v20 = vpop.f32.mrb[192].mxu1  ;;  %v9289_v22 = vpop.f32.mrb[193].mxu0 }
 0x46a   : > { %v9359_v29 = vpop.f32.mrb[193].mxu1  ;;  %v5924_v35 = vpop.f32.mrb[194].mxu0 }
 0x46b   : > { %v12221_v40 = vadd.f32 %v6443_v20, %v5996_v37  ;;  %v5997_v44 = vadd.f32 %v5924_v35, %v11990_v0  ;;  %v6446_v61 = vpop.f32.mrb[194].mxu1  ;;  %v9290_v42 = vpop.f32.mrb[195].mxu0 }
 0x46c   : > { %v9360_v34 = vpop.f32.mrb[195].mxu1 }
 0x46d   : > { %v12224_v58 = vadd.f32 %v6446_v61, %v5997_v44 }
 0x470   : > { %v5929_v25 = vpop.f32.mrb[196].mxu0 }
 0x471   : > { %v5998_v49 = vadd.f32 %v5929_v25, %v12002_v23  ;;  %v6451_v30 = vpop.f32.mrb[196].mxu1  ;;  %v9293_v17 = vpop.f32.mrb[197].mxu0 }
 0x472   : > { %v9363_v48 = vpop.f32.mrb[197].mxu1  ;;  %v5932_v39 = vpop.f32.mrb[198].mxu0 }
 0x473   : > { %v12227_v16 = vadd.f32 %v6451_v30, %v5998_v49  ;;  %v5999_v38 = vadd.f32 %v5932_v39, %v12006_v46  ;;  %v6454_v55 = vpop.f32.mrb[198].mxu1  ;;  %v9294_v43 = vpop.f32.mrb[199].mxu0 }
 0x474   : > { %v9364_v50 = vpop.f32.mrb[199].mxu1 }
 0x475   : > { %v12230_v0 = vadd.f32 %v6454_v55, %v5999_v38 }
 0x478   : > { %v5937_v21 = vpop.f32.mrb[200].mxu0 }
 0x479   : > { %v6000_v45 = vadd.f32 %v5937_v21, %v12018_v57  ;;  %v6459_v27 = vpop.f32.mrb[200].mxu1  ;;  %v9297_v11 = vpop.f32.mrb[201].mxu0 }
 0x47a   : > { %v9367_v36 = vpop.f32.mrb[201].mxu1  ;;  %v5940_v23 = vpop.f32.mrb[202].mxu0 }
 0x47b   : > { %v12233_v14 = vadd.f32 %v6459_v27, %v6000_v45  ;;  %v6001_v12 = vadd.f32 %v5940_v23, %v12022_v41  ;;  %v6462_v53 = vpop.f32.mrb[202].mxu1  ;;  %v9298_v3 = vpop.f32.mrb[203].mxu0 }
 0x47c   : > { %v9368_v37 = vpop.f32.mrb[203].mxu1 }
 0x47d   : > { %v12236_v46 = vadd.f32 %v6462_v53, %v6001_v12 }
 0x480   : > { %v5945_v20 = vpop.f32.mrb[204].mxu0 }
 0x481   : > { %v6002_v22 = vadd.f32 %v5945_v20, %v12034_v56  ;;  %v6467_v29 = vpop.f32.mrb[204].mxu1  ;;  %v9301_v35 = vpop.f32.mrb[205].mxu0 }
 0x482   : > { %v9371_v44 = vpop.f32.mrb[205].mxu1  ;;  %v5948_v57 = vpop.f32.mrb[206].mxu0 }
 0x483   : > { %v12239_v61 = vadd.f32 %v6467_v29, %v6002_v22  ;;  %v6003_v42 = vadd.f32 %v5948_v57, %v12038_v2  ;;  %v6470_v34 = vpop.f32.mrb[206].mxu1  ;;  %v9302_v25 = vpop.f32.mrb[207].mxu0 }
 0x484   : > { %v9372_v49 = vpop.f32.mrb[207].mxu1 }
 0x485   : > { %v12242_v41 = vadd.f32 %v6470_v34, %v6003_v42 }
 0x488   : > { %v5953_v30 = vpop.f32.mrb[208].mxu0 }
 0x489   : > { %v6004_v17 = vadd.f32 %v5953_v30, %v12050_v63  ;;  %v6475_v48 = vpop.f32.mrb[208].mxu1  ;;  %v9305_v39 = vpop.f32.mrb[209].mxu0 }
 0x48a   : > { %v9375_v38 = vpop.f32.mrb[209].mxu1  ;;  %v5956_v56 = vpop.f32.mrb[210].mxu0 }
 0x48b   : > { %v12245_v55 = vadd.f32 %v6475_v48, %v6004_v17  ;;  %v6005_v43 = vadd.f32 %v5956_v56, %v12054_v10  ;;  %v6478_v50 = vpop.f32.mrb[210].mxu1  ;;  %v9306_v21 = vpop.f32.mrb[211].mxu0 }
 0x48c   : > { %v9376_v45 = vpop.f32.mrb[211].mxu1 }
 0x48d   : > { %v12248_v2 = vadd.f32 %v6478_v50, %v6005_v43 }
 0x490   : > { %v5961_v27 = vpop.f32.mrb[212].mxu0 }
 0x491   : > { %v6006_v11 = vadd.f32 %v5961_v27, %v12066_v52  ;;  %v6483_v36 = vpop.f32.mrb[212].mxu1  ;;  %v9309_v23 = vpop.f32.mrb[213].mxu0 }
 0x492   : > { %v9379_v12 = vpop.f32.mrb[213].mxu1  ;;  %v5964_v63 = vpop.f32.mrb[214].mxu0 }
 0x493   : > { %v12251_v53 = vadd.f32 %v6483_v36, %v6006_v11  ;;  %v6007_v3 = vadd.f32 %v5964_v63, %v12070_v4  ;;  %v6486_v37 = vpop.f32.mrb[214].mxu1  ;;  %v9310_v20 = vpop.f32.mrb[215].mxu0 }
 0x494   : > { %v9380_v22 = vpop.f32.mrb[215].mxu1 }
 0x495   : > { %v12254_v10 = vadd.f32 %v6486_v37, %v6007_v3 }
 0x498   : > { %v5969_v29 = vpop.f32.mrb[216].mxu0 }
 0x499   : > { %v6008_v35 = vadd.f32 %v5969_v29, %v12082_v26  ;;  %v6491_v44 = vpop.f32.mrb[216].mxu1  ;;  %v9313_v57 = vpop.f32.mrb[217].mxu0  ;;  %v12266_v26 = vld [vmem:[%s12417_s5] ss:$0 sm:$0xff] }
 0x49a   : > { %v9383_v42 = vpop.f32.mrb[217].mxu1  ;;  %v5972_v52 = vpop.f32.mrb[218].mxu0 }
 0x49b   : > { %v12257_v34 = vadd.f32 %v6491_v44, %v6008_v35  ;;  %v6009_v25 = vadd.f32 %v5972_v52, %v12086_v18  ;;  %v6494_v49 = vpop.f32.mrb[218].mxu1  ;;  %v9314_v30 = vpop.f32.mrb[219].mxu0 }
 0x49c   : > { %v9384_v4 = vpop.f32.mrb[219].mxu1 }
 0x49d   : > { %v12260_v17 = vadd.f32 %v6494_v49, %v6009_v25 }
 0x4a0   : > { %v6661_v48 = vpop.f32.mrb[220].mxu0 }
 0x4a1   : > { %v6796_v39 = vadd.f32 %v6661_v48, %v12098_v24  ;;  %v6959_v38 = vpop.f32.mrb[220].mxu1  ;;  %v9389_v56 = vpop.f32.mrb[221].mxu0 }
 0x4a2   : > { %v9459_v43 = vpop.f32.mrb[221].mxu1  ;;  %v6664_v50 = vpop.f32.mrb[222].mxu0 }
 0x4a3   : > { %v7094_v21 = vadd.f32 %v6959_v38, %v6796_v39  ;;  %v6797_v18 = vadd.f32 %v6664_v50, %v12102_v33  ;;  %v6962_v45 = vpop.f32.mrb[222].mxu1  ;;  %v9390_v27 = vpop.f32.mrb[223].mxu0 }
 0x4a4   : > { %v9460_v11 = vpop.f32.mrb[223].mxu1 }
 0x4a5   : > { %v7135_v36 = vadd.f32 %v12266_v26, %v7094_v21  ;;  %v7095_v23 = vadd.f32 %v6962_v45, %v6797_v18 }
 0x4a7   : > { %vm7169_vm5 = vcmp.ge.f32.partialorder %v7135_v36, 0.0  ;;  %v7203_v24 = vmul.f32 0.2, %v7135_v36  ;;  %v7136_v12 = vadd.f32 %v12266_v26, %v7095_v23 }
 0x4a8   : > { %v6669_v63 = vpop.f32.mrb[224].mxu0 }
 0x4a9   : > { %v7237_v33 = vsel %vm7169_vm5, %v7135_v36, %v7203_v24  ;;  %vm7170_vm7 = vcmp.ge.f32.partialorder %v7136_v12, 0.0  ;;  %v7204_v3 = vmul.f32 0.2, %v7136_v12  ;;  %v6798_v37 = vadd.f32 %v6669_v63, %v12114_v59  ;;  %v6967_v20 = vpop.f32.mrb[224].mxu1  ;;  %v9393_v22 = vpop.f32.mrb[225].mxu0 }
 0x4aa   : > { %v8083_v29 = vpack.c.bf16 %v7237_v33, %v7237_v33  ;;  %v9463_v35 = vpop.f32.mrb[225].mxu1  ;;  %v6672_v44 = vpop.f32.mrb[226].mxu0 }
 0x4ab   : > { %v7238_v57 = vsel %vm7170_vm7, %v7136_v12, %v7204_v3  ;;  %v7096_v42 = vadd.f32 %v6967_v20, %v6798_v37  ;;  %v6799_v52 = vadd.f32 %v6672_v44, %v12118_v28  ;;  %v6970_v25 = vpop.f32.mrb[226].mxu1  ;;  %v9394_v49 = vpop.f32.mrb[227].mxu0 }
 0x4ac   : > { %7408 = vst.msk [vmem:[%s12275_s29] sm:$0xf] %vm7407_vm6, %v8083_v29  ;;  %v8084_v30 = vpack.c.bf16 %v7238_v57, %v7238_v57  ;;  %v9464_v4 = vpop.f32.mrb[227].mxu1 }
 0x4ad   : > { %v7137_v48 = vadd.f32 %v12266_v26, %v7096_v42  ;;  %v7097_v39 = vadd.f32 %v6970_v25, %v6799_v52 }
 0x4ae   : > { %7409 = vst.msk [vmem:[%s12275_s29 + $0x4] sm:$0xf] %vm7407_vm6, %v8084_v30 }
 0x4af   : > { %vm7171_vm8 = vcmp.ge.f32.partialorder %v7137_v48, 0.0  ;;  %v7205_v59 = vmul.f32 0.2, %v7137_v48  ;;  %v7138_v38 = vadd.f32 %v12266_v26, %v7097_v39 }
 0x4b0   : > { %v6677_v56 = vpop.f32.mrb[228].mxu0 }
 0x4b1   : > { %v7239_v43 = vsel %vm7171_vm8, %v7137_v48, %v7205_v59  ;;  %vm7172_vm9 = vcmp.ge.f32.partialorder %v7138_v38, 0.0  ;;  %v7206_v28 = vmul.f32 0.2, %v7138_v38  ;;  %v6800_v50 = vadd.f32 %v6677_v56, %v12130_v7  ;;  %v6975_v21 = vpop.f32.mrb[228].mxu1  ;;  %v9397_v18 = vpop.f32.mrb[229].mxu0 }
 0x4b2   : > { %v8085_v45 = vpack.c.bf16 %v7239_v43, %v7239_v43  ;;  %v9467_v27 = vpop.f32.mrb[229].mxu1  ;;  %v6680_v11 = vpop.f32.mrb[230].mxu0 }
 0x4b3   : > { %v7240_v36 = vsel %vm7172_vm9, %v7138_v38, %v7206_v28  ;;  %v7098_v23 = vadd.f32 %v6975_v21, %v6800_v50  ;;  %v6801_v24 = vadd.f32 %v6680_v11, %v12134_v5  ;;  %v6978_v12 = vpop.f32.mrb[230].mxu1  ;;  %v9398_v63 = vpop.f32.mrb[231].mxu0 }
 0x4b4   : > { %7410 = vst.msk [vmem:[%s12275_s29 + $0x8] sm:$0xf] %vm7407_vm6, %v8085_v45  ;;  %v8086_v33 = vpack.c.bf16 %v7240_v36, %v7240_v36  ;;  %v9468_v3 = vpop.f32.mrb[231].mxu1 }
 0x4b5   : > { %v7139_v37 = vadd.f32 %v12266_v26, %v7098_v23  ;;  %v7099_v20 = vadd.f32 %v6978_v12, %v6801_v24 }
 0x4b6   : > { %7411 = vst.msk [vmem:[%s12275_s29 + $0xc] sm:$0xf] %vm7407_vm6, %v8086_v33 }
 0x4b7   : > { %vm7173_vm10 = vcmp.ge.f32.partialorder %v7139_v37, 0.0  ;;  %v7207_v7 = vmul.f32 0.2, %v7139_v37  ;;  %v7140_v22 = vadd.f32 %v12266_v26, %v7099_v20 }
 0x4b8   : > { %v6685_v29 = vpop.f32.mrb[232].mxu0 }
 0x4b9   : > { %v7241_v35 = vsel %vm7173_vm10, %v7139_v37, %v7207_v7  ;;  %vm7174_vm11 = vcmp.ge.f32.partialorder %v7140_v22, 0.0  ;;  %v7208_v5 = vmul.f32 0.2, %v7140_v22  ;;  %v6802_v44 = vadd.f32 %v6685_v29, %v12146_v51  ;;  %v6983_v57 = vpop.f32.mrb[232].mxu1  ;;  %v9401_v42 = vpop.f32.mrb[233].mxu0 }
 0x4ba   : > { %v8087_v52 = vpack.c.bf16 %v7241_v35, %v7241_v35  ;;  %v9471_v25 = vpop.f32.mrb[233].mxu1  ;;  %v6688_v49 = vpop.f32.mrb[234].mxu0 }
 0x4bb   : > { %v7242_v30 = vsel %vm7174_vm11, %v7140_v22, %v7208_v5  ;;  %v7100_v4 = vadd.f32 %v6983_v57, %v6802_v44  ;;  %v6803_v48 = vadd.f32 %v6688_v49, %v12150_v47  ;;  %v6986_v39 = vpop.f32.mrb[234].mxu1  ;;  %v9402_v59 = vpop.f32.mrb[235].mxu0 }
 0x4bc   : > { %7412 = vst.msk [vmem:[%s12275_s29 + $0x10] sm:$0xf] %vm7407_vm6, %v8087_v52  ;;  %v8088_v38 = vpack.c.bf16 %v7242_v30, %v7242_v30  ;;  %v9472_v56 = vpop.f32.mrb[235].mxu1 }
 0x4bd   : > { %v7141_v43 = vadd.f32 %v12266_v26, %v7100_v4  ;;  %v7101_v28 = vadd.f32 %v6986_v39, %v6803_v48 }
 0x4be   : > { %7413 = vst.msk [vmem:[%s12275_s29 + $0x14] sm:$0xf] %vm7407_vm6, %v8088_v38 }
 0x4bf   : > { %vm7175_vm12 = vcmp.ge.f32.partialorder %v7141_v43, 0.0  ;;  %v7209_v51 = vmul.f32 0.2, %v7141_v43  ;;  %v7142_v50 = vadd.f32 %v12266_v26, %v7101_v28 }
 0x4c0   : > { %v6693_v21 = vpop.f32.mrb[236].mxu0 }
 0x4c1   : > { %v7243_v18 = vsel %vm7175_vm12, %v7141_v43, %v7209_v51  ;;  %vm7176_vm13 = vcmp.ge.f32.partialorder %v7142_v50, 0.0  ;;  %v7210_v47 = vmul.f32 0.2, %v7142_v50  ;;  %v6804_v45 = vadd.f32 %v6693_v21, %v12162_v8  ;;  %v6991_v27 = vpop.f32.mrb[236].mxu1  ;;  %v9405_v11 = vpop.f32.mrb[237].mxu0 }
 0x4c2   : > { %v8089_v36 = vpack.c.bf16 %v7243_v18, %v7243_v18  ;;  %v9475_v23 = vpop.f32.mrb[237].mxu1  ;;  %v6696_v24 = vpop.f32.mrb[238].mxu0 }
 0x4c3   : > { %v7244_v12 = vsel %vm7176_vm13, %v7142_v50, %v7210_v47  ;;  %v7102_v63 = vadd.f32 %v6991_v27, %v6804_v45  ;;  %v6805_v33 = vadd.f32 %v6696_v24, %v12166_v32  ;;  %v6994_v3 = vpop.f32.mrb[238].mxu1  ;;  %v9406_v37 = vpop.f32.mrb[239].mxu0 }
 0x4c4   : > { %7414 = vst.msk [vmem:[%s12275_s29 + $0x18] sm:$0xf] %vm7407_vm6, %v8089_v36  ;;  %v8090_v20 = vpack.c.bf16 %v7244_v12, %v7244_v12  ;;  %v9476_v7 = vpop.f32.mrb[239].mxu1 }
 0x4c5   : > { %v7143_v22 = vadd.f32 %v12266_v26, %v7102_v63  ;;  %v7103_v29 = vadd.f32 %v6994_v3, %v6805_v33 }
 0x4c6   : > { %7415 = vst.msk [vmem:[%s12275_s29 + $0x1c] sm:$0xf] %vm7407_vm6, %v8090_v20 }
 0x4c7   : > { %vm7177_vm14 = vcmp.ge.f32.partialorder %v7143_v22, 0.0  ;;  %v7211_v8 = vmul.f32 0.2, %v7143_v22  ;;  %v7144_v35 = vadd.f32 %v12266_v26, %v7103_v29 }
 0x4c8   : > { %v6701_v5 = vpop.f32.mrb[240].mxu0 }
 0x4c9   : > { %v7245_v44 = vsel %vm7177_vm14, %v7143_v22, %v7211_v8  ;;  %vm7178_vm15 = vcmp.ge.f32.partialorder %v7144_v35, 0.0  ;;  %v7212_v32 = vmul.f32 0.2, %v7144_v35  ;;  %v6806_v57 = vadd.f32 %v6701_v5, %v12178_v19  ;;  %v6999_v42 = vpop.f32.mrb[240].mxu1  ;;  %v9409_v52 = vpop.f32.mrb[241].mxu0 }
 0x4ca   : > { %v8091_v25 = vpack.c.bf16 %v7245_v44, %v7245_v44  ;;  %v9479_v49 = vpop.f32.mrb[241].mxu1  ;;  %v6704_v30 = vpop.f32.mrb[242].mxu0 }
 0x4cb   : > { %v7246_v4 = vsel %vm7178_vm15, %v7144_v35, %v7212_v32  ;;  %v7104_v48 = vadd.f32 %v6999_v42, %v6806_v57  ;;  %v6807_v39 = vadd.f32 %v6704_v30, %v12182_v31  ;;  %v7002_v59 = vpop.f32.mrb[242].mxu1  ;;  %v9410_v38 = vpop.f32.mrb[243].mxu0 }
 0x4cc   : > { %7416 = vst.msk [vmem:[%s12275_s29 + $0x20] sm:$0xf] %vm7407_vm6, %v8091_v25  ;;  %v8092_v56 = vpack.c.bf16 %v7246_v4, %v7246_v4  ;;  %v9480_v43 = vpop.f32.mrb[243].mxu1 }
 0x4cd   : > { %v7145_v28 = vadd.f32 %v12266_v26, %v7104_v48  ;;  %v7105_v51 = vadd.f32 %v7002_v59, %v6807_v39 }
 0x4ce   : > { %7417 = vst.msk [vmem:[%s12275_s29 + $0x24] sm:$0xf] %vm7407_vm6, %v8092_v56 }
 0x4cf   : > { %vm7179_vm0 = vcmp.ge.f32.partialorder %v7145_v28, 0.0  ;;  %v7213_v19 = vmul.f32 0.2, %v7145_v28  ;;  %v7146_v50 = vadd.f32 %v12266_v26, %v7105_v51 }
 0x4d0   : > { %v6709_v21 = vpop.f32.mrb[244].mxu0 }
 0x4d1   : > { %v7247_v18 = vsel %vm7179_vm0, %v7145_v28, %v7213_v19  ;;  %vm7180_vm1 = vcmp.ge.f32.partialorder %v7146_v50, 0.0  ;;  %v7214_v31 = vmul.f32 0.2, %v7146_v50  ;;  %v6808_v47 = vadd.f32 %v6709_v21, %v12194_v13  ;;  %v7007_v45 = vpop.f32.mrb[244].mxu1  ;;  %v9413_v27 = vpop.f32.mrb[245].mxu0 }
 0x4d2   : > { %v8093_v11 = vpack.c.bf16 %v7247_v18, %v7247_v18  ;;  %v9483_v36 = vpop.f32.mrb[245].mxu1  ;;  %v6712_v23 = vpop.f32.mrb[246].mxu0 }
 0x4d3   : > { %v7248_v24 = vsel %vm7180_vm1, %v7146_v50, %v7214_v31  ;;  %v7106_v12 = vadd.f32 %v7007_v45, %v6808_v47  ;;  %v6809_v63 = vadd.f32 %v6712_v23, %v12198_v15  ;;  %v7010_v33 = vpop.f32.mrb[246].mxu1  ;;  %v9414_v3 = vpop.f32.mrb[247].mxu0 }
 0x4d4   : > { %7418 = vst.msk [vmem:[%s12275_s29 + $0x28] sm:$0xf] %vm7407_vm6, %v8093_v11  ;;  %v8094_v37 = vpack.c.bf16 %v7248_v24, %v7248_v24  ;;  %v9484_v20 = vpop.f32.mrb[247].mxu1 }
 0x4d5   : > { %v7147_v7 = vadd.f32 %v12266_v26, %v7106_v12  ;;  %v7107_v22 = vadd.f32 %v7010_v33, %v6809_v63 }
 0x4d6   : > { %7419 = vst.msk [vmem:[%s12275_s29 + $0x2c] sm:$0xf] %vm7407_vm6, %v8094_v37 }
 0x4d7   : > { %vm7181_vm2 = vcmp.ge.f32.partialorder %v7147_v7, 0.0  ;;  %v7215_v13 = vmul.f32 0.2, %v7147_v7  ;;  %v7148_v29 = vadd.f32 %v12266_v26, %v7107_v22 }
 0x4d8   : > { %v6717_v8 = vpop.f32.mrb[248].mxu0 }
 0x4d9   : > { %v7249_v35 = vsel %vm7181_vm2, %v7147_v7, %v7215_v13  ;;  %vm7182_vm3 = vcmp.ge.f32.partialorder %v7148_v29, 0.0  ;;  %v7216_v15 = vmul.f32 0.2, %v7148_v29  ;;  %v6810_v5 = vadd.f32 %v6717_v8, %v12203_v9  ;;  %v7015_v44 = vpop.f32.mrb[248].mxu1  ;;  %v9417_v32 = vpop.f32.mrb[249].mxu0 }
 0x4da   : > { %v8095_v57 = vpack.c.bf16 %v7249_v35, %v7249_v35  ;;  %v9487_v42 = vpop.f32.mrb[249].mxu1  ;;  %v6720_v52 = vpop.f32.mrb[250].mxu0 }
 0x4db   : > { %v7250_v25 = vsel %vm7182_vm3, %v7148_v29, %v7216_v15  ;;  %v7108_v49 = vadd.f32 %v7015_v44, %v6810_v5  ;;  %v6811_v30 = vadd.f32 %v6720_v52, %v12206_v1  ;;  %v7018_v4 = vpop.f32.mrb[250].mxu1  ;;  %v9418_v48 = vpop.f32.mrb[251].mxu0 }
 0x4dc   : > { %7420 = vst.msk [vmem:[%s12275_s29 + $0x30] sm:$0xf] %vm7407_vm6, %v8095_v57  ;;  %v8096_v39 = vpack.c.bf16 %v7250_v25, %v7250_v25  ;;  %v9488_v59 = vpop.f32.mrb[251].mxu1 }
 0x4dd   : > { %v7149_v38 = vadd.f32 %v12266_v26, %v7108_v49  ;;  %v7109_v56 = vadd.f32 %v7018_v4, %v6811_v30 }
 0x4de   : > { %7421 = vst.msk [vmem:[%s12275_s29 + $0x34] sm:$0xf] %vm7407_vm6, %v8096_v39 }
 0x4df   : > { %vm7183_vm4 = vcmp.ge.f32.partialorder %v7149_v38, 0.0  ;;  %v7217_v9 = vmul.f32 0.2, %v7149_v38  ;;  %v7150_v43 = vadd.f32 %v12266_v26, %v7109_v56 }
 0x4e0   : > { %v6725_v28 = vpop.f32.mrb[252].mxu0 }
 0x4e1   : > { %v7251_v51 = vsel %vm7183_vm4, %v7149_v38, %v7217_v9  ;;  %vm7184_vm5 = vcmp.ge.f32.partialorder %v7150_v43, 0.0  ;;  %v7218_v1 = vmul.f32 0.2, %v7150_v43  ;;  %v6812_v19 = vadd.f32 %v6725_v28, %v12209_v54  ;;  %v7023_v50 = vpop.f32.mrb[252].mxu1  ;;  %v9421_v21 = vpop.f32.mrb[253].mxu0 }
 0x4e2   : > { %v8097_v18 = vpack.c.bf16 %v7251_v51, %v7251_v51  ;;  %v9491_v31 = vpop.f32.mrb[253].mxu1  ;;  %v6728_v47 = vpop.f32.mrb[254].mxu0 }
 0x4e3   : > { %v7252_v45 = vsel %vm7184_vm5, %v7150_v43, %v7218_v1  ;;  %v7110_v27 = vadd.f32 %v7023_v50, %v6812_v19  ;;  %v6813_v11 = vadd.f32 %v6728_v47, %v12212_v6  ;;  %v7026_v36 = vpop.f32.mrb[254].mxu1  ;;  %v9422_v23 = vpop.f32.mrb[255].mxu0 }
 0x4e4   : > { %7422 = vst.msk [vmem:[%s12275_s29 + $0x38] sm:$0xf] %vm7407_vm6, %v8097_v18  ;;  %v8098_v24 = vpack.c.bf16 %v7252_v45, %v7252_v45  ;;  %v9492_v12 = vpop.f32.mrb[255].mxu1 }
 0x4e5   : > { %v7151_v63 = vadd.f32 %v12266_v26, %v7110_v27  ;;  %v7111_v33 = vadd.f32 %v7026_v36, %v6813_v11 }
 0x4e6   : > { %7423 = vst.msk [vmem:[%s12275_s29 + $0x3c] sm:$0xf] %vm7407_vm6, %v8098_v24 }
 0x4e7   : > { %vm7185_vm7 = vcmp.ge.f32.partialorder %v7151_v63, 0.0  ;;  %v7219_v54 = vmul.f32 0.2, %v7151_v63  ;;  %v7152_v3 = vadd.f32 %v12266_v26, %v7111_v33 }
 0x4e8   : > { %v6733_v37 = vpop.f32.mrb[0].mxu0 }
 0x4e9   : > { %v7253_v20 = vsel %vm7185_vm7, %v7151_v63, %v7219_v54  ;;  %vm7186_vm8 = vcmp.ge.f32.partialorder %v7152_v3, 0.0  ;;  %v7220_v6 = vmul.f32 0.2, %v7152_v3  ;;  %v6814_v7 = vadd.f32 %v6733_v37, %v12215_v62  ;;  %v7031_v22 = vpop.f32.mrb[0].mxu1  ;;  %v9425_v13 = vpop.f32.mrb[1].mxu0 }
 0x4ea   : > { %v8099_v29 = vpack.c.bf16 %v7253_v20, %v7253_v20  ;;  %v9495_v8 = vpop.f32.mrb[1].mxu1  ;;  %v6736_v35 = vpop.f32.mrb[2].mxu0 }
 0x4eb   : > { %v7254_v15 = vsel %vm7186_vm8, %v7152_v3, %v7220_v6  ;;  %v7112_v5 = vadd.f32 %v7031_v22, %v6814_v7  ;;  %v6815_v44 = vadd.f32 %v6736_v35, %v12218_v60  ;;  %v7034_v32 = vpop.f32.mrb[2].mxu1  ;;  %v9426_v57 = vpop.f32.mrb[3].mxu0 }
 0x4ec   : > { %7424 = vst.msk [vmem:[%s12275_s29 + $0x40] sm:$0xf] %vm7407_vm6, %v8099_v29  ;;  %v8100_v42 = vpack.c.bf16 %v7254_v15, %v7254_v15  ;;  %v9496_v52 = vpop.f32.mrb[3].mxu1 }
 0x4ed   : > { %v7153_v25 = vadd.f32 %v12266_v26, %v7112_v5  ;;  %v7113_v49 = vadd.f32 %v7034_v32, %v6815_v44 }
 0x4ee   : > { %7425 = vst.msk [vmem:[%s12275_s29 + $0x44] sm:$0xf] %vm7407_vm6, %v8100_v42 }
 0x4ef   : > { %vm7187_vm9 = vcmp.ge.f32.partialorder %v7153_v25, 0.0  ;;  %v7221_v62 = vmul.f32 0.2, %v7153_v25  ;;  %v7154_v30 = vadd.f32 %v12266_v26, %v7113_v49 }
 0x4f0   : > { %v6741_v4 = vpop.f32.mrb[4].mxu0 }
 0x4f1   : > { %v7255_v48 = vsel %vm7187_vm9, %v7153_v25, %v7221_v62  ;;  %vm7188_vm10 = vcmp.ge.f32.partialorder %v7154_v30, 0.0  ;;  %v7222_v60 = vmul.f32 0.2, %v7154_v30  ;;  %v6816_v39 = vadd.f32 %v6741_v4, %v12221_v40  ;;  %v7039_v59 = vpop.f32.mrb[4].mxu1  ;;  %v9429_v38 = vpop.f32.mrb[5].mxu0 }
 0x4f2   : > { %v8101_v56 = vpack.c.bf16 %v7255_v48, %v7255_v48  ;;  %v9499_v9 = vpop.f32.mrb[5].mxu1  ;;  %v6744_v43 = vpop.f32.mrb[6].mxu0 }
 0x4f3   : > { %v7256_v28 = vsel %vm7188_vm10, %v7154_v30, %v7222_v60  ;;  %v7114_v51 = vadd.f32 %v7039_v59, %v6816_v39  ;;  %v6817_v1 = vadd.f32 %v6744_v43, %v12224_v58  ;;  %v7042_v19 = vpop.f32.mrb[6].mxu1  ;;  %v9430_v50 = vpop.f32.mrb[7].mxu0 }
 0x4f4   : > { %7426 = vst.msk [vmem:[%s12275_s29 + $0x48] sm:$0xf] %vm7407_vm6, %v8101_v56  ;;  %v8102_v21 = vpack.c.bf16 %v7256_v28, %v7256_v28  ;;  %v9500_v18 = vpop.f32.mrb[7].mxu1 }
 0x4f5   : > { %v7155_v31 = vadd.f32 %v12266_v26, %v7114_v51  ;;  %v7115_v47 = vadd.f32 %v7042_v19, %v6817_v1 }
 0x4f6   : > { %7427 = vst.msk [vmem:[%s12275_s29 + $0x4c] sm:$0xf] %vm7407_vm6, %v8102_v21 }
 0x4f7   : > { %vm7189_vm11 = vcmp.ge.f32.partialorder %v7155_v31, 0.0  ;;  %v7223_v40 = vmul.f32 0.2, %v7155_v31  ;;  %v7156_v45 = vadd.f32 %v12266_v26, %v7115_v47 }
 0x4f8   : > { %v6749_v27 = vpop.f32.mrb[8].mxu0 }
 0x4f9   : > { %v7257_v11 = vsel %vm7189_vm11, %v7155_v31, %v7223_v40  ;;  %vm7190_vm12 = vcmp.ge.f32.partialorder %v7156_v45, 0.0  ;;  %v7224_v58 = vmul.f32 0.2, %v7156_v45  ;;  %v6818_v36 = vadd.f32 %v6749_v27, %v12227_v16  ;;  %v7047_v23 = vpop.f32.mrb[8].mxu1  ;;  %v9433_v24 = vpop.f32.mrb[9].mxu0 }
 0x4fa   : > { %v8103_v12 = vpack.c.bf16 %v7257_v11, %v7257_v11  ;;  %v9503_v63 = vpop.f32.mrb[9].mxu1  ;;  %v6752_v33 = vpop.f32.mrb[10].mxu0 }
 0x4fb   : > { %v7258_v54 = vsel %vm7190_vm12, %v7156_v45, %v7224_v58  ;;  %v7116_v3 = vadd.f32 %v7047_v23, %v6818_v36  ;;  %v6819_v37 = vadd.f32 %v6752_v33, %v12230_v0  ;;  %v7050_v20 = vpop.f32.mrb[10].mxu1  ;;  %v9434_v6 = vpop.f32.mrb[11].mxu0 }
 0x4fc   : > { %7428 = vst.msk [vmem:[%s12275_s29 + $0x50] sm:$0xf] %vm7407_vm6, %v8103_v12  ;;  %v8104_v7 = vpack.c.bf16 %v7258_v54, %v7258_v54  ;;  %v9504_v22 = vpop.f32.mrb[11].mxu1 }
 0x4fd   : > { %v7157_v13 = vadd.f32 %v12266_v26, %v7116_v3  ;;  %v7117_v29 = vadd.f32 %v7050_v20, %v6819_v37 }
 0x4fe   : > { %7429 = vst.msk [vmem:[%s12275_s29 + $0x54] sm:$0xf] %vm7407_vm6, %v8104_v7 }
 0x4ff   : > { %vm7191_vm13 = vcmp.ge.f32.partialorder %v7157_v13, 0.0  ;;  %v7225_v16 = vmul.f32 0.2, %v7157_v13  ;;  %v7158_v8 = vadd.f32 %v12266_v26, %v7117_v29 }
 0x500   : > { %v6757_v35 = vpop.f32.mrb[12].mxu0 }
 0x501   : > { %v7259_v15 = vsel %vm7191_vm13, %v7157_v13, %v7225_v16  ;;  %vm7192_vm14 = vcmp.ge.f32.partialorder %v7158_v8, 0.0  ;;  %v7226_v0 = vmul.f32 0.2, %v7158_v8  ;;  %v6820_v5 = vadd.f32 %v6757_v35, %v12233_v14  ;;  %v7055_v44 = vpop.f32.mrb[12].mxu1  ;;  %v9437_v32 = vpop.f32.mrb[13].mxu0 }
 0x502   : > { %v8105_v57 = vpack.c.bf16 %v7259_v15, %v7259_v15  ;;  %v9507_v42 = vpop.f32.mrb[13].mxu1  ;;  %v6760_v52 = vpop.f32.mrb[14].mxu0 }
 0x503   : > { %v7260_v25 = vsel %vm7192_vm14, %v7158_v8, %v7226_v0  ;;  %v7118_v49 = vadd.f32 %v7055_v44, %v6820_v5  ;;  %v6821_v62 = vadd.f32 %v6760_v52, %v12236_v46  ;;  %v7058_v30 = vpop.f32.mrb[14].mxu1  ;;  %v9438_v4 = vpop.f32.mrb[15].mxu0 }
 0x504   : > { %7430 = vst.msk [vmem:[%s12275_s29 + $0x58] sm:$0xf] %vm7407_vm6, %v8105_v57  ;;  %v8106_v48 = vpack.c.bf16 %v7260_v25, %v7260_v25  ;;  %v9508_v60 = vpop.f32.mrb[15].mxu1 }
 0x505   : > { %v7159_v39 = vadd.f32 %v12266_v26, %v7118_v49  ;;  %v7119_v59 = vadd.f32 %v7058_v30, %v6821_v62 }
 0x506   : > { %7431 = vst.msk [vmem:[%s12275_s29 + $0x5c] sm:$0xf] %vm7407_vm6, %v8106_v48 }
 0x507   : > { %vm7193_vm15 = vcmp.ge.f32.partialorder %v7159_v39, 0.0  ;;  %v7227_v14 = vmul.f32 0.2, %v7159_v39  ;;  %v7160_v38 = vadd.f32 %v12266_v26, %v7119_v59 }
 0x508   : > { %v6765_v56 = vpop.f32.mrb[16].mxu0 }
 0x509   : > { %v7261_v9 = vsel %vm7193_vm15, %v7159_v39, %v7227_v14  ;;  %vm7194_vm0 = vcmp.ge.f32.partialorder %v7160_v38, 0.0  ;;  %v7228_v46 = vmul.f32 0.2, %v7160_v38  ;;  %v6822_v43 = vadd.f32 %v6765_v56, %v12239_v61  ;;  %v7063_v28 = vpop.f32.mrb[16].mxu1  ;;  %v9441_v51 = vpop.f32.mrb[17].mxu0 }
 0x50a   : > { %v8107_v1 = vpack.c.bf16 %v7261_v9, %v7261_v9  ;;  %v9511_v19 = vpop.f32.mrb[17].mxu1  ;;  %v6768_v50 = vpop.f32.mrb[18].mxu0 }
 0x50b   : > { %v7262_v21 = vsel %vm7194_vm0, %v7160_v38, %v7228_v46  ;;  %v7120_v18 = vadd.f32 %v7063_v28, %v6822_v43  ;;  %v6823_v31 = vadd.f32 %v6768_v50, %v12242_v41  ;;  %v7066_v47 = vpop.f32.mrb[18].mxu1  ;;  %v9442_v40 = vpop.f32.mrb[19].mxu0 }
 0x50c   : > { %7432 = vst.msk [vmem:[%s12275_s29 + $0x60] sm:$0xf] %vm7407_vm6, %v8107_v1  ;;  %v8108_v45 = vpack.c.bf16 %v7262_v21, %v7262_v21  ;;  %v9512_v27 = vpop.f32.mrb[19].mxu1 }
 0x50d   : > { %v7161_v11 = vadd.f32 %v12266_v26, %v7120_v18  ;;  %v7121_v58 = vadd.f32 %v7066_v47, %v6823_v31 }
 0x50e   : > { %7433 = vst.msk [vmem:[%s12275_s29 + $0x64] sm:$0xf] %vm7407_vm6, %v8108_v45 }
 0x50f   : > { %vm7195_vm1 = vcmp.ge.f32.partialorder %v7161_v11, 0.0  ;;  %v7229_v61 = vmul.f32 0.2, %v7161_v11  ;;  %v7162_v36 = vadd.f32 %v12266_v26, %v7121_v58 }
 0x510   : > { %v6773_v23 = vpop.f32.mrb[20].mxu0 }
 0x511   : > { %v7263_v24 = vsel %vm7195_vm1, %v7161_v11, %v7229_v61  ;;  %vm7196_vm2 = vcmp.ge.f32.partialorder %v7162_v36, 0.0  ;;  %v7230_v41 = vmul.f32 0.2, %v7162_v36  ;;  %v6824_v12 = vadd.f32 %v6773_v23, %v12245_v55  ;;  %v7071_v63 = vpop.f32.mrb[20].mxu1  ;;  %v9445_v33 = vpop.f32.mrb[21].mxu0 }
 0x512   : > { %v8109_v54 = vpack.c.bf16 %v7263_v24, %v7263_v24  ;;  %v9515_v3 = vpop.f32.mrb[21].mxu1  ;;  %v6776_v37 = vpop.f32.mrb[22].mxu0 }
 0x513   : > { %v7264_v20 = vsel %vm7196_vm2, %v7162_v36, %v7230_v41  ;;  %v7122_v6 = vadd.f32 %v7071_v63, %v6824_v12  ;;  %v6825_v7 = vadd.f32 %v6776_v37, %v12248_v2  ;;  %v7074_v22 = vpop.f32.mrb[22].mxu1  ;;  %v9446_v13 = vpop.f32.mrb[23].mxu0 }
 0x514   : > { %7434 = vst.msk [vmem:[%s12275_s29 + $0x68] sm:$0xf] %vm7407_vm6, %v8109_v54  ;;  %v8110_v29 = vpack.c.bf16 %v7264_v20, %v7264_v20  ;;  %v9516_v16 = vpop.f32.mrb[23].mxu1 }
 0x515   : > { %v7163_v8 = vadd.f32 %v12266_v26, %v7122_v6  ;;  %v7123_v35 = vadd.f32 %v7074_v22, %v6825_v7 }
 0x516   : > { %7435 = vst.msk [vmem:[%s12275_s29 + $0x6c] sm:$0xf] %vm7407_vm6, %v8110_v29 }
 0x517   : > { %vm7197_vm3 = vcmp.ge.f32.partialorder %v7163_v8, 0.0  ;;  %v7231_v55 = vmul.f32 0.2, %v7163_v8  ;;  %v7164_v15 = vadd.f32 %v12266_v26, %v7123_v35 }
 0x518   : > { %v6781_v0 = vpop.f32.mrb[24].mxu0 }
 0x519   : > { %v7265_v5 = vsel %vm7197_vm3, %v7163_v8, %v7231_v55  ;;  %vm7198_vm4 = vcmp.ge.f32.partialorder %v7164_v15, 0.0  ;;  %v7232_v2 = vmul.f32 0.2, %v7164_v15  ;;  %v6826_v44 = vadd.f32 %v6781_v0, %v12251_v53  ;;  %v7079_v32 = vpop.f32.mrb[24].mxu1  ;;  %v9449_v57 = vpop.f32.mrb[25].mxu0 }
 0x51a   : > { %v8111_v42 = vpack.c.bf16 %v7265_v5, %v7265_v5  ;;  %v9519_v52 = vpop.f32.mrb[25].mxu1  ;;  %v6784_v25 = vpop.f32.mrb[26].mxu0 }
 0x51b   : > { %v7266_v49 = vsel %vm7198_vm4, %v7164_v15, %v7232_v2  ;;  %v7124_v62 = vadd.f32 %v7079_v32, %v6826_v44  ;;  %v6827_v30 = vadd.f32 %v6784_v25, %v12254_v10  ;;  %v7082_v4 = vpop.f32.mrb[26].mxu1  ;;  %v9450_v48 = vpop.f32.mrb[27].mxu0 }
 0x51c   : > { %7436 = vst.msk [vmem:[%s12275_s29 + $0x70] sm:$0xf] %vm7407_vm6, %v8111_v42  ;;  %v8112_v60 = vpack.c.bf16 %v7266_v49, %v7266_v49  ;;  %v9520_v39 = vpop.f32.mrb[27].mxu1 }
 0x51d   : > { %v7165_v59 = vadd.f32 %v12266_v26, %v7124_v62  ;;  %v7125_v14 = vadd.f32 %v7082_v4, %v6827_v30 }
 0x51e   : > { %7437 = vst.msk [vmem:[%s12275_s29 + $0x74] sm:$0xf] %vm7407_vm6, %v8112_v60 }
 0x51f   : > { %vm7199_vm5 = vcmp.ge.f32.partialorder %v7165_v59, 0.0  ;;  %v7233_v53 = vmul.f32 0.2, %v7165_v59  ;;  %v7166_v38 = vadd.f32 %v12266_v26, %v7125_v14 }
 0x520   : > { %v6789_v56 = vpop.f32.mrb[28].mxu0 }
 0x521   : > { %v7267_v9 = vsel %vm7199_vm5, %v7165_v59, %v7233_v53  ;;  %vm7200_vm7 = vcmp.ge.f32.partialorder %v7166_v38, 0.0  ;;  %v7234_v10 = vmul.f32 0.2, %v7166_v38  ;;  %v6828_v46 = vadd.f32 %v6789_v56, %v12257_v34  ;;  %v7087_v43 = vpop.f32.mrb[28].mxu1  ;;  %v9453_v28 = vpop.f32.mrb[29].mxu0 }
 0x522   : > { %v8113_v51 = vpack.c.bf16 %v7267_v9, %v7267_v9  ;;  %v9523_v1 = vpop.f32.mrb[29].mxu1  ;;  %v6792_v19 = vpop.f32.mrb[30].mxu0 }
 0x523   : > { %v7268_v50 = vsel %vm7200_vm7, %v7166_v38, %v7234_v10  ;;  %v7126_v21 = vadd.f32 %v7087_v43, %v6828_v46  ;;  %v6829_v18 = vadd.f32 %v6792_v19, %v12260_v17  ;;  %v7090_v31 = vpop.f32.mrb[30].mxu1  ;;  %v9454_v47 = vpop.f32.mrb[31].mxu0 }
 0x524   : > { %7438 = vst.msk [vmem:[%s12275_s29 + $0x78] sm:$0xf] %vm7407_vm6, %v8113_v51  ;;  %v8114_v40 = vpack.c.bf16 %v7268_v50, %v7268_v50  ;;  %v9524_v45 = vpop.f32.mrb[31].mxu1 }
 0x525   : > { %v7167_v34 = vadd.f32 %v12266_v26, %v7126_v21  ;;  %v7127_v27 = vadd.f32 %v7090_v31, %v6829_v18 }
 0x526   : > { %7439 = vst.msk [vmem:[%s12275_s29 + $0x7c] sm:$0xf] %vm7407_vm6, %v8114_v40 }
 0x527   : > { %vm7201_vm8 = vcmp.ge.f32.partialorder %v7167_v34, 0.0  ;;  %v7235_v11 = vmul.f32 0.2, %v7167_v34  ;;  %v7168_v58 = vadd.f32 %v12266_v26, %v7127_v27 }
 0x529   : > { %v7269_v61 = vsel %vm7201_vm8, %v7167_v34, %v7235_v11  ;;  %vm7202_vm9 = vcmp.ge.f32.partialorder %v7168_v58, 0.0  ;;  %v7236_v17 = vmul.f32 0.2, %v7168_v58 }
 0x52a   : > { %v8115_v36 = vpack.c.bf16 %v7269_v61, %v7269_v61 }
 0x52b   : > { %v7270_v23 = vsel %vm7202_vm9, %v7168_v58, %v7236_v17 }
 0x52c   : > { %7440 = vst.msk [vmem:[%s12275_s29 + $0x80] sm:$0xf] %vm7407_vm6, %v8115_v36  ;;  %v8116_v24 = vpack.c.bf16 %v7270_v23, %v7270_v23 }
 0x52e   : > { %7441 = vst.msk [vmem:[%s12275_s29 + $0x84] sm:$0xf] %vm7407_vm6, %v8116_v24 }
 0x52f PF: > { %s16_s21 = sadd.s32 1, %s9766_s21  }
 0x530   : > { %p13_p4 = scmp.ge.s32.totalorder %s16_s21, 4  }
 0x532   :  { %15 = sbr.rel (!%p13_p4) target bundleno = 1 (0x1), region = 98 }

// kernel: nlayer_discriminator_forward.7
= control target key start
LH: loop header
LB: loop body
LE: loop exit
PB: predicated region body
PF: predicated region fallthrough
CT: control target
= control target key end

     0   :  { %s2592_s27 = smov 0   ;;  %s2875_s0 = inlined_call_operand.vmem [shape: bf16[2,32,32], index: 0, kind: input, shape index: {}]   ;;  %s2876_s1 = inlined_call_operand.vmem [shape: bf16[2,32,32], index: 1, kind: input, shape index: {}]   ;;  %s2877_s2 = inlined_call_operand.vmem [shape: bf16[2,32,32], index: 2, kind: input, shape index: {}]   ;;  %s2878_s3 = inlined_call_operand.vmem [shape: bf16[2,32,32], index: 3, kind: input, shape index: {}]   ;;  %s2879_s4 = inlined_call_operand.vmem [shape: bf16[16,32,64], index: 4, kind: input, shape index: {}]   ;;  %s2880_s5 = inlined_call_operand.vmem [shape: f32[20,1], index: 5, kind: input, shape index: {}]   ;;  %s2881_s6 = inlined_call_operand.vmem [shape: bf16[2,20,64], index: 6, kind: output, shape index: {0}]   ;;  %s2882_s7 = inlined_call_operand.vmem [shape: f32[2,1,64], index: 7, kind: output, shape index: {1}]   ;;  %s2883_s8 = inlined_call_operand.vmem [shape: f32[2,1,64], index: 8, kind: output, shape index: {2}]  }
   0x1 LB: > { %s2045_s28 = sadd.s32 4294967295, %s2544_s27   ;;  %p2049_p0 = scmp.ge.s32.totalorder %s2544_s27, 1  ;;  %s2544_s27 = sphi %s2592_s27, %s19_s27  }
   0x2   : > { %p297_p1 = scmp.lt.s32.totalorder %s2544_s27, 3 }
   0x4   : > { %p298_p2 = pnand %p2049_p0, %p297_p1 }
   0x5   : > { %v2482_v0 = vld [vmem:[%s2879_s4 + $0x10] sm:$0xff] (!%p298_p2)   ;;  %p352_p3 = scmp.lt.s32.totalorder (!%p298_p2), %s2045_s28, 1  ;;  %v2483_v1 = vld [vmem:[%s2879_s4 + $0x18] sm:$0xff] (!%p298_p2)   ;;  %v2484_v2 = vld [vmem:[%s2879_s4 + $0x80] sm:$0xff] (!%p298_p2)   ;;  %vm419_vm0 = vcmask (!%p298_p2), 261120   ;;  %v2546_v8 = vmov (!%p298_p2), 0  }
   0x6   : > { %301 = sbr.rel (%p298_p2) target bundleno = 351 (0x15f), region = 44  ;;  %2283 = vmatprep.subr.bf16.mxu1 (!%p298_p2), %v2482_v0  ;;  %v2487_v3 = vld [vmem:[%s2879_s4 + $0x88] sm:$0xff] (!%p298_p2)   ;;  %2347 = vmatprep.subr.bf16.mxu0 (!%p298_p2), %v2484_v2  ;;  %v2488_v4 = vld [vmem:[%s2879_s4] sm:$0xff] (!%p298_p2)   ;;  %v2491_v7 = vld [vmem:[%s2879_s4 + $0x90] sm:$0xff] (!%p298_p2)   ;;  %vm1106_vm1 = vsmask.f32 (!%p298_p2), 5376 }
   0x7   : > { %2284 = vmatpush3.bf16.msra.mxu1 (!%p298_p2), %v2482_v0  ;;  %2348 = vmatpush3.bf16.msra.mxu0 (!%p298_p2), %v2484_v2  ;;  %v2492_v13 = vld [vmem:[%s2879_s4 + $0x8] sm:$0xff] (!%p298_p2)   ;;  %v2494_v26 = vld [vmem:[%s2879_s4 + $0x98] sm:$0xff] (!%p298_p2)   ;;  %v2496_v27 = vld [vmem:[%s2879_s4 + $0x20] sm:$0xff] (!%p298_p2)   ;;  %vm557_vm2 = vsmask.f32 (!%p298_p2), 7424  ;;  %vm1307_vm3 = vcmask (!%p298_p2), 1044480  }
   0x8   : > { %2285 = vmatprep.subr.bf16.mxu1 (!%p298_p2), %v2483_v1  ;;  %2349 = vmatprep.subr.bf16.mxu0 (!%p298_p2), %v2487_v3  ;;  %v2499_v40 = vld [vmem:[%s2879_s4 + $0xa0] sm:$0xff] (!%p298_p2)   ;;  %v2500_v41 = vld [vmem:[%s2879_s4 + $0x28] sm:$0xff] (!%p298_p2)   ;;  %v2503_v54 = vld [vmem:[%s2879_s4 + $0x30] sm:$0xff] (!%p298_p2)   ;;  %vm1849_vm4 = vcmask (!%p298_p2), 517120   ;;  %vm1846_vm5 = vcmask (!%p298_p2), 519168   ;;  %vm1872_vm6 = vcmask (!%p298_p2), 523264  }
   0x9   : > { %2480 = vset.pattern.permute.xlu0 (!%p298_p2), %v2546_v8  ;;  %2481 = vset.pattern.permute.xlu1 (!%p298_p2), %v2546_v8  ;;  %v2502_v0 = vld [vmem:[%s2879_s4 + $0xa8] sm:$0xff] (!%p298_p2)   ;;  %v2506_v8 = vld [vmem:[%s2879_s4 + $0x38] sm:$0xff] (!%p298_p2)   ;;  %vm1884_vm7 = vcmask (!%p298_p2), 516096  }
   0xb   : > { %2286 = vmatpush3.bf16.msra.mxu1 (!%p298_p2), %v2483_v1  ;;  %2350 = vmatpush3.bf16.msra.mxu0 (!%p298_p2), %v2487_v3 }
   0xc   : > { %2291 = vmatprep.subr.bf16.mxu1 (!%p298_p2), %v2488_v4  ;;  %2355 = vmatprep.subr.bf16.mxu0 (!%p298_p2), %v2491_v7 }
   0xd   : > { %s2885_s28 = smov (!%p352_p3, %s2045_s28), 1 }
   0xe   : > { %s2615_s15 = sshll.u32 %s2885_s28, 4  ;;  %s2470_s13 = smul.u32 12, %s2885_s28 }
   0xf   : > { %s2624_s20 = scalar_lea.vmem %s2876_s1, %s2615_s15  ;;  %s2630_s23 = scalar_lea.vmem %s2875_s0, %s2615_s15 }
  0x10   : > { %v2633_v5 = vld [vmem:[%s2624_s20] sm:$0xff]   ;;  %v2486_v6 = vld [vmem:[%s2624_s20 + $0x8] ss:$0 sps:$4 sm:$0x33]   ;;  %s2709_s24 = scalar_lea.vmem %s2877_s2, %s2615_s15  ;;  %s2739_s12 = scalar_lea.vmem %s2878_s3, %s2615_s15 }
  0x11   : > { %2287 = vmatprep.mubr.msk.bf16.mxu1 %vm419_vm0, %v2633_v5  ;;  %v1087_v9 = vld [vmem:[%s2630_s23] sm:$0xc]  ;;  %v2643_v10 = vld [vmem:[%s2630_s23 + $0x4] sm:$0xf]  ;;  %v2647_v12 = vld [vmem:[%s2630_s23 + $0x8] sm:$0x1f]   ;;  %s376_s17 = scalar_lea.vmem %s2881_s6, %s2470_s13  ;;  %s379_s19 = scalar_lea.vmem %s2882_s7, %s2885_s28 }
  0x12   : > { %v2135_v11 = vcombine.low %v1087_v9, %v2643_v10  ;;  %2288 = vmatmul.mubr.msk.bf16.vlgmr.msra.gmra.mrb[0].mxu1 %vm419_vm0, %v2486_v6  ;;  %v1116_v16 = vshrl.u32 %v2647_v12, 16  ;;  %v1119_v17 = vshll.u32 %v2647_v12, 16  ;;  %v2493_v18 = vld [vmem:[%s2630_s23] sm:$0xff]   ;;  %v652_v23 = vshll.u32 %v2633_v5, 16  ;;  %v2672_v33 = vld [vmem:[%s2624_s20 + $0x8] sm:$0x1f]  }
  0x13   : > { %2292 = vmatpush3.bf16.msra.mxu1 %v2488_v4  ;;  %2295 = vmatprep.mubr.msk.bf16.mxu1 %vm419_vm0, %v2493_v18  ;;  %v2495_v28 = vld [vmem:[%s2630_s23 + $0x8] ss:$0 sps:$4 sm:$0x33]   ;;  %v1193_v29 = vld [vmem:[%s2624_s20] sm:$0xc]  ;;  %v558_v34 = vshrl.u32 %v2493_v18, 16 }
  0x14   : > { %v1108_v14 = vshrl.u32 %v2135_v11, 16  ;;  %v1111_v15 = vshll.u32 %v2135_v11, 16  ;;  %2293 = vmatprep.subr.bf16.mxu1 %v2492_v13  ;;  %v1118_v21 = vrot.slane %v1116_v16, 2  ;;  %v1121_v22 = vrot.slane %v1119_v17, 3  ;;  %v2667_v30 = vld [vmem:[%s2624_s20 + $0x4] sm:$0xf] }
  0x15   : > { %v2145_v32 = vcombine.low %v1193_v29, %v2667_v30  ;;  %v560_v35 = vshll.u32 %v2493_v18, 16  ;;  %v1221_v38 = vshrl.u32 %v2672_v33, 16  ;;  %v1224_v39 = vshll.u32 %v2672_v33, 16  ;;  %v2501_v42 = vld [vmem:[%s2630_s23 + $0x8] ss:$0 sps:$4 sm:$0x77]  }
  0x16   : > { %v1110_v19 = vrot.slane %v1108_v14, 2  ;;  %v1113_v20 = vrot.slane %v1111_v15, 3  ;;  %v1122_v25 = vor.u32 %v1121_v22, %v1118_v21  ;;  %v650_v47 = vshrl.u32 %v2633_v5, 16  ;;  %v1298_v55 = vld [vmem:[%s2630_s23] sm:$0x8]  ;;  %v2505_v9 = vld [vmem:[%s2879_s4 + $0xb0] sm:$0xff]   ;;  %s382_s23 = scalar_lea.vmem %s2883_s8, %s2885_s28 }
  0x17   : > { %2294 = vmatpush3.bf16.msra.mxu1 %v2492_v13  ;;  %v1213_v36 = vshrl.u32 %v2145_v32, 16  ;;  %v1216_v37 = vshll.u32 %v2145_v32, 16  ;;  %v1223_v45 = vrot.slane %v1221_v38, 2  ;;  %v1226_v46 = vrot.slane %v1224_v39, 3  ;;  %v1380_v5 = vld [vmem:[%s2624_s20] sm:$0x8] }
  0x18   : > { %v1114_v24 = vor.u32 %v1113_v20, %v1110_v19  ;;  %2299 = vmatprep.subr.bf16.mxu1 %v2496_v27  ;;  %v562_v48 = vrot.slane %v560_v35, 1  ;;  %v565_v49 = vshll.u32 %v2501_v42, 16  ;;  %v654_v56 = vrot.slane %v652_v23, 1  ;;  %v2507_v63 = vld [vmem:[%s2624_s20 + $0x8] ss:$0 sps:$4 sm:$0x77]  }
  0x19   : > { %v1215_v43 = vrot.slane %v1213_v36, 2  ;;  %v1218_v44 = vrot.slane %v1216_v37, 3  ;;  %v1227_v51 = vor.u32 %v1226_v46, %v1223_v45  ;;  %v2155_v58 = vcombine.low %v1298_v55, %v2643_v10  ;;  %v2509_v11 = vld [vmem:[%s2879_s4 + $0x40] sm:$0xff]   ;;  %v2731_v17 = vld [vmem:[%s2709_s24 + $0x8] sm:$0x1f]   ;;  %v2508_v23 = vld [vmem:[%s2879_s4 + $0xb8] sm:$0xff]  }
  0x1a   : > { %v1123_v31 = vsel %vm1106_vm1, %v1114_v24, %v1122_v25  ;;  %v563_v52 = vor.u32 %v562_v48, %v558_v34  ;;  %v567_v53 = vrot.slane %v565_v49, 1  ;;  %v1309_v59 = vrot.slane %v2647_v12, 3  ;;  %v1461_v14 = vld [vmem:[%s2709_s24] sm:$0xc]  ;;  %v2727_v15 = vld [vmem:[%s2709_s24 + $0x4] sm:$0xf] }
  0x1b   : > { %2351 = vmatprep.mubr.msk.bf16.mxu0 %vm419_vm0, %v1123_v31  ;;  %v1219_v50 = vor.u32 %v1218_v44, %v1215_v43  ;;  %v569_v61 = vshrl.u32 %v2501_v42, 16  ;;  %v1308_v62 = vrot.slane %v2155_v58, 3  ;;  %v655_v2 = vor.u32 %v654_v56, %v650_v47  ;;  %v2758_v34 = vld [vmem:[%s2739_s12 + $0x4] sm:$0xf]  ;;  %v2516_v35 = vld [vmem:[%s2879_s4 + $0x50] sm:$0xff]   ;;  %v2520_v48 = vld [vmem:[%s2879_s4 + $0x58] sm:$0xff]  }
  0x1c   : > { %2352 = vmatmul.mubr.msk.bf16.vlgmr.msra.gmra.mrb[0].mxu0 %vm419_vm0, %v1122_v25  ;;  %v568_v60 = vsel %vm557_vm2, %v563_v52, %v567_v53  ;;  %v657_v3 = vshll.u32 %v2507_v63, 16  ;;  %v1390_v13 = vrot.slane %v2672_v33, 3  ;;  %v2173_v16 = vcombine.low %v1461_v14, %v2727_v15  ;;  %v1566_v33 = vld [vmem:[%s2739_s12] sm:$0xc]  ;;  %v2768_v39 = vld [vmem:[%s2739_s12 + $0x8] sm:$0x1f]  }
  0x1d   : > { %2356 = vmatpush3.bf16.msra.mxu0 %v2491_v7  ;;  %v1228_v57 = vsel %vm1106_vm1, %v1219_v50, %v1227_v51  ;;  %v1310_v1 = vsel %vm1307_vm3, %v1308_v62, %v1309_v59  ;;  %v571_v4 = vor.u32 %v569_v61, %v567_v53  ;;  %v2164_v7 = vcombine.low %v1380_v5, %v2667_v30  ;;  %v2515_v46 = vld [vmem:[%s2709_s24 + $0x8] ss:$0 sps:$4 sm:$0x33]   ;;  %v2519_v47 = vld [vmem:[%s2879_s4 + $0xd0] sm:$0xff]   ;;  %v2521_v49 = vld [vmem:[%s2739_s12] sm:$0xff]  }
  0x1e   : > { %2357 = vmatprep.subr.bf16.mxu0 %v2494_v26  ;;  %2296 = vmatmul.mubr.msk.bf16.vlgmr.msra.gmra.mrb[0].mxu1 %vm419_vm0, %v2495_v28  ;;  %v659_v6 = vrot.slane %v657_v3, 1  ;;  %v661_v18 = vshrl.u32 %v2507_v63, 16  ;;  %v1481_v19 = vshrl.u32 %v2173_v16, 16  ;;  %v1484_v20 = vshll.u32 %v2173_v16, 16  ;;  %v2511_v28 = vld [vmem:[%s2879_s4 + $0xc0] sm:$0xff]   ;;  %v1852_v58 = vld [vmem:[%s2880_s5 + $0x8] sm:$0xff] }
  0x1f   : > { %2300 = vmatpush3.bf16.msra.mxu1 %v2496_v27  ;;  %2359 = vmatprep.mubr.msk.bf16.mxu0 %vm419_vm0, %v1228_v57  ;;  %v1389_v12 = vrot.slane %v2164_v7, 3  ;;  %v1489_v21 = vshrl.u32 %v2731_v17, 16  ;;  %v1492_v22 = vshll.u32 %v2731_v17, 16  ;;  %v2749_v27 = vld [vmem:[%s2709_s24] sm:$0xff]   ;;  %v2183_v36 = vcombine.low %v1566_v33, %v2758_v34  ;;  %v1853_v57 = vld [vmem:[%s2880_s5 + $0x10] sm:$0xf] }
  0x20   : > { %2301 = vmatprep.subr.bf16.mxu1 %v2500_v41  ;;  %2303 = vmatprep.mubr.msk.bf16.mxu1 %vm419_vm0, %v568_v60  ;;  %v660_v10 = vsel %vm557_vm2, %v655_v2, %v659_v6  ;;  %v663_v25 = vor.u32 %v661_v18, %v659_v6  ;;  %v1483_v29 = vrot.slane %v1481_v19, 2  ;;  %v1486_v30 = vrot.slane %v1484_v20, 3  ;;  %v1851_v52 = vld [vmem:[%s2880_s5] sm:$0xff]  ;;  %v2522_v3 = vld [vmem:[%s2879_s4 + $0xd8] sm:$0xff]   ;;  %v2528_v7 = vld [vmem:[%s2879_s4 + $0x68] sm:$0xff]  }
  0x21   : > { %2358 = vmatpush3.bf16.msra.mxu0 %v2494_v26  ;;  %v1391_v24 = vsel %vm1307_vm3, %v1389_v12, %v1390_v13  ;;  %v2512_v26 = vld [vmem:[%s2879_s4 + $0x48] sm:$0xff]   ;;  %v1491_v31 = vrot.slane %v1489_v21, 2  ;;  %v1494_v32 = vrot.slane %v1492_v22, 3  ;;  %v1589_v42 = vshll.u32 %v2183_v36, 16  ;;  %1856 = vperm.xlu0 %2480, %v1851_v52   ;;  %v1671_v6 = vld [vmem:[%s2709_s24] sm:$0x8] }
  0x22   : > { %2363 = vmatprep.subr.bf16.mxu0 %v2499_v40  ;;  %v1487_v37 = vor.u32 %v1486_v30, %v1483_v29  ;;  %v1594_v44 = vshrl.u32 %v2768_v39, 16  ;;  %v1597_v45 = vshll.u32 %v2768_v39, 16  ;;  %v914_v50 = vshll.u32 %v2749_v27, 16  ;;  %1866 = vperm.xlu1 %2481, %v1853_v57   ;;  %v2523_v5 = vld [vmem:[%s2739_s12 + $0x8] ss:$0 sps:$4 sm:$0x33]  }
  0x23   : > { %2302 = vmatpush3.bf16.msra.mxu1 %v2500_v41  ;;  %v1495_v38 = vor.u32 %v1494_v32, %v1491_v31  ;;  %v1586_v41 = vshrl.u32 %v2183_v36, 16  ;;  %v912_v60 = vshrl.u32 %v2749_v27, 16  ;;  %v2193_v12 = vcombine.low %v1671_v6, %v2727_v15  ;;  %v2536_v33 = vld [vmem:[%s2879_s4 + $0xf8] sm:$0xff]  }
  0x24   : > { %2307 = vmatprep.subr.bf16.mxu1 %v2503_v54  ;;  %v1596_v55 = vrot.slane %v1594_v44, 2  ;;  %v1599_v56 = vrot.slane %v1597_v45, 3  ;;  %v916_v61 = vrot.slane %v914_v50, 1  ;;  %v1004_v14 = vshrl.u32 %v2521_v49, 16 }
  0x25   : > { %v1496_v43 = vsel %vm1106_vm1, %v1487_v37, %v1495_v38  ;;  %v1588_v53 = vrot.slane %v1586_v41, 2  ;;  %1861 = vperm.xlu0 %2480, %v1852_v58   ;;  %v1680_v19 = vrot.slane %v2193_v12, 3  ;;  %v1681_v20 = vrot.slane %v2731_v17, 3  ;;  %v2534_v17 = vld [vmem:[%s2879_s4 + $0x78] sm:$0xff]  }
  0x26   : > { %v1762_v31 = vrot.slane %v2768_v39, 3 }
  0x28   : > { %2360 = vmatmul.mubr.msk.bf16.vlgmr.msra.gmra.mrb[0].mxu0 %vm419_vm0, %v1227_v51  ;;  %v2529_v51 = vld [vmem:[%s2709_s24 + $0x8] ss:$0 sps:$4 sm:$0x77]  }
  0x29   : > { %2364 = vmatpush3.bf16.msra.mxu0 %v2499_v40  ;;  %2367 = vmatprep.mubr.msk.bf16.mxu0 %vm419_vm0, %v1310_v1  ;;  %v2514_v40 = vld [vmem:[%s2879_s4 + $0xc8] sm:$0xff]   ;;  %v919_v62 = vshll.u32 %v2529_v51, 16  ;;  %v917_v1 = vor.u32 %v916_v61, %v912_v60  ;;  %v923_v15 = vshrl.u32 %v2529_v51, 16 }
  0x2a   : > { %2365 = vmatprep.subr.bf16.mxu0 %v2502_v0  ;;  %2304 = vmatmul.mubr.msk.bf16.vlgmr.msra.gmra.mrb[0].mxu1 %vm419_vm0, %v571_v4 }
  0x2b   : > { %2308 = vmatpush3.bf16.msra.mxu1 %v2503_v54  ;;  %2311 = vmatprep.mubr.msk.bf16.mxu1 %vm419_vm0, %v660_v10  ;;  %v1591_v54 = vrot.slane %v1589_v42, 3  ;;  %v921_v2 = vrot.slane %v919_v62, 1  ;;  %v1006_v10 = vshll.u32 %v2521_v49, 16 }
  0x2c   : > { %2309 = vmatprep.subr.bf16.mxu1 %v2506_v8 }
  0x2d   : > { %2366 = vmatpush3.bf16.msra.mxu0 %v2502_v0  ;;  %v1592_v63 = vor.u32 %v1591_v54, %v1588_v53  ;;  %v1600_v0 = vor.u32 %v1599_v56, %v1596_v55  ;;  %v1008_v16 = vrot.slane %v1006_v10, 1 }
  0x2e   : > { %2371 = vmatprep.subr.bf16.mxu0 %v2505_v9 }
  0x2f   : > { %2310 = vmatpush3.bf16.msra.mxu1 %v2506_v8  ;;  %v1601_v4 = vsel %vm1106_vm1, %v1592_v63, %v1600_v0  ;;  %v922_v8 = vsel %vm557_vm2, %v917_v1, %v921_v2  ;;  %v1009_v21 = vor.u32 %v1008_v16, %v1004_v14 }
  0x30   : > { %2315 = vmatprep.subr.bf16.mxu1 %v2509_v11 }
  0x34   : > { %2368 = vmatmul.mubr.msk.bf16.vlgmr.msra.gmra.mrb[0].mxu0 %vm419_vm0, %v1309_v59  ;;  %v2524_v59 = vld [vmem:[%s2879_s4 + $0x60] sm:$0xff]  }
  0x35   : > { %2372 = vmatpush3.bf16.msra.mxu0 %v2505_v9  ;;  %2375 = vmatprep.mubr.msk.bf16.mxu0 %vm419_vm0, %v1391_v24  ;;  %v2535_v9 = vld [vmem:[%s2739_s12 + $0x8] ss:$0 sps:$4 sm:$0x77]   ;;  %v1682_v24 = vsel %vm1307_vm3, %v1680_v19, %v1681_v20 }
  0x36   : > { %2373 = vmatprep.subr.bf16.mxu0 %v2508_v23  ;;  %2312 = vmatmul.mubr.msk.bf16.vlgmr.msra.gmra.mrb[0].mxu1 %vm419_vm0, %v663_v25  ;;  %v1011_v18 = vshll.u32 %v2535_v9, 16  ;;  %v925_v25 = vor.u32 %v923_v15, %v921_v2  ;;  %v1015_v32 = vshrl.u32 %v2535_v9, 16 }
  0x37   : > { %2316 = vmatpush3.bf16.msra.mxu1 %v2509_v11  ;;  %2319 = vmatprep.mubr.msk.bf16.mxu1 %vm419_vm0, %v2749_v27  ;;  %v2527_v11 = vld [vmem:[%s2879_s4 + $0xe0] sm:$0xff]  }
  0x38   : > { %2317 = vmatprep.subr.bf16.mxu1 %v2512_v26  ;;  %v1013_v22 = vrot.slane %v1011_v18, 1 }
  0x39   : > { %2374 = vmatpush3.bf16.msra.mxu0 %v2508_v23  ;;  %v2530_v23 = vld [vmem:[%s2879_s4 + $0xe8] sm:$0xff]  }
  0x3a   : > { %2379 = vmatprep.subr.bf16.mxu0 %v2511_v28  ;;  %v1014_v27 = vsel %vm557_vm2, %v1009_v21, %v1013_v22 }
  0x3b   : > { %2318 = vmatpush3.bf16.msra.mxu1 %v2512_v26  ;;  %v1752_v26 = vld [vmem:[%s2739_s12] sm:$0x8] }
  0x3c   : > { %2323 = vmatprep.subr.bf16.mxu1 %v2516_v35  ;;  %v2202_v29 = vcombine.low %v1752_v26, %v2758_v34 }
  0x3e   : > { %v1761_v30 = vrot.slane %v2202_v29, 3 }
  0x40   : > { %2376 = vmatmul.mubr.msk.bf16.vlgmr.msra.gmra.mrb[0].mxu0 %vm419_vm0, %v1390_v13  ;;  %v2531_v13 = vld [vmem:[%s2879_s4 + $0x70] sm:$0xff]   ;;  %v1763_v34 = vsel %vm1307_vm3, %v1761_v30, %v1762_v31 }
  0x41   : > { %2380 = vmatpush3.bf16.msra.mxu0 %v2511_v28  ;;  %2383 = vmatprep.mubr.msk.bf16.mxu0 %vm419_vm0, %v1496_v43  ;;  %v2533_v28 = vld [vmem:[%s2879_s4 + $0xf0] sm:$0xff]  }
  0x42   : > { %2381 = vmatprep.subr.bf16.mxu0 %v2514_v40  ;;  %2320 = vmatmul.mubr.msk.bf16.vlgmr.msra.gmra.mrb[0].mxu1 %vm419_vm0, %v2515_v46 }
  0x43   : > { %2324 = vmatpush3.bf16.msra.mxu1 %v2516_v35  ;;  %2327 = vmatprep.mubr.msk.bf16.mxu1 %vm419_vm0, %v2521_v49  ;;  %v1017_v35 = vor.u32 %v1015_v32, %v1013_v22 }
  0x44   : > { %2325 = vmatprep.subr.bf16.mxu1 %v2520_v48 }
  0x45   : > { %2382 = vmatpush3.bf16.msra.mxu0 %v2514_v40 }
  0x46   : > { %2387 = vmatprep.subr.bf16.mxu0 %v2519_v47 }
  0x47   : > { %2326 = vmatpush3.bf16.msra.mxu1 %v2520_v48 }
  0x48   : > { %2331 = vmatprep.subr.bf16.mxu1 %v2524_v59 }
  0x4c   : > { %2384 = vmatmul.mubr.msk.bf16.vlgmr.msra.gmra.mrb[0].mxu0 %vm419_vm0, %v1495_v38 }
  0x4d   : > { %2388 = vmatpush3.bf16.msra.mxu0 %v2519_v47  ;;  %2391 = vmatprep.mubr.msk.bf16.mxu0 %vm419_vm0, %v1601_v4 }
  0x4e   : > { %2389 = vmatprep.subr.bf16.mxu0 %v2522_v3  ;;  %2328 = vmatmul.mubr.msk.bf16.vlgmr.msra.gmra.mrb[0].mxu1 %vm419_vm0, %v2523_v5 }
  0x4f   : > { %2332 = vmatpush3.bf16.msra.mxu1 %v2524_v59  ;;  %2335 = vmatprep.mubr.msk.bf16.mxu1 %vm419_vm0, %v922_v8 }
  0x50   : > { %2333 = vmatprep.subr.bf16.mxu1 %v2528_v7 }
  0x51   : > { %2390 = vmatpush3.bf16.msra.mxu0 %v2522_v3 }
  0x52   : > { %2395 = vmatprep.subr.bf16.mxu0 %v2527_v11 }
  0x53   : > { %2334 = vmatpush3.bf16.msra.mxu1 %v2528_v7 }
  0x54   : > { %2339 = vmatprep.subr.bf16.mxu1 %v2531_v13 }
  0x58   : > { %2392 = vmatmul.mubr.msk.bf16.vlgmr.msra.gmra.mrb[0].mxu0 %vm419_vm0, %v1600_v0 }
  0x59   : > { %2396 = vmatpush3.bf16.msra.mxu0 %v2527_v11  ;;  %2399 = vmatprep.mubr.msk.bf16.mxu0 %vm419_vm0, %v1682_v24 }
  0x5a   : > { %2397 = vmatprep.subr.bf16.mxu0 %v2530_v23  ;;  %2336 = vmatmul.mubr.msk.bf16.vlgmr.msra.gmra.mrb[0].mxu1 %vm419_vm0, %v925_v25 }
  0x5b   : > { %2340 = vmatpush3.bf16.msra.mxu1 %v2531_v13  ;;  %2343 = vmatprep.mubr.msk.bf16.mxu1 %vm419_vm0, %v1014_v27 }
  0x5c   : > { %2341 = vmatprep.subr.bf16.mxu1 %v2534_v17 }
  0x5d   : > { %2398 = vmatpush3.bf16.msra.mxu0 %v2530_v23 }
  0x5e   : > { %2403 = vmatprep.subr.bf16.mxu0 %v2533_v28 }
  0x5f   : > { %2342 = vmatpush3.bf16.msra.mxu1 %v2534_v17 }
  0x64   : > { %2400 = vmatmul.mubr.msk.bf16.vlgmr.msra.gmra.mrb[0].mxu0 %vm419_vm0, %v1681_v20 }
  0x65   : > { %2404 = vmatpush3.bf16.msra.mxu0 %v2533_v28  ;;  %2407 = vmatprep.mubr.msk.bf16.mxu0 %vm419_vm0, %v1763_v34 }
  0x66   : > { %2405 = vmatprep.subr.bf16.mxu0 %v2536_v33  ;;  %2344 = vmatmul.mubr.msk.bf16.vlgmr.msra.gmra.mrb[0].mxu1 %vm419_vm0, %v1017_v35 }
  0x69   : > { %2406 = vmatpush3.bf16.msra.mxu0 %v2536_v33 }
  0x70   : > { %2408 = vmatmul.mubr.msk.bf16.vlgmr.msra.gmra.mrb[0].mxu0 %vm419_vm0, %v1762_v31 }
  0xa0   : > { %v1857_v40 = vpop.permute.xlu0 %1856 }
  0xa1   : > { %v1867_v47 = vpop.permute.xlu1 %1866 }
  0xa4   : > { %v1862_v54 = vpop.permute.xlu0 %1861 }
 0x139   : > { %v2345_v36 = vpop.f32.mrb[0].mxu1 }
 0x13a   : > { %v1070_v37 = vpop.f32.mrb[1].mxu1 }
 0x13b   : > { %v2346_v38 = vpop.f32.mrb[2].mxu1 }
 0x13c   : > { %v1073_v39 = vpop.f32.mrb[3].mxu1 }
 0x143   : > { %v2409_v41 = vpop.f32.mrb[0].mxu0 }
 0x144   : > { %v2411_v42 = vadd.f32 %v2409_v41, %v2345_v36  ;;  %v1816_v43 = vpop.f32.mrb[1].mxu0 }
 0x145   : > { %v2412_v44 = vadd.f32 %v1816_v43, %v1070_v37  ;;  %v2410_v45 = vpop.f32.mrb[2].mxu0 }
 0x146   : > { %v2218_v46 = vpack.c.bf16 %v2411_v42, %v2411_v42  ;;  %v1819_v48 = vpop.f32.mrb[3].mxu0  ;;  %v1888_v53 = vmul.f32 %v2411_v42, %v2411_v42  ;;  %v1871_v55 = vmul.f32 %v2411_v42, %v1867_v47 }
 0x147   : > { %v2216_v49 = vpack.c.bf16 %v2412_v44, %v2412_v44  ;;  %v1869_v50 = vmul.f32 %v2412_v44, %v1857_v40  ;;  %v1886_v51 = vmul.f32 %v2412_v44, %v2412_v44  ;;  %v2413_v52 = vadd.f32 %v1819_v48, %v1073_v39 }
 0x148   : > { %1850 = vst.msk [vmem:[%s376_s17 + $0x8] sm:$0x3] %vm1849_vm4, %v2218_v46  ;;  %v1891_v62 = vmul.f32 %v1888_v53, %v1867_v47  ;;  %v1876_v1 = vsel %vm1846_vm5, %v1871_v55, 0.0 }
 0x149   : > { %1847 = vst.msk [vmem:[%s376_s17] sm:$0xf] %vm1846_vm5, %v2216_v49  ;;  %v2217_v56 = vpack.c.bf16 %v2413_v52, %v2413_v52  ;;  %v1870_v57 = vmul.f32 %v2413_v52, %v1862_v54  ;;  %v1889_v58 = vmul.f32 %v1886_v51, %v1857_v40  ;;  %v1887_v59 = vmul.f32 %v2413_v52, %v2413_v52 }
 0x14a   : > { %v1873_v60 = vsel %vm1872_vm6, %v1869_v50, 0.0  ;;  %v1895_v6 = vsel %vm1846_vm5, %v1891_v62, 0.0 }
 0x14b   : > { %1848 = vst.msk [vmem:[%s376_s17 + $0x4] sm:$0xf] %vm1846_vm5, %v2217_v56  ;;  %v1874_v61 = vsel %vm1872_vm6, %v1870_v57, 0.0  ;;  %v1890_v0 = vmul.f32 %v1887_v59, %v1862_v54  ;;  %v1892_v2 = vsel %vm1872_vm6, %v1889_v58, 0.0 }
 0x14c   : > { %v1875_v63 = vadd.f32 %v1874_v61, %v1873_v60 }
 0x14d   : > { %v1893_v4 = vsel %vm1872_vm6, %v1890_v0, 0.0 }
 0x14e   : > { %v1877_v3 = vadd.f32 %v1876_v1, %v1875_v63  ;;  %v1894_v5 = vadd.f32 %v1893_v4, %v1892_v2 }
 0x150   : > { %v1878_v7 = vrot.slane %v1877_v3, 4  ;;  %v1896_v8 = vadd.f32 %v1895_v6, %v1894_v5 }
 0x152   : > { %v1879_v9 = vadd.f32 %v1878_v7, %v1877_v3  ;;  %v1897_v10 = vrot.slane %v1896_v8, 4 }
 0x154   : > { %v1880_v11 = vrot.slane %v1879_v9, 2  ;;  %v1898_v12 = vadd.f32 %v1897_v10, %v1896_v8 }
 0x156   : > { %v1881_v13 = vadd.f32 %v1880_v11, %v1879_v9  ;;  %v1899_v14 = vrot.slane %v1898_v12, 2 }
 0x158   : > { %v1882_v16 = vrot.slane %v1881_v13, 1  ;;  %v1900_v18 = vadd.f32 %v1899_v14, %v1898_v12 }
 0x15a   : > { %v1883_v19 = vadd.f32 %v1882_v16, %v1881_v13  ;;  %v1901_v20 = vrot.slane %v1900_v18, 1 }
 0x15c   : > { %1885 = vst.msk [vmem:[%s379_s19] sm:$0x1] %vm1884_vm7, %v1883_v19  ;;  %v1902_v15 = vadd.f32 %v1901_v20, %v1900_v18 }
 0x15e   : > { %1903 = vst.msk [vmem:[%s382_s23] sm:$0x1] %vm1884_vm7, %v1902_v15 }
 0x15f PF: > { %s19_s27 = sadd.s32 1, %s2544_s27  }
 0x160   : > { %p16_p4 = scmp.ge.s32.totalorder %s19_s27, 4  }
 0x162   :  { %18 = sbr.rel (!%p16_p4) target bundleno = 1 (0x1), region = 122 }

// kernel: nlayer_discriminator_forward.8
= control target key start
LH: loop header
LB: loop body
LE: loop exit
PB: predicated region body
PF: predicated region fallthrough
CT: control target
= control target key end

     0   :  { %s2847_s18 = smov 0   ;;  %s3212_s0 = inlined_call_operand.vmem [shape: bf16[2,40,64], index: 0, kind: input, shape index: {}]   ;;  %s3213_s1 = inlined_call_operand.vmem [shape: bf16[16,64,128], index: 1, kind: input, shape index: {}]   ;;  %s3214_s2 = inlined_call_operand.vmem [shape: f32[18,1], index: 2, kind: input, shape index: {}]   ;;  %s3215_s3 = inlined_call_operand.vmem [shape: bf16[2,18,128], index: 3, kind: output, shape index: {0}]   ;;  %s3216_s4 = inlined_call_operand.vmem [shape: f32[2,1,128], index: 4, kind: output, shape index: {1}]   ;;  %s3217_s5 = inlined_call_operand.vmem [shape: f32[2,1,128], index: 5, kind: output, shape index: {2}]  }
   0x1 LB: > { %s2102_s19 = sadd.s32 4294967295, %s2814_s18   ;;  %p2106_p0 = scmp.ge.s32.totalorder %s2814_s18, 1  ;;  %s2814_s18 = sphi %s2847_s18, %s16_s18  }
   0x2   : > { %p192_p1 = scmp.lt.s32.totalorder %s2814_s18, 3 }
   0x4   : > { %p193_p2 = pnand %p2106_p0, %p192_p1 }
   0x5   : > { %v2721_v0 = vld [vmem:[%s3213_s1 + $0x20] sm:$0xff] (!%p193_p2)   ;;  %p226_p3 = scmp.lt.s32.totalorder (!%p193_p2), %s2102_s19, 1  ;;  %v2723_v2 = vld [vmem:[%s3213_s1 + $0x28] sm:$0xff] (!%p193_p2)   ;;  %v2725_v4 = vld [vmem:[%s3213_s1 + $0x30] sm:$0xff] (!%p193_p2)   ;;  %vm312_vm0 = vcmask (!%p193_p2), 523264   ;;  %vm1098_vm1 = vcmask (!%p193_p2), 1045504  }
   0x6   : > { %196 = sbr.rel (%p193_p2) target bundleno = 378 (0x17a), region = 32  ;;  %v2722_v1 = vld [vmem:[%s3213_s1 + $0x100] sm:$0xff] (!%p193_p2)   ;;  %2457 = vmatprep.subr.bf16.mxu1 (!%p193_p2), %v2721_v0  ;;  %v2724_v3 = vld [vmem:[%s3213_s1 + $0x108] sm:$0xff] (!%p193_p2)   ;;  %v2726_v5 = vld [vmem:[%s3213_s1 + $0x110] sm:$0xff] (!%p193_p2)   ;;  %vm272_vm2 = vsmask.f32 (!%p193_p2), 7424 }
   0x7   : > { %2553 = vmatprep.subr.bf16.mxu0 (!%p193_p2), %v2722_v1  ;;  %2458 = vmatpush3.bf16.msra.mxu1 (!%p193_p2), %v2721_v0  ;;  %v2727_v6 = vld [vmem:[%s3213_s1 + $0x38] sm:$0xff] (!%p193_p2)   ;;  %v2816_v12 = vmov (!%p193_p2), 0   ;;  %v2731_v13 = vld [vmem:[%s3213_s1] sm:$0xff] (!%p193_p2)   ;;  %v2735_v30 = vld [vmem:[%s3213_s1 + $0x8] sm:$0xff] (!%p193_p2)   ;;  %vm1196_vm3 = vsmask.f32 (!%p193_p2), 5376 }
   0x8   : > { %2554 = vmatpush3.bf16.msra.mxu0 (!%p193_p2), %v2722_v1  ;;  %2459 = vmatprep.subr.bf16.mxu1 (!%p193_p2), %v2723_v2  ;;  %v2728_v9 = vld [vmem:[%s3213_s1 + $0x118] sm:$0xff] (!%p193_p2)   ;;  %v2734_v22 = vld [vmem:[%s3213_s1 + $0x120] sm:$0xff] (!%p193_p2)   ;;  %v2736_v33 = vld [vmem:[%s3213_s1 + $0x128] sm:$0xff] (!%p193_p2)   ;;  %vm460_vm4 = vcmask (!%p193_p2), 1046528   ;;  %vm674_vm5 = vcmask (!%p193_p2), 1044480   ;;  %vm1971_vm8 = vcmask (!%p193_p2), 1041408  }
   0x9   : > { %2555 = vmatprep.subr.bf16.mxu0 (!%p193_p2), %v2724_v3  ;;  %2719 = vset.pattern.permute.xlu0 (!%p193_p2), %v2816_v12  ;;  %v2737_v35 = vld [vmem:[%s3213_s1 + $0x10] sm:$0xff] (!%p193_p2)   ;;  %v2739_v42 = vld [vmem:[%s3213_s1 + $0x18] sm:$0xff] (!%p193_p2)   ;;  %v2741_v48 = vld [vmem:[%s3213_s1 + $0x40] sm:$0xff] (!%p193_p2)   ;;  %vm558_vm6 = vsmask.f32 (!%p193_p2), 6400 }
   0xa   : > { %2720 = vset.pattern.permute.xlu1 (!%p193_p2), %v2816_v12  ;;  %v2738_v37 = vld [vmem:[%s3213_s1 + $0x130] sm:$0xff] (!%p193_p2)   ;;  %v2740_v43 = vld [vmem:[%s3213_s1 + $0x138] sm:$0xff] (!%p193_p2)   ;;  %v2743_v50 = vld [vmem:[%s3213_s1 + $0x140] sm:$0xff] (!%p193_p2)   ;;  %vm782_vm7 = vsmask.f32 (!%p193_p2), 4352 }
   0xb   : > { %2460 = vmatpush3.bf16.msra.mxu1 (!%p193_p2), %v2723_v2  ;;  %v2745_v56 = vld [vmem:[%s3213_s1 + $0x48] sm:$0xff] (!%p193_p2)   ;;  %v2747_v62 = vld [vmem:[%s3213_s1 + $0x50] sm:$0xff] (!%p193_p2)  }
   0xc   : > { %2556 = vmatpush3.bf16.msra.mxu0 (!%p193_p2), %v2724_v3  ;;  %2461 = vmatprep.subr.bf16.mxu1 (!%p193_p2), %v2725_v4  ;;  %v2746_v59 = vld [vmem:[%s3213_s1 + $0x148] sm:$0xff] (!%p193_p2)   ;;  %v2748_v3 = vld [vmem:[%s3213_s1 + $0x150] sm:$0xff] (!%p193_p2)  }
   0xd   : > { %s3219_s19 = smov (!%p226_p3, %s2102_s19), 1  ;;  %2557 = vmatprep.subr.bf16.mxu0 %v2726_v5 }
   0xe   : > { %s2708_s30 = smul.u32 20, %s3219_s19  ;;  %s241_s7 = scalar_lea.vmem %s3217_s5, %s3219_s19 }
   0xf   : > { %2462 = vmatpush3.bf16.msra.mxu1 %v2725_v4  ;;  %v2749_v4 = vld [vmem:[%s3213_s1 + $0x58] sm:$0xff]   ;;  %s2709_s24 = smul.u32 12, %s3219_s19 }
  0x10   : > { %s2879_s10 = scalar_lea.vmem %s3212_s0, %s2708_s30  ;;  %2558 = vmatpush3.bf16.msra.mxu0 %v2726_v5  ;;  %2463 = vmatprep.subr.bf16.mxu1 %v2727_v6  ;;  %v2750_v5 = vld [vmem:[%s3213_s1 + $0x158] sm:$0xff]   ;;  %s238_s30 = scalar_lea.vmem %s3216_s4, %s3219_s19 }
  0x11   : > { %v243_v7 = vld [vmem:[%s2879_s10] sm:$0xf]  ;;  %v2886_v8 = vld [vmem:[%s2879_s10 + $0x4] sm:$0xf]  ;;  %v2899_v14 = vld [vmem:[%s2879_s10 + $0x8] sm:$0xf]  ;;  %2559 = vmatprep.subr.bf16.mxu0 %v2728_v9  ;;  %s235_s27 = scalar_lea.vmem %s3215_s3, %s2709_s24 }
  0x12   : > { %v2117_v10 = vcombine.low %v243_v7, %v2886_v8  ;;  %v2893_v11 = vld [vmem:[%s2879_s10 + $0x8] ss:$0 sps:$4 sm:$0x33]   ;;  %v1081_v19 = vld [vmem:[%s2879_s10 + $0x4] sm:$0xc] }
  0x13   : > { %v281_v17 = vshll.u32 %v2893_v11, 16  ;;  %v285_v18 = vshrl.u32 %v2893_v11, 16  ;;  %v2233_v20 = vcombine.low %v1081_v19, %v2899_v14  ;;  %v2733_v21 = vld [vmem:[%s2879_s10 + $0xc] ss:$0 sps:$4 sm:$0x77]   ;;  %2464 = vmatpush3.bf16.msra.mxu1 %v2727_v6  ;;  %v462_v54 = vrot.slane %v2893_v11, 1 }
  0x14   : > { %v274_v15 = vshrl.u32 %v2117_v10, 16  ;;  %v276_v16 = vshll.u32 %v2117_v10, 16  ;;  %v1100_v26 = vrot.slane %v2733_v21, 2  ;;  %2560 = vmatpush3.bf16.msra.mxu0 %v2728_v9  ;;  %2469 = vmatprep.subr.bf16.mxu1 %v2731_v13  ;;  %v2928_v38 = vld [vmem:[%s2879_s10 + $0xc] ss:$0 sps:$4 sm:$0xff]   ;;  %v2754_v21 = vld [vmem:[%s3213_s1 + $0x160] sm:$0xff]  }
  0x15   : > { %v283_v24 = vrot.slane %v281_v17, 1  ;;  %v1099_v25 = vrot.slane %v2233_v20, 2  ;;  %v1198_v31 = vshrl.u32 %v2233_v20, 16  ;;  %2565 = vmatprep.subr.bf16.mxu0 %v2734_v22  ;;  %v1201_v34 = vshll.u32 %v2233_v20, 16  ;;  %v447_v52 = vld [vmem:[%s2879_s10] sm:$0xe] }
  0x16   : > { %v278_v23 = vrot.slane %v276_v16, 1  ;;  %v1206_v40 = vshrl.u32 %v2928_v38, 16  ;;  %v1209_v41 = vshll.u32 %v2928_v38, 16  ;;  %v2744_v51 = vld [vmem:[%s2879_s10 + $0x8] ss:$0 sps:$4 sm:$0x11]   ;;  %v2140_v53 = vcombine.low %v447_v52, %v2886_v8 }
  0x17   : > { %v287_v28 = vor.u32 %v285_v18, %v283_v24  ;;  %v1101_v29 = vsel %vm1098_vm1, %v1099_v25, %v1100_v26  ;;  %v1200_v36 = vrot.slane %v1198_v31, 2  ;;  %v1203_v39 = vrot.slane %v1201_v34, 3  ;;  %v1295_v55 = vld [vmem:[%s2879_s10 + $0x4] sm:$0x8]  ;;  %v2757_v11 = vld [vmem:[%s3213_s1 + $0x70] sm:$0xff]  }
  0x18   : > { %v279_v27 = vor.u32 %v278_v23, %v274_v15  ;;  %2561 = vmatprep.mubr.msk.bf16.mxu0 %vm312_vm0, %v1101_v29  ;;  %v1208_v45 = vrot.slane %v1206_v40, 2  ;;  %v1211_v46 = vrot.slane %v1209_v41, 3  ;;  %v2264_v57 = vcombine.low %v1295_v55, %v2899_v14  ;;  %v2761_v6 = vld [vmem:[%s2879_s10 + $0x8] ss:$0 sps:$4 sm:$0x77]   ;;  %v2752_v16 = vld [vmem:[%s3213_s1 + $0x60] sm:$0xff]  }
  0x19   : > { %2562 = vmatmul.mubr.msk.bf16.vlgmr.msra.gmra.mrb[0].mxu0 %vm312_vm0, %v1100_v26  ;;  %v1204_v44 = vor.u32 %v1203_v39, %v1200_v36  ;;  %v1309_v58 = vrot.slane %v2928_v38, 3  ;;  %v461_v60 = vrot.slane %v2140_v53, 1  ;;  %v560_v1 = vshrl.u32 %v2140_v53, 16  ;;  %v1395_v15 = vld [vmem:[%s2879_s10 + $0x10] sm:$0x1]  ;;  %v2759_v41 = vld [vmem:[%s3213_s1 + $0x78] sm:$0xff]  }
  0x1a   : > { %v284_v32 = vsel %vm272_vm2, %v279_v27, %v283_v24  ;;  %2566 = vmatpush3.bf16.msra.mxu0 %v2734_v22  ;;  %v1212_v47 = vor.u32 %v1211_v46, %v1208_v45  ;;  %v1308_v61 = vrot.slane %v2264_v57, 3  ;;  %v563_v2 = vshll.u32 %v2140_v53, 16  ;;  %v2763_v19 = vld [vmem:[%s2879_s10 + $0x4] sm:$0xf8]   ;;  %v2758_v39 = vld [vmem:[%s3213_s1 + $0x170] sm:$0xff]  }
  0x1b   : > { %2465 = vmatprep.mubr.msk.bf16.mxu1 %vm312_vm0, %v284_v32  ;;  %2567 = vmatprep.subr.bf16.mxu0 %v2736_v33  ;;  %v463_v63 = vsel %vm460_vm4, %v461_v60, %v462_v54  ;;  %v562_v7 = vrot.slane %v560_v1, 1  ;;  %v571_v12 = vshll.u32 %v2761_v6, 16  ;;  %v1416_v22 = vshrl.u32 %v2763_v19, 16  ;;  %v2755_v27 = vld [vmem:[%s3213_s1 + $0x68] sm:$0xff]   ;;  %v657_v38 = vld [vmem:[%s2879_s10] sm:$0x8] }
  0x1c   : > { %2466 = vmatmul.mubr.msk.bf16.vlgmr.msra.gmra.mrb[0].mxu1 %vm312_vm0, %v287_v28  ;;  %v1213_v49 = vsel %vm1196_vm3, %v1204_v44, %v1212_v47  ;;  %v1310_v0 = vsel %vm674_vm5, %v1308_v61, %v1309_v58  ;;  %v565_v9 = vrot.slane %v563_v2, 2  ;;  %v1419_v23 = vshll.u32 %v2763_v19, 16  ;;  %v2756_v32 = vld [vmem:[%s3213_s1 + $0x168] sm:$0xff]   ;;  %v3029_v44 = vld [vmem:[%s2879_s10 + $0x10] ss:$0 sps:$4 sm:$0x33]  }
  0x1d   : > { %2470 = vmatpush3.bf16.msra.mxu1 %v2731_v13  ;;  %2477 = vmatprep.mubr.msk.bf16.mxu1 %vm312_vm0, %v2117_v10  ;;  %v568_v10 = vshrl.u32 %v2761_v6, 16  ;;  %v2984_v13 = vld [vmem:[%s2879_s10 + $0xc] sm:$0xf]  ;;  %v573_v18 = vrot.slane %v571_v12, 2  ;;  %v1418_v29 = vrot.slane %v1416_v22, 3  ;;  %v2170_v45 = vcombine.low %v657_v38, %v2886_v8  ;;  %v2769_v60 = vld [vmem:[%s3213_s1 + $0x190] sm:$0xff]  }
  0x1e   : > { %2471 = vmatprep.subr.bf16.mxu1 %v2735_v30  ;;  %2568 = vmatpush3.bf16.msra.mxu0 %v2736_v33  ;;  %v2280_v20 = vcombine.low %v2984_v13, %v1395_v15  ;;  %v566_v25 = vor.u32 %v565_v9, %v562_v7  ;;  %v1513_v40 = vld [vmem:[%s2879_s10 + $0x8] sm:$0xe]  ;;  %v1531_v8 = vrot.slane %v3029_v44, 1  ;;  %v759_v52 = vld [vmem:[%s2879_s10] sm:$0x8]  ;;  %v2770_v6 = vld [vmem:[%s3213_s1 + $0x98] sm:$0xff]  }
  0x1f   : > { %2569 = vmatprep.subr.bf16.mxu0 %v2738_v37  ;;  %2573 = vmatprep.mubr.msk.bf16.mxu0 %vm312_vm0, %v1213_v49  ;;  %v570_v17 = vrot.slane %v568_v10, 1  ;;  %v2295_v46 = vcombine.low %v1513_v40, %v2984_v13  ;;  %v675_v49 = vrot.slane %v2170_v45, 3  ;;  %v3043_v53 = vld [vmem:[%s2879_s10 + $0x4] sm:$0xf]  ;;  %v2766_v55 = vld [vmem:[%s3213_s1 + $0x88] sm:$0xff]   ;;  %v2771_v7 = vld [vmem:[%s3213_s1 + $0x198] sm:$0xff]  }
  0x20   : > { %v1424_v24 = vshrl.u32 %v2280_v20, 16  ;;  %v1427_v26 = vshll.u32 %v2280_v20, 16  ;;  %v2186_v57 = vcombine.low %v759_v52, %v3043_v53  ;;  %v2774_v22 = vld [vmem:[%s3213_s1 + $0xa0] sm:$0xff]   ;;  %v2790_v44 = vld [vmem:[%s3213_s1 + $0x1c8] sm:$0xff]   ;;  %v2202_v45 = vcombine.low %v3043_v53, %v2899_v14 }
  0x21   : > { %2472 = vmatpush3.bf16.msra.mxu1 %v2735_v30  ;;  %v574_v28 = vor.u32 %v573_v18, %v570_v17  ;;  %v1421_v30 = vrot.slane %v1419_v23, 4  ;;  %v1631_v1 = vshll.u32 %v2295_v46, 16  ;;  %v2777_v23 = vld [vmem:[%s3213_s1 + $0x1a0] sm:$0xff]  }
  0x22   : > { %2473 = vmatprep.subr.bf16.mxu1 %v2737_v35  ;;  %2570 = vmatpush3.bf16.msra.mxu0 %v2738_v37  ;;  %v1426_v31 = vrot.slane %v1424_v24, 3  ;;  %v1429_v33 = vrot.slane %v1427_v26, 4  ;;  %v784_v2 = vshrl.u32 %v2186_v57, 16  ;;  %v2786_v40 = vld [vmem:[%s3213_s1 + $0xc0] sm:$0xff]  }
  0x23   : > { %2571 = vmatprep.subr.bf16.mxu0 %v2740_v43  ;;  %v1422_v34 = vor.u32 %v1421_v30, %v1418_v29  ;;  %v575_v36 = vsel %vm558_vm6, %v566_v25, %v574_v28  ;;  %v1633_v15 = vrot.slane %v1631_v1, 2  ;;  %v2779_v29 = vld [vmem:[%s3213_s1 + $0x1a8] sm:$0xff]   ;;  %v2798_v1 = vld [vmem:[%s3213_s1 + $0x1e0] sm:$0xff]  }
  0x25   : > { %2474 = vmatpush3.bf16.msra.mxu1 %v2737_v35  ;;  %v1430_v35 = vor.u32 %v1429_v33, %v1426_v31  ;;  %v1951_v33 = vld [vmem:[%s3214_s2 + $0x10] sm:$0x3] }
  0x26   : > { %2475 = vmatprep.subr.bf16.mxu1 %v2739_v42  ;;  %2572 = vmatpush3.bf16.msra.mxu0 %v2740_v43  ;;  %v2760_v43 = vld [vmem:[%s3213_s1 + $0x178] sm:$0xff]  }
  0x27   : > { %2577 = vmatprep.subr.bf16.mxu0 %v2743_v50  ;;  %v1431_v37 = vsel %vm782_vm7, %v1422_v34, %v1430_v35  ;;  %v2780_v34 = vld [vmem:[%s3213_s1 + $0xb0] sm:$0xff]   ;;  %1964 = vperm.xlu1 %2720, %v1951_v33  }
  0x29   : > { %2476 = vmatpush3.bf16.msra.mxu1 %v2739_v42  ;;  %2574 = vmatmul.mubr.msk.bf16.vlgmr.msra.gmra.mrb[0].mxu0 %vm312_vm0, %v1212_v47  ;;  %v3023_v42 = vld [vmem:[%s2879_s10 + $0x8] ss:$0 sps:$4 sm:$0xff]   ;;  %v2762_v47 = vld [vmem:[%s3213_s1 + $0x80] sm:$0xff]  }
  0x2a   : > { %2481 = vmatprep.subr.bf16.mxu1 %v2741_v48  ;;  %2578 = vmatpush3.bf16.msra.mxu0 %v2743_v50  ;;  %v676_v50 = vrot.slane %v3023_v42, 3 }
  0x2b   : > { %2579 = vmatprep.subr.bf16.mxu0 %v2746_v59  ;;  %2585 = vmatprep.mubr.msk.bf16.mxu0 %vm312_vm0, %v1310_v0  ;;  %v1628_v0 = vshrl.u32 %v2295_v46, 16 }
  0x2c   : > { %2478 = vmatmul.mubr.msk.bf16.vlgmr.msra.gmra.mrb[0].mxu1 %vm312_vm0, %v2744_v51  ;;  %v1530_v51 = vrot.slane %v2295_v46, 1  ;;  %v677_v61 = vsel %vm674_vm5, %v675_v49, %v676_v50  ;;  %v2792_v49 = vld [vmem:[%s3213_s1 + $0x1d0] sm:$0xff]  }
  0x2d   : > { %2482 = vmatpush3.bf16.msra.mxu1 %v2741_v48  ;;  %2489 = vmatprep.mubr.msk.bf16.mxu1 %vm312_vm0, %v463_v63  ;;  %v2765_v48 = vld [vmem:[%s3213_s1 + $0x180] sm:$0xff]   ;;  %v3072_v63 = vld [vmem:[%s2879_s10 + $0x10] ss:$0 sps:$4 sm:$0x77]   ;;  %v1630_v12 = vrot.slane %v1628_v0, 1 }
  0x2e   : > { %2483 = vmatprep.subr.bf16.mxu1 %v2745_v56  ;;  %2580 = vmatpush3.bf16.msra.mxu0 %v2746_v59  ;;  %v2768_v59 = vld [vmem:[%s3213_s1 + $0x90] sm:$0xff]   ;;  %v1636_v9 = vshrl.u32 %v3072_v63, 16  ;;  %v1639_v10 = vshll.u32 %v3072_v63, 16  ;;  %v2796_v0 = vld [vmem:[%s3213_s1 + $0xe0] sm:$0xff]  }
  0x2f   : > { %2581 = vmatprep.subr.bf16.mxu0 %v2748_v3  ;;  %v1634_v26 = vor.u32 %v1633_v15, %v1630_v12  ;;  %v2802_v12 = vld [vmem:[%s3213_s1 + $0xf0] sm:$0xff]  }
  0x30   : > { %v1638_v20 = vrot.slane %v1636_v9, 1  ;;  %v2801_v9 = vld [vmem:[%s3213_s1 + $0x1e8] sm:$0xff]   ;;  %v2803_v15 = vld [vmem:[%s3213_s1 + $0x1f0] sm:$0xff]  }
  0x31   : > { %2484 = vmatpush3.bf16.msra.mxu1 %v2745_v56  ;;  %v2767_v56 = vld [vmem:[%s3213_s1 + $0x188] sm:$0xff]  }
  0x32   : > { %2485 = vmatprep.subr.bf16.mxu1 %v2747_v62  ;;  %2582 = vmatpush3.bf16.msra.mxu0 %v2748_v3  ;;  %v787_v3 = vshll.u32 %v2186_v57, 16  ;;  %v986_v57 = vshrl.u32 %v2202_v45, 16 }
  0x33   : > { %2583 = vmatprep.subr.bf16.mxu0 %v2750_v5 }
  0x34   : > { %v789_v17 = vrot.slane %v787_v3, 4 }
  0x35   : > { %2486 = vmatpush3.bf16.msra.mxu1 %v2747_v62  ;;  %v1532_v62 = vsel %vm460_vm4, %v1530_v51, %v1531_v8  ;;  %v2806_v51 = vld [vmem:[%s2879_s10 + $0xc] ss:$0 sps:$4 sm:$0x33]  }
  0x36   : > { %2487 = vmatprep.subr.bf16.mxu1 %v2749_v4  ;;  %2584 = vmatpush3.bf16.msra.mxu0 %v2750_v5 }
  0x37   : > { %2589 = vmatprep.subr.bf16.mxu0 %v2754_v21 }
  0x39   : > { %2488 = vmatpush3.bf16.msra.mxu1 %v2749_v4  ;;  %2586 = vmatmul.mubr.msk.bf16.vlgmr.msra.gmra.mrb[0].mxu0 %vm312_vm0, %v1309_v58 }
  0x3a   : > { %2493 = vmatprep.subr.bf16.mxu1 %v2752_v16  ;;  %2590 = vmatpush3.bf16.msra.mxu0 %v2754_v21  ;;  %v1641_v21 = vrot.slane %v1639_v10, 2 }
  0x3b   : > { %2591 = vmatprep.subr.bf16.mxu0 %v2756_v32  ;;  %2597 = vmatprep.mubr.msk.bf16.mxu0 %vm312_vm0, %v1431_v37  ;;  %v1950_v37 = vld [vmem:[%s3214_s2 + $0x8] sm:$0xff] }
  0x3c   : > { %2490 = vmatmul.mubr.msk.bf16.vlgmr.msra.gmra.mrb[0].mxu1 %vm312_vm0, %v462_v54  ;;  %v3046_v54 = vld [vmem:[%s2879_s10 + $0xc] sm:$0x1] }
  0x3d   : > { %2494 = vmatpush3.bf16.msra.mxu1 %v2752_v16  ;;  %2501 = vmatprep.mubr.msk.bf16.mxu1 %vm312_vm0, %v575_v36  ;;  %v2187_v58 = vcombine.low %v2899_v14, %v3046_v54  ;;  %v786_v16 = vrot.slane %v784_v2, 3  ;;  %v1725_v36 = vld [vmem:[%s2879_s10 + $0x8] sm:$0xc]  ;;  %v988_v14 = vshll.u32 %v2202_v45, 16  ;;  %v2203_v2 = vcombine.low %v3046_v54, %v3046_v54 }
  0x3e   : > { %2495 = vmatprep.subr.bf16.mxu1 %v2755_v27  ;;  %2592 = vmatpush3.bf16.msra.mxu0 %v2756_v32  ;;  %v1949_v32 = vld [vmem:[%s3214_s2] sm:$0xff]  ;;  %v2326_v38 = vcombine.low %v1725_v36, %v2984_v13  ;;  %v2789_v13 = vld [vmem:[%s3213_s1 + $0xc8] sm:$0xff]  }
  0x3f   : > { %2593 = vmatprep.subr.bf16.mxu0 %v2758_v39  ;;  %v792_v4 = vshrl.u32 %v2187_v58, 16  ;;  %v795_v5 = vshll.u32 %v2187_v58, 16  ;;  %v790_v24 = vor.u32 %v789_v17, %v786_v16  ;;  %1954 = vperm.xlu0 %2719, %v1949_v32   ;;  %v990_v58 = vrot.slane %v988_v14, 1  ;;  %v2804_v16 = vld [vmem:[%s3213_s1 + $0xf8] sm:$0xff]  }
  0x40   : > { %v1738_v42 = vrot.slane %v2326_v38, 2  ;;  %v2805_v17 = vld [vmem:[%s3213_s1 + $0x1f8] sm:$0xff]  }
  0x41   : > { %2496 = vmatpush3.bf16.msra.mxu1 %v2755_v27  ;;  %v794_v18 = vrot.slane %v792_v4, 3  ;;  %v797_v19 = vrot.slane %v795_v5, 4  ;;  %v1642_v27 = vor.u32 %v1641_v21, %v1638_v20  ;;  %v991_v3 = vor.u32 %v990_v58, %v986_v57 }
  0x42   : > { %2497 = vmatprep.subr.bf16.mxu1 %v2757_v11  ;;  %2594 = vmatpush3.bf16.msra.mxu0 %v2758_v39  ;;  %v2783_v39 = vld [vmem:[%s3213_s1 + $0x1b8] sm:$0xff]  }
  0x43   : > { %2595 = vmatprep.subr.bf16.mxu0 %v2760_v43  ;;  %v798_v25 = vor.u32 %v797_v19, %v794_v18  ;;  %v1643_v31 = vsel %vm558_vm6, %v1634_v26, %v1642_v27  ;;  %1959 = vperm.xlu0 %2719, %v1950_v37   ;;  %v997_v18 = vshrl.u32 %v2806_v51, 16 }
  0x45   : > { %2498 = vmatpush3.bf16.msra.mxu1 %v2757_v11  ;;  %v799_v30 = vsel %vm782_vm7, %v790_v24, %v798_v25  ;;  %v2782_v11 = vld [vmem:[%s3213_s1 + $0xb8] sm:$0xff]  }
  0x46   : > { %2499 = vmatprep.subr.bf16.mxu1 %v2759_v41  ;;  %2596 = vmatpush3.bf16.msra.mxu0 %v2760_v43  ;;  %v1739_v43 = vrot.slane %v3072_v63, 2 }
  0x47   : > { %2601 = vmatprep.subr.bf16.mxu0 %v2765_v48 }
  0x48   : > { %v1740_v46 = vsel %vm1098_vm1, %v1738_v42, %v1739_v43 }
  0x49   : > { %2500 = vmatpush3.bf16.msra.mxu1 %v2759_v41  ;;  %2598 = vmatmul.mubr.msk.bf16.vlgmr.msra.gmra.mrb[0].mxu0 %vm312_vm0, %v1430_v35  ;;  %v2781_v35 = vld [vmem:[%s3213_s1 + $0x1b0] sm:$0xff]   ;;  %v2788_v41 = vld [vmem:[%s3213_s1 + $0x1c0] sm:$0xff]  }
  0x4a   : > { %2505 = vmatprep.subr.bf16.mxu1 %v2762_v47  ;;  %2602 = vmatpush3.bf16.msra.mxu0 %v2765_v48  ;;  %v2791_v48 = vld [vmem:[%s3213_s1 + $0xd0] sm:$0xff]  }
  0x4b   : > { %2603 = vmatprep.subr.bf16.mxu0 %v2767_v56  ;;  %2609 = vmatprep.mubr.msk.bf16.mxu0 %vm312_vm0, %v1532_v62 }
  0x4c   : > { %2502 = vmatmul.mubr.msk.bf16.vlgmr.msra.gmra.mrb[0].mxu1 %vm312_vm0, %v574_v28  ;;  %v2778_v28 = vld [vmem:[%s3213_s1 + $0xa8] sm:$0xff]  }
  0x4d   : > { %2506 = vmatpush3.bf16.msra.mxu1 %v2762_v47  ;;  %2513 = vmatprep.mubr.msk.bf16.mxu1 %vm312_vm0, %v677_v61  ;;  %v2807_v47 = vld [vmem:[%s2879_s10 + $0x10] ss:$0 sps:$4 sm:$0xff]  }
  0x4e   : > { %2507 = vmatprep.subr.bf16.mxu1 %v2766_v55  ;;  %2604 = vmatpush3.bf16.msra.mxu0 %v2767_v56  ;;  %v1844_v52 = vshrl.u32 %v2807_v47, 16  ;;  %v1847_v53 = vshll.u32 %v2807_v47, 16  ;;  %v2794_v56 = vld [vmem:[%s3213_s1 + $0x1d8] sm:$0xff]  }
  0x4f   : > { %2605 = vmatprep.subr.bf16.mxu0 %v2769_v60 }
  0x50   : > { %v1846_v62 = vrot.slane %v1844_v52, 2  ;;  %v1849_v63 = vrot.slane %v1847_v53, 3 }
  0x51   : > { %2508 = vmatpush3.bf16.msra.mxu1 %v2766_v55  ;;  %v2793_v55 = vld [vmem:[%s3213_s1 + $0xd8] sm:$0xff]  }
  0x52   : > { %2509 = vmatprep.subr.bf16.mxu1 %v2768_v59  ;;  %2606 = vmatpush3.bf16.msra.mxu0 %v2769_v60  ;;  %v993_v60 = vshll.u32 %v2806_v51, 16 }
  0x53   : > { %2607 = vmatprep.subr.bf16.mxu0 %v2771_v7 }
  0x54   : > { %v995_v4 = vrot.slane %v993_v60, 1 }
  0x55   : > { %2510 = vmatpush3.bf16.msra.mxu1 %v2768_v59 }
  0x56   : > { %2511 = vmatprep.subr.bf16.mxu1 %v2770_v6  ;;  %2608 = vmatpush3.bf16.msra.mxu0 %v2771_v7  ;;  %v2800_v7 = vld [vmem:[%s3213_s1 + $0xe8] sm:$0xff]   ;;  %v996_v54 = vsel %vm272_vm2, %v991_v3, %v995_v4  ;;  %v999_v19 = vor.u32 %v997_v18, %v995_v4 }
  0x57   : > { %2613 = vmatprep.subr.bf16.mxu0 %v2777_v23 }
  0x59   : > { %2512 = vmatpush3.bf16.msra.mxu1 %v2770_v6  ;;  %2610 = vmatmul.mubr.msk.bf16.vlgmr.msra.gmra.mrb[0].mxu0 %vm312_vm0, %v1531_v8  ;;  %v1839_v8 = vshll.u32 %v2326_v38, 16  ;;  %v1850_v6 = vor.u32 %v1849_v63, %v1846_v62 }
  0x5a   : > { %2517 = vmatprep.subr.bf16.mxu1 %v2774_v22  ;;  %2614 = vmatpush3.bf16.msra.mxu0 %v2777_v23 }
  0x5b   : > { %2615 = vmatprep.subr.bf16.mxu0 %v2779_v29  ;;  %2621 = vmatprep.mubr.msk.bf16.mxu0 %vm312_vm0, %v1643_v31  ;;  %v1841_v61 = vrot.slane %v1839_v8, 3 }
  0x5c   : > { %2514 = vmatmul.mubr.msk.bf16.vlgmr.msra.gmra.mrb[0].mxu1 %vm312_vm0, %v676_v50  ;;  %v1836_v50 = vshrl.u32 %v2326_v38, 16 }
  0x5d   : > { %2518 = vmatpush3.bf16.msra.mxu1 %v2774_v22  ;;  %2525 = vmatprep.mubr.msk.bf16.mxu1 %vm312_vm0, %v799_v30 }
  0x5e   : > { %2519 = vmatprep.subr.bf16.mxu1 %v2778_v28  ;;  %2616 = vmatpush3.bf16.msra.mxu0 %v2779_v29  ;;  %v1838_v59 = vrot.slane %v1836_v50, 2 }
  0x5f   : > { %2617 = vmatprep.subr.bf16.mxu0 %v2781_v35 }
  0x60   : > { %v1842_v5 = vor.u32 %v1841_v61, %v1838_v59 }
  0x61   : > { %2520 = vmatpush3.bf16.msra.mxu1 %v2778_v28 }
  0x62   : > { %2521 = vmatprep.subr.bf16.mxu1 %v2780_v34  ;;  %2618 = vmatpush3.bf16.msra.mxu0 %v2781_v35  ;;  %v1851_v10 = vsel %vm1196_vm3, %v1842_v5, %v1850_v6 }
  0x63   : > { %2619 = vmatprep.subr.bf16.mxu0 %v2783_v39 }
  0x65   : > { %2522 = vmatpush3.bf16.msra.mxu1 %v2780_v34 }
  0x66   : > { %2523 = vmatprep.subr.bf16.mxu1 %v2782_v11  ;;  %2620 = vmatpush3.bf16.msra.mxu0 %v2783_v39 }
  0x67   : > { %2625 = vmatprep.subr.bf16.mxu0 %v2788_v41 }
  0x69   : > { %2524 = vmatpush3.bf16.msra.mxu1 %v2782_v11  ;;  %2622 = vmatmul.mubr.msk.bf16.vlgmr.msra.gmra.mrb[0].mxu0 %vm312_vm0, %v1642_v27 }
  0x6a   : > { %2529 = vmatprep.subr.bf16.mxu1 %v2786_v40  ;;  %2626 = vmatpush3.bf16.msra.mxu0 %v2788_v41 }
  0x6b   : > { %2627 = vmatprep.subr.bf16.mxu0 %v2790_v44  ;;  %2633 = vmatprep.mubr.msk.bf16.mxu0 %vm312_vm0, %v1740_v46 }
  0x6c   : > { %2526 = vmatmul.mubr.msk.bf16.vlgmr.msra.gmra.mrb[0].mxu1 %vm312_vm0, %v798_v25 }
  0x6d   : > { %2530 = vmatpush3.bf16.msra.mxu1 %v2786_v40  ;;  %2537 = vmatprep.mubr.msk.bf16.mxu1 %vm312_vm0, %v2202_v45 }
  0x6e   : > { %2531 = vmatprep.subr.bf16.mxu1 %v2789_v13  ;;  %2628 = vmatpush3.bf16.msra.mxu0 %v2790_v44 }
  0x6f   : > { %2629 = vmatprep.subr.bf16.mxu0 %v2792_v49 }
  0x71   : > { %2532 = vmatpush3.bf16.msra.mxu1 %v2789_v13 }
  0x72   : > { %2533 = vmatprep.subr.bf16.mxu1 %v2791_v48  ;;  %2630 = vmatpush3.bf16.msra.mxu0 %v2792_v49 }
  0x73   : > { %2631 = vmatprep.subr.bf16.mxu0 %v2794_v56 }
  0x75   : > { %2534 = vmatpush3.bf16.msra.mxu1 %v2791_v48 }
  0x76   : > { %2535 = vmatprep.subr.bf16.mxu1 %v2793_v55  ;;  %2632 = vmatpush3.bf16.msra.mxu0 %v2794_v56 }
  0x77   : > { %2637 = vmatprep.subr.bf16.mxu0 %v2798_v1 }
  0x79   : > { %2536 = vmatpush3.bf16.msra.mxu1 %v2793_v55  ;;  %2634 = vmatmul.mubr.msk.bf16.vlgmr.msra.gmra.mrb[0].mxu0 %vm312_vm0, %v1739_v43 }
  0x7a   : > { %2541 = vmatprep.subr.bf16.mxu1 %v2796_v0  ;;  %2638 = vmatpush3.bf16.msra.mxu0 %v2798_v1 }
  0x7b   : > { %2639 = vmatprep.subr.bf16.mxu0 %v2801_v9  ;;  %2645 = vmatprep.mubr.msk.bf16.mxu0 %vm312_vm0, %v1851_v10 }
  0x7c   : > { %2538 = vmatmul.mubr.msk.bf16.vlgmr.msra.gmra.mrb[0].mxu1 %vm312_vm0, %v2203_v2 }
  0x7d   : > { %2542 = vmatpush3.bf16.msra.mxu1 %v2796_v0  ;;  %2549 = vmatprep.mubr.msk.bf16.mxu1 %vm312_vm0, %v996_v54 }
  0x7e   : > { %2543 = vmatprep.subr.bf16.mxu1 %v2800_v7  ;;  %2640 = vmatpush3.bf16.msra.mxu0 %v2801_v9 }
  0x7f   : > { %2641 = vmatprep.subr.bf16.mxu0 %v2803_v15 }
  0x81   : > { %2544 = vmatpush3.bf16.msra.mxu1 %v2800_v7 }
  0x82   : > { %2545 = vmatprep.subr.bf16.mxu1 %v2802_v12  ;;  %2642 = vmatpush3.bf16.msra.mxu0 %v2803_v15 }
  0x83   : > { %2643 = vmatprep.subr.bf16.mxu0 %v2805_v17 }
  0x85   : > { %2546 = vmatpush3.bf16.msra.mxu1 %v2802_v12 }
  0x86   : > { %2547 = vmatprep.subr.bf16.mxu1 %v2804_v16  ;;  %2644 = vmatpush3.bf16.msra.mxu0 %v2805_v17 }
  0x89   : > { %2548 = vmatpush3.bf16.msra.mxu1 %v2804_v16  ;;  %2646 = vmatmul.mubr.msk.bf16.vlgmr.msra.gmra.mrb[0].mxu0 %vm312_vm0, %v1850_v6 }
  0x8c   : > { %2550 = vmatmul.mubr.msk.bf16.vlgmr.msra.gmra.mrb[0].mxu1 %vm312_vm0, %v999_v19 }
  0xa6   : > { %v1965_v21 = vpop.permute.xlu1 %1964 }
  0xbe   : > { %v1955_v20 = vpop.permute.xlu0 %1954 }
  0xc2   : > { %v1960_v37 = vpop.permute.xlu0 %1959 }
 0x15c   : > { %v2647_v23 = vpop.f32.mrb[0].mxu0 }
 0x15d   : > { %v1916_v26 = vpop.f32.mrb[1].mxu0 }
 0x15e   : > { %v2648_v29 = vpop.f32.mrb[2].mxu0 }
 0x15f   : > { %v2551_v22 = vpop.f32.mrb[0].mxu1  ;;  %v1919_v33 = vpop.f32.mrb[3].mxu0 }
 0x160   : > { %v2649_v24 = vadd.f32 %v2647_v23, %v2551_v22  ;;  %v1064_v25 = vpop.f32.mrb[1].mxu1 }
 0x161   : > { %v2650_v27 = vadd.f32 %v1916_v26, %v1064_v25  ;;  %v2552_v28 = vpop.f32.mrb[2].mxu1 }
 0x162   : > { %v2355_v30 = vpack.c.bf16 %v2649_v24, %v2649_v24  ;;  %v1983_v31 = vmul.f32 %v2649_v24, %v2649_v24  ;;  %v1067_v32 = vpop.f32.mrb[3].mxu1  ;;  %v1969_v36 = vmul.f32 %v2649_v24, %v1965_v21 }
 0x163   : > { %v1981_v34 = vmul.f32 %v2650_v27, %v2650_v27  ;;  %v2651_v35 = vadd.f32 %v1919_v33, %v1067_v32  ;;  %v1967_v11 = vmul.f32 %v2650_v27, %v1955_v20 }
 0x164   : > { %1948 = vst [vmem:[%s235_s27 + $0x8] sm:$0x1] %v2355_v30  ;;  %v1986_v41 = vmul.f32 %v1983_v31, %v1965_v21  ;;  %v1972_v44 = vsel %vm1971_vm8, %v1969_v36, 0.0 }
 0x165   : > { %v2359_v39 = vpack.c.bf16 %v2651_v35, %v2650_v27  ;;  %v1968_v38 = vmul.f32 %v2651_v35, %v1960_v37  ;;  %v1982_v40 = vmul.f32 %v2651_v35, %v2651_v35  ;;  %v1984_v42 = vmul.f32 %v1981_v34, %v1955_v20 }
 0x166   : > { %v1988_v47 = vsel %vm1971_vm8, %v1986_v41, 0.0 }
 0x167   : > { %2360 = vst [vmem:[%s235_s27] sm:$0xff] %v2359_v39   ;;  %v1970_v43 = vadd.f32 %v1968_v38, %v1967_v11  ;;  %v1985_v13 = vmul.f32 %v1982_v40, %v1960_v37 }
 0x169   : > { %v1973_v45 = vadd.f32 %v1972_v44, %v1970_v43  ;;  %v1987_v46 = vadd.f32 %v1985_v13, %v1984_v42 }
 0x16b   : > { %v1974_v48 = vrot.slane %v1973_v45, 4  ;;  %v1989_v49 = vadd.f32 %v1988_v47, %v1987_v46 }
 0x16d   : > { %v1975_v14 = vadd.f32 %v1974_v48, %v1973_v45  ;;  %v1990_v50 = vrot.slane %v1989_v49, 4 }
 0x16f   : > { %v1976_v51 = vrot.slane %v1975_v14, 2  ;;  %v1991_v8 = vadd.f32 %v1990_v50, %v1989_v49 }
 0x171   : > { %v1977_v52 = vadd.f32 %v1976_v51, %v1975_v14  ;;  %v1992_v53 = vrot.slane %v1991_v8, 2 }
 0x173   : > { %v1978_v55 = vrot.slane %v1977_v52, 1  ;;  %v1993_v56 = vadd.f32 %v1992_v53, %v1991_v8 }
 0x175   : > { %v1979_v57 = vadd.f32 %v1978_v55, %v1977_v52  ;;  %v1994_v58 = vrot.slane %v1993_v56, 1 }
 0x177   : > { %1980 = vst [vmem:[%s238_s30] sm:$0x1] %v1979_v57  ;;  %v1995_v59 = vadd.f32 %v1994_v58, %v1993_v56 }
 0x179   : > { %1996 = vst [vmem:[%s241_s7] sm:$0x1] %v1995_v59 }
 0x17a PF: > { %s16_s18 = sadd.s32 1, %s2814_s18  }
 0x17b   : > { %p13_p4 = scmp.ge.s32.totalorder %s16_s18, 4  }
 0x17d   :  { %15 = sbr.rel (!%p13_p4) target bundleno = 1 (0x1), region = 101 }

// kernel: nlayer_discriminator_forward.9
= control target key start
LH: loop header
LB: loop body
LE: loop exit
PB: predicated region body
PF: predicated region fallthrough
CT: control target
= control target key end

     0   :  { %s3186_s12 = smov 0   ;;  %s3795_s0 = inlined_call_operand.vmem [shape: bf16[2,32,128], index: 0, kind: input, shape index: {}]   ;;  %s3796_s1 = inlined_call_operand.vmem [shape: bf16[16,128,128], index: 1, kind: input, shape index: {}]   ;;  %s3797_s2 = inlined_call_operand.vmem [shape: f32[1,128], index: 2, kind: input, shape index: {}]   ;;  %s3798_s3 = inlined_call_operand.vmem [shape: f32[2,10,128], index: 3, kind: output, shape index: {}]  }
   0x1 LB: > { %s2136_s13 = sadd.s32 4294967295, %s3162_s12   ;;  %p2140_p0 = scmp.ge.s32.totalorder %s3162_s12, 1  ;;  %s3162_s12 = sphi %s3186_s12, %s13_s12  }
   0x2   : > { %p137_p1 = scmp.lt.s32.totalorder %s3162_s12, 3 }
   0x4   : > { %p138_p2 = pnand %p2140_p0, %p137_p1 }
   0x5   : > { %v3010_v0 = vld [vmem:[%s3796_s1 + $0x40] sm:$0xff] (!%p138_p2)   ;;  %v3164_v1 = vmov (!%p138_p2), 0.0   ;;  %v3012_v3 = vld [vmem:[%s3796_s1 + $0x48] sm:$0xff] (!%p138_p2)   ;;  %vm3165_vm0 = vmmov (!%p138_p2), 0   ;;  %p161_p3 = scmp.lt.s32.totalorder (!%p138_p2), %s2136_s13, 1  ;;  %v3014_v5 = vld [vmem:[%s3796_s1 + $0x50] sm:$0xff] (!%p138_p2)  }
   0x6   : > { %141 = sbr.rel (%p138_p2) target bundleno = 483 (0x1e3), region = 32  ;;  %2680 = vmatprep.subr.bf16.mxu0 (!%p138_p2), %v3164_v1  ;;  %2700 = vmatprep.subr.bf16.mxu1 (!%p138_p2), %v3164_v1  ;;  %v3011_v2 = vld [vmem:[%s3796_s1] sm:$0xff] (!%p138_p2)   ;;  %v3013_v4 = vld [vmem:[%s3796_s1 + $0x8] sm:$0xff] (!%p138_p2)   ;;  %v3015_v6 = vld [vmem:[%s3796_s1 + $0x10] sm:$0xff] (!%p138_p2)   ;;  %vm904_vm1 = vsmask.f32 (!%p138_p2), 4352 }
   0x7   : > { %2681 = vmatpush3.bf16.msra.mxu0 (!%p138_p2), %v3010_v0  ;;  %2696 = vmatprep.mubr.msk.bf16.mxu0 (!%p138_p2), %vm3165_vm0, %v3164_v1  ;;  %v3016_v7 = vld [vmem:[%s3796_s1 + $0x58] sm:$0xff] (!%p138_p2)   ;;  %v3018_v9 = vld [vmem:[%s3796_s1 + $0x60] sm:$0xff] (!%p138_p2)   ;;  %v3020_v14 = vld [vmem:[%s3796_s1 + $0x68] sm:$0xff] (!%p138_p2)  }
   0x8   : > { %2701 = vmatpush3.bf16.msra.mxu1 (!%p138_p2), %v3011_v2  ;;  %2682 = vmatprep.subr.bf16.mxu0 (!%p138_p2), %v3164_v1  ;;  %v3017_v8 = vld [vmem:[%s3796_s1 + $0x18] sm:$0xff] (!%p138_p2)   ;;  %v3019_v10 = vld [vmem:[%s3796_s1 + $0x20] sm:$0xff] (!%p138_p2)   ;;  %v3021_v15 = vld [vmem:[%s3796_s1 + $0x28] sm:$0xff] (!%p138_p2)  }
   0x9   : > { %2702 = vmatprep.subr.bf16.mxu1 (!%p138_p2), %v3164_v1  ;;  %2716 = vmatprep.mubr.msk.bf16.mxu1 (!%p138_p2), %vm3165_vm0, %v3164_v1  ;;  %v3022_v17 = vld [vmem:[%s3796_s1 + $0x70] sm:$0xff] (!%p138_p2)   ;;  %v3024_v19 = vld [vmem:[%s3796_s1 + $0x78] sm:$0xff] (!%p138_p2)   ;;  %v3028_v26 = vld [vmem:[%s3796_s1 + $0x80] sm:$0xff] (!%p138_p2)  }
   0xa   : > { %v3023_v18 = vld [vmem:[%s3796_s1 + $0x30] sm:$0xff] (!%p138_p2)   ;;  %v3025_v22 = vld [vmem:[%s3796_s1 + $0x38] sm:$0xff] (!%p138_p2)   ;;  %v3029_v27 = vld [vmem:[%s3796_s1 + $0xc0] sm:$0xff] (!%p138_p2)  }
   0xb   : > { %2683 = vmatpush3.bf16.msra.mxu0 (!%p138_p2), %v3012_v3  ;;  %v3030_v28 = vld [vmem:[%s3796_s1 + $0x88] sm:$0xff] (!%p138_p2)   ;;  %v3032_v30 = vld [vmem:[%s3796_s1 + $0x90] sm:$0xff] (!%p138_p2)   ;;  %v3034_v32 = vld [vmem:[%s3796_s1 + $0x98] sm:$0xff] (!%p138_p2)  }
   0xc   : > { %2703 = vmatpush3.bf16.msra.mxu1 (!%p138_p2), %v3013_v4  ;;  %2684 = vmatprep.subr.bf16.mxu0 (!%p138_p2), %v3164_v1  ;;  %v3031_v29 = vld [vmem:[%s3796_s1 + $0xc8] sm:$0xff] (!%p138_p2)   ;;  %v3033_v31 = vld [vmem:[%s3796_s1 + $0xd0] sm:$0xff] (!%p138_p2)   ;;  %v3035_v33 = vld [vmem:[%s3796_s1 + $0xd8] sm:$0xff] (!%p138_p2)  }
   0xd   : > { %s3800_s13 = smov (!%p161_p3, %s2136_s13), 1  ;;  %2704 = vmatprep.subr.bf16.mxu1 %v3164_v1  ;;  %v3036_v34 = vld [vmem:[%s3796_s1 + $0xa0] sm:$0xff]   ;;  %v3038_v38 = vld [vmem:[%s3796_s1 + $0xa8] sm:$0xff]   ;;  %v3040_v41 = vld [vmem:[%s3796_s1 + $0xb0] sm:$0xff]  }
   0xe   : > { %s2534_s28 = sshll.u32 %s3800_s13, 4  ;;  %v3037_v35 = vld [vmem:[%s3796_s1 + $0xe0] sm:$0xff]   ;;  %v3039_v40 = vld [vmem:[%s3796_s1 + $0xe8] sm:$0xff]   ;;  %v3041_v44 = vld [vmem:[%s3796_s1 + $0xf0] sm:$0xff]  }
   0xf   : > { %2685 = vmatpush3.bf16.msra.mxu0 %v3014_v5  ;;  %s3238_s6 = scalar_lea.vmem %s3795_s0, %s2534_s28  ;;  %v3042_v45 = vld [vmem:[%s3796_s1 + $0xb8] sm:$0xff]   ;;  %v3046_v52 = vld [vmem:[%s3796_s1 + $0x100] sm:$0xff]   ;;  %v3048_v54 = vld [vmem:[%s3796_s1 + $0x108] sm:$0xff]   ;;  %s170_s22 = scalar_lea.vmem %s3798_s3, %s2534_s28 }
  0x10   : > { %2705 = vmatpush3.bf16.msra.mxu1 %v3015_v6  ;;  %2686 = vmatprep.subr.bf16.mxu0 %v3164_v1  ;;  %v172_v11 = vld [vmem:[%s3238_s6] sm:$0xf]  ;;  %v3250_v12 = vld [vmem:[%s3238_s6 + $0x4] sm:$0x3]  ;;  %v3043_v49 = vld [vmem:[%s3796_s1 + $0xf8] sm:$0xff]  }
  0x11   : > { %2706 = vmatprep.subr.bf16.mxu1 %v3164_v1  ;;  %v2161_v13 = vcombine.low %v172_v11, %v3250_v12  ;;  %v173_v23 = vld [vmem:[%s3238_s6 + $0x4] sm:$0x1]  ;;  %v403_v36 = vld [vmem:[%s3238_s6] sm:$0xe]  ;;  %v3049_v55 = vld [vmem:[%s3796_s1 + $0x148] sm:$0xff]  }
  0x12   : > { %v2170_v25 = vcombine.low %v172_v11, %v173_v23  ;;  %v517_v37 = vld [vmem:[%s3238_s6 + $0x4] sm:$0x7]  ;;  %v2195_v46 = vcombine.low %v403_v36, %v3250_v12  ;;  %v3050_v56 = vld [vmem:[%s3796_s1 + $0x110] sm:$0xff]   ;;  %v3052_v58 = vld [vmem:[%s3796_s1 + $0x118] sm:$0xff]  }
  0x13   : > { %2687 = vmatpush3.bf16.msra.mxu0 %v3016_v7  ;;  %v216_v16 = vshll.u32 %v2161_v13, 16  ;;  %v214_v20 = vshrl.u32 %v2161_v13, 16  ;;  %v2220_v39 = vcombine.low %v403_v36, %v517_v37  ;;  %v3047_v53 = vld [vmem:[%s3796_s1 + $0x140] sm:$0xff]   ;;  %v3051_v57 = vld [vmem:[%s3796_s1 + $0x150] sm:$0xff]   ;;  %v3053_v59 = vld [vmem:[%s3796_s1 + $0x158] sm:$0xff]  }
  0x14   : > { %2707 = vmatpush3.bf16.msra.mxu1 %v3017_v8  ;;  %2688 = vmatprep.subr.bf16.mxu0 %v3164_v1  ;;  %v424_v50 = vrot.slane %v2195_v46, 1  ;;  %v3054_v60 = vld [vmem:[%s3796_s1 + $0x120] sm:$0xff]   ;;  %v3056_v2 = vld [vmem:[%s3796_s1 + $0x128] sm:$0xff]   ;;  %v3058_v6 = vld [vmem:[%s3796_s1 + $0x130] sm:$0xff]  }
  0x15   : > { %2708 = vmatprep.subr.bf16.mxu1 %v3164_v1  ;;  %v218_v21 = vrot.slane %v216_v16, 1  ;;  %v539_v42 = vshrl.u32 %v2220_v39, 16  ;;  %v542_v43 = vshll.u32 %v2220_v39, 16  ;;  %v638_v61 = vld [vmem:[%s3238_s6] sm:$0xc]  ;;  %v3057_v3 = vld [vmem:[%s3796_s1 + $0x168] sm:$0xff]  }
  0x16   : > { %v639_v62 = vld [vmem:[%s3238_s6 + $0x4] sm:$0xf]  ;;  %v3059_v7 = vld [vmem:[%s3796_s1 + $0x170] sm:$0xff]   ;;  %v762_v8 = vld [vmem:[%s3238_s6] sm:$0x8] }
  0x17   : > { %2689 = vmatpush3.bf16.msra.mxu0 %v3018_v9  ;;  %v219_v24 = vor.u32 %v218_v21, %v214_v20  ;;  %v541_v47 = vrot.slane %v539_v42, 1  ;;  %v544_v48 = vrot.slane %v542_v43, 2  ;;  %v3055_v63 = vld [vmem:[%s3796_s1 + $0x160] sm:$0xff]   ;;  %v2245_v0 = vcombine.low %v638_v61, %v639_v62  ;;  %v3060_v11 = vld [vmem:[%s3796_s1 + $0x138] sm:$0xff]   ;;  %v3068_v20 = vld [vmem:[%s3796_s1 + $0x190] sm:$0xff]  }
  0x18   : > { %2709 = vmatpush3.bf16.msra.mxu1 %v3019_v10  ;;  %2690 = vmatprep.subr.bf16.mxu0 %v3164_v1  ;;  %v2270_v12 = vcombine.low %v762_v8, %v639_v62  ;;  %v3061_v13 = vld [vmem:[%s3796_s1 + $0x178] sm:$0xff]   ;;  %v3064_v16 = vld [vmem:[%s3796_s1 + $0x180] sm:$0xff]   ;;  %v3069_v21 = vld [vmem:[%s3796_s1 + $0x1d0] sm:$0xff]  }
  0x19   : > { %2710 = vmatprep.subr.bf16.mxu1 %v3164_v1  ;;  %v545_v51 = vor.u32 %v544_v48, %v541_v47  ;;  %v663_v4 = vshrl.u32 %v2245_v0, 16  ;;  %v666_v5 = vshll.u32 %v2245_v0, 16  ;;  %v3071_v23 = vld [vmem:[%s3796_s1 + $0x1d8] sm:$0xff]   ;;  %v3077_v39 = vld [vmem:[%s3796_s1 + $0x1f0] sm:$0xff]   ;;  %v3083_v46 = vld [vmem:[%s3796_s1 + $0x200] sm:$0xff]  }
  0x1a   : > { %v3079_v43 = vld [vmem:[%s3796_s1 + $0x1f8] sm:$0xff]   ;;  %v3084_v47 = vld [vmem:[%s3796_s1 + $0x240] sm:$0xff]   ;;  %v3085_v48 = vld [vmem:[%s3796_s1 + $0x208] sm:$0xff]  }
  0x1b   : > { %2691 = vmatpush3.bf16.msra.mxu0 %v3020_v14  ;;  %v665_v9 = vrot.slane %v663_v4, 2  ;;  %v668_v10 = vrot.slane %v666_v5, 3  ;;  %v3095_v61 = vld [vmem:[%s3796_s1 + $0x230] sm:$0xff]   ;;  %v1121_v62 = vld [vmem:[%s3238_s6 + $0x8] sm:$0x3]  ;;  %v3097_v4 = vld [vmem:[%s3796_s1 + $0x238] sm:$0xff]  }
  0x1c   : > { %2711 = vmatpush3.bf16.msra.mxu1 %v3021_v15  ;;  %2692 = vmatprep.subr.bf16.mxu0 %v3164_v1  ;;  %v783_v15 = vrot.slane %v2270_v12, 3  ;;  %v3103_v12 = vld [vmem:[%s3796_s1 + $0x288] sm:$0xff]  }
  0x1d   : > { %2712 = vmatprep.subr.bf16.mxu1 %v3164_v1  ;;  %v669_v14 = vor.u32 %v668_v10, %v665_v9  ;;  %v3101_v10 = vld [vmem:[%s3796_s1 + $0x280] sm:$0xff]  }
  0x1f   : > { %2693 = vmatpush3.bf16.msra.mxu0 %v3022_v17  ;;  %v3065_v17 = vld [vmem:[%s3796_s1 + $0x1c0] sm:$0xff]  }
  0x20   : > { %2713 = vmatpush3.bf16.msra.mxu1 %v3023_v18  ;;  %2694 = vmatprep.subr.bf16.mxu0 %v3164_v1  ;;  %v3066_v18 = vld [vmem:[%s3796_s1 + $0x188] sm:$0xff]  }
  0x21   : > { %2714 = vmatprep.subr.bf16.mxu1 %v3164_v1 }
  0x23   : > { %2695 = vmatpush3.bf16.msra.mxu0 %v3024_v19  ;;  %v3067_v19 = vld [vmem:[%s3796_s1 + $0x1c8] sm:$0xff]  }
  0x24   : > { %2715 = vmatpush3.bf16.msra.mxu1 %v3025_v22  ;;  %2720 = vmatprep.subr.bf16.mxu0 %v3164_v1  ;;  %v3070_v22 = vld [vmem:[%s3796_s1 + $0x198] sm:$0xff]  }
  0x25   : > { %2740 = vmatprep.subr.bf16.mxu1 %v3164_v1 }
  0x26   : > { %2697 = vmatmul.mubr.bf16.vlgmr.msra.gmra.mrb[0].mxu0 %v219_v24  ;;  %v876_v24 = vld [vmem:[%s3238_s6] sm:$0x8] }
  0x27   : > { %2717 = vmatmul.mubr.bf16.vlgmr.msra.gmra.mrb[0].mxu1 %v2170_v25  ;;  %2721 = vmatpush3.bf16.msra.mxu0 %v3028_v26  ;;  %v877_v25 = vld [vmem:[%s3238_s6 + $0x4] sm:$0xf] }
  0x28   : > { %2741 = vmatpush3.bf16.msra.mxu1 %v3029_v27  ;;  %2722 = vmatprep.subr.bf16.mxu0 %v3164_v1  ;;  %v3072_v26 = vld [vmem:[%s3796_s1 + $0x1a0] sm:$0xff]   ;;  %v878_v27 = vld [vmem:[%s3238_s6 + $0x8] sm:$0x1] }
  0x29   : > { %2742 = vmatprep.subr.bf16.mxu1 %v3164_v1  ;;  %2736 = vmatprep.mubr.msk.bf16.mxu0 %vm3165_vm0, %v3164_v1 }
  0x2a   : > { %2756 = vmatprep.mubr.msk.bf16.mxu1 %vm3165_vm0, %v3164_v1 }
  0x2b   : > { %2723 = vmatpush3.bf16.msra.mxu0 %v3030_v28  ;;  %v2295_v28 = vcombine.low %v876_v24, %v877_v25  ;;  %v3112_v24 = vld [vmem:[%s3796_s1 + $0x2e8] sm:$0xff]  }
  0x2c   : > { %2743 = vmatpush3.bf16.msra.mxu1 %v3031_v29  ;;  %2724 = vmatprep.subr.bf16.mxu0 %v3164_v1  ;;  %v3073_v29 = vld [vmem:[%s3796_s1 + $0x1e0] sm:$0xff]  }
  0x2d   : > { %2744 = vmatprep.subr.bf16.mxu1 %v3164_v1 }
  0x2f   : > { %2725 = vmatpush3.bf16.msra.mxu0 %v3032_v30  ;;  %v3074_v30 = vld [vmem:[%s3796_s1 + $0x1a8] sm:$0xff]  }
  0x30   : > { %2745 = vmatpush3.bf16.msra.mxu1 %v3033_v31  ;;  %2726 = vmatprep.subr.bf16.mxu0 %v3164_v1  ;;  %v2296_v31 = vcombine.low %v878_v27, %v878_v27 }
  0x31   : > { %2746 = vmatprep.subr.bf16.mxu1 %v3164_v1 }
  0x32   : > { %v914_v36 = vshll.u32 %v2296_v31, 16 }
  0x33   : > { %2727 = vmatpush3.bf16.msra.mxu0 %v3034_v32  ;;  %v906_v32 = vshrl.u32 %v2295_v28, 16 }
  0x34   : > { %2747 = vmatpush3.bf16.msra.mxu1 %v3035_v33  ;;  %2728 = vmatprep.subr.bf16.mxu0 %v3164_v1  ;;  %v909_v33 = vshll.u32 %v2295_v28, 16  ;;  %v916_v42 = vrot.slane %v914_v36, 4  ;;  %v3114_v28 = vld [vmem:[%s3796_s1 + $0x2f0] sm:$0xff]   ;;  %v3119_v36 = vld [vmem:[%s3796_s1 + $0x300] sm:$0xff]  }
  0x35   : > { %2748 = vmatprep.subr.bf16.mxu1 %v3164_v1  ;;  %v908_v37 = vrot.slane %v906_v32, 3 }
  0x37   : > { %2729 = vmatpush3.bf16.msra.mxu0 %v3036_v34  ;;  %v3075_v34 = vld [vmem:[%s3796_s1 + $0x1e8] sm:$0xff]  }
  0x38   : > { %2749 = vmatpush3.bf16.msra.mxu1 %v3037_v35  ;;  %2730 = vmatprep.subr.bf16.mxu0 %v3164_v1  ;;  %v3076_v35 = vld [vmem:[%s3796_s1 + $0x1b0] sm:$0xff]  }
  0x39   : > { %2750 = vmatprep.subr.bf16.mxu1 %v3164_v1 }
  0x3b   : > { %2731 = vmatpush3.bf16.msra.mxu0 %v3038_v38  ;;  %v911_v38 = vrot.slane %v909_v33, 4  ;;  %v3116_v33 = vld [vmem:[%s3796_s1 + $0x2f8] sm:$0xff]  }
  0x3c   : > { %2751 = vmatpush3.bf16.msra.mxu1 %v3039_v40  ;;  %2732 = vmatprep.subr.bf16.mxu0 %v3164_v1  ;;  %v3078_v40 = vld [vmem:[%s3796_s1 + $0x1b8] sm:$0xff]  }
  0x3d   : > { %2752 = vmatprep.subr.bf16.mxu1 %v3164_v1 }
  0x3f   : > { %2733 = vmatpush3.bf16.msra.mxu0 %v3040_v41  ;;  %v912_v41 = vor.u32 %v911_v38, %v908_v37  ;;  %v3120_v37 = vld [vmem:[%s3796_s1 + $0x340] sm:$0xff]   ;;  %v3121_v38 = vld [vmem:[%s3796_s1 + $0x308] sm:$0xff]  }
  0x40   : > { %2753 = vmatpush3.bf16.msra.mxu1 %v3041_v44  ;;  %2734 = vmatprep.subr.bf16.mxu0 %v3164_v1 }
  0x41   : > { %2754 = vmatprep.subr.bf16.mxu1 %v3164_v1  ;;  %v917_v44 = vsel %vm904_vm1, %v912_v41, %v916_v42  ;;  %v3124_v41 = vld [vmem:[%s3796_s1 + $0x350] sm:$0xff]   ;;  %v3125_v42 = vld [vmem:[%s3796_s1 + $0x318] sm:$0xff]  }
  0x43   : > { %2735 = vmatpush3.bf16.msra.mxu0 %v3042_v45  ;;  %v2321_v45 = vcombine.low %v877_v25, %v878_v27  ;;  %v3113_v25 = vld [vmem:[%s3796_s1 + $0x2b0] sm:$0xff]  }
  0x44   : > { %2755 = vmatpush3.bf16.msra.mxu1 %v3043_v49  ;;  %2760 = vmatprep.subr.bf16.mxu0 %v3164_v1  ;;  %v3086_v49 = vld [vmem:[%s3796_s1 + $0x248] sm:$0xff]  }
  0x45   : > { %2780 = vmatprep.subr.bf16.mxu1 %v3164_v1 }
  0x46   : > { %2737 = vmatmul.mubr.bf16.vlgmr.msra.gmra.mrb[4].mxu0 %v424_v50  ;;  %v3087_v50 = vld [vmem:[%s3796_s1 + $0x210] sm:$0xff]  }
  0x47   : > { %2757 = vmatmul.mubr.bf16.vlgmr.msra.gmra.mrb[4].mxu1 %v545_v51  ;;  %2761 = vmatpush3.bf16.msra.mxu0 %v3046_v52  ;;  %v3088_v51 = vld [vmem:[%s3796_s1 + $0x250] sm:$0xff]   ;;  %v3089_v52 = vld [vmem:[%s3796_s1 + $0x218] sm:$0xff]  }
  0x48   : > { %2781 = vmatpush3.bf16.msra.mxu1 %v3047_v53  ;;  %2762 = vmatprep.subr.bf16.mxu0 %v3164_v1  ;;  %v3090_v53 = vld [vmem:[%s3796_s1 + $0x258] sm:$0xff]  }
  0x49   : > { %2782 = vmatprep.subr.bf16.mxu1 %v3164_v1  ;;  %2776 = vmatprep.mubr.msk.bf16.mxu0 %vm3165_vm0, %v3164_v1 }
  0x4a   : > { %2796 = vmatprep.mubr.msk.bf16.mxu1 %vm3165_vm0, %v3164_v1 }
  0x4b   : > { %2763 = vmatpush3.bf16.msra.mxu0 %v3048_v54  ;;  %v3091_v54 = vld [vmem:[%s3796_s1 + $0x220] sm:$0xff]  }
  0x4c   : > { %2783 = vmatpush3.bf16.msra.mxu1 %v3049_v55  ;;  %2764 = vmatprep.subr.bf16.mxu0 %v3164_v1  ;;  %v3092_v55 = vld [vmem:[%s3796_s1 + $0x260] sm:$0xff]  }
  0x4d   : > { %2784 = vmatprep.subr.bf16.mxu1 %v3164_v1 }
  0x4f   : > { %2765 = vmatpush3.bf16.msra.mxu0 %v3050_v56  ;;  %v1120_v56 = vld [vmem:[%s3238_s6 + $0x4] sm:$0xe] }
  0x50   : > { %2785 = vmatpush3.bf16.msra.mxu1 %v3051_v57  ;;  %2766 = vmatprep.subr.bf16.mxu0 %v3164_v1  ;;  %v3537_v57 = vld [vmem:[%s3238_s6 + $0x8] sm:$0x7] }
  0x51   : > { %2786 = vmatprep.subr.bf16.mxu1 %v3164_v1 }
  0x53   : > { %2767 = vmatpush3.bf16.msra.mxu0 %v3052_v58  ;;  %v3093_v58 = vld [vmem:[%s3796_s1 + $0x228] sm:$0xff]  }
  0x54   : > { %2787 = vmatpush3.bf16.msra.mxu1 %v3053_v59  ;;  %2768 = vmatprep.subr.bf16.mxu0 %v3164_v1  ;;  %v2371_v59 = vcombine.low %v1120_v56, %v3537_v57 }
  0x55   : > { %2788 = vmatprep.subr.bf16.mxu1 %v3164_v1 }
  0x56   : > { %v1262_v0 = vshll.u32 %v2371_v59, 16 }
  0x57   : > { %2769 = vmatpush3.bf16.msra.mxu0 %v3054_v60  ;;  %v3094_v60 = vld [vmem:[%s3796_s1 + $0x268] sm:$0xff]  }
  0x58   : > { %2789 = vmatpush3.bf16.msra.mxu1 %v3055_v63  ;;  %2770 = vmatprep.subr.bf16.mxu0 %v3164_v1  ;;  %v1259_v63 = vshrl.u32 %v2371_v59, 16  ;;  %v3132_v59 = vld [vmem:[%s3796_s1 + $0x370] sm:$0xff]  }
  0x59   : > { %2790 = vmatprep.subr.bf16.mxu1 %v3164_v1 }
  0x5a   : > { %v1261_v5 = vrot.slane %v1259_v63, 1  ;;  %v3134_v63 = vld [vmem:[%s3796_s1 + $0x378] sm:$0xff]  }
  0x5b   : > { %2771 = vmatpush3.bf16.msra.mxu0 %v3056_v2  ;;  %v3096_v2 = vld [vmem:[%s3796_s1 + $0x270] sm:$0xff]  }
  0x5c   : > { %2791 = vmatpush3.bf16.msra.mxu1 %v3057_v3  ;;  %2772 = vmatprep.subr.bf16.mxu0 %v3164_v1  ;;  %v2346_v3 = vcombine.low %v1120_v56, %v1121_v62 }
  0x5d   : > { %2792 = vmatprep.subr.bf16.mxu1 %v3164_v1 }
  0x5e   : > { %v1144_v8 = vrot.slane %v2346_v3, 1  ;;  %v3138_v3 = vld [vmem:[%s3796_s1 + $0x380] sm:$0xff]  }
  0x5f   : > { %2773 = vmatpush3.bf16.msra.mxu0 %v3058_v6  ;;  %v1264_v6 = vrot.slane %v1262_v0, 2 }
  0x60   : > { %2793 = vmatpush3.bf16.msra.mxu1 %v3059_v7  ;;  %2774 = vmatprep.subr.bf16.mxu0 %v3164_v1  ;;  %v3098_v7 = vld [vmem:[%s3796_s1 + $0x278] sm:$0xff]  }
  0x61   : > { %2794 = vmatprep.subr.bf16.mxu1 %v3164_v1  ;;  %v1265_v9 = vor.u32 %v1264_v6, %v1261_v5  ;;  %v3140_v5 = vld [vmem:[%s3796_s1 + $0x388] sm:$0xff]  }
  0x62   : > { %v3141_v6 = vld [vmem:[%s3796_s1 + $0x3c8] sm:$0xff]  }
  0x63   : > { %2775 = vmatpush3.bf16.msra.mxu0 %v3060_v11  ;;  %v3102_v11 = vld [vmem:[%s3796_s1 + $0x2c0] sm:$0xff]  }
  0x64   : > { %2795 = vmatpush3.bf16.msra.mxu1 %v3061_v13  ;;  %2800 = vmatprep.subr.bf16.mxu0 %v3164_v1  ;;  %v3104_v13 = vld [vmem:[%s3796_s1 + $0x2c8] sm:$0xff]  }
  0x65   : > { %2820 = vmatprep.subr.bf16.mxu1 %v3164_v1 }
  0x66   : > { %2777 = vmatmul.mubr.bf16.vlgmr.msra.gmra.mrb[8].mxu0 %v669_v14  ;;  %v3105_v14 = vld [vmem:[%s3796_s1 + $0x290] sm:$0xff]  }
  0x67   : > { %2797 = vmatmul.mubr.bf16.vlgmr.msra.gmra.mrb[8].mxu1 %v783_v15  ;;  %2801 = vmatpush3.bf16.msra.mxu0 %v3064_v16  ;;  %v3106_v15 = vld [vmem:[%s3796_s1 + $0x2d0] sm:$0xff]   ;;  %v3107_v16 = vld [vmem:[%s3796_s1 + $0x298] sm:$0xff]  }
  0x68   : > { %2821 = vmatpush3.bf16.msra.mxu1 %v3065_v17  ;;  %2802 = vmatprep.subr.bf16.mxu0 %v3164_v1  ;;  %v3108_v17 = vld [vmem:[%s3796_s1 + $0x2d8] sm:$0xff]  }
  0x69   : > { %2822 = vmatprep.subr.bf16.mxu1 %v3164_v1  ;;  %2816 = vmatprep.mubr.msk.bf16.mxu0 %vm3165_vm0, %v3164_v1 }
  0x6a   : > { %2836 = vmatprep.mubr.msk.bf16.mxu1 %vm3165_vm0, %v3164_v1 }
  0x6b   : > { %2803 = vmatpush3.bf16.msra.mxu0 %v3066_v18  ;;  %v3109_v18 = vld [vmem:[%s3796_s1 + $0x2a0] sm:$0xff]  }
  0x6c   : > { %2823 = vmatpush3.bf16.msra.mxu1 %v3067_v19  ;;  %2804 = vmatprep.subr.bf16.mxu0 %v3164_v1  ;;  %v3110_v19 = vld [vmem:[%s3796_s1 + $0x2e0] sm:$0xff]  }
  0x6d   : > { %2824 = vmatprep.subr.bf16.mxu1 %v3164_v1 }
  0x6f   : > { %2805 = vmatpush3.bf16.msra.mxu0 %v3068_v20  ;;  %v1358_v20 = vld [vmem:[%s3238_s6 + $0x4] sm:$0xc] }
  0x70   : > { %2825 = vmatpush3.bf16.msra.mxu1 %v3069_v21  ;;  %2806 = vmatprep.subr.bf16.mxu0 %v3164_v1  ;;  %v1472_v21 = vld [vmem:[%s3238_s6 + $0x8] sm:$0xf] }
  0x71   : > { %2826 = vmatprep.subr.bf16.mxu1 %v3164_v1 }
  0x73   : > { %2807 = vmatpush3.bf16.msra.mxu0 %v3070_v22  ;;  %v3111_v22 = vld [vmem:[%s3796_s1 + $0x2a8] sm:$0xff]  }
  0x74   : > { %2827 = vmatpush3.bf16.msra.mxu1 %v3071_v23  ;;  %2808 = vmatprep.subr.bf16.mxu0 %v3164_v1  ;;  %v2421_v23 = vcombine.low %v1358_v20, %v1472_v21 }
  0x75   : > { %2828 = vmatprep.subr.bf16.mxu1 %v3164_v1 }
  0x76   : > { %v1497_v27 = vshll.u32 %v2421_v23, 16 }
  0x77   : > { %2809 = vmatpush3.bf16.msra.mxu0 %v3072_v26  ;;  %v1494_v26 = vshrl.u32 %v2421_v23, 16 }
  0x78   : > { %2829 = vmatpush3.bf16.msra.mxu1 %v3073_v29  ;;  %2810 = vmatprep.subr.bf16.mxu0 %v3164_v1  ;;  %v2396_v29 = vcombine.low %v1358_v20, %v3537_v57  ;;  %v1499_v32 = vrot.slane %v1497_v27, 3  ;;  %v3151_v27 = vld [vmem:[%s3796_s1 + $0x3f0] sm:$0xff]  }
  0x79   : > { %2830 = vmatprep.subr.bf16.mxu1 %v3164_v1  ;;  %v1496_v31 = vrot.slane %v1494_v26, 2 }
  0x7b   : > { %2811 = vmatpush3.bf16.msra.mxu0 %v3074_v30  ;;  %v3115_v30 = vld [vmem:[%s3796_s1 + $0x2b8] sm:$0xff]  }
  0x7c   : > { %2831 = vmatpush3.bf16.msra.mxu1 %v3075_v34  ;;  %2812 = vmatprep.subr.bf16.mxu0 %v3164_v1  ;;  %v1379_v34 = vrot.slane %v2396_v29, 2 }
  0x7d   : > { %2832 = vmatprep.subr.bf16.mxu1 %v3164_v1 }
  0x7f   : > { %2813 = vmatpush3.bf16.msra.mxu0 %v3076_v35  ;;  %v1500_v35 = vor.u32 %v1499_v32, %v1496_v31 }
  0x80   : > { %2833 = vmatpush3.bf16.msra.mxu1 %v3077_v39  ;;  %2814 = vmatprep.subr.bf16.mxu0 %v3164_v1  ;;  %v3122_v39 = vld [vmem:[%s3796_s1 + $0x348] sm:$0xff]  }
  0x81   : > { %2834 = vmatprep.subr.bf16.mxu1 %v3164_v1 }
  0x83   : > { %2815 = vmatpush3.bf16.msra.mxu0 %v3078_v40  ;;  %v3123_v40 = vld [vmem:[%s3796_s1 + $0x310] sm:$0xff]  }
  0x84   : > { %2835 = vmatpush3.bf16.msra.mxu1 %v3079_v43  ;;  %2840 = vmatprep.subr.bf16.mxu0 %v3164_v1  ;;  %v3126_v43 = vld [vmem:[%s3796_s1 + $0x358] sm:$0xff]  }
  0x85   : > { %2860 = vmatprep.subr.bf16.mxu1 %v3164_v1 }
  0x86   : > { %2817 = vmatmul.mubr.bf16.vlgmr.msra.gmra.mrb[12].mxu0 %v917_v44  ;;  %v1593_v44 = vld [vmem:[%s3238_s6 + $0x4] sm:$0x8] }
  0x87   : > { %2837 = vmatmul.mubr.bf16.vlgmr.msra.gmra.mrb[12].mxu1 %v2321_v45  ;;  %2841 = vmatpush3.bf16.msra.mxu0 %v3083_v46  ;;  %v3674_v45 = vld [vmem:[%s3238_s6 + $0x8] sm:$0xf]  ;;  %v3127_v46 = vld [vmem:[%s3796_s1 + $0x320] sm:$0xff]  }
  0x88   : > { %2861 = vmatpush3.bf16.msra.mxu1 %v3084_v47  ;;  %2842 = vmatprep.subr.bf16.mxu0 %v3164_v1  ;;  %v2446_v47 = vcombine.low %v1593_v44, %v3674_v45 }
  0x89   : > { %2862 = vmatprep.subr.bf16.mxu1 %v3164_v1  ;;  %2856 = vmatprep.mubr.msk.bf16.mxu0 %vm3165_vm0, %v3164_v1 }
  0x8a   : > { %2876 = vmatprep.mubr.msk.bf16.mxu1 %vm3165_vm0, %v3164_v1 }
  0x8b   : > { %2843 = vmatpush3.bf16.msra.mxu0 %v3085_v48  ;;  %v3128_v48 = vld [vmem:[%s3796_s1 + $0x360] sm:$0xff]  }
  0x8c   : > { %2863 = vmatpush3.bf16.msra.mxu1 %v3086_v49  ;;  %2844 = vmatprep.subr.bf16.mxu0 %v3164_v1  ;;  %v1595_v49 = vld [vmem:[%s3238_s6 + $0xc] sm:$0x1] }
  0x8d   : > { %2864 = vmatprep.subr.bf16.mxu1 %v3164_v1 }
  0x8f   : > { %2845 = vmatpush3.bf16.msra.mxu0 %v3087_v50  ;;  %v3129_v50 = vld [vmem:[%s3796_s1 + $0x328] sm:$0xff]  }
  0x90   : > { %2865 = vmatpush3.bf16.msra.mxu1 %v3088_v51  ;;  %2846 = vmatprep.subr.bf16.mxu0 %v3164_v1  ;;  %v2447_v51 = vcombine.low %v1595_v49, %v1595_v49 }
  0x91   : > { %2866 = vmatprep.subr.bf16.mxu1 %v3164_v1 }
  0x93   : > { %2847 = vmatpush3.bf16.msra.mxu0 %v3089_v52  ;;  %v1622_v52 = vshrl.u32 %v2446_v47, 16 }
  0x94   : > { %2867 = vmatpush3.bf16.msra.mxu1 %v3090_v53  ;;  %2848 = vmatprep.subr.bf16.mxu0 %v3164_v1  ;;  %v1625_v53 = vshll.u32 %v2446_v47, 16 }
  0x95   : > { %2868 = vmatprep.subr.bf16.mxu1 %v3164_v1  ;;  %v1624_v56 = vrot.slane %v1622_v52, 3 }
  0x96   : > { %v1627_v57 = vrot.slane %v1625_v53, 4 }
  0x97   : > { %2849 = vmatpush3.bf16.msra.mxu0 %v3091_v54  ;;  %v3130_v54 = vld [vmem:[%s3796_s1 + $0x368] sm:$0xff]  }
  0x98   : > { %2869 = vmatpush3.bf16.msra.mxu1 %v3092_v55  ;;  %2850 = vmatprep.subr.bf16.mxu0 %v3164_v1  ;;  %v3131_v55 = vld [vmem:[%s3796_s1 + $0x330] sm:$0xff]  }
  0x99   : > { %2870 = vmatprep.subr.bf16.mxu1 %v3164_v1 }
  0x9b   : > { %2851 = vmatpush3.bf16.msra.mxu0 %v3093_v58  ;;  %v1630_v58 = vshll.u32 %v2447_v51, 16 }
  0x9c   : > { %2871 = vmatpush3.bf16.msra.mxu1 %v3094_v60  ;;  %2852 = vmatprep.subr.bf16.mxu0 %v3164_v1  ;;  %v3133_v60 = vld [vmem:[%s3796_s1 + $0x338] sm:$0xff]  }
  0x9d   : > { %2872 = vmatprep.subr.bf16.mxu1 %v3164_v1  ;;  %v1632_v62 = vrot.slane %v1630_v58, 4 }
  0x9f   : > { %2853 = vmatpush3.bf16.msra.mxu0 %v3095_v61  ;;  %v1628_v61 = vor.u32 %v1627_v57, %v1624_v56 }
  0xa0   : > { %2873 = vmatpush3.bf16.msra.mxu1 %v3096_v2  ;;  %2854 = vmatprep.subr.bf16.mxu0 %v3164_v1  ;;  %v2472_v2 = vcombine.low %v3674_v45, %v1595_v49 }
  0xa1   : > { %2874 = vmatprep.subr.bf16.mxu1 %v3164_v1  ;;  %v1633_v0 = vsel %vm904_vm1, %v1628_v61, %v1632_v62 }
  0xa3   : > { %2855 = vmatpush3.bf16.msra.mxu0 %v3097_v4  ;;  %v3139_v4 = vld [vmem:[%s3796_s1 + $0x3c0] sm:$0xff]  }
  0xa4   : > { %2875 = vmatpush3.bf16.msra.mxu1 %v3098_v7  ;;  %2880 = vmatprep.subr.bf16.mxu0 %v3164_v1  ;;  %v3142_v7 = vld [vmem:[%s3796_s1 + $0x390] sm:$0xff]  }
  0xa5   : > { %2900 = vmatprep.subr.bf16.mxu1 %v3164_v1 }
  0xa6   : > { %2857 = vmatmul.mubr.bf16.vlgmr.msra.gmra.mrb[16].mxu0 %v1144_v8  ;;  %v3143_v8 = vld [vmem:[%s3796_s1 + $0x3d0] sm:$0xff]  }
  0xa7   : > { %2877 = vmatmul.mubr.bf16.vlgmr.msra.gmra.mrb[16].mxu1 %v1265_v9  ;;  %2881 = vmatpush3.bf16.msra.mxu0 %v3101_v10  ;;  %v3144_v9 = vld [vmem:[%s3796_s1 + $0x398] sm:$0xff]  }
  0xa8   : > { %2901 = vmatpush3.bf16.msra.mxu1 %v3102_v11  ;;  %2882 = vmatprep.subr.bf16.mxu0 %v3164_v1  ;;  %v3145_v10 = vld [vmem:[%s3796_s1 + $0x3d8] sm:$0xff]   ;;  %v3146_v11 = vld [vmem:[%s3796_s1 + $0x3a0] sm:$0xff]  }
  0xa9   : > { %2902 = vmatprep.subr.bf16.mxu1 %v3164_v1  ;;  %2896 = vmatprep.mubr.msk.bf16.mxu0 %vm3165_vm0, %v3164_v1 }
  0xaa   : > { %2916 = vmatprep.mubr.msk.bf16.mxu1 %vm3165_vm0, %v3164_v1 }
  0xab   : > { %2883 = vmatpush3.bf16.msra.mxu0 %v3103_v12  ;;  %v1836_v12 = vld [vmem:[%s3238_s6 + $0xc] sm:$0x3] }
  0xac   : > { %2903 = vmatpush3.bf16.msra.mxu1 %v3104_v13  ;;  %2884 = vmatprep.subr.bf16.mxu0 %v3164_v1  ;;  %v3147_v13 = vld [vmem:[%s3796_s1 + $0x3e0] sm:$0xff]  }
  0xad   : > { %2904 = vmatprep.subr.bf16.mxu1 %v3164_v1 }
  0xaf   : > { %2885 = vmatpush3.bf16.msra.mxu0 %v3105_v14  ;;  %v2497_v14 = vcombine.low %v3674_v45, %v1836_v12 }
  0xb0   : > { %2905 = vmatpush3.bf16.msra.mxu1 %v3106_v15  ;;  %2886 = vmatprep.subr.bf16.mxu0 %v3164_v1  ;;  %v3148_v15 = vld [vmem:[%s3796_s1 + $0x3a8] sm:$0xff]  }
  0xb1   : > { %2906 = vmatprep.subr.bf16.mxu1 %v3164_v1  ;;  %v1860_v20 = vshll.u32 %v2497_v14, 16  ;;  %v1858_v31 = vshrl.u32 %v2497_v14, 16 }
  0xb3   : > { %2887 = vmatpush3.bf16.msra.mxu0 %v3107_v16  ;;  %v3149_v16 = vld [vmem:[%s3796_s1 + $0x3e8] sm:$0xff]   ;;  %v1862_v32 = vrot.slane %v1860_v20, 1 }
  0xb4   : > { %2907 = vmatpush3.bf16.msra.mxu1 %v3108_v17  ;;  %2888 = vmatprep.subr.bf16.mxu0 %v3164_v1 }
  0xb5   : > { %2908 = vmatprep.subr.bf16.mxu1 %v3164_v1 }
  0xb7   : > { %2889 = vmatpush3.bf16.msra.mxu0 %v3109_v18 }
  0xb8   : > { %2909 = vmatpush3.bf16.msra.mxu1 %v3110_v19  ;;  %2890 = vmatprep.subr.bf16.mxu0 %v3164_v1 }
  0xb9   : > { %2910 = vmatprep.subr.bf16.mxu1 %v3164_v1 }
  0xbb   : > { %2891 = vmatpush3.bf16.msra.mxu0 %v3111_v22 }
  0xbc   : > { %2911 = vmatpush3.bf16.msra.mxu1 %v3112_v24  ;;  %2892 = vmatprep.subr.bf16.mxu0 %v3164_v1  ;;  %v3150_v24 = vld [vmem:[%s3796_s1 + $0x3b0] sm:$0xff]  }
  0xbd   : > { %2912 = vmatprep.subr.bf16.mxu1 %v3164_v1 }
  0xbf   : > { %2893 = vmatpush3.bf16.msra.mxu0 %v3113_v25 }
  0xc0   : > { %2913 = vmatpush3.bf16.msra.mxu1 %v3114_v28  ;;  %2894 = vmatprep.subr.bf16.mxu0 %v3164_v1  ;;  %v1956_v28 = vld [vmem:[%s3238_s6 + $0x8] sm:$0xe] }
  0xc1   : > { %2914 = vmatprep.subr.bf16.mxu1 %v3164_v1 }
  0xc3   : > { %2895 = vmatpush3.bf16.msra.mxu0 %v3115_v30 }
  0xc4   : > { %2915 = vmatpush3.bf16.msra.mxu1 %v3116_v33  ;;  %2920 = vmatprep.subr.bf16.mxu0 %v3164_v1  ;;  %v3152_v33 = vld [vmem:[%s3796_s1 + $0x3b8] sm:$0xff]  }
  0xc5   : > { %2940 = vmatprep.subr.bf16.mxu1 %v3164_v1 }
  0xc6   : > { %2897 = vmatmul.mubr.bf16.vlgmr.msra.gmra.mrb[20].mxu0 %v1379_v34  ;;  %v2522_v34 = vcombine.low %v1956_v28, %v1836_v12 }
  0xc7   : > { %2917 = vmatmul.mubr.bf16.vlgmr.msra.gmra.mrb[20].mxu1 %v1500_v35  ;;  %2921 = vmatpush3.bf16.msra.mxu0 %v3119_v36  ;;  %v3153_v35 = vld [vmem:[%s3796_s1 + $0x3f8] sm:$0xff]   ;;  %v1863_v36 = vor.u32 %v1862_v32, %v1858_v31 }
  0xc8   : > { %2941 = vmatpush3.bf16.msra.mxu1 %v3120_v37  ;;  %2922 = vmatprep.subr.bf16.mxu0 %v3164_v1  ;;  %v1977_v37 = vrot.slane %v2522_v34, 1 }
  0xc9   : > { %2942 = vmatprep.subr.bf16.mxu1 %v3164_v1  ;;  %2936 = vmatprep.mubr.msk.bf16.mxu0 %vm3165_vm0, %v3164_v1 }
  0xca   : > { %2956 = vmatprep.mubr.msk.bf16.mxu1 %vm3165_vm0, %v3164_v1 }
  0xcb   : > { %2923 = vmatpush3.bf16.msra.mxu0 %v3121_v38 }
  0xcc   : > { %2943 = vmatpush3.bf16.msra.mxu1 %v3122_v39  ;;  %2924 = vmatprep.subr.bf16.mxu0 %v3164_v1 }
  0xcd   : > { %2944 = vmatprep.subr.bf16.mxu1 %v3164_v1 }
  0xcf   : > { %2925 = vmatpush3.bf16.msra.mxu0 %v3123_v40 }
  0xd0   : > { %2945 = vmatpush3.bf16.msra.mxu1 %v3124_v41  ;;  %2926 = vmatprep.subr.bf16.mxu0 %v3164_v1 }
  0xd1   : > { %2946 = vmatprep.subr.bf16.mxu1 %v3164_v1 }
  0xd3   : > { %2927 = vmatpush3.bf16.msra.mxu0 %v3125_v42 }
  0xd4   : > { %2947 = vmatpush3.bf16.msra.mxu1 %v3126_v43  ;;  %2928 = vmatprep.subr.bf16.mxu0 %v3164_v1 }
  0xd5   : > { %2948 = vmatprep.subr.bf16.mxu1 %v3164_v1 }
  0xd7   : > { %2929 = vmatpush3.bf16.msra.mxu0 %v3127_v46 }
  0xd8   : > { %2949 = vmatpush3.bf16.msra.mxu1 %v3128_v48  ;;  %2930 = vmatprep.subr.bf16.mxu0 %v3164_v1 }
  0xd9   : > { %2950 = vmatprep.subr.bf16.mxu1 %v3164_v1 }
  0xdb   : > { %2931 = vmatpush3.bf16.msra.mxu0 %v3129_v50 }
  0xdc   : > { %2951 = vmatpush3.bf16.msra.mxu1 %v3130_v54  ;;  %2932 = vmatprep.subr.bf16.mxu0 %v3164_v1 }
  0xdd   : > { %2952 = vmatprep.subr.bf16.mxu1 %v3164_v1 }
  0xdf   : > { %2933 = vmatpush3.bf16.msra.mxu0 %v3131_v55 }
  0xe0   : > { %2953 = vmatpush3.bf16.msra.mxu1 %v3132_v59  ;;  %2934 = vmatprep.subr.bf16.mxu0 %v3164_v1 }
  0xe1   : > { %2954 = vmatprep.subr.bf16.mxu1 %v3164_v1 }
  0xe3   : > { %2935 = vmatpush3.bf16.msra.mxu0 %v3133_v60 }
  0xe4   : > { %2955 = vmatpush3.bf16.msra.mxu1 %v3134_v63  ;;  %2960 = vmatprep.subr.bf16.mxu0 %v3164_v1 }
  0xe5   : > { %2980 = vmatprep.subr.bf16.mxu1 %v3164_v1 }
  0xe6   : > { %2937 = vmatmul.mubr.bf16.vlgmr.msra.gmra.mrb[24].mxu0 %v1633_v0 }
  0xe7   : > { %2957 = vmatmul.mubr.bf16.vlgmr.msra.gmra.mrb[24].mxu1 %v2472_v2  ;;  %2961 = vmatpush3.bf16.msra.mxu0 %v3138_v3 }
  0xe8   : > { %2981 = vmatpush3.bf16.msra.mxu1 %v3139_v4  ;;  %2962 = vmatprep.subr.bf16.mxu0 %v3164_v1 }
  0xe9   : > { %2982 = vmatprep.subr.bf16.mxu1 %v3164_v1  ;;  %2976 = vmatprep.mubr.msk.bf16.mxu0 %vm3165_vm0, %v3164_v1 }
  0xea   : > { %2996 = vmatprep.mubr.msk.bf16.mxu1 %vm3165_vm0, %v3164_v1 }
  0xeb   : > { %2963 = vmatpush3.bf16.msra.mxu0 %v3140_v5 }
  0xec   : > { %2983 = vmatpush3.bf16.msra.mxu1 %v3141_v6  ;;  %2964 = vmatprep.subr.bf16.mxu0 %v3164_v1 }
  0xed   : > { %2984 = vmatprep.subr.bf16.mxu1 %v3164_v1 }
  0xef   : > { %2965 = vmatpush3.bf16.msra.mxu0 %v3142_v7 }
  0xf0   : > { %2985 = vmatpush3.bf16.msra.mxu1 %v3143_v8  ;;  %2966 = vmatprep.subr.bf16.mxu0 %v3164_v1 }
  0xf1   : > { %2986 = vmatprep.subr.bf16.mxu1 %v3164_v1 }
  0xf3   : > { %2967 = vmatpush3.bf16.msra.mxu0 %v3144_v9 }
  0xf4   : > { %2987 = vmatpush3.bf16.msra.mxu1 %v3145_v10  ;;  %2968 = vmatprep.subr.bf16.mxu0 %v3164_v1 }
  0xf5   : > { %2988 = vmatprep.subr.bf16.mxu1 %v3164_v1 }
  0xf7   : > { %2969 = vmatpush3.bf16.msra.mxu0 %v3146_v11 }
  0xf8   : > { %2989 = vmatpush3.bf16.msra.mxu1 %v3147_v13  ;;  %2970 = vmatprep.subr.bf16.mxu0 %v3164_v1 }
  0xf9   : > { %v303_v17 = vpop.f32.mrb[0].mxu0  ;;  %2990 = vmatprep.subr.bf16.mxu1 %v3164_v1 }
  0xfa   : > { %v396_v18 = vpop.f32.mrb[0].mxu1  ;;  %v2698_v19 = vpop.f32.mrb[1].mxu0 }
  0xfb   : > { %v397_v21 = vadd.f32 %v396_v18, %v303_v17  ;;  %v2718_v22 = vpop.f32.mrb[1].mxu1  ;;  %v306_v23 = vpop.f32.mrb[2].mxu0  ;;  %2971 = vmatpush3.bf16.msra.mxu0 %v3148_v15 }
  0xfc   : > { %v399_v25 = vpop.f32.mrb[2].mxu1  ;;  %2991 = vmatpush3.bf16.msra.mxu1 %v3149_v16  ;;  %v2699_v26 = vpop.f32.mrb[3].mxu0  ;;  %2972 = vmatprep.subr.bf16.mxu0 %v3164_v1 }
  0xfd   : > { %v400_v29 = vadd.f32 %v399_v25, %v306_v23  ;;  %v2719_v30 = vpop.f32.mrb[3].mxu1  ;;  %2992 = vmatprep.subr.bf16.mxu1 %v3164_v1 }
  0xff   : > { %2973 = vmatpush3.bf16.msra.mxu0 %v3150_v24 }
 0x100   : > { %2993 = vmatpush3.bf16.msra.mxu1 %v3151_v27  ;;  %2974 = vmatprep.subr.bf16.mxu0 %v3164_v1 }
 0x101   : > { %2994 = vmatprep.subr.bf16.mxu1 %v3164_v1 }
 0x103   : > { %2975 = vmatpush3.bf16.msra.mxu0 %v3152_v33 }
 0x104   : > { %2995 = vmatpush3.bf16.msra.mxu1 %v3153_v35 }
 0x106   : > { %2977 = vmatmul.mubr.bf16.vlgmr.msra.gmra.mrb[28].mxu0 %v1863_v36 }
 0x107   : > { %2997 = vmatmul.mubr.bf16.vlgmr.msra.gmra.mrb[28].mxu1 %v1977_v37 }
 0x119   : > { %v508_v38 = vpop.f32.mrb[4].mxu0 }
 0x11a   : > { %v515_v39 = vadd.f32 %v508_v38, %v397_v21  ;;  %v629_v40 = vpop.f32.mrb[4].mxu1  ;;  %v2738_v41 = vpop.f32.mrb[5].mxu0 }
 0x11b   : > { %v2758_v42 = vpop.f32.mrb[5].mxu1  ;;  %v511_v43 = vpop.f32.mrb[6].mxu0 }
 0x11c   : > { %v636_v44 = vadd.f32 %v629_v40, %v515_v39  ;;  %v516_v45 = vadd.f32 %v511_v43, %v400_v29  ;;  %v632_v46 = vpop.f32.mrb[6].mxu1  ;;  %v2739_v47 = vpop.f32.mrb[7].mxu0 }
 0x11d   : > { %v2759_v48 = vpop.f32.mrb[7].mxu1 }
 0x11e   : > { %v637_v49 = vadd.f32 %v632_v46, %v516_v45 }
 0x139   : > { %v753_v50 = vpop.f32.mrb[8].mxu0 }
 0x13a   : > { %v760_v1 = vadd.f32 %v753_v50, %v636_v44  ;;  %v867_v51 = vpop.f32.mrb[8].mxu1  ;;  %v2778_v52 = vpop.f32.mrb[9].mxu0  ;;  %v2531_v50 = vld [vmem:[%s3797_s2] ss:$0 sm:$0xff] }
 0x13b   : > { %v2798_v53 = vpop.f32.mrb[9].mxu1  ;;  %v756_v54 = vpop.f32.mrb[10].mxu0 }
 0x13c   : > { %v874_v55 = vadd.f32 %v867_v51, %v760_v1  ;;  %v761_v56 = vadd.f32 %v756_v54, %v637_v49  ;;  %v870_v57 = vpop.f32.mrb[10].mxu1  ;;  %v2779_v58 = vpop.f32.mrb[11].mxu0 }
 0x13d   : > { %v2799_v59 = vpop.f32.mrb[11].mxu1 }
 0x13e   : > { %v875_v60 = vadd.f32 %v870_v57, %v761_v56 }
 0x159   : > { %v1001_v61 = vpop.f32.mrb[12].mxu0 }
 0x15a   : > { %v1008_v62 = vadd.f32 %v1001_v61, %v874_v55  ;;  %v1111_v63 = vpop.f32.mrb[12].mxu1  ;;  %v2818_v0 = vpop.f32.mrb[13].mxu0 }
 0x15b   : > { %v2838_v2 = vpop.f32.mrb[13].mxu1  ;;  %v1004_v3 = vpop.f32.mrb[14].mxu0 }
 0x15c   : > { %v1118_v4 = vadd.f32 %v1111_v63, %v1008_v62  ;;  %v1009_v5 = vadd.f32 %v1004_v3, %v875_v60  ;;  %v1114_v6 = vpop.f32.mrb[14].mxu1  ;;  %v2819_v7 = vpop.f32.mrb[15].mxu0 }
 0x15d   : > { %v2839_v8 = vpop.f32.mrb[15].mxu1 }
 0x15e   : > { %v1119_v9 = vadd.f32 %v1114_v6, %v1009_v5 }
 0x179   : > { %v1228_v10 = vpop.f32.mrb[16].mxu0 }
 0x17a   : > { %v1235_v11 = vadd.f32 %v1228_v10, %v1118_v4  ;;  %v1349_v12 = vpop.f32.mrb[16].mxu1  ;;  %v2858_v13 = vpop.f32.mrb[17].mxu0 }
 0x17b   : > { %v2878_v14 = vpop.f32.mrb[17].mxu1  ;;  %v1231_v15 = vpop.f32.mrb[18].mxu0 }
 0x17c   : > { %v1356_v16 = vadd.f32 %v1349_v12, %v1235_v11  ;;  %v1236_v17 = vadd.f32 %v1231_v15, %v1119_v9  ;;  %v1352_v18 = vpop.f32.mrb[18].mxu1  ;;  %v2859_v19 = vpop.f32.mrb[19].mxu0 }
 0x17d   : > { %v2879_v20 = vpop.f32.mrb[19].mxu1 }
 0x17e   : > { %v1357_v21 = vadd.f32 %v1352_v18, %v1236_v17 }
 0x199   : > { %v1463_v22 = vpop.f32.mrb[20].mxu0 }
 0x19a   : > { %v1470_v23 = vadd.f32 %v1463_v22, %v1356_v16  ;;  %v1584_v24 = vpop.f32.mrb[20].mxu1  ;;  %v2898_v25 = vpop.f32.mrb[21].mxu0 }
 0x19b   : > { %v2918_v26 = vpop.f32.mrb[21].mxu1  ;;  %v1466_v27 = vpop.f32.mrb[22].mxu0 }
 0x19c   : > { %v1591_v28 = vadd.f32 %v1584_v24, %v1470_v23  ;;  %v1471_v29 = vadd.f32 %v1466_v27, %v1357_v21  ;;  %v1587_v30 = vpop.f32.mrb[22].mxu1  ;;  %v2899_v31 = vpop.f32.mrb[23].mxu0 }
 0x19d   : > { %v2919_v32 = vpop.f32.mrb[23].mxu1 }
 0x19e   : > { %v1592_v33 = vadd.f32 %v1587_v30, %v1471_v29 }
 0x1b9   : > { %v1717_v34 = vpop.f32.mrb[24].mxu0 }
 0x1ba   : > { %v1724_v35 = vadd.f32 %v1717_v34, %v1591_v28  ;;  %v1827_v36 = vpop.f32.mrb[24].mxu1  ;;  %v2938_v37 = vpop.f32.mrb[25].mxu0 }
 0x1bb   : > { %v2958_v38 = vpop.f32.mrb[25].mxu1  ;;  %v1720_v39 = vpop.f32.mrb[26].mxu0 }
 0x1bc   : > { %v1834_v40 = vadd.f32 %v1827_v36, %v1724_v35  ;;  %v1725_v41 = vadd.f32 %v1720_v39, %v1592_v33  ;;  %v1830_v42 = vpop.f32.mrb[26].mxu1  ;;  %v2939_v43 = vpop.f32.mrb[27].mxu0 }
 0x1bd   : > { %v2959_v44 = vpop.f32.mrb[27].mxu1 }
 0x1be   : > { %v1835_v45 = vadd.f32 %v1830_v42, %v1725_v41 }
 0x1d9   : > { %v1947_v46 = vpop.f32.mrb[28].mxu0 }
 0x1da   : > { %v1954_v47 = vadd.f32 %v1947_v46, %v1834_v40  ;;  %v2061_v48 = vpop.f32.mrb[28].mxu1  ;;  %v2978_v49 = vpop.f32.mrb[29].mxu0 }
 0x1db   : > { %v2998_v1 = vpop.f32.mrb[29].mxu1  ;;  %v1950_v51 = vpop.f32.mrb[30].mxu0 }
 0x1dc   : > { %v2068_v52 = vadd.f32 %v2061_v48, %v1954_v47  ;;  %v1955_v53 = vadd.f32 %v1950_v51, %v1835_v45  ;;  %v2064_v54 = vpop.f32.mrb[30].mxu1  ;;  %v2979_v55 = vpop.f32.mrb[31].mxu0 }
 0x1dd   : > { %v2999_v56 = vpop.f32.mrb[31].mxu1 }
 0x1de   : > { %v2077_v57 = vadd.f32 %v2531_v50, %v2068_v52  ;;  %v2069_v58 = vadd.f32 %v2064_v54, %v1955_v53 }
 0x1e0   : > { %2079 = vst [vmem:[%s170_s22] sm:$0xff] %v2077_v57  ;;  %v2078_v59 = vadd.f32 %v2531_v50, %v2069_v58 }
 0x1e2   : > { %2080 = vst [vmem:[%s170_s22 + $0x8] sm:$0x3] %v2078_v59 }
 0x1e3 PF: > { %s13_s12 = sadd.s32 1, %s3162_s12  }
 0x1e4   : > { %p10_p4 = scmp.ge.s32.totalorder %s13_s12, 4  }
 0x1e6   :  { %12 = sbr.rel (!%p10_p4) target bundleno = 1 (0x1), region = 77 }

</bundles_post_ra>
